<compile_context>
chip_gen: v5e
topology: v5e:2x2
jax: 0.10.0
libtpu: 0.0.40
codegen_flags: <defaults>
</compile_context>

<pallas_src>
import math
import jax
import jax.numpy as jnp
from jax import lax
from jax.experimental import pallas as pl
from jax.experimental.pallas import tpu as pltpu

# ----------------------------- small synthetic config -----------------------------
B = 2                  # batch (>=2 so ClipAdapter's squeeze(1) is a no-op, as in the module)
C_IN = 3               # image channels
IMG = 16               # spatial size
PATCH = 4              # conv1 kernel == stride
GRID = IMG // PATCH    # 4
NPATCH = GRID * GRID   # 16
L = NPATCH + 1         # tokens incl. CLS = 17
LP = 24                # padded token count (multiple of 8); keys >= L masked in softmax
D = 128                # transformer width   (stand-in for 896)
HEADS = 4
HD = D // HEADS        # 32
MLP = 4 * D            # 512
BNECK = 32             # adapter bottleneck  (stand-in for 226)
OUT_DIM = 64           # visual projection dim
N_BLOCKS = 24          # module hardcodes range(24)
FEATURES = (6, 12, 18, 24)
NF = len(FEATURES)
LN_EPS = 1e-5
LEAKY_SLOPE = 0.01     # nn.LeakyReLU default
ATTN_SCALE = 1.0 / math.sqrt(HD)
CKK = C_IN * PATCH * PATCH   # 48
CKK_PAD = 128                # pad patch-embed contraction dim to the lane width


# ----------------------------- in-kernel math helpers -----------------------------
def _ln(x, g, b):
    x = x.astype(jnp.float32)
    mu = jnp.mean(x, axis=-1, keepdims=True)
    xc = x - mu
    var = jnp.mean(xc * xc, axis=-1, keepdims=True)
    return xc * lax.rsqrt(var + LN_EPS) * g + b


def _l2n(x):
    # == F.normalize(x, dim=-1) (eps = 1e-12 on the norm)
    x = x.astype(jnp.float32)
    ss = jnp.sum(x * x, axis=-1, keepdims=True)
    return x * lax.rsqrt(jnp.maximum(ss, 1e-24))


def _leaky(x):
    return jnp.where(x >= 0.0, x, LEAKY_SLOPE * x)


_SQRT1_2 = 1.0 / math.sqrt(2.0)


def _erf(z):
    # TODO(synk): no native erf primitive is relied on inside the kernel; exact-GELU's
    # erf is evaluated with the Abramowitz&Stegun 7.1.26 polynomial (|err| < 1.5e-7 ~ f32 eps).
    a1, a2, a3, a4, a5 = 0.254829592, -0.284496736, 1.421413741, -1.453152027, 1.061405429
    p = 0.3275911
    sgn = jnp.where(z >= 0.0, 1.0, -1.0)
    az = jnp.abs(z)
    t = 1.0 / (1.0 + p * az)
    poly = t * (a1 + t * (a2 + t * (a3 + t * (a4 + t * a5))))
    return sgn * (1.0 - poly * jnp.exp(-az * az))


def _gelu_exact(x):
    # nn.GELU() default (erf form)
    return 0.5 * x * (1.0 + _erf(x * _SQRT1_2))


# ----------------------------- Pallas kernels -----------------------------
def _patch_embed_kernel(xp_ref, w_ref, o_ref):
    # conv1 (bias=False) realized as unfold (done in glue) + one MXU matmul
    o_ref[...] = jnp.dot(xp_ref[...].astype(jnp.bfloat16), w_ref[...],
                         preferred_element_type=jnp.float32).astype(o_ref.dtype)


def _blocks_kernel(flags_ref, slots_ref,                      # scalar prefetch (SMEM)
                   x_in_ref, lnpre_g_ref, lnpre_b_ref,
                   ln1_g_ref, ln1_b_ref, qkv_w_ref, qkv_b_ref,
                   outp_w_ref, outp_b_ref,
                   ln2_g_ref, ln2_b_ref,
                   mlp_w1_ref, mlp_b1_ref, mlp_w2_ref, mlp_b2_ref,
                   seg_w1_ref, seg_w2_ref, det_w1_ref, det_w2_ref,
                   x_out_ref,                                  # output (written at last step)
                   x_scr):                                     # VMEM carry across grid steps
    i = pl.program_id(0)

    # ---- grid step 0: ln_pre on the (padded) embedded tokens, into the carry ----
    @pl.when(i == 0)
    def _():
        x0 = x_in_ref[...].reshape(B * LP, D)
        x_scr[...] = _ln(x0, lnpre_g_ref[...], lnpre_b_ref[...]).reshape(B, LP, D)

    x = x_scr[...]                                             # (B, LP, D) f32

    # ---- attention branch: x + out_proj(MHA(ln_1(x))) ----
    h = _ln(x.reshape(B * LP, D), ln1_g_ref[0], ln1_b_ref[0]).astype(jnp.bfloat16)
    key_ok = lax.broadcasted_iota(jnp.int32, (B, LP, LP), 2) < L   # mask padded key rows
    attn = jnp.zeros((B * LP, D), jnp.float32)
    for hh in range(HEADS):                                    # static unroll over heads
        qh = (jnp.dot(h, qkv_w_ref[0, hh], preferred_element_type=jnp.float32)
              + qkv_b_ref[0, hh]).reshape(B, LP, HD)
        kh = (jnp.dot(h, qkv_w_ref[0, HEADS + hh], preferred_element_type=jnp.float32)
              + qkv_b_ref[0, HEADS + hh]).reshape(B, LP, HD)
        vh = (jnp.dot(h, qkv_w_ref[0, 2 * HEADS + hh], preferred_element_type=jnp.float32)
              + qkv_b_ref[0, 2 * HEADS + hh]).reshape(B, LP, HD)
        s = jnp.einsum("bqd,bkd->bqk", qh.astype(jnp.bfloat16), kh.astype(jnp.bfloat16),
                       preferred_element_type=jnp.float32) * ATTN_SCALE
        s = jnp.where(key_ok, s, -1e30)
        s = s - jnp.max(s, axis=-1, keepdims=True)
        p = jnp.exp(s)
        p = p * pl.reciprocal(jnp.sum(p, axis=-1, keepdims=True), approx=True)
        oh = jnp.einsum("bqk,bkd->bqd", p.astype(jnp.bfloat16), vh.astype(jnp.bfloat16),
                        preferred_element_type=jnp.float32)
        # out_proj accumulated per head (rows hh*HD:(hh+1)*HD of the torch weight)
        attn = attn + jnp.dot(oh.reshape(B * LP, HD).astype(jnp.bfloat16),
                              outp_w_ref[0, hh], preferred_element_type=jnp.float32)
    x = x + (attn + outp_b_ref[0]).reshape(B, LP, D)

    # ---- MLP branch: x + c_proj(GELU(c_fc(ln_2(x)))) ----
    h2 = _ln(x.reshape(B * LP, D), ln2_g_ref[0], ln2_b_ref[0]).astype(jnp.bfloat16)
    h2 = jnp.dot(h2, mlp_w1_ref[0], preferred_element_type=jnp.float32) + mlp_b1_ref[0]
    h2 = _gelu_exact(h2)
    h2 = jnp.dot(h2.astype(jnp.bfloat16), mlp_w2_ref[0],
                 preferred_element_type=jnp.float32) + mlp_b2_ref[0]
    x = x + h2.reshape(B, LP, D)
    x_scr[...] = x

    # ---- seg / det adapters: only the 4 feature blocks (flag-gated, slot-indexed weights) ----
    @pl.when(flags_ref[i] == 1)
    def _():
        xb = x.reshape(B * LP, D).astype(jnp.bfloat16)
        s1 = _leaky(jnp.dot(xb, seg_w1_ref[0], preferred_element_type=jnp.float32))
        s2 = _leaky(jnp.dot(s1.astype(jnp.bfloat16), seg_w2_ref[0],
                            preferred_element_type=jnp.float32))
        d1 = _leaky(jnp.dot(xb, det_w1_ref[0], preferred_element_type=jnp.float32))
        d2 = _leaky(jnp.dot(d1.astype(jnp.bfloat16), det_w2_ref[0],
                            preferred_element_type=jnp.float32))
        x_scr[...] = 0.8 * x + 0.1 * s2.reshape(B, LP, D) + 0.1 * d2.reshape(B, LP, D)
        # s1/d1 ("med" activations == seg/det_patch_tokens) never reach the module's
        # return value, so they are intentionally not materialized to HBM.

    @pl.when(i == N_BLOCKS - 1)
    def _():
        x_out_ref[...] = x_scr[...]


def _head_kernel(pooled_ref, tok_ref, g_ref, b_ref, proj_ref, gem_ref, clip_ref):
    # _global_pool('tok') pooled path: ln_post -> @ proj -> F.normalize
    pooled = _ln(pooled_ref[...], g_ref[...], b_ref[...])
    pooled = jnp.dot(pooled.astype(jnp.bfloat16), proj_ref[...],
                     preferred_element_type=jnp.float32)
    gem_ref[...] = _l2n(pooled).astype(gem_ref.dtype)
    # token path: F.normalize of the raw patch tokens
    clip_ref[...] = _l2n(tok_ref[...]).astype(clip_ref.dtype)


# ----------------------------- parameters (deterministic, synthetic) -----------------------------
def init_params(key):
    ks = iter(jax.random.split(key, 24))

    def nrm(shape, dtype=jnp.float32, scale=0.02):
        return (scale * jax.random.normal(next(ks), shape, jnp.float32)).astype(dtype)

    # Conv2d(3, D, PATCH, stride=PATCH, bias=False) -> (CKK, D) matmul weight, K padded to 128
    conv1 = nrm((D, C_IN, PATCH, PATCH))
    conv1_w = jnp.pad(conv1.reshape(D, CKK).T, ((0, CKK_PAD - CKK), (0, 0))).astype(jnp.bfloat16)

    # in_proj (D, 3D) -> per-(q/k/v, head) slabs (3*HEADS, D, HD) for lane-safe in-kernel indexing
    qkv_w = nrm((N_BLOCKS, D, 3 * D))
    qkv_w = qkv_w.reshape(N_BLOCKS, D, 3, HEADS, HD).transpose(0, 2, 3, 1, 4)
    qkv_w = qkv_w.reshape(N_BLOCKS, 3 * HEADS, D, HD).astype(jnp.bfloat16)
    qkv_b = nrm((N_BLOCKS, 3 * HEADS, 1, HD))
    # out_proj (D, D) stored (in,out) -> per-head row slabs (HEADS, HD, D)
    outp_w = nrm((N_BLOCKS, D, D)).reshape(N_BLOCKS, HEADS, HD, D).astype(jnp.bfloat16)

    blocks = {
        "ln1_g": jnp.ones((N_BLOCKS, 1, D), jnp.float32),
        "ln1_b": jnp.zeros((N_BLOCKS, 1, D), jnp.float32),
        "ln2_g": jnp.ones((N_BLOCKS, 1, D), jnp.float32),
        "ln2_b": jnp.zeros((N_BLOCKS, 1, D), jnp.float32),
        "qkv_w": qkv_w, "qkv_b": qkv_b,
        "outp_w": outp_w,
        "outp_b": nrm((N_BLOCKS, 1, D)),
        "mlp_w1": nrm((N_BLOCKS, D, MLP), jnp.bfloat16),
        "mlp_b1": nrm((N_BLOCKS, 1, MLP)),
        "mlp_w2": nrm((N_BLOCKS, MLP, D), jnp.bfloat16),
        "mlp_b2": nrm((N_BLOCKS, 1, D)),
    }

    # 4 seg + 4 det adapters (one per feature layer), Linear(bias=False) weights, (in,out) layout
    seg_w1 = nrm((NF, D, BNECK), jnp.bfloat16)
    seg_w2 = nrm((NF, BNECK, D), jnp.bfloat16)
    det_w1 = nrm((NF, D, BNECK), jnp.bfloat16)
    det_w2 = nrm((NF, BNECK, D), jnp.bfloat16)

    # scalar-prefetch tables: which blocks run adapters, and which adapter slot to stage
    flags = jnp.array([1 if (i + 1) in FEATURES else 0 for i in range(N_BLOCKS)], jnp.int32)
    slot_list, cur = [], 0
    for i in range(N_BLOCKS):
        if (i + 1) in FEATURES:
            cur = FEATURES.index(i + 1)
        slot_list.append(cur)        # constant between feature blocks -> weights re-DMAed 4x only
    slots = jnp.array(slot_list, jnp.int32)

    return {
        "conv1_w": conv1_w,
        "class_emb": nrm((D,)),
        "pos_emb": nrm((L, D)),
        "ln_pre_g": jnp.ones((1, D), jnp.float32), "ln_pre_b": jnp.zeros((1, D), jnp.float32),
        "ln_post_g": jnp.ones((1, D), jnp.float32), "ln_post_b": jnp.zeros((1, D), jnp.float32),
        "proj": nrm((D, OUT_DIM), jnp.bfloat16),
        "blocks": blocks,
        "seg_w1": seg_w1, "seg_w2": seg_w2, "det_w1": det_w1, "det_w2": det_w2,
        "flags": flags, "slots": slots,
    }


# ----------------------------- forward -----------------------------
def forward(params, img):
    blk = params["blocks"]

    # --- conv1 patch embed: unfold (glue) + one Pallas matmul ---
    xp = img.reshape(B, C_IN, GRID, PATCH, GRID, PATCH)
    xp = xp.transpose(0, 2, 4, 1, 3, 5).reshape(B * NPATCH, CKK)
    xp = jnp.pad(xp, ((0, 0), (0, CKK_PAD - CKK)))
    patches = pl.pallas_call(
        _patch_embed_kernel,
        out_shape=jax.ShapeDtypeStruct((B * NPATCH, D), jnp.float32),
    )(xp, params["conv1_w"])

    # --- class token + positional embedding; pad tokens 17 -> 24 (one-time glue) ---
    cls = jnp.broadcast_to(params["class_emb"][None, None, :], (B, 1, D))
    x = jnp.concatenate([cls, patches.reshape(B, NPATCH, D)], axis=1) + params["pos_emb"][None]
    x = jnp.pad(x, ((0, 0), (0, LP - L), (0, 0)))   # padded rows only ever act as masked keys
    # patch_dropout is identity at inference; ln_pre runs inside grid step 0 of the block kernel.

    # --- 24 fused resblocks: single pallas_call, grid over blocks, pipelined per-block weights ---
    grid_spec = pltpu.PrefetchScalarGridSpec(
        num_scalar_prefetch=2,               # (flags, adapter slot table) -> SMEM
        grid=(N_BLOCKS,),
        in_specs=[
            pl.BlockSpec((B, LP, D), lambda i, f, s: (0, 0, 0)),               # embedded tokens
            pl.BlockSpec((1, D), lambda i, f, s: (0, 0)),                      # ln_pre g
            pl.BlockSpec((1, D), lambda i, f, s: (0, 0)),                      # ln_pre b
            pl.BlockSpec((1, 1, D), lambda i, f, s: (i, 0, 0)),                # ln1 g
            pl.BlockSpec((1, 1, D), lambda i, f, s: (i, 0, 0)),                # ln1 b
            pl.BlockSpec((1, 3 * HEADS, D, HD), lambda i, f, s: (i, 0, 0, 0)),  # qkv w
            pl.BlockSpec((1, 3 * HEADS, 1, HD), lambda i, f, s: (i, 0, 0, 0)),  # qkv b
            pl.BlockSpec((1, HEADS, HD, D), lambda i, f, s: (i, 0, 0, 0)),      # out_proj w
            pl.BlockSpec((1, 1, D), lambda i, f, s: (i, 0, 0)),                # out_proj b
            pl.BlockSpec((1, 1, D), lambda i, f, s: (i, 0, 0)),                # ln2 g
            pl.BlockSpec((1, 1, D), lambda i, f, s: (i, 0, 0)),                # ln2 b
            pl.BlockSpec((1, D, MLP), lambda i, f, s: (i, 0, 0)),              # mlp w1
            pl.BlockSpec((1, 1, MLP), lambda i, f, s: (i, 0, 0)),              # mlp b1
            pl.BlockSpec((1, MLP, D), lambda i, f, s: (i, 0, 0)),              # mlp w2
            pl.BlockSpec((1, 1, D), lambda i, f, s: (i, 0, 0)),                # mlp b2
            pl.BlockSpec((1, D, BNECK), lambda i, f, s: (s[i], 0, 0)),         # seg w1 (slot)
            pl.BlockSpec((1, BNECK, D), lambda i, f, s: (s[i], 0, 0)),         # seg w2 (slot)
            pl.BlockSpec((1, D, BNECK), lambda i, f, s: (s[i], 0, 0)),         # det w1 (slot)
            pl.BlockSpec((1, BNECK, D), lambda i, f, s: (s[i], 0, 0)),         # det w2 (slot)
        ],
        out_specs=pl.BlockSpec((B, LP, D), lambda i, f, s: (0, 0, 0)),
        scratch_shapes=[pltpu.VMEM((B, LP, D), jnp.float32)],
    )
    # TODO(synk): the module's attn_out / out_attn accumulation (block 12) and the seg/det
    # patch-token lists are computed but never returned (and the out_attn loop indexes
    # attn_out[i] for i>0, which faults); along with its debug print()s they are skipped here.
    x = pl.pallas_call(
        _blocks_kernel,
        grid_spec=grid_spec,
        out_shape=jax.ShapeDtypeStruct((B, LP, D), jnp.float32),
        compiler_params=pltpu.CompilerParams(dimension_semantics=("arbitrary",)),
    )(params["flags"], params["slots"],
      x, params["ln_pre_g"], params["ln_pre_b"],
      blk["ln1_g"], blk["ln1_b"], blk["qkv_w"], blk["qkv_b"],
      blk["outp_w"], blk["outp_b"], blk["ln2_g"], blk["ln2_b"],
      blk["mlp_w1"], blk["mlp_b1"], blk["mlp_w2"], blk["mlp_b2"],
      params["seg_w1"], params["seg_w2"], params["det_w1"], params["det_w2"])

    # --- head: _global_pool('tok'), ln_post, proj, F.normalize (one fused kernel) ---
    pooled = x[:, 0, :]                                    # (B, D)
    tokens = x[:, 1:L, :].reshape(B * (L - 1), D)          # drop CLS and padding rows
    feats_gem, feats_clip = pl.pallas_call(
        _head_kernel,
        out_shape=(jax.ShapeDtypeStruct((B, OUT_DIM), jnp.float32),
                   jax.ShapeDtypeStruct((B * (L - 1), D), jnp.float32)),
    )(pooled, tokens, params["ln_post_g"], params["ln_post_b"], params["proj"])
    return feats_gem, feats_clip.reshape(B, L - 1, D)


# ----------------------------- main -----------------------------
if __name__ == "__main__":
    key = jax.random.PRNGKey(0)
    kp, kx = jax.random.split(key)
    params = init_params(kp)
    img = jax.random.normal(kx, (B, C_IN, IMG, IMG), jnp.float32)   # NCHW, like PyTorch

    fwd = jax.jit(forward)
    feats_gem, feats_clip = fwd(params, img)
    jax.block_until_ready(feats_gem)
    jax.block_until_ready(feats_clip)

    assert feats_gem.shape == (B, OUT_DIM)
    assert feats_clip.shape == (B, L - 1, D)
    assert bool(jnp.all(jnp.isfinite(feats_gem))) and bool(jnp.all(jnp.isfinite(feats_clip)))
    print("KERNEL_OK")
</pallas_src>

<mosaic_0001>
module attributes {stable_mosaic.version = 11 : i64} {
  func.func @_blocks_kernel(%arg0: i32, %arg1: memref<24xi32, #tpu.memory_space<smem>>, %arg2: memref<24xi32, #tpu.memory_space<smem>>, %arg3: memref<2x24x128xf32, #tpu.memory_space<vmem>>, %arg4: memref<1x128xf32, #tpu.memory_space<vmem>>, %arg5: memref<1x128xf32, #tpu.memory_space<vmem>>, %arg6: memref<1x1x128xf32, #tpu.memory_space<vmem>>, %arg7: memref<1x1x128xf32, #tpu.memory_space<vmem>>, %arg8: memref<1x12x128x32xbf16, #tpu.memory_space<vmem>>, %arg9: memref<1x12x1x32xf32, #tpu.memory_space<vmem>>, %arg10: memref<1x4x32x128xbf16, #tpu.memory_space<vmem>>, %arg11: memref<1x1x128xf32, #tpu.memory_space<vmem>>, %arg12: memref<1x1x128xf32, #tpu.memory_space<vmem>>, %arg13: memref<1x1x128xf32, #tpu.memory_space<vmem>>, %arg14: memref<1x128x512xbf16, #tpu.memory_space<vmem>>, %arg15: memref<1x1x512xf32, #tpu.memory_space<vmem>>, %arg16: memref<1x512x128xbf16, #tpu.memory_space<vmem>>, %arg17: memref<1x1x128xf32, #tpu.memory_space<vmem>>, %arg18: memref<1x128x32xbf16, #tpu.memory_space<vmem>>, %arg19: memref<1x32x128xbf16, #tpu.memory_space<vmem>>, %arg20: memref<1x128x32xbf16, #tpu.memory_space<vmem>>, %arg21: memref<1x32x128xbf16, #tpu.memory_space<vmem>>, %arg22: memref<2x24x128xf32, #tpu.memory_space<vmem>>, %arg23: memref<2x24x128xf32, #tpu.memory_space<vmem>>) attributes {dimension_semantics = [#tpu.dimension_semantics<arbitrary>], iteration_bounds = array<i64: 24>, scalar_prefetch = 2 : i64, scratch_operands = 1 : i64, tpu.core_type = #tpu.core_type<tc>, window_params = [{pipeline_mode = #tpu.pipeline_mode<synchronous>, transform_indices = @transform_0, window_bounds = array<i64: 2, 24, 128>}, {pipeline_mode = #tpu.pipeline_mode<synchronous>, transform_indices = @transform_1, window_bounds = array<i64: 1, 128>}, {pipeline_mode = #tpu.pipeline_mode<synchronous>, transform_indices = @transform_2, window_bounds = array<i64: 1, 128>}, {transform_indices = @transform_3, window_bounds = array<i64: 1, 1, 128>}, {transform_indices = @transform_4, window_bounds = array<i64: 1, 1, 128>}, {transform_indices = @transform_5, window_bounds = array<i64: 1, 12, 128, 32>}, {transform_indices = @transform_6, window_bounds = array<i64: 1, 12, 1, 32>}, {transform_indices = @transform_7, window_bounds = array<i64: 1, 4, 32, 128>}, {transform_indices = @transform_8, window_bounds = array<i64: 1, 1, 128>}, {transform_indices = @transform_9, window_bounds = array<i64: 1, 1, 128>}, {transform_indices = @transform_10, window_bounds = array<i64: 1, 1, 128>}, {transform_indices = @transform_11, window_bounds = array<i64: 1, 128, 512>}, {transform_indices = @transform_12, window_bounds = array<i64: 1, 1, 512>}, {transform_indices = @transform_13, window_bounds = array<i64: 1, 512, 128>}, {transform_indices = @transform_14, window_bounds = array<i64: 1, 1, 128>}, {transform_indices = @transform_15, window_bounds = array<i64: 1, 128, 32>}, {transform_indices = @transform_16, window_bounds = array<i64: 1, 32, 128>}, {transform_indices = @transform_17, window_bounds = array<i64: 1, 128, 32>}, {transform_indices = @transform_18, window_bounds = array<i64: 1, 32, 128>}, {pipeline_mode = #tpu.pipeline_mode<synchronous>, transform_indices = @transform_19, window_bounds = array<i64: 2, 24, 128>}]} {
    %c0_i32 = arith.constant 0 : i32
    %0 = arith.cmpi eq, %arg0, %c0_i32 : i32
    %1 = arith.extui %0 : i1 to i32
    %c0_i32_0 = arith.constant 0 : i32
    %2 = arith.cmpi ne, %1, %c0_i32_0 : i32
    scf.if %2 {
      %c0_204 = arith.constant 0 : index
      %c0_205 = arith.constant 0 : index
      %c0_206 = arith.constant 0 : index
      %333 = vector.load %arg3[%c0_204, %c0_205, %c0_206] : memref<2x24x128xf32, #tpu.memory_space<vmem>>, vector<2x24x128xf32>
      %334 = vector.shape_cast %333 : vector<2x24x128xf32> to vector<48x128xf32>
      %c0_207 = arith.constant 0 : index
      %c0_208 = arith.constant 0 : index
      %335 = vector.load %arg4[%c0_207, %c0_208] : memref<1x128xf32, #tpu.memory_space<vmem>>, vector<1x128xf32>
      %c0_209 = arith.constant 0 : index
      %c0_210 = arith.constant 0 : index
      %336 = vector.load %arg5[%c0_209, %c0_210] : memref<1x128xf32, #tpu.memory_space<vmem>>, vector<1x128xf32>
      %cst_211 = arith.constant dense<0.000000e+00> : vector<48xf32>
      %337 = vector.multi_reduction <add>, %334, %cst_211 [1] : vector<48x128xf32> to vector<48xf32>
      %338 = vector.shape_cast %337 : vector<48xf32> to vector<48x1xf32>
      %cst_212 = arith.constant 1.280000e+02 : f32
      %339 = vector.broadcast %cst_212 : f32 to vector<48x1xf32>
      %340 = arith.divf %338, %339 : vector<48x1xf32>
      %341 = vector.broadcast %340 : vector<48x1xf32> to vector<48x128xf32>
      %342 = arith.subf %334, %341 : vector<48x128xf32>
      %343 = arith.mulf %342, %342 : vector<48x128xf32>
      %cst_213 = arith.constant dense<0.000000e+00> : vector<48xf32>
      %344 = vector.multi_reduction <add>, %343, %cst_213 [1] : vector<48x128xf32> to vector<48xf32>
      %345 = vector.shape_cast %344 : vector<48xf32> to vector<48x1xf32>
      %cst_214 = arith.constant 1.280000e+02 : f32
      %346 = vector.broadcast %cst_214 : f32 to vector<48x1xf32>
      %347 = arith.divf %345, %346 : vector<48x1xf32>
      %cst_215 = arith.constant 9.99999974E-6 : f32
      %348 = vector.broadcast %cst_215 : f32 to vector<48x1xf32>
      %349 = arith.addf %347, %348 : vector<48x1xf32>
      %350 = math.rsqrt %349 : vector<48x1xf32>
      %351 = vector.broadcast %350 : vector<48x1xf32> to vector<48x128xf32>
      %352 = arith.mulf %342, %351 : vector<48x128xf32>
      %353 = vector.broadcast %335 : vector<1x128xf32> to vector<48x128xf32>
      %354 = arith.mulf %352, %353 : vector<48x128xf32>
      %355 = vector.broadcast %336 : vector<1x128xf32> to vector<48x128xf32>
      %356 = arith.addf %354, %355 : vector<48x128xf32>
      %357 = vector.shape_cast %356 : vector<48x128xf32> to vector<2x24x128xf32>
      %c0_216 = arith.constant 0 : index
      %c0_217 = arith.constant 0 : index
      %c0_218 = arith.constant 0 : index
      %358 = vector.load %arg23[%c0_216, %c0_217, %c0_218] : memref<2x24x128xf32, #tpu.memory_space<vmem>>, vector<2x24x128xf32>
      tpu.vector_store %arg23[%c0_216, %c0_217, %c0_218], %357 {strides = array<i32>} : memref<2x24x128xf32, #tpu.memory_space<vmem>>, vector<2x24x128xf32>,
    } else {
    }
    %c0 = arith.constant 0 : index
    %c0_1 = arith.constant 0 : index
    %c0_2 = arith.constant 0 : index
    %3 = vector.load %arg23[%c0, %c0_1, %c0_2] : memref<2x24x128xf32, #tpu.memory_space<vmem>>, vector<2x24x128xf32>
    %4 = vector.shape_cast %3 : vector<2x24x128xf32> to vector<48x128xf32>
    %c0_3 = arith.constant 0 : index
    %c0_4 = arith.constant 0 : index
    %c0_5 = arith.constant 0 : index
    %5 = vector.load %arg6[%c0_3, %c0_4, %c0_5] : memref<1x1x128xf32, #tpu.memory_space<vmem>>, vector<1x1x128xf32>
    %6 = vector.shape_cast %5 : vector<1x1x128xf32> to vector<1x128xf32>
    %c0_6 = arith.constant 0 : index
    %c0_7 = arith.constant 0 : index
    %c0_8 = arith.constant 0 : index
    %7 = vector.load %arg7[%c0_6, %c0_7, %c0_8] : memref<1x1x128xf32, #tpu.memory_space<vmem>>, vector<1x1x128xf32>
    %8 = vector.shape_cast %7 : vector<1x1x128xf32> to vector<1x128xf32>
    %cst = arith.constant dense<0.000000e+00> : vector<48xf32>
    %9 = vector.multi_reduction <add>, %4, %cst [1] : vector<48x128xf32> to vector<48xf32>
    %10 = vector.shape_cast %9 : vector<48xf32> to vector<48x1xf32>
    %cst_9 = arith.constant 1.280000e+02 : f32
    %11 = vector.broadcast %cst_9 : f32 to vector<48x1xf32>
    %12 = arith.divf %10, %11 : vector<48x1xf32>
    %13 = vector.broadcast %12 : vector<48x1xf32> to vector<48x128xf32>
    %14 = arith.subf %4, %13 : vector<48x128xf32>
    %15 = arith.mulf %14, %14 : vector<48x128xf32>
    %cst_10 = arith.constant dense<0.000000e+00> : vector<48xf32>
    %16 = vector.multi_reduction <add>, %15, %cst_10 [1] : vector<48x128xf32> to vector<48xf32>
    %17 = vector.shape_cast %16 : vector<48xf32> to vector<48x1xf32>
    %cst_11 = arith.constant 1.280000e+02 : f32
    %18 = vector.broadcast %cst_11 : f32 to vector<48x1xf32>
    %19 = arith.divf %17, %18 : vector<48x1xf32>
    %cst_12 = arith.constant 9.99999974E-6 : f32
    %20 = vector.broadcast %cst_12 : f32 to vector<48x1xf32>
    %21 = arith.addf %19, %20 : vector<48x1xf32>
    %22 = math.rsqrt %21 : vector<48x1xf32>
    %23 = vector.broadcast %22 : vector<48x1xf32> to vector<48x128xf32>
    %24 = arith.mulf %14, %23 : vector<48x128xf32>
    %25 = vector.broadcast %6 : vector<1x128xf32> to vector<48x128xf32>
    %26 = arith.mulf %24, %25 : vector<48x128xf32>
    %27 = vector.broadcast %8 : vector<1x128xf32> to vector<48x128xf32>
    %28 = arith.addf %26, %27 : vector<48x128xf32>
    %29 = arith.truncf %28 : vector<48x128xf32> to vector<48x128xbf16>
    %30 = tpu.iota {dimensions = array<i32: 2>} : vector<2x24x24xi32>
    %c17_i32 = arith.constant 17 : i32
    %31 = vector.broadcast %c17_i32 : i32 to vector<2x24x24xi32>
    %32 = arith.cmpi slt, %30, %31 : vector<2x24x24xi32>
    %cst_13 = arith.constant 0.000000e+00 : f32
    %33 = vector.broadcast %cst_13 : f32 to vector<48x128xf32>
    %c0_14 = arith.constant 0 : index
    %c0_15 = arith.constant 0 : index
    %c0_16 = arith.constant 0 : index
    %c0_17 = arith.constant 0 : index
    %34 = vector.load %arg8[%c0_14, %c0_15, %c0_16, %c0_17] : memref<1x12x128x32xbf16, #tpu.memory_space<vmem>>, vector<1x1x128x32xbf16>
    %35 = vector.shape_cast %34 : vector<1x1x128x32xbf16> to vector<128x32xbf16>
    %cst_18 = arith.constant dense<0.000000e+00> : vector<48x32xf32>
    %36 = tpu.matmul %29, %35, %cst_18 {dimension_numbers = #tpu.dot_dimension_numbers<[1], [0], [0], [1], [0, 0, 1, 1], [], []>} : vector<48x128xbf16>, vector<128x32xbf16>, vector<48x32xf32> -> vector<48x32xf32>
    %c0_19 = arith.constant 0 : index
    %c0_20 = arith.constant 0 : index
    %c0_21 = arith.constant 0 : index
    %c0_22 = arith.constant 0 : index
    %37 = vector.load %arg9[%c0_19, %c0_20, %c0_21, %c0_22] : memref<1x12x1x32xf32, #tpu.memory_space<vmem>>, vector<1x1x1x32xf32>
    %38 = vector.shape_cast %37 : vector<1x1x1x32xf32> to vector<1x32xf32>
    %39 = vector.broadcast %38 : vector<1x32xf32> to vector<48x32xf32>
    %40 = arith.addf %36, %39 : vector<48x32xf32>
    %41 = vector.shape_cast %40 : vector<48x32xf32> to vector<2x24x32xf32>
    %c0_23 = arith.constant 0 : index
    %c4 = arith.constant 4 : index
    %c0_24 = arith.constant 0 : index
    %c0_25 = arith.constant 0 : index
    %42 = vector.load %arg8[%c0_23, %c4, %c0_24, %c0_25] : memref<1x12x128x32xbf16, #tpu.memory_space<vmem>>, vector<1x1x128x32xbf16>
    %43 = vector.shape_cast %42 : vector<1x1x128x32xbf16> to vector<128x32xbf16>
    %cst_26 = arith.constant dense<0.000000e+00> : vector<48x32xf32>
    %44 = tpu.matmul %29, %43, %cst_26 {dimension_numbers = #tpu.dot_dimension_numbers<[1], [0], [0], [1], [0, 0, 1, 1], [], []>} : vector<48x128xbf16>, vector<128x32xbf16>, vector<48x32xf32> -> vector<48x32xf32>
    %c0_27 = arith.constant 0 : index
    %c4_28 = arith.constant 4 : index
    %c0_29 = arith.constant 0 : index
    %c0_30 = arith.constant 0 : index
    %45 = vector.load %arg9[%c0_27, %c4_28, %c0_29, %c0_30] : memref<1x12x1x32xf32, #tpu.memory_space<vmem>>, vector<1x1x1x32xf32>
    %46 = vector.shape_cast %45 : vector<1x1x1x32xf32> to vector<1x32xf32>
    %47 = vector.broadcast %46 : vector<1x32xf32> to vector<48x32xf32>
    %48 = arith.addf %44, %47 : vector<48x32xf32>
    %49 = vector.shape_cast %48 : vector<48x32xf32> to vector<2x24x32xf32>
    %c0_31 = arith.constant 0 : index
    %c8 = arith.constant 8 : index
    %c0_32 = arith.constant 0 : index
    %c0_33 = arith.constant 0 : index
    %50 = vector.load %arg8[%c0_31, %c8, %c0_32, %c0_33] : memref<1x12x128x32xbf16, #tpu.memory_space<vmem>>, vector<1x1x128x32xbf16>
    %51 = vector.shape_cast %50 : vector<1x1x128x32xbf16> to vector<128x32xbf16>
    %cst_34 = arith.constant dense<0.000000e+00> : vector<48x32xf32>
    %52 = tpu.matmul %29, %51, %cst_34 {dimension_numbers = #tpu.dot_dimension_numbers<[1], [0], [0], [1], [0, 0, 1, 1], [], []>} : vector<48x128xbf16>, vector<128x32xbf16>, vector<48x32xf32> -> vector<48x32xf32>
    %c0_35 = arith.constant 0 : index
    %c8_36 = arith.constant 8 : index
    %c0_37 = arith.constant 0 : index
    %c0_38 = arith.constant 0 : index
    %53 = vector.load %arg9[%c0_35, %c8_36, %c0_37, %c0_38] : memref<1x12x1x32xf32, #tpu.memory_space<vmem>>, vector<1x1x1x32xf32>
    %54 = vector.shape_cast %53 : vector<1x1x1x32xf32> to vector<1x32xf32>
    %55 = vector.broadcast %54 : vector<1x32xf32> to vector<48x32xf32>
    %56 = arith.addf %52, %55 : vector<48x32xf32>
    %57 = vector.shape_cast %56 : vector<48x32xf32> to vector<2x24x32xf32>
    %58 = arith.truncf %41 : vector<2x24x32xf32> to vector<2x24x32xbf16>
    %59 = arith.truncf %49 : vector<2x24x32xf32> to vector<2x24x32xbf16>
    "tpu.trace_start"() <{level = 10 : i32, message = "bqd,bkd->bqk"}> : () -> ()
    %cst_39 = arith.constant dense<0.000000e+00> : vector<2x24x24xf32>
    %60 = tpu.matmul %58, %59, %cst_39 {dimension_numbers = #tpu.dot_dimension_numbers<[2], [2], [1], [1], [0, 0, 0, 1, 1, 1], [0], [0]>} : vector<2x24x32xbf16>, vector<2x24x32xbf16>, vector<2x24x24xf32> -> vector<2x24x24xf32>
    "tpu.trace_stop"() : () -> ()
    %cst_40 = arith.constant 0.176776692 : f32
    %61 = vector.broadcast %cst_40 : f32 to vector<2x24x24xf32>
    %62 = arith.mulf %60, %61 : vector<2x24x24xf32>
    %cst_41 = arith.constant -1.000000e+30 : f32
    %63 = vector.broadcast %cst_41 : f32 to vector<2x24x24xf32>
    %64 = arith.select %32, %62, %63 : vector<2x24x24xi1>, vector<2x24x24xf32>
    %cst_42 = arith.constant dense<0xFF800000> : vector<2x24xf32>
    %65 = vector.multi_reduction <maximumf>, %64, %cst_42 [2] : vector<2x24x24xf32> to vector<2x24xf32>
    %66 = vector.shape_cast %65 : vector<2x24xf32> to vector<2x24x1xf32>
    %67 = vector.broadcast %66 : vector<2x24x1xf32> to vector<2x24x24xf32>
    %68 = arith.subf %64, %67 : vector<2x24x24xf32>
    %69 = math.exp %68 : vector<2x24x24xf32>
    %cst_43 = arith.constant dense<0.000000e+00> : vector<2x24xf32>
    %70 = vector.multi_reduction <add>, %69, %cst_43 [2] : vector<2x24x24xf32> to vector<2x24xf32>
    %71 = vector.shape_cast %70 : vector<2x24xf32> to vector<2x24x1xf32>
    %72 = tpu.reciprocal %71 {approx = true} : vector<2x24x1xf32> -> vector<2x24x1xf32>
    %73 = vector.broadcast %72 : vector<2x24x1xf32> to vector<2x24x24xf32>
    %74 = arith.mulf %69, %73 : vector<2x24x24xf32>
    %75 = arith.truncf %74 : vector<2x24x24xf32> to vector<2x24x24xbf16>
    %76 = arith.truncf %57 : vector<2x24x32xf32> to vector<2x24x32xbf16>
    "tpu.trace_start"() <{level = 10 : i32, message = "bqk,bkd->bqd"}> : () -> ()
    %cst_44 = arith.constant dense<0.000000e+00> : vector<2x24x32xf32>
    %77 = tpu.matmul %75, %76, %cst_44 {dimension_numbers = #tpu.dot_dimension_numbers<[2], [1], [1], [2], [0, 0, 0, 1, 1, 2], [0], [0]>} : vector<2x24x24xbf16>, vector<2x24x32xbf16>, vector<2x24x32xf32> -> vector<2x24x32xf32>
    "tpu.trace_stop"() : () -> ()
    %78 = vector.shape_cast %77 : vector<2x24x32xf32> to vector<48x32xf32>
    %79 = arith.truncf %78 : vector<48x32xf32> to vector<48x32xbf16>
    %c0_45 = arith.constant 0 : index
    %c0_46 = arith.constant 0 : index
    %c0_47 = arith.constant 0 : index
    %c0_48 = arith.constant 0 : index
    %80 = vector.load %arg10[%c0_45, %c0_46, %c0_47, %c0_48] : memref<1x4x32x128xbf16, #tpu.memory_space<vmem>>, vector<1x1x32x128xbf16>
    %81 = vector.shape_cast %80 : vector<1x1x32x128xbf16> to vector<32x128xbf16>
    %cst_49 = arith.constant dense<0.000000e+00> : vector<48x128xf32>
    %82 = tpu.matmul %79, %81, %cst_49 {dimension_numbers = #tpu.dot_dimension_numbers<[1], [0], [0], [1], [0, 0, 1, 1], [], []>} : vector<48x32xbf16>, vector<32x128xbf16>, vector<48x128xf32> -> vector<48x128xf32>
    %83 = arith.addf %33, %82 : vector<48x128xf32>
    %c0_50 = arith.constant 0 : index
    %c1 = arith.constant 1 : index
    %c0_51 = arith.constant 0 : index
    %c0_52 = arith.constant 0 : index
    %84 = vector.load %arg8[%c0_50, %c1, %c0_51, %c0_52] : memref<1x12x128x32xbf16, #tpu.memory_space<vmem>>, vector<1x1x128x32xbf16>
    %85 = vector.shape_cast %84 : vector<1x1x128x32xbf16> to vector<128x32xbf16>
    %cst_53 = arith.constant dense<0.000000e+00> : vector<48x32xf32>
    %86 = tpu.matmul %29, %85, %cst_53 {dimension_numbers = #tpu.dot_dimension_numbers<[1], [0], [0], [1], [0, 0, 1, 1], [], []>} : vector<48x128xbf16>, vector<128x32xbf16>, vector<48x32xf32> -> vector<48x32xf32>
    %c0_54 = arith.constant 0 : index
    %c1_55 = arith.constant 1 : index
    %c0_56 = arith.constant 0 : index
    %c0_57 = arith.constant 0 : index
    %87 = vector.load %arg9[%c0_54, %c1_55, %c0_56, %c0_57] : memref<1x12x1x32xf32, #tpu.memory_space<vmem>>, vector<1x1x1x32xf32>
    %88 = vector.shape_cast %87 : vector<1x1x1x32xf32> to vector<1x32xf32>
    %89 = vector.broadcast %88 : vector<1x32xf32> to vector<48x32xf32>
    %90 = arith.addf %86, %89 : vector<48x32xf32>
    %91 = vector.shape_cast %90 : vector<48x32xf32> to vector<2x24x32xf32>
    %c0_58 = arith.constant 0 : index
    %c5 = arith.constant 5 : index
    %c0_59 = arith.constant 0 : index
    %c0_60 = arith.constant 0 : index
    %92 = vector.load %arg8[%c0_58, %c5, %c0_59, %c0_60] : memref<1x12x128x32xbf16, #tpu.memory_space<vmem>>, vector<1x1x128x32xbf16>
    %93 = vector.shape_cast %92 : vector<1x1x128x32xbf16> to vector<128x32xbf16>
    %cst_61 = arith.constant dense<0.000000e+00> : vector<48x32xf32>
    %94 = tpu.matmul %29, %93, %cst_61 {dimension_numbers = #tpu.dot_dimension_numbers<[1], [0], [0], [1], [0, 0, 1, 1], [], []>} : vector<48x128xbf16>, vector<128x32xbf16>, vector<48x32xf32> -> vector<48x32xf32>
    %c0_62 = arith.constant 0 : index
    %c5_63 = arith.constant 5 : index
    %c0_64 = arith.constant 0 : index
    %c0_65 = arith.constant 0 : index
    %95 = vector.load %arg9[%c0_62, %c5_63, %c0_64, %c0_65] : memref<1x12x1x32xf32, #tpu.memory_space<vmem>>, vector<1x1x1x32xf32>
    %96 = vector.shape_cast %95 : vector<1x1x1x32xf32> to vector<1x32xf32>
    %97 = vector.broadcast %96 : vector<1x32xf32> to vector<48x32xf32>
    %98 = arith.addf %94, %97 : vector<48x32xf32>
    %99 = vector.shape_cast %98 : vector<48x32xf32> to vector<2x24x32xf32>
    %c0_66 = arith.constant 0 : index
    %c9 = arith.constant 9 : index
    %c0_67 = arith.constant 0 : index
    %c0_68 = arith.constant 0 : index
    %100 = vector.load %arg8[%c0_66, %c9, %c0_67, %c0_68] : memref<1x12x128x32xbf16, #tpu.memory_space<vmem>>, vector<1x1x128x32xbf16>
    %101 = vector.shape_cast %100 : vector<1x1x128x32xbf16> to vector<128x32xbf16>
    %cst_69 = arith.constant dense<0.000000e+00> : vector<48x32xf32>
    %102 = tpu.matmul %29, %101, %cst_69 {dimension_numbers = #tpu.dot_dimension_numbers<[1], [0], [0], [1], [0, 0, 1, 1], [], []>} : vector<48x128xbf16>, vector<128x32xbf16>, vector<48x32xf32> -> vector<48x32xf32>
    %c0_70 = arith.constant 0 : index
    %c9_71 = arith.constant 9 : index
    %c0_72 = arith.constant 0 : index
    %c0_73 = arith.constant 0 : index
    %103 = vector.load %arg9[%c0_70, %c9_71, %c0_72, %c0_73] : memref<1x12x1x32xf32, #tpu.memory_space<vmem>>, vector<1x1x1x32xf32>
    %104 = vector.shape_cast %103 : vector<1x1x1x32xf32> to vector<1x32xf32>
    %105 = vector.broadcast %104 : vector<1x32xf32> to vector<48x32xf32>
    %106 = arith.addf %102, %105 : vector<48x32xf32>
    %107 = vector.shape_cast %106 : vector<48x32xf32> to vector<2x24x32xf32>
    %108 = arith.truncf %91 : vector<2x24x32xf32> to vector<2x24x32xbf16>
    %109 = arith.truncf %99 : vector<2x24x32xf32> to vector<2x24x32xbf16>
    "tpu.trace_start"() <{level = 10 : i32, message = "bqd,bkd->bqk"}> : () -> ()
    %cst_74 = arith.constant dense<0.000000e+00> : vector<2x24x24xf32>
    %110 = tpu.matmul %108, %109, %cst_74 {dimension_numbers = #tpu.dot_dimension_numbers<[2], [2], [1], [1], [0, 0, 0, 1, 1, 1], [0], [0]>} : vector<2x24x32xbf16>, vector<2x24x32xbf16>, vector<2x24x24xf32> -> vector<2x24x24xf32>
    "tpu.trace_stop"() : () -> ()
    %cst_75 = arith.constant 0.176776692 : f32
    %111 = vector.broadcast %cst_75 : f32 to vector<2x24x24xf32>
    %112 = arith.mulf %110, %111 : vector<2x24x24xf32>
    %cst_76 = arith.constant -1.000000e+30 : f32
    %113 = vector.broadcast %cst_76 : f32 to vector<2x24x24xf32>
    %114 = arith.select %32, %112, %113 : vector<2x24x24xi1>, vector<2x24x24xf32>
    %cst_77 = arith.constant dense<0xFF800000> : vector<2x24xf32>
    %115 = vector.multi_reduction <maximumf>, %114, %cst_77 [2] : vector<2x24x24xf32> to vector<2x24xf32>
    %116 = vector.shape_cast %115 : vector<2x24xf32> to vector<2x24x1xf32>
    %117 = vector.broadcast %116 : vector<2x24x1xf32> to vector<2x24x24xf32>
    %118 = arith.subf %114, %117 : vector<2x24x24xf32>
    %119 = math.exp %118 : vector<2x24x24xf32>
    %cst_78 = arith.constant dense<0.000000e+00> : vector<2x24xf32>
    %120 = vector.multi_reduction <add>, %119, %cst_78 [2] : vector<2x24x24xf32> to vector<2x24xf32>
    %121 = vector.shape_cast %120 : vector<2x24xf32> to vector<2x24x1xf32>
    %122 = tpu.reciprocal %121 {approx = true} : vector<2x24x1xf32> -> vector<2x24x1xf32>
    %123 = vector.broadcast %122 : vector<2x24x1xf32> to vector<2x24x24xf32>
    %124 = arith.mulf %119, %123 : vector<2x24x24xf32>
    %125 = arith.truncf %124 : vector<2x24x24xf32> to vector<2x24x24xbf16>
    %126 = arith.truncf %107 : vector<2x24x32xf32> to vector<2x24x32xbf16>
    "tpu.trace_start"() <{level = 10 : i32, message = "bqk,bkd->bqd"}> : () -> ()
    %cst_79 = arith.constant dense<0.000000e+00> : vector<2x24x32xf32>
    %127 = tpu.matmul %125, %126, %cst_79 {dimension_numbers = #tpu.dot_dimension_numbers<[2], [1], [1], [2], [0, 0, 0, 1, 1, 2], [0], [0]>} : vector<2x24x24xbf16>, vector<2x24x32xbf16>, vector<2x24x32xf32> -> vector<2x24x32xf32>
    "tpu.trace_stop"() : () -> ()
    %128 = vector.shape_cast %127 : vector<2x24x32xf32> to vector<48x32xf32>
    %129 = arith.truncf %128 : vector<48x32xf32> to vector<48x32xbf16>
    %c0_80 = arith.constant 0 : index
    %c1_81 = arith.constant 1 : index
    %c0_82 = arith.constant 0 : index
    %c0_83 = arith.constant 0 : index
    %130 = vector.load %arg10[%c0_80, %c1_81, %c0_82, %c0_83] : memref<1x4x32x128xbf16, #tpu.memory_space<vmem>>, vector<1x1x32x128xbf16>
    %131 = vector.shape_cast %130 : vector<1x1x32x128xbf16> to vector<32x128xbf16>
    %cst_84 = arith.constant dense<0.000000e+00> : vector<48x128xf32>
    %132 = tpu.matmul %129, %131, %cst_84 {dimension_numbers = #tpu.dot_dimension_numbers<[1], [0], [0], [1], [0, 0, 1, 1], [], []>} : vector<48x32xbf16>, vector<32x128xbf16>, vector<48x128xf32> -> vector<48x128xf32>
    %133 = arith.addf %83, %132 : vector<48x128xf32>
    %c0_85 = arith.constant 0 : index
    %c2 = arith.constant 2 : index
    %c0_86 = arith.constant 0 : index
    %c0_87 = arith.constant 0 : index
    %134 = vector.load %arg8[%c0_85, %c2, %c0_86, %c0_87] : memref<1x12x128x32xbf16, #tpu.memory_space<vmem>>, vector<1x1x128x32xbf16>
    %135 = vector.shape_cast %134 : vector<1x1x128x32xbf16> to vector<128x32xbf16>
    %cst_88 = arith.constant dense<0.000000e+00> : vector<48x32xf32>
    %136 = tpu.matmul %29, %135, %cst_88 {dimension_numbers = #tpu.dot_dimension_numbers<[1], [0], [0], [1], [0, 0, 1, 1], [], []>} : vector<48x128xbf16>, vector<128x32xbf16>, vector<48x32xf32> -> vector<48x32xf32>
    %c0_89 = arith.constant 0 : index
    %c2_90 = arith.constant 2 : index
    %c0_91 = arith.constant 0 : index
    %c0_92 = arith.constant 0 : index
    %137 = vector.load %arg9[%c0_89, %c2_90, %c0_91, %c0_92] : memref<1x12x1x32xf32, #tpu.memory_space<vmem>>, vector<1x1x1x32xf32>
    %138 = vector.shape_cast %137 : vector<1x1x1x32xf32> to vector<1x32xf32>
    %139 = vector.broadcast %138 : vector<1x32xf32> to vector<48x32xf32>
    %140 = arith.addf %136, %139 : vector<48x32xf32>
    %141 = vector.shape_cast %140 : vector<48x32xf32> to vector<2x24x32xf32>
    %c0_93 = arith.constant 0 : index
    %c6 = arith.constant 6 : index
    %c0_94 = arith.constant 0 : index
    %c0_95 = arith.constant 0 : index
    %142 = vector.load %arg8[%c0_93, %c6, %c0_94, %c0_95] : memref<1x12x128x32xbf16, #tpu.memory_space<vmem>>, vector<1x1x128x32xbf16>
    %143 = vector.shape_cast %142 : vector<1x1x128x32xbf16> to vector<128x32xbf16>
    %cst_96 = arith.constant dense<0.000000e+00> : vector<48x32xf32>
    %144 = tpu.matmul %29, %143, %cst_96 {dimension_numbers = #tpu.dot_dimension_numbers<[1], [0], [0], [1], [0, 0, 1, 1], [], []>} : vector<48x128xbf16>, vector<128x32xbf16>, vector<48x32xf32> -> vector<48x32xf32>
    %c0_97 = arith.constant 0 : index
    %c6_98 = arith.constant 6 : index
    %c0_99 = arith.constant 0 : index
    %c0_100 = arith.constant 0 : index
    %145 = vector.load %arg9[%c0_97, %c6_98, %c0_99, %c0_100] : memref<1x12x1x32xf32, #tpu.memory_space<vmem>>, vector<1x1x1x32xf32>
    %146 = vector.shape_cast %145 : vector<1x1x1x32xf32> to vector<1x32xf32>
    %147 = vector.broadcast %146 : vector<1x32xf32> to vector<48x32xf32>
    %148 = arith.addf %144, %147 : vector<48x32xf32>
    %149 = vector.shape_cast %148 : vector<48x32xf32> to vector<2x24x32xf32>
    %c0_101 = arith.constant 0 : index
    %c10 = arith.constant 10 : index
    %c0_102 = arith.constant 0 : index
    %c0_103 = arith.constant 0 : index
    %150 = vector.load %arg8[%c0_101, %c10, %c0_102, %c0_103] : memref<1x12x128x32xbf16, #tpu.memory_space<vmem>>, vector<1x1x128x32xbf16>
    %151 = vector.shape_cast %150 : vector<1x1x128x32xbf16> to vector<128x32xbf16>
    %cst_104 = arith.constant dense<0.000000e+00> : vector<48x32xf32>
    %152 = tpu.matmul %29, %151, %cst_104 {dimension_numbers = #tpu.dot_dimension_numbers<[1], [0], [0], [1], [0, 0, 1, 1], [], []>} : vector<48x128xbf16>, vector<128x32xbf16>, vector<48x32xf32> -> vector<48x32xf32>
    %c0_105 = arith.constant 0 : index
    %c10_106 = arith.constant 10 : index
    %c0_107 = arith.constant 0 : index
    %c0_108 = arith.constant 0 : index
    %153 = vector.load %arg9[%c0_105, %c10_106, %c0_107, %c0_108] : memref<1x12x1x32xf32, #tpu.memory_space<vmem>>, vector<1x1x1x32xf32>
    %154 = vector.shape_cast %153 : vector<1x1x1x32xf32> to vector<1x32xf32>
    %155 = vector.broadcast %154 : vector<1x32xf32> to vector<48x32xf32>
    %156 = arith.addf %152, %155 : vector<48x32xf32>
    %157 = vector.shape_cast %156 : vector<48x32xf32> to vector<2x24x32xf32>
    %158 = arith.truncf %141 : vector<2x24x32xf32> to vector<2x24x32xbf16>
    %159 = arith.truncf %149 : vector<2x24x32xf32> to vector<2x24x32xbf16>
    "tpu.trace_start"() <{level = 10 : i32, message = "bqd,bkd->bqk"}> : () -> ()
    %cst_109 = arith.constant dense<0.000000e+00> : vector<2x24x24xf32>
    %160 = tpu.matmul %158, %159, %cst_109 {dimension_numbers = #tpu.dot_dimension_numbers<[2], [2], [1], [1], [0, 0, 0, 1, 1, 1], [0], [0]>} : vector<2x24x32xbf16>, vector<2x24x32xbf16>, vector<2x24x24xf32> -> vector<2x24x24xf32>
    "tpu.trace_stop"() : () -> ()
    %cst_110 = arith.constant 0.176776692 : f32
    %161 = vector.broadcast %cst_110 : f32 to vector<2x24x24xf32>
    %162 = arith.mulf %160, %161 : vector<2x24x24xf32>
    %cst_111 = arith.constant -1.000000e+30 : f32
    %163 = vector.broadcast %cst_111 : f32 to vector<2x24x24xf32>
    %164 = arith.select %32, %162, %163 : vector<2x24x24xi1>, vector<2x24x24xf32>
    %cst_112 = arith.constant dense<0xFF800000> : vector<2x24xf32>
    %165 = vector.multi_reduction <maximumf>, %164, %cst_112 [2] : vector<2x24x24xf32> to vector<2x24xf32>
    %166 = vector.shape_cast %165 : vector<2x24xf32> to vector<2x24x1xf32>
    %167 = vector.broadcast %166 : vector<2x24x1xf32> to vector<2x24x24xf32>
    %168 = arith.subf %164, %167 : vector<2x24x24xf32>
    %169 = math.exp %168 : vector<2x24x24xf32>
    %cst_113 = arith.constant dense<0.000000e+00> : vector<2x24xf32>
    %170 = vector.multi_reduction <add>, %169, %cst_113 [2] : vector<2x24x24xf32> to vector<2x24xf32>
    %171 = vector.shape_cast %170 : vector<2x24xf32> to vector<2x24x1xf32>
    %172 = tpu.reciprocal %171 {approx = true} : vector<2x24x1xf32> -> vector<2x24x1xf32>
    %173 = vector.broadcast %172 : vector<2x24x1xf32> to vector<2x24x24xf32>
    %174 = arith.mulf %169, %173 : vector<2x24x24xf32>
    %175 = arith.truncf %174 : vector<2x24x24xf32> to vector<2x24x24xbf16>
    %176 = arith.truncf %157 : vector<2x24x32xf32> to vector<2x24x32xbf16>
    "tpu.trace_start"() <{level = 10 : i32, message = "bqk,bkd->bqd"}> : () -> ()
    %cst_114 = arith.constant dense<0.000000e+00> : vector<2x24x32xf32>
    %177 = tpu.matmul %175, %176, %cst_114 {dimension_numbers = #tpu.dot_dimension_numbers<[2], [1], [1], [2], [0, 0, 0, 1, 1, 2], [0], [0]>} : vector<2x24x24xbf16>, vector<2x24x32xbf16>, vector<2x24x32xf32> -> vector<2x24x32xf32>
    "tpu.trace_stop"() : () -> ()
    %178 = vector.shape_cast %177 : vector<2x24x32xf32> to vector<48x32xf32>
    %179 = arith.truncf %178 : vector<48x32xf32> to vector<48x32xbf16>
    %c0_115 = arith.constant 0 : index
    %c2_116 = arith.constant 2 : index
    %c0_117 = arith.constant 0 : index
    %c0_118 = arith.constant 0 : index
    %180 = vector.load %arg10[%c0_115, %c2_116, %c0_117, %c0_118] : memref<1x4x32x128xbf16, #tpu.memory_space<vmem>>, vector<1x1x32x128xbf16>
    %181 = vector.shape_cast %180 : vector<1x1x32x128xbf16> to vector<32x128xbf16>
    %cst_119 = arith.constant dense<0.000000e+00> : vector<48x128xf32>
    %182 = tpu.matmul %179, %181, %cst_119 {dimension_numbers = #tpu.dot_dimension_numbers<[1], [0], [0], [1], [0, 0, 1, 1], [], []>} : vector<48x32xbf16>, vector<32x128xbf16>, vector<48x128xf32> -> vector<48x128xf32>
    %183 = arith.addf %133, %182 : vector<48x128xf32>
    %c0_120 = arith.constant 0 : index
    %c3 = arith.constant 3 : index
    %c0_121 = arith.constant 0 : index
    %c0_122 = arith.constant 0 : index
    %184 = vector.load %arg8[%c0_120, %c3, %c0_121, %c0_122] : memref<1x12x128x32xbf16, #tpu.memory_space<vmem>>, vector<1x1x128x32xbf16>
    %185 = vector.shape_cast %184 : vector<1x1x128x32xbf16> to vector<128x32xbf16>
    %cst_123 = arith.constant dense<0.000000e+00> : vector<48x32xf32>
    %186 = tpu.matmul %29, %185, %cst_123 {dimension_numbers = #tpu.dot_dimension_numbers<[1], [0], [0], [1], [0, 0, 1, 1], [], []>} : vector<48x128xbf16>, vector<128x32xbf16>, vector<48x32xf32> -> vector<48x32xf32>
    %c0_124 = arith.constant 0 : index
    %c3_125 = arith.constant 3 : index
    %c0_126 = arith.constant 0 : index
    %c0_127 = arith.constant 0 : index
    %187 = vector.load %arg9[%c0_124, %c3_125, %c0_126, %c0_127] : memref<1x12x1x32xf32, #tpu.memory_space<vmem>>, vector<1x1x1x32xf32>
    %188 = vector.shape_cast %187 : vector<1x1x1x32xf32> to vector<1x32xf32>
    %189 = vector.broadcast %188 : vector<1x32xf32> to vector<48x32xf32>
    %190 = arith.addf %186, %189 : vector<48x32xf32>
    %191 = vector.shape_cast %190 : vector<48x32xf32> to vector<2x24x32xf32>
    %c0_128 = arith.constant 0 : index
    %c7 = arith.constant 7 : index
    %c0_129 = arith.constant 0 : index
    %c0_130 = arith.constant 0 : index
    %192 = vector.load %arg8[%c0_128, %c7, %c0_129, %c0_130] : memref<1x12x128x32xbf16, #tpu.memory_space<vmem>>, vector<1x1x128x32xbf16>
    %193 = vector.shape_cast %192 : vector<1x1x128x32xbf16> to vector<128x32xbf16>
    %cst_131 = arith.constant dense<0.000000e+00> : vector<48x32xf32>
    %194 = tpu.matmul %29, %193, %cst_131 {dimension_numbers = #tpu.dot_dimension_numbers<[1], [0], [0], [1], [0, 0, 1, 1], [], []>} : vector<48x128xbf16>, vector<128x32xbf16>, vector<48x32xf32> -> vector<48x32xf32>
    %c0_132 = arith.constant 0 : index
    %c7_133 = arith.constant 7 : index
    %c0_134 = arith.constant 0 : index
    %c0_135 = arith.constant 0 : index
    %195 = vector.load %arg9[%c0_132, %c7_133, %c0_134, %c0_135] : memref<1x12x1x32xf32, #tpu.memory_space<vmem>>, vector<1x1x1x32xf32>
    %196 = vector.shape_cast %195 : vector<1x1x1x32xf32> to vector<1x32xf32>
    %197 = vector.broadcast %196 : vector<1x32xf32> to vector<48x32xf32>
    %198 = arith.addf %194, %197 : vector<48x32xf32>
    %199 = vector.shape_cast %198 : vector<48x32xf32> to vector<2x24x32xf32>
    %c0_136 = arith.constant 0 : index
    %c11 = arith.constant 11 : index
    %c0_137 = arith.constant 0 : index
    %c0_138 = arith.constant 0 : index
    %200 = vector.load %arg8[%c0_136, %c11, %c0_137, %c0_138] : memref<1x12x128x32xbf16, #tpu.memory_space<vmem>>, vector<1x1x128x32xbf16>
    %201 = vector.shape_cast %200 : vector<1x1x128x32xbf16> to vector<128x32xbf16>
    %cst_139 = arith.constant dense<0.000000e+00> : vector<48x32xf32>
    %202 = tpu.matmul %29, %201, %cst_139 {dimension_numbers = #tpu.dot_dimension_numbers<[1], [0], [0], [1], [0, 0, 1, 1], [], []>} : vector<48x128xbf16>, vector<128x32xbf16>, vector<48x32xf32> -> vector<48x32xf32>
    %c0_140 = arith.constant 0 : index
    %c11_141 = arith.constant 11 : index
    %c0_142 = arith.constant 0 : index
    %c0_143 = arith.constant 0 : index
    %203 = vector.load %arg9[%c0_140, %c11_141, %c0_142, %c0_143] : memref<1x12x1x32xf32, #tpu.memory_space<vmem>>, vector<1x1x1x32xf32>
    %204 = vector.shape_cast %203 : vector<1x1x1x32xf32> to vector<1x32xf32>
    %205 = vector.broadcast %204 : vector<1x32xf32> to vector<48x32xf32>
    %206 = arith.addf %202, %205 : vector<48x32xf32>
    %207 = vector.shape_cast %206 : vector<48x32xf32> to vector<2x24x32xf32>
    %208 = arith.truncf %191 : vector<2x24x32xf32> to vector<2x24x32xbf16>
    %209 = arith.truncf %199 : vector<2x24x32xf32> to vector<2x24x32xbf16>
    "tpu.trace_start"() <{level = 10 : i32, message = "bqd,bkd->bqk"}> : () -> ()
    %cst_144 = arith.constant dense<0.000000e+00> : vector<2x24x24xf32>
    %210 = tpu.matmul %208, %209, %cst_144 {dimension_numbers = #tpu.dot_dimension_numbers<[2], [2], [1], [1], [0, 0, 0, 1, 1, 1], [0], [0]>} : vector<2x24x32xbf16>, vector<2x24x32xbf16>, vector<2x24x24xf32> -> vector<2x24x24xf32>
    "tpu.trace_stop"() : () -> ()
    %cst_145 = arith.constant 0.176776692 : f32
    %211 = vector.broadcast %cst_145 : f32 to vector<2x24x24xf32>
    %212 = arith.mulf %210, %211 : vector<2x24x24xf32>
    %cst_146 = arith.constant -1.000000e+30 : f32
    %213 = vector.broadcast %cst_146 : f32 to vector<2x24x24xf32>
    %214 = arith.select %32, %212, %213 : vector<2x24x24xi1>, vector<2x24x24xf32>
    %cst_147 = arith.constant dense<0xFF800000> : vector<2x24xf32>
    %215 = vector.multi_reduction <maximumf>, %214, %cst_147 [2] : vector<2x24x24xf32> to vector<2x24xf32>
    %216 = vector.shape_cast %215 : vector<2x24xf32> to vector<2x24x1xf32>
    %217 = vector.broadcast %216 : vector<2x24x1xf32> to vector<2x24x24xf32>
    %218 = arith.subf %214, %217 : vector<2x24x24xf32>
    %219 = math.exp %218 : vector<2x24x24xf32>
    %cst_148 = arith.constant dense<0.000000e+00> : vector<2x24xf32>
    %220 = vector.multi_reduction <add>, %219, %cst_148 [2] : vector<2x24x24xf32> to vector<2x24xf32>
    %221 = vector.shape_cast %220 : vector<2x24xf32> to vector<2x24x1xf32>
    %222 = tpu.reciprocal %221 {approx = true} : vector<2x24x1xf32> -> vector<2x24x1xf32>
    %223 = vector.broadcast %222 : vector<2x24x1xf32> to vector<2x24x24xf32>
    %224 = arith.mulf %219, %223 : vector<2x24x24xf32>
    %225 = arith.truncf %224 : vector<2x24x24xf32> to vector<2x24x24xbf16>
    %226 = arith.truncf %207 : vector<2x24x32xf32> to vector<2x24x32xbf16>
    "tpu.trace_start"() <{level = 10 : i32, message = "bqk,bkd->bqd"}> : () -> ()
    %cst_149 = arith.constant dense<0.000000e+00> : vector<2x24x32xf32>
    %227 = tpu.matmul %225, %226, %cst_149 {dimension_numbers = #tpu.dot_dimension_numbers<[2], [1], [1], [2], [0, 0, 0, 1, 1, 2], [0], [0]>} : vector<2x24x24xbf16>, vector<2x24x32xbf16>, vector<2x24x32xf32> -> vector<2x24x32xf32>
    "tpu.trace_stop"() : () -> ()
    %228 = vector.shape_cast %227 : vector<2x24x32xf32> to vector<48x32xf32>
    %229 = arith.truncf %228 : vector<48x32xf32> to vector<48x32xbf16>
    %c0_150 = arith.constant 0 : index
    %c3_151 = arith.constant 3 : index
    %c0_152 = arith.constant 0 : index
    %c0_153 = arith.constant 0 : index
    %230 = vector.load %arg10[%c0_150, %c3_151, %c0_152, %c0_153] : memref<1x4x32x128xbf16, #tpu.memory_space<vmem>>, vector<1x1x32x128xbf16>
    %231 = vector.shape_cast %230 : vector<1x1x32x128xbf16> to vector<32x128xbf16>
    %cst_154 = arith.constant dense<0.000000e+00> : vector<48x128xf32>
    %232 = tpu.matmul %229, %231, %cst_154 {dimension_numbers = #tpu.dot_dimension_numbers<[1], [0], [0], [1], [0, 0, 1, 1], [], []>} : vector<48x32xbf16>, vector<32x128xbf16>, vector<48x128xf32> -> vector<48x128xf32>
    %233 = arith.addf %183, %232 : vector<48x128xf32>
    %c0_155 = arith.constant 0 : index
    %c0_156 = arith.constant 0 : index
    %c0_157 = arith.constant 0 : index
    %234 = vector.load %arg11[%c0_155, %c0_156, %c0_157] : memref<1x1x128xf32, #tpu.memory_space<vmem>>, vector<1x1x128xf32>
    %235 = vector.shape_cast %234 : vector<1x1x128xf32> to vector<1x128xf32>
    %236 = vector.broadcast %235 : vector<1x128xf32> to vector<48x128xf32>
    %237 = arith.addf %233, %236 : vector<48x128xf32>
    %238 = vector.shape_cast %237 : vector<48x128xf32> to vector<2x24x128xf32>
    %239 = arith.addf %3, %238 : vector<2x24x128xf32>
    %240 = vector.shape_cast %239 : vector<2x24x128xf32> to vector<48x128xf32>
    %c0_158 = arith.constant 0 : index
    %c0_159 = arith.constant 0 : index
    %c0_160 = arith.constant 0 : index
    %241 = vector.load %arg12[%c0_158, %c0_159, %c0_160] : memref<1x1x128xf32, #tpu.memory_space<vmem>>, vector<1x1x128xf32>
    %242 = vector.shape_cast %241 : vector<1x1x128xf32> to vector<1x128xf32>
    %c0_161 = arith.constant 0 : index
    %c0_162 = arith.constant 0 : index
    %c0_163 = arith.constant 0 : index
    %243 = vector.load %arg13[%c0_161, %c0_162, %c0_163] : memref<1x1x128xf32, #tpu.memory_space<vmem>>, vector<1x1x128xf32>
    %244 = vector.shape_cast %243 : vector<1x1x128xf32> to vector<1x128xf32>
    %cst_164 = arith.constant dense<0.000000e+00> : vector<48xf32>
    %245 = vector.multi_reduction <add>, %240, %cst_164 [1] : vector<48x128xf32> to vector<48xf32>
    %246 = vector.shape_cast %245 : vector<48xf32> to vector<48x1xf32>
    %cst_165 = arith.constant 1.280000e+02 : f32
    %247 = vector.broadcast %cst_165 : f32 to vector<48x1xf32>
    %248 = arith.divf %246, %247 : vector<48x1xf32>
    %249 = vector.broadcast %248 : vector<48x1xf32> to vector<48x128xf32>
    %250 = arith.subf %240, %249 : vector<48x128xf32>
    %251 = arith.mulf %250, %250 : vector<48x128xf32>
    %cst_166 = arith.constant dense<0.000000e+00> : vector<48xf32>
    %252 = vector.multi_reduction <add>, %251, %cst_166 [1] : vector<48x128xf32> to vector<48xf32>
    %253 = vector.shape_cast %252 : vector<48xf32> to vector<48x1xf32>
    %cst_167 = arith.constant 1.280000e+02 : f32
    %254 = vector.broadcast %cst_167 : f32 to vector<48x1xf32>
    %255 = arith.divf %253, %254 : vector<48x1xf32>
    %cst_168 = arith.constant 9.99999974E-6 : f32
    %256 = vector.broadcast %cst_168 : f32 to vector<48x1xf32>
    %257 = arith.addf %255, %256 : vector<48x1xf32>
    %258 = math.rsqrt %257 : vector<48x1xf32>
    %259 = vector.broadcast %258 : vector<48x1xf32> to vector<48x128xf32>
    %260 = arith.mulf %250, %259 : vector<48x128xf32>
    %261 = vector.broadcast %242 : vector<1x128xf32> to vector<48x128xf32>
    %262 = arith.mulf %260, %261 : vector<48x128xf32>
    %263 = vector.broadcast %244 : vector<1x128xf32> to vector<48x128xf32>
    %264 = arith.addf %262, %263 : vector<48x128xf32>
    %265 = arith.truncf %264 : vector<48x128xf32> to vector<48x128xbf16>
    %c0_169 = arith.constant 0 : index
    %c0_170 = arith.constant 0 : index
    %c0_171 = arith.constant 0 : index
    %266 = vector.load %arg14[%c0_169, %c0_170, %c0_171] : memref<1x128x512xbf16, #tpu.memory_space<vmem>>, vector<1x128x512xbf16>
    %267 = vector.shape_cast %266 : vector<1x128x512xbf16> to vector<128x512xbf16>
    %cst_172 = arith.constant dense<0.000000e+00> : vector<48x512xf32>
    %268 = tpu.matmul %265, %267, %cst_172 {dimension_numbers = #tpu.dot_dimension_numbers<[1], [0], [0], [1], [0, 0, 1, 1], [], []>} : vector<48x128xbf16>, vector<128x512xbf16>, vector<48x512xf32> -> vector<48x512xf32>
    %c0_173 = arith.constant 0 : index
    %c0_174 = arith.constant 0 : index
    %c0_175 = arith.constant 0 : index
    %269 = vector.load %arg15[%c0_173, %c0_174, %c0_175] : memref<1x1x512xf32, #tpu.memory_space<vmem>>, vector<1x1x512xf32>
    %270 = vector.shape_cast %269 : vector<1x1x512xf32> to vector<1x512xf32>
    %271 = vector.broadcast %270 : vector<1x512xf32> to vector<48x512xf32>
    %272 = arith.addf %268, %271 : vector<48x512xf32>
    %cst_176 = arith.constant 5.000000e-01 : f32
    %273 = vector.broadcast %cst_176 : f32 to vector<48x512xf32>
    %274 = arith.mulf %273, %272 : vector<48x512xf32>
    %cst_177 = arith.constant 0.707106769 : f32
    %275 = vector.broadcast %cst_177 : f32 to vector<48x512xf32>
    %276 = arith.mulf %272, %275 : vector<48x512xf32>
    %cst_178 = arith.constant 0.000000e+00 : f32
    %277 = vector.broadcast %cst_178 : f32 to vector<48x512xf32>
    %278 = arith.cmpf oge, %276, %277 : vector<48x512xf32>
    %cst_179 = arith.constant 1.000000e+00 : f32
    %cst_180 = arith.constant -1.000000e+00 : f32
    %279 = vector.broadcast %cst_179 : f32 to vector<48x512xf32>
    %280 = vector.broadcast %cst_180 : f32 to vector<48x512xf32>
    %281 = arith.select %278, %279, %280 : vector<48x512xi1>, vector<48x512xf32>
    %282 = math.absf %276 : vector<48x512xf32>
    %cst_181 = arith.constant 0.327591091 : f32
    %283 = vector.broadcast %cst_181 : f32 to vector<48x512xf32>
    %284 = arith.mulf %283, %282 : vector<48x512xf32>
    %cst_182 = arith.constant 1.000000e+00 : f32
    %285 = vector.broadcast %cst_182 : f32 to vector<48x512xf32>
    %286 = arith.addf %285, %284 : vector<48x512xf32>
    %cst_183 = arith.constant 1.000000e+00 : f32
    %287 = vector.broadcast %cst_183 : f32 to vector<48x512xf32>
    %288 = arith.divf %287, %286 : vector<48x512xf32>
    %cst_184 = arith.constant 1.06140542 : f32
    %289 = vector.broadcast %cst_184 : f32 to vector<48x512xf32>
    %290 = arith.mulf %288, %289 : vector<48x512xf32>
    %cst_185 = arith.constant -1.45315206 : f32
    %291 = vector.broadcast %cst_185 : f32 to vector<48x512xf32>
    %292 = arith.addf %291, %290 : vector<48x512xf32>
    %293 = arith.mulf %288, %292 : vector<48x512xf32>
    %cst_186 = arith.constant 1.42141378 : f32
    %294 = vector.broadcast %cst_186 : f32 to vector<48x512xf32>
    %295 = arith.addf %294, %293 : vector<48x512xf32>
    %296 = arith.mulf %288, %295 : vector<48x512xf32>
    %cst_187 = arith.constant -0.284496725 : f32
    %297 = vector.broadcast %cst_187 : f32 to vector<48x512xf32>
    %298 = arith.addf %297, %296 : vector<48x512xf32>
    %299 = arith.mulf %288, %298 : vector<48x512xf32>
    %cst_188 = arith.constant 0.254829586 : f32
    %300 = vector.broadcast %cst_188 : f32 to vector<48x512xf32>
    %301 = arith.addf %300, %299 : vector<48x512xf32>
    %302 = arith.mulf %288, %301 : vector<48x512xf32>
    %cst_189 = arith.constant 0.000000e+00 : f32
    %303 = vector.broadcast %cst_189 : f32 to vector<48x512xf32>
    %304 = arith.subf %303, %282 : vector<48x512xf32>
    %305 = arith.mulf %304, %282 : vector<48x512xf32>
    %306 = math.exp %305 : vector<48x512xf32>
    %307 = arith.mulf %302, %306 : vector<48x512xf32>
    %cst_190 = arith.constant 1.000000e+00 : f32
    %308 = vector.broadcast %cst_190 : f32 to vector<48x512xf32>
    %309 = arith.subf %308, %307 : vector<48x512xf32>
    %310 = arith.mulf %281, %309 : vector<48x512xf32>
    %cst_191 = arith.constant 1.000000e+00 : f32
    %311 = vector.broadcast %cst_191 : f32 to vector<48x512xf32>
    %312 = arith.addf %311, %310 : vector<48x512xf32>
    %313 = arith.mulf %274, %312 : vector<48x512xf32>
    %314 = arith.truncf %313 : vector<48x512xf32> to vector<48x512xbf16>
    %c0_192 = arith.constant 0 : index
    %c0_193 = arith.constant 0 : index
    %c0_194 = arith.constant 0 : index
    %315 = vector.load %arg16[%c0_192, %c0_193, %c0_194] : memref<1x512x128xbf16, #tpu.memory_space<vmem>>, vector<1x512x128xbf16>
    %316 = vector.shape_cast %315 : vector<1x512x128xbf16> to vector<512x128xbf16>
    %cst_195 = arith.constant dense<0.000000e+00> : vector<48x128xf32>
    %317 = tpu.matmul %314, %316, %cst_195 {dimension_numbers = #tpu.dot_dimension_numbers<[1], [0], [0], [1], [0, 0, 1, 1], [], []>} : vector<48x512xbf16>, vector<512x128xbf16>, vector<48x128xf32> -> vector<48x128xf32>
    %c0_196 = arith.constant 0 : index
    %c0_197 = arith.constant 0 : index
    %c0_198 = arith.constant 0 : index
    %318 = vector.load %arg17[%c0_196, %c0_197, %c0_198] : memref<1x1x128xf32, #tpu.memory_space<vmem>>, vector<1x1x128xf32>
    %319 = vector.shape_cast %318 : vector<1x1x128xf32> to vector<1x128xf32>
    %320 = vector.broadcast %319 : vector<1x128xf32> to vector<48x128xf32>
    %321 = arith.addf %317, %320 : vector<48x128xf32>
    %322 = vector.shape_cast %321 : vector<48x128xf32> to vector<2x24x128xf32>
    %323 = arith.addf %239, %322 : vector<2x24x128xf32>
    %c0_199 = arith.constant 0 : index
    %c0_200 = arith.constant 0 : index
    %c0_201 = arith.constant 0 : index
    %324 = vector.load %arg23[%c0_199, %c0_200, %c0_201] : memref<2x24x128xf32, #tpu.memory_space<vmem>>, vector<2x24x128xf32>
    tpu.vector_store %arg23[%c0_199, %c0_200, %c0_201], %323 {strides = array<i32>} : memref<2x24x128xf32, #tpu.memory_space<vmem>>, vector<2x24x128xf32>,
    %325 = arith.index_cast %arg0 : i32 to index
    %326 = memref.load %arg1[%325] : memref<24xi32, #tpu.memory_space<smem>>
    %c1_i32 = arith.constant 1 : i32
    %327 = arith.cmpi eq, %326, %c1_i32 : i32
    %328 = arith.extui %327 : i1 to i32
    %c0_i32_202 = arith.constant 0 : i32
    %329 = arith.cmpi ne, %328, %c0_i32_202 : i32
    scf.if %329 {
      %333 = vector.shape_cast %323 : vector<2x24x128xf32> to vector<48x128xf32>
      %334 = arith.truncf %333 : vector<48x128xf32> to vector<48x128xbf16>
      %c0_204 = arith.constant 0 : index
      %c0_205 = arith.constant 0 : index
      %c0_206 = arith.constant 0 : index
      %335 = vector.load %arg18[%c0_204, %c0_205, %c0_206] : memref<1x128x32xbf16, #tpu.memory_space<vmem>>, vector<1x128x32xbf16>
      %336 = vector.shape_cast %335 : vector<1x128x32xbf16> to vector<128x32xbf16>
      %cst_207 = arith.constant dense<0.000000e+00> : vector<48x32xf32>
      %337 = tpu.matmul %334, %336, %cst_207 {dimension_numbers = #tpu.dot_dimension_numbers<[1], [0], [0], [1], [0, 0, 1, 1], [], []>} : vector<48x128xbf16>, vector<128x32xbf16>, vector<48x32xf32> -> vector<48x32xf32>
      %cst_208 = arith.constant 0.000000e+00 : f32
      %338 = vector.broadcast %cst_208 : f32 to vector<48x32xf32>
      %339 = arith.cmpf oge, %337, %338 : vector<48x32xf32>
      %cst_209 = arith.constant 0.00999999977 : f32
      %340 = vector.broadcast %cst_209 : f32 to vector<48x32xf32>
      %341 = arith.mulf %340, %337 : vector<48x32xf32>
      %342 = arith.select %339, %337, %341 : vector<48x32xi1>, vector<48x32xf32>
      %343 = arith.truncf %342 : vector<48x32xf32> to vector<48x32xbf16>
      %c0_210 = arith.constant 0 : index
      %c0_211 = arith.constant 0 : index
      %c0_212 = arith.constant 0 : index
      %344 = vector.load %arg19[%c0_210, %c0_211, %c0_212] : memref<1x32x128xbf16, #tpu.memory_space<vmem>>, vector<1x32x128xbf16>
      %345 = vector.shape_cast %344 : vector<1x32x128xbf16> to vector<32x128xbf16>
      %cst_213 = arith.constant dense<0.000000e+00> : vector<48x128xf32>
      %346 = tpu.matmul %343, %345, %cst_213 {dimension_numbers = #tpu.dot_dimension_numbers<[1], [0], [0], [1], [0, 0, 1, 1], [], []>} : vector<48x32xbf16>, vector<32x128xbf16>, vector<48x128xf32> -> vector<48x128xf32>
      %cst_214 = arith.constant 0.000000e+00 : f32
      %347 = vector.broadcast %cst_214 : f32 to vector<48x128xf32>
      %348 = arith.cmpf oge, %346, %347 : vector<48x128xf32>
      %cst_215 = arith.constant 0.00999999977 : f32
      %349 = vector.broadcast %cst_215 : f32 to vector<48x128xf32>
      %350 = arith.mulf %349, %346 : vector<48x128xf32>
      %351 = arith.select %348, %346, %350 : vector<48x128xi1>, vector<48x128xf32>
      %c0_216 = arith.constant 0 : index
      %c0_217 = arith.constant 0 : index
      %c0_218 = arith.constant 0 : index
      %352 = vector.load %arg20[%c0_216, %c0_217, %c0_218] : memref<1x128x32xbf16, #tpu.memory_space<vmem>>, vector<1x128x32xbf16>
      %353 = vector.shape_cast %352 : vector<1x128x32xbf16> to vector<128x32xbf16>
      %cst_219 = arith.constant dense<0.000000e+00> : vector<48x32xf32>
      %354 = tpu.matmul %334, %353, %cst_219 {dimension_numbers = #tpu.dot_dimension_numbers<[1], [0], [0], [1], [0, 0, 1, 1], [], []>} : vector<48x128xbf16>, vector<128x32xbf16>, vector<48x32xf32> -> vector<48x32xf32>
      %cst_220 = arith.constant 0.000000e+00 : f32
      %355 = vector.broadcast %cst_220 : f32 to vector<48x32xf32>
      %356 = arith.cmpf oge, %354, %355 : vector<48x32xf32>
      %cst_221 = arith.constant 0.00999999977 : f32
      %357 = vector.broadcast %cst_221 : f32 to vector<48x32xf32>
      %358 = arith.mulf %357, %354 : vector<48x32xf32>
      %359 = arith.select %356, %354, %358 : vector<48x32xi1>, vector<48x32xf32>
      %360 = arith.truncf %359 : vector<48x32xf32> to vector<48x32xbf16>
      %c0_222 = arith.constant 0 : index
      %c0_223 = arith.constant 0 : index
      %c0_224 = arith.constant 0 : index
      %361 = vector.load %arg21[%c0_222, %c0_223, %c0_224] : memref<1x32x128xbf16, #tpu.memory_space<vmem>>, vector<1x32x128xbf16>
      %362 = vector.shape_cast %361 : vector<1x32x128xbf16> to vector<32x128xbf16>
      %cst_225 = arith.constant dense<0.000000e+00> : vector<48x128xf32>
      %363 = tpu.matmul %360, %362, %cst_225 {dimension_numbers = #tpu.dot_dimension_numbers<[1], [0], [0], [1], [0, 0, 1, 1], [], []>} : vector<48x32xbf16>, vector<32x128xbf16>, vector<48x128xf32> -> vector<48x128xf32>
      %cst_226 = arith.constant 0.000000e+00 : f32
      %364 = vector.broadcast %cst_226 : f32 to vector<48x128xf32>
      %365 = arith.cmpf oge, %363, %364 : vector<48x128xf32>
      %cst_227 = arith.constant 0.00999999977 : f32
      %366 = vector.broadcast %cst_227 : f32 to vector<48x128xf32>
      %367 = arith.mulf %366, %363 : vector<48x128xf32>
      %368 = arith.select %365, %363, %367 : vector<48x128xi1>, vector<48x128xf32>
      %cst_228 = arith.constant 8.000000e-01 : f32
      %369 = vector.broadcast %cst_228 : f32 to vector<2x24x128xf32>
      %370 = arith.mulf %369, %323 : vector<2x24x128xf32>
      %371 = vector.shape_cast %351 : vector<48x128xf32> to vector<2x24x128xf32>
      %cst_229 = arith.constant 1.000000e-01 : f32
      %372 = vector.broadcast %cst_229 : f32 to vector<2x24x128xf32>
      %373 = arith.mulf %372, %371 : vector<2x24x128xf32>
      %374 = arith.addf %370, %373 : vector<2x24x128xf32>
      %375 = vector.shape_cast %368 : vector<48x128xf32> to vector<2x24x128xf32>
      %cst_230 = arith.constant 1.000000e-01 : f32
      %376 = vector.broadcast %cst_230 : f32 to vector<2x24x128xf32>
      %377 = arith.mulf %376, %375 : vector<2x24x128xf32>
      %378 = arith.addf %374, %377 : vector<2x24x128xf32>
      %c0_231 = arith.constant 0 : index
      %c0_232 = arith.constant 0 : index
      %c0_233 = arith.constant 0 : index
      %379 = vector.load %arg23[%c0_231, %c0_232, %c0_233] : memref<2x24x128xf32, #tpu.memory_space<vmem>>, vector<2x24x128xf32>
      tpu.vector_store %arg23[%c0_231, %c0_232, %c0_233], %378 {strides = array<i32>} : memref<2x24x128xf32, #tpu.memory_space<vmem>>, vector<2x24x128xf32>,
    } else {
    }
    %c23_i32 = arith.constant 23 : i32
    %330 = arith.cmpi eq, %arg0, %c23_i32 : i32
    %331 = arith.extui %330 : i1 to i32
    %c0_i32_203 = arith.constant 0 : i32
    %332 = arith.cmpi ne, %331, %c0_i32_203 : i32
    scf.if %332 {
      %c0_204 = arith.constant 0 : index
      %c0_205 = arith.constant 0 : index
      %c0_206 = arith.constant 0 : index
      %333 = vector.load %arg23[%c0_204, %c0_205, %c0_206] : memref<2x24x128xf32, #tpu.memory_space<vmem>>, vector<2x24x128xf32>
      %c0_207 = arith.constant 0 : index
      %c0_208 = arith.constant 0 : index
      %c0_209 = arith.constant 0 : index
      %334 = vector.load %arg22[%c0_207, %c0_208, %c0_209] : memref<2x24x128xf32, #tpu.memory_space<vmem>>, vector<2x24x128xf32>
      tpu.vector_store %arg22[%c0_207, %c0_208, %c0_209], %333 {strides = array<i32>} : memref<2x24x128xf32, #tpu.memory_space<vmem>>, vector<2x24x128xf32>,
    } else {
    }
    return
  }
  func.func @transform_0(%arg0: i32, %arg1: memref<24xi32, #tpu.memory_space<smem>>, %arg2: memref<24xi32, #tpu.memory_space<smem>>) -> (i32, i32, i32) {
    %c0_i32 = arith.constant 0 : i32
    %c0_i32_0 = arith.constant 0 : i32
    %c0_i32_1 = arith.constant 0 : i32
    %c0_i32_2 = arith.constant 0 : i32
    return %c0_i32, %c0_i32_0, %c0_i32_1 : i32, i32, i32
  }
  func.func @transform_1(%arg0: i32, %arg1: memref<24xi32, #tpu.memory_space<smem>>, %arg2: memref<24xi32, #tpu.memory_space<smem>>) -> (i32, i32) {
    %c0_i32 = arith.constant 0 : i32
    %c0_i32_0 = arith.constant 0 : i32
    %c0_i32_1 = arith.constant 0 : i32
    return %c0_i32, %c0_i32_0 : i32, i32
  }
  func.func @transform_2(%arg0: i32, %arg1: memref<24xi32, #tpu.memory_space<smem>>, %arg2: memref<24xi32, #tpu.memory_space<smem>>) -> (i32, i32) {
    %c0_i32 = arith.constant 0 : i32
    %c0_i32_0 = arith.constant 0 : i32
    %c0_i32_1 = arith.constant 0 : i32
    return %c0_i32, %c0_i32_0 : i32, i32
  }
  func.func @transform_3(%arg0: i32, %arg1: memref<24xi32, #tpu.memory_space<smem>>, %arg2: memref<24xi32, #tpu.memory_space<smem>>) -> (i32, i32, i32) {
    %c0_i32 = arith.constant 0 : i32
    %c0_i32_0 = arith.constant 0 : i32
    %c0_i32_1 = arith.constant 0 : i32
    return %arg0, %c0_i32, %c0_i32_0 : i32, i32, i32
  }
  func.func @transform_4(%arg0: i32, %arg1: memref<24xi32, #tpu.memory_space<smem>>, %arg2: memref<24xi32, #tpu.memory_space<smem>>) -> (i32, i32, i32) {
    %c0_i32 = arith.constant 0 : i32
    %c0_i32_0 = arith.constant 0 : i32
    %c0_i32_1 = arith.constant 0 : i32
    return %arg0, %c0_i32, %c0_i32_0 : i32, i32, i32
  }
  func.func @transform_5(%arg0: i32, %arg1: memref<24xi32, #tpu.memory_space<smem>>, %arg2: memref<24xi32, #tpu.memory_space<smem>>) -> (i32, i32, i32, i32) {
    %c0_i32 = arith.constant 0 : i32
    %c0_i32_0 = arith.constant 0 : i32
    %c0_i32_1 = arith.constant 0 : i32
    %c0_i32_2 = arith.constant 0 : i32
    return %arg0, %c0_i32, %c0_i32_0, %c0_i32_1 : i32, i32, i32, i32
  }
  func.func @transform_6(%arg0: i32, %arg1: memref<24xi32, #tpu.memory_space<smem>>, %arg2: memref<24xi32, #tpu.memory_space<smem>>) -> (i32, i32, i32, i32) {
    %c0_i32 = arith.constant 0 : i32
    %c0_i32_0 = arith.constant 0 : i32
    %c0_i32_1 = arith.constant 0 : i32
    %c0_i32_2 = arith.constant 0 : i32
    return %arg0, %c0_i32, %c0_i32_0, %c0_i32_1 : i32, i32, i32, i32
  }
  func.func @transform_7(%arg0: i32, %arg1: memref<24xi32, #tpu.memory_space<smem>>, %arg2: memref<24xi32, #tpu.memory_space<smem>>) -> (i32, i32, i32, i32) {
    %c0_i32 = arith.constant 0 : i32
    %c0_i32_0 = arith.constant 0 : i32
    %c0_i32_1 = arith.constant 0 : i32
    %c0_i32_2 = arith.constant 0 : i32
    return %arg0, %c0_i32, %c0_i32_0, %c0_i32_1 : i32, i32, i32, i32
  }
  func.func @transform_8(%arg0: i32, %arg1: memref<24xi32, #tpu.memory_space<smem>>, %arg2: memref<24xi32, #tpu.memory_space<smem>>) -> (i32, i32, i32) {
    %c0_i32 = arith.constant 0 : i32
    %c0_i32_0 = arith.constant 0 : i32
    %c0_i32_1 = arith.constant 0 : i32
    return %arg0, %c0_i32, %c0_i32_0 : i32, i32, i32
  }
  func.func @transform_9(%arg0: i32, %arg1: memref<24xi32, #tpu.memory_space<smem>>, %arg2: memref<24xi32, #tpu.memory_space<smem>>) -> (i32, i32, i32) {
    %c0_i32 = arith.constant 0 : i32
    %c0_i32_0 = arith.constant 0 : i32
    %c0_i32_1 = arith.constant 0 : i32
    return %arg0, %c0_i32, %c0_i32_0 : i32, i32, i32
  }
  func.func @transform_10(%arg0: i32, %arg1: memref<24xi32, #tpu.memory_space<smem>>, %arg2: memref<24xi32, #tpu.memory_space<smem>>) -> (i32, i32, i32) {
    %c0_i32 = arith.constant 0 : i32
    %c0_i32_0 = arith.constant 0 : i32
    %c0_i32_1 = arith.constant 0 : i32
    return %arg0, %c0_i32, %c0_i32_0 : i32, i32, i32
  }
  func.func @transform_11(%arg0: i32, %arg1: memref<24xi32, #tpu.memory_space<smem>>, %arg2: memref<24xi32, #tpu.memory_space<smem>>) -> (i32, i32, i32) {
    %c0_i32 = arith.constant 0 : i32
    %c0_i32_0 = arith.constant 0 : i32
    %c0_i32_1 = arith.constant 0 : i32
    return %arg0, %c0_i32, %c0_i32_0 : i32, i32, i32
  }
  func.func @transform_12(%arg0: i32, %arg1: memref<24xi32, #tpu.memory_space<smem>>, %arg2: memref<24xi32, #tpu.memory_space<smem>>) -> (i32, i32, i32) {
    %c0_i32 = arith.constant 0 : i32
    %c0_i32_0 = arith.constant 0 : i32
    %c0_i32_1 = arith.constant 0 : i32
    return %arg0, %c0_i32, %c0_i32_0 : i32, i32, i32
  }
  func.func @transform_13(%arg0: i32, %arg1: memref<24xi32, #tpu.memory_space<smem>>, %arg2: memref<24xi32, #tpu.memory_space<smem>>) -> (i32, i32, i32) {
    %c0_i32 = arith.constant 0 : i32
    %c0_i32_0 = arith.constant 0 : i32
    %c0_i32_1 = arith.constant 0 : i32
    return %arg0, %c0_i32, %c0_i32_0 : i32, i32, i32
  }
  func.func @transform_14(%arg0: i32, %arg1: memref<24xi32, #tpu.memory_space<smem>>, %arg2: memref<24xi32, #tpu.memory_space<smem>>) -> (i32, i32, i32) {
    %c0_i32 = arith.constant 0 : i32
    %c0_i32_0 = arith.constant 0 : i32
    %c0_i32_1 = arith.constant 0 : i32
    return %arg0, %c0_i32, %c0_i32_0 : i32, i32, i32
  }
  func.func @transform_15(%arg0: i32, %arg1: memref<24xi32, #tpu.memory_space<smem>>, %arg2: memref<24xi32, #tpu.memory_space<smem>>) -> (i32, i32, i32) {
    %0 = arith.index_cast %arg0 : i32 to index
    %1 = memref.load %arg2[%0] : memref<24xi32, #tpu.memory_space<smem>>
    %c0_i32 = arith.constant 0 : i32
    %c0_i32_0 = arith.constant 0 : i32
    %c0_i32_1 = arith.constant 0 : i32
    return %1, %c0_i32, %c0_i32_0 : i32, i32, i32
  }
  func.func @transform_16(%arg0: i32, %arg1: memref<24xi32, #tpu.memory_space<smem>>, %arg2: memref<24xi32, #tpu.memory_space<smem>>) -> (i32, i32, i32) {
    %0 = arith.index_cast %arg0 : i32 to index
    %1 = memref.load %arg2[%0] : memref<24xi32, #tpu.memory_space<smem>>
    %c0_i32 = arith.constant 0 : i32
    %c0_i32_0 = arith.constant 0 : i32
    %c0_i32_1 = arith.constant 0 : i32
    return %1, %c0_i32, %c0_i32_0 : i32, i32, i32
  }
  func.func @transform_17(%arg0: i32, %arg1: memref<24xi32, #tpu.memory_space<smem>>, %arg2: memref<24xi32, #tpu.memory_space<smem>>) -> (i32, i32, i32) {
    %0 = arith.index_cast %arg0 : i32 to index
    %1 = memref.load %arg2[%0] : memref<24xi32, #tpu.memory_space<smem>>
    %c0_i32 = arith.constant 0 : i32
    %c0_i32_0 = arith.constant 0 : i32
    %c0_i32_1 = arith.constant 0 : i32
    return %1, %c0_i32, %c0_i32_0 : i32, i32, i32
  }
  func.func @transform_18(%arg0: i32, %arg1: memref<24xi32, #tpu.memory_space<smem>>, %arg2: memref<24xi32, #tpu.memory_space<smem>>) -> (i32, i32, i32) {
    %0 = arith.index_cast %arg0 : i32 to index
    %1 = memref.load %arg2[%0] : memref<24xi32, #tpu.memory_space<smem>>
    %c0_i32 = arith.constant 0 : i32
    %c0_i32_0 = arith.constant 0 : i32
    %c0_i32_1 = arith.constant 0 : i32
    return %1, %c0_i32, %c0_i32_0 : i32, i32, i32
  }
  func.func @transform_19(%arg0: i32, %arg1: memref<24xi32, #tpu.memory_space<smem>>, %arg2: memref<24xi32, #tpu.memory_space<smem>>) -> (i32, i32, i32) {
    %c0_i32 = arith.constant 0 : i32
    %c0_i32_0 = arith.constant 0 : i32
    %c0_i32_1 = arith.constant 0 : i32
    %c0_i32_2 = arith.constant 0 : i32
    return %c0_i32, %c0_i32_0, %c0_i32_1 : i32, i32, i32
  }
}

module attributes {stable_mosaic.version = 11 : i64} {
  func.func @_patch_embed_kernel(%arg0: memref<32x128xf32, #tpu.memory_space<vmem>>, %arg1: memref<128x128xbf16, #tpu.memory_space<vmem>>, %arg2: memref<32x128xf32, #tpu.memory_space<vmem>>) attributes {dimension_semantics = [], scalar_prefetch = 0 : i64, scratch_operands = 0 : i64, tpu.core_type = #tpu.core_type<tc>} {
    %c0 = arith.constant 0 : index
    %c0_0 = arith.constant 0 : index
    %0 = vector.load %arg0[%c0, %c0_0] : memref<32x128xf32, #tpu.memory_space<vmem>>, vector<32x128xf32>
    %1 = arith.truncf %0 : vector<32x128xf32> to vector<32x128xbf16>
    %c0_1 = arith.constant 0 : index
    %c0_2 = arith.constant 0 : index
    %2 = vector.load %arg1[%c0_1, %c0_2] : memref<128x128xbf16, #tpu.memory_space<vmem>>, vector<128x128xbf16>
    %cst = arith.constant dense<0.000000e+00> : vector<32x128xf32>
    %3 = tpu.matmul %1, %2, %cst {dimension_numbers = #tpu.dot_dimension_numbers<[1], [0], [0], [1], [0, 0, 1, 1], [], []>} : vector<32x128xbf16>, vector<128x128xbf16>, vector<32x128xf32> -> vector<32x128xf32>
    %c0_3 = arith.constant 0 : index
    %c0_4 = arith.constant 0 : index
    %4 = vector.load %arg2[%c0_3, %c0_4] : memref<32x128xf32, #tpu.memory_space<vmem>>, vector<32x128xf32>
    tpu.vector_store %arg2[%c0_3, %c0_4], %3 {strides = array<i32>} : memref<32x128xf32, #tpu.memory_space<vmem>>, vector<32x128xf32>,
    return
  }
}

module attributes {stable_mosaic.version = 11 : i64} {
  func.func @_head_kernel(%arg0: memref<2x128xf32, #tpu.memory_space<vmem>>, %arg1: memref<32x128xf32, #tpu.memory_space<vmem>>, %arg2: memref<1x128xf32, #tpu.memory_space<vmem>>, %arg3: memref<1x128xf32, #tpu.memory_space<vmem>>, %arg4: memref<128x64xbf16, #tpu.memory_space<vmem>>, %arg5: memref<2x64xf32, #tpu.memory_space<vmem>>, %arg6: memref<32x128xf32, #tpu.memory_space<vmem>>) attributes {dimension_semantics = [], scalar_prefetch = 0 : i64, scratch_operands = 0 : i64, tpu.core_type = #tpu.core_type<tc>} {
    %c0 = arith.constant 0 : index
    %c0_0 = arith.constant 0 : index
    %0 = vector.load %arg0[%c0, %c0_0] : memref<2x128xf32, #tpu.memory_space<vmem>>, vector<2x128xf32>
    %c0_1 = arith.constant 0 : index
    %c0_2 = arith.constant 0 : index
    %1 = vector.load %arg2[%c0_1, %c0_2] : memref<1x128xf32, #tpu.memory_space<vmem>>, vector<1x128xf32>
    %c0_3 = arith.constant 0 : index
    %c0_4 = arith.constant 0 : index
    %2 = vector.load %arg3[%c0_3, %c0_4] : memref<1x128xf32, #tpu.memory_space<vmem>>, vector<1x128xf32>
    %cst = arith.constant dense<0.000000e+00> : vector<2xf32>
    %3 = vector.multi_reduction <add>, %0, %cst [1] : vector<2x128xf32> to vector<2xf32>
    %4 = vector.shape_cast %3 : vector<2xf32> to vector<2x1xf32>
    %cst_5 = arith.constant 1.280000e+02 : f32
    %5 = vector.broadcast %cst_5 : f32 to vector<2x1xf32>
    %6 = arith.divf %4, %5 : vector<2x1xf32>
    %7 = vector.broadcast %6 : vector<2x1xf32> to vector<2x128xf32>
    %8 = arith.subf %0, %7 : vector<2x128xf32>
    %9 = arith.mulf %8, %8 : vector<2x128xf32>
    %cst_6 = arith.constant dense<0.000000e+00> : vector<2xf32>
    %10 = vector.multi_reduction <add>, %9, %cst_6 [1] : vector<2x128xf32> to vector<2xf32>
    %11 = vector.shape_cast %10 : vector<2xf32> to vector<2x1xf32>
    %cst_7 = arith.constant 1.280000e+02 : f32
    %12 = vector.broadcast %cst_7 : f32 to vector<2x1xf32>
    %13 = arith.divf %11, %12 : vector<2x1xf32>
    %cst_8 = arith.constant 9.99999974E-6 : f32
    %14 = vector.broadcast %cst_8 : f32 to vector<2x1xf32>
    %15 = arith.addf %13, %14 : vector<2x1xf32>
    %16 = math.rsqrt %15 : vector<2x1xf32>
    %17 = vector.broadcast %16 : vector<2x1xf32> to vector<2x128xf32>
    %18 = arith.mulf %8, %17 : vector<2x128xf32>
    %19 = vector.broadcast %1 : vector<1x128xf32> to vector<2x128xf32>
    %20 = arith.mulf %18, %19 : vector<2x128xf32>
    %21 = vector.broadcast %2 : vector<1x128xf32> to vector<2x128xf32>
    %22 = arith.addf %20, %21 : vector<2x128xf32>
    %23 = arith.truncf %22 : vector<2x128xf32> to vector<2x128xbf16>
    %c0_9 = arith.constant 0 : index
    %c0_10 = arith.constant 0 : index
    %24 = vector.load %arg4[%c0_9, %c0_10] : memref<128x64xbf16, #tpu.memory_space<vmem>>, vector<128x64xbf16>
    %cst_11 = arith.constant dense<0.000000e+00> : vector<2x64xf32>
    %25 = tpu.matmul %23, %24, %cst_11 {dimension_numbers = #tpu.dot_dimension_numbers<[1], [0], [0], [1], [0, 0, 1, 1], [], []>} : vector<2x128xbf16>, vector<128x64xbf16>, vector<2x64xf32> -> vector<2x64xf32>
    %26 = arith.mulf %25, %25 : vector<2x64xf32>
    %cst_12 = arith.constant dense<0.000000e+00> : vector<2xf32>
    %27 = vector.multi_reduction <add>, %26, %cst_12 [1] : vector<2x64xf32> to vector<2xf32>
    %28 = vector.shape_cast %27 : vector<2xf32> to vector<2x1xf32>
    %cst_13 = arith.constant 1.000000e-24 : f32
    %29 = vector.broadcast %cst_13 : f32 to vector<2x1xf32>
    %30 = arith.maximumf %28, %29 : vector<2x1xf32>
    %31 = math.rsqrt %30 : vector<2x1xf32>
    %32 = vector.broadcast %31 : vector<2x1xf32> to vector<2x64xf32>
    %33 = arith.mulf %25, %32 : vector<2x64xf32>
    %c0_14 = arith.constant 0 : index
    %c0_15 = arith.constant 0 : index
    %34 = vector.load %arg5[%c0_14, %c0_15] : memref<2x64xf32, #tpu.memory_space<vmem>>, vector<2x64xf32>
    tpu.vector_store %arg5[%c0_14, %c0_15], %33 {strides = array<i32>} : memref<2x64xf32, #tpu.memory_space<vmem>>, vector<2x64xf32>,
    %c0_16 = arith.constant 0 : index
    %c0_17 = arith.constant 0 : index
    %35 = vector.load %arg1[%c0_16, %c0_17] : memref<32x128xf32, #tpu.memory_space<vmem>>, vector<32x128xf32>
    %36 = arith.mulf %35, %35 : vector<32x128xf32>
    %cst_18 = arith.constant dense<0.000000e+00> : vector<32xf32>
    %37 = vector.multi_reduction <add>, %36, %cst_18 [1] : vector<32x128xf32> to vector<32xf32>
    %38 = vector.shape_cast %37 : vector<32xf32> to vector<32x1xf32>
    %cst_19 = arith.constant 1.000000e-24 : f32
    %39 = vector.broadcast %cst_19 : f32 to vector<32x1xf32>
    %40 = arith.maximumf %38, %39 : vector<32x1xf32>
    %41 = math.rsqrt %40 : vector<32x1xf32>
    %42 = vector.broadcast %41 : vector<32x1xf32> to vector<32x128xf32>
    %43 = arith.mulf %35, %42 : vector<32x128xf32>
    %c0_20 = arith.constant 0 : index
    %c0_21 = arith.constant 0 : index
    %44 = vector.load %arg6[%c0_20, %c0_21] : memref<32x128xf32, #tpu.memory_space<vmem>>, vector<32x128xf32>
    tpu.vector_store %arg6[%c0_20, %c0_21], %43 {strides = array<i32>} : memref<32x128xf32, #tpu.memory_space<vmem>>, vector<32x128xf32>,
    return
  }
}

</mosaic_0001>

<bundles_post_ra>
// kernel: forward.3
= control target key start
LH: loop header
LB: loop body
LE: loop exit
PB: predicated region body
PF: predicated region fallthrough
CT: control target
= control target key end

     0   :  { %7 = vsyncpa [#allocation3], 0  ;;  %s202_s12 = smov [#allocation2]   ;;  %s203_s14 = smov 64   ;;  %s247_s0 = inlined_call_operand.vmem [shape: f32[32,128], index: 0, kind: input, shape index: {}]   ;;  %s248_s1 = inlined_call_operand.hbm [shape: bf16[128,128], index: 1, kind: input, shape index: {}]   ;;  %s249_s2 = inlined_call_operand.vmem [shape: f32[32,128], index: 2, kind: output, shape index: {}]  }
   0x1   :  { %s14_s11 = sshll.u32 %s248_s1, 4  ;;  %s16_s13 = sshll.u32 %s202_s12, 4  ;;  %s15_s11 = int_to_ptr.hbm [resolvable:$true] %s14_s11  ;;  %s17_s13 = int_to_ptr.vmem [resolvable:$true] %s16_s13 }
   0x2   :  { %s204_s15 = smov 4  }
   0x3   :  { %22 = dma.hbm_to_vmem [thread:$0]  %s15_s11, 1024, %s17_s13, [#allocation3], %s203_s14, %s203_s14, %s204_s15  }
   0x4   :  { %200 = dma.done.wait [#allocation3], 1024  }
   0x5   :  { %201 = vsyncadd [#allocation3], 4294966272  ;;  %v164_v0 = vld [vmem:[#allocation2 + $0x38] sm:$0xff]  ;;  %v163_v1 = vld [vmem:[#allocation2 + $0x30] sm:$0xff] }
   0x6   :  { %97 = vmatpush.bf16.msra.mxu0 %v164_v0  ;;  %165 = vmatpush.bf16.msra.mxu1 %v164_v0  ;;  %v162_v2 = vld [vmem:[#allocation2 + $0x28] sm:$0xff]  ;;  %v161_v3 = vld [vmem:[#allocation2 + $0x20] sm:$0xff]  ;;  %v160_v4 = vld [vmem:[#allocation2 + $0x18] sm:$0xff] }
   0x7   :  { %v159_v5 = vld [vmem:[#allocation2 + $0x10] sm:$0xff]  ;;  %v158_v6 = vld [vmem:[#allocation2 + $0x8] sm:$0xff]  ;;  %v157_v7 = vld [vmem:[#allocation2] sm:$0xff] }
   0x8   :  { %v27_v8 = vld [vmem:[%s247_s0] sm:$0xff]  ;;  %v28_v9 = vld [vmem:[%s247_s0 + $0x8] sm:$0xff]  ;;  %v29_v10 = vld [vmem:[%s247_s0 + $0x10] sm:$0xff] }
   0x9   :  { %v30_v11 = vld [vmem:[%s247_s0 + $0x18] sm:$0xff]  ;;  %v31_v12 = vpack.c.bf16 %v28_v9, %v27_v8 }
   0xa   :  { %98 = vmatpush.bf16.msra.mxu0 %v163_v1  ;;  %166 = vmatpush.bf16.msra.mxu1 %v163_v1  ;;  %v32_v13 = vpack.c.bf16 %v30_v11, %v29_v10 }
   0xe   :  { %99 = vmatpush.bf16.msra.mxu0 %v162_v2  ;;  %167 = vmatpush.bf16.msra.mxu1 %v162_v2 }
  0x12   :  { %100 = vmatpush.bf16.msra.mxu0 %v161_v3  ;;  %168 = vmatpush.bf16.msra.mxu1 %v161_v3 }
  0x16   :  { %101 = vmatpush.bf16.msra.mxu0 %v160_v4  ;;  %169 = vmatpush.bf16.msra.mxu1 %v160_v4 }
  0x1a   :  { %102 = vmatpush.bf16.msra.mxu0 %v159_v5  ;;  %170 = vmatpush.bf16.msra.mxu1 %v159_v5 }
  0x1e   :  { %103 = vmatpush.bf16.msra.mxu0 %v158_v6  ;;  %171 = vmatpush.bf16.msra.mxu1 %v158_v6 }
  0x22   :  { %104 = vmatpush.bf16.msra.mxu0 %v157_v7  ;;  %172 = vmatpush.bf16.msra.mxu1 %v157_v7 }
  0x25   :  { %105 = vmatmul.bf16.vlgmr.msra.gmra.mxu0 %v31_v12  ;;  %110 = vmatmul.bf16.vlgmr.msra.gmra.mxu1 %v32_v13 }
  0xa2   :  { %v106_v14 = vpop.f32.mrf.mxu0  ;;  %v111_v15 = vpop.f32.mrf.mxu1 }
  0xa3   :  { %116 = vst [vmem:[%s249_s2] sm:$0xff] %v106_v14 }
  0xa4   :  { %118 = vst [vmem:[%s249_s2 + $0x10] sm:$0xff] %v111_v15 }
  0xaa   :  { %v108_v16 = vpop.f32.mrf.mxu0  ;;  %v113_v17 = vpop.f32.mrf.mxu1 }
  0xab   :  { %117 = vst [vmem:[%s249_s2 + $0x8] sm:$0xff] %v108_v16 }
  0xac   :  { %119 = vst [vmem:[%s249_s2 + $0x18] sm:$0xff] %v113_v17 }
  0xad   :  { %124 = vsyncpa [#allocation3], 1 }

// kernel: forward.5
= control target key start
LH: loop header
LB: loop body
LE: loop exit
PB: predicated region body
PF: predicated region fallthrough
CT: control target
= control target key end

     0   :  { %12 = vsyncpa [#allocation3], 0  ;;  %vm27_vm0 = vcmask 1041408   ;;  %s486_s0 = inlined_call_operand.vmem [shape: f32[2,128], index: 0, kind: input, shape index: {}]   ;;  %s487_s1 = inlined_call_operand.vmem [shape: f32[32,128], index: 1, kind: input, shape index: {}]   ;;  %s488_s2 = inlined_call_operand.vmem [shape: f32[1,128], index: 2, kind: input, shape index: {}]   ;;  %s489_s3 = inlined_call_operand.vmem [shape: f32[1,128], index: 3, kind: input, shape index: {}]   ;;  %s490_s4 = inlined_call_operand.vmem [shape: bf16[128,64], index: 4, kind: input, shape index: {}]   ;;  %s491_s5 = inlined_call_operand.hbm [shape: f32[2,64], index: 5, kind: output, shape index: {0}]   ;;  %s492_s6 = inlined_call_operand.hbm [shape: f32[32,128], index: 6, kind: output, shape index: {1}]  }
   0x1   :  { %v24_v0 = vld [vmem:[%s486_s0] sm:$0x3] }
   0x2   :  { %v28_v1 = vsel %vm27_vm0, %v24_v0, 0.0 }
   0x3   :  { %13 = vsyncpa [#allocation5], 0  ;;  %29 = vadd.xlane.f32.xlu0 %v28_v1  ;;  %v376_v2 = vmov 128.0   ;;  %v302_v3 = vld [vmem:[%s490_s4 + $0x38] sm:$0xff]  ;;  %v301_v15 = vld [vmem:[%s490_s4 + $0x30] sm:$0xff]  ;;  %vm144_vm11 = vcmask 517120  }
   0x4   :  { %310 = vrcp.f32 %v376_v2  ;;  %130 = vmatpush.bf16.msra.mxu0 %v302_v3  ;;  %v300_v16 = vld [vmem:[%s490_s4 + $0x28] sm:$0xff]  ;;  %v299_v17 = vld [vmem:[%s490_s4 + $0x20] sm:$0xff]  ;;  %v298_v18 = vld [vmem:[%s490_s4 + $0x18] sm:$0xff]  ;;  %s236_s25 = sshll.u32 %s491_s5, 4  ;;  %s378_s26 = smov [#allocation4]   ;;  %s237_s25 = int_to_ptr.hbm [resolvable:$true] %s236_s25 }
   0x5   :  { %v297_v19 = vld [vmem:[%s490_s4 + $0x10] sm:$0xff]  ;;  %v296_v20 = vld [vmem:[%s490_s4 + $0x8] sm:$0xff]  ;;  %v295_v21 = vld [vmem:[%s490_s4] sm:$0xff]  ;;  %s244_s27 = sshll.u32 %s378_s26, 4  ;;  %s246_s30 = sshll.u32 %s492_s6, 4  ;;  %s245_s27 = int_to_ptr.vmem [resolvable:$true] %s244_s27  ;;  %s247_s30 = int_to_ptr.hbm [resolvable:$true] %s246_s30 }
   0x6   :  { %v448_v22 = vld [vmem:[%s487_s1 + $0x8] sm:$0xff]  ;;  %v453_v23 = vld [vmem:[%s487_s1 + $0x18] sm:$0xff]  ;;  %v462_v29 = vld [vmem:[%s487_s1 + $0x10] sm:$0xff]  ;;  %s379_s5 = smov 128   ;;  %s380_s7 = smov 8  }
   0x7   :  { %v166_v25 = vmul.f32 %v448_v22, %v448_v22  ;;  %v168_v26 = vmul.f32 %v453_v23, %v453_v23  ;;  %v167_v30 = vmul.f32 %v462_v29, %v462_v29  ;;  %v308_v37 = vld [vmem:[%s488_s2] ss:$0 sm:$0xff] }
   0x8   :  { %131 = vmatpush.bf16.msra.mxu0 %v301_v15  ;;  %v309_v40 = vld [vmem:[%s489_s3] ss:$0 sm:$0xff] }
   0x9   :  { %171 = vadd.xlane.f32.xlu2 %v166_v25 }
   0xa   :  { %v311_v4 = vpop.eup %310 }
   0xb   :  { %v32_v5 = vmul.f32 128.0, %v311_v4  ;;  %vm36_vm1 = vweird.f32 %v311_v4 }
   0xc   :  { %132 = vmatpush.bf16.msra.mxu0 %v300_v16 }
   0xd   :  { %v33_v6 = vsub.f32 1.0, %v32_v5 }
   0xf   :  { %v34_v7 = vmul.f32 %v311_v4, %v33_v6 }
  0x10   :  { %133 = vmatpush.bf16.msra.mxu0 %v299_v17 }
  0x11   :  { %v35_v8 = vadd.f32 %v311_v4, %v34_v7  ;;  %173 = vadd.xlane.f32.xlu2 %v167_v30 }
  0x13   :  { %v37_v9 = vsel %vm36_vm1, %v311_v4, %v35_v8 }
  0x14   :  { %134 = vmatpush.bf16.msra.mxu0 %v298_v18 }
  0x18   :  { %135 = vmatpush.bf16.msra.mxu0 %v297_v19 }
  0x1c   :  { %136 = vmatpush.bf16.msra.mxu0 %v296_v20 }
  0x20   :  { %137 = vmatpush.bf16.msra.mxu0 %v295_v21 }
  0x76   :  { %v30_v10 = vpop.xlane.xlu0 %29 }
  0x77   :  { %v38_v11 = vmul.f32 %v37_v9, %v30_v10  ;;  %v161_v10 = vld [vmem:[%s487_s1] sm:$0xff]  ;;  %s377_s1 = smov [#allocation2]  }
  0x78   :  { %s234_s23 = sshll.u32 %s377_s1, 4  ;;  %s235_s23 = int_to_ptr.vmem [resolvable:$true] %s234_s23 }
  0x79   :  { %v39_v12 = vsub.f32 %v24_v0, %v38_v11 }
  0x7b   :  { %v40_v13 = vmul.f32 %v39_v12, %v39_v12 }
  0x7c   :  { %v172_v44 = vpop.xlane.xlu2 %171 }
  0x7d   :  { %v41_v14 = vsel %vm27_vm0, %v40_v13, 0.0  ;;  %v178_v46 = vmax.f32 %v172_v44, 1e-24  ;;  %v165_v13 = vmul.f32 %v161_v10, %v161_v10 }
  0x7e   :  { %42 = vadd.xlane.f32.xlu0 %v41_v14 }
  0x7f   :  { %vm197_vm5 = vweird.f32 %v178_v46 }
  0x84   :  { %v174_v48 = vpop.xlane.xlu2 %173 }
  0x85   :  { %v179_v50 = vmax.f32 %v174_v48, 1e-24 }
  0x86   :  { %175 = vadd.xlane.f32.xlu0 %v168_v26 }
  0x87   :  { %vm207_vm12 = vweird.f32 %v179_v50 }
  0xf1   :  { %v43_v24 = vpop.xlane.xlu0 %42 }
  0xf2   :  { %v44_v27 = vmul.f32 %v43_v24, %v37_v9 }
  0xf4   :  { %v45_v28 = vadd.f32 1e-05, %v44_v27 }
  0xf6   :  { %312 = vrsqrt.f32 %v45_v28  ;;  %vm52_vm3 = vweird.f32 %v45_v28 }
  0xf7   :  { %314 = vrsqrt.f32 %v178_v46 }
  0xf9   :  { %v176_v45 = vpop.xlane.xlu0 %175 }
  0xfa   :  { %v180_v47 = vmax.f32 %v176_v45, 1e-24 }
  0xfc   :  { %v313_v31 = vpop.eup %312  ;;  %316 = vrsqrt.f32 %v180_v47  ;;  %vm217_vm7 = vweird.f32 %v180_v47 }
  0xfd   :  { %v47_v32 = vmul.f32 %v313_v31, %v45_v28  ;;  %vm53_vm2 = vweird.f32 %v313_v31  ;;  %v315_v49 = vpop.eup %314  ;;  %318 = vrsqrt.f32 %v179_v50 }
  0xfe   :  { %vm54_vm4 = vmor %vm52_vm3, %vm53_vm2  ;;  %v192_v52 = vmul.f32 %v315_v49, %v178_v46  ;;  %vm198_vm6 = vweird.f32 %v315_v49 }
  0xff   :  { %v48_v33 = vmul.f32 %v313_v31, %v47_v32  ;;  %vm199_vm9 = vmor %vm197_vm5, %vm198_vm6 }
 0x100   :  { %v193_v54 = vmul.f32 %v315_v49, %v192_v52 }
 0x101   :  { %v49_v34 = vmul.f32 0.5, %v48_v33 }
 0x102   :  { %v317_v51 = vpop.eup %316  ;;  %v194_v56 = vmul.f32 0.5, %v193_v54 }
 0x103   :  { %v50_v35 = vsub.f32 1.5, %v49_v34  ;;  %v212_v53 = vmul.f32 %v317_v51, %v180_v47  ;;  %vm218_vm8 = vweird.f32 %v317_v51  ;;  %v319_v59 = vpop.eup %318 }
 0x104   :  { %v195_v58 = vsub.f32 1.5, %v194_v56  ;;  %v202_v62 = vmul.f32 %v319_v59, %v179_v50  ;;  %vm219_vm10 = vmor %vm217_vm7, %vm218_vm8  ;;  %vm208_vm13 = vweird.f32 %v319_v59 }
 0x105   :  { %v51_v36 = vmul.f32 %v313_v31, %v50_v35  ;;  %v213_v55 = vmul.f32 %v317_v51, %v212_v53  ;;  %vm209_vm14 = vmor %vm207_vm12, %vm208_vm13 }
 0x106   :  { %v196_v61 = vmul.f32 %v315_v49, %v195_v58  ;;  %v203_v2 = vmul.f32 %v319_v59, %v202_v62 }
 0x107   :  { %v55_v38 = vsel %vm54_vm4, %v313_v31, %v51_v36  ;;  %v214_v57 = vmul.f32 0.5, %v213_v55 }
 0x108   :  { %v56_v39 = vmul.f32 %v55_v38, %v39_v12  ;;  %v200_v1 = vsel %vm199_vm9, %v315_v49, %v196_v61  ;;  %v204_v6 = vmul.f32 0.5, %v203_v2 }
 0x109   :  { %v215_v60 = vsub.f32 1.5, %v214_v57  ;;  %v222_v4 = vmul.f32 %v200_v1, %v448_v22 }
 0x10a   :  { %v60_v41 = vmul.f32 %v308_v37, %v56_v39  ;;  %v205_v9 = vsub.f32 1.5, %v204_v6 }
 0x10b   :  { %v216_v63 = vmul.f32 %v317_v51, %v215_v60  ;;  %226 = vst [vmem:[#allocation4 + $0x8] sm:$0xff] %v222_v4 }
 0x10c   :  { %v64_v42 = vadd.f32 %v309_v40, %v60_v41  ;;  %v206_v11 = vmul.f32 %v319_v59, %v205_v9 }
 0x10d   :  { %v220_v5 = vsel %vm219_vm10, %v317_v51, %v216_v63 }
 0x10e   :  { %v65_v43 = vpack.c.bf16 %v64_v42, %v64_v42  ;;  %v224_v7 = vmul.f32 %v220_v5, %v453_v23  ;;  %v210_v14 = vsel %vm209_vm14, %v319_v59, %v206_v11 }
 0x10f   :  { %v223_v15 = vmul.f32 %v210_v14, %v462_v29 }
 0x110   :  { %138 = vmatmul.bf16.vlgmr.msra.gmra.mxu0 %v65_v43  ;;  %228 = vst [vmem:[#allocation4 + $0x18] sm:$0xff] %v224_v7 }
 0x111   :  { %227 = vst [vmem:[#allocation4 + $0x10] sm:$0xff] %v223_v15 }
 0x18d   :  { %v139_v0 = vpop.f32.mrf.mxu0 }
 0x18e   :  { %v143_v3 = vmul.f32 %v139_v0, %v139_v0 }
 0x190   :  { %v145_v8 = vsel %vm144_vm11, %v143_v3, 0.0 }
 0x191   :  { %146 = vadd.xlane.f32.xlu1 %v145_v8 }
 0x195   :  { %v141_v12 = vpop.f32.mrf.mxu0 }
 0x199   :  { %169 = vadd.xlane.f32.xlu1 %v165_v13 }
 0x204   :  { %v147_v16 = vpop.xlane.xlu1 %146 }
 0x205   :  { %v148_v17 = vmax.f32 %v147_v16, 1e-24 }
 0x207   :  { %320 = vrsqrt.f32 %v148_v17  ;;  %vm155_vm0 = vweird.f32 %v148_v17 }
 0x20c   :  { %v170_v18 = vpop.xlane.xlu1 %169 }
 0x20d   :  { %v321_v19 = vpop.eup %320  ;;  %v177_v20 = vmax.f32 %v170_v18, 1e-24 }
 0x20e   :  { %v150_v21 = vmul.f32 %v321_v19, %v148_v17  ;;  %vm156_vm15 = vweird.f32 %v321_v19 }
 0x20f   :  { %322 = vrsqrt.f32 %v177_v20  ;;  %vm157_vm1 = vmor %vm155_vm0, %vm156_vm15  ;;  %vm187_vm3 = vweird.f32 %v177_v20 }
 0x210   :  { %v151_v22 = vmul.f32 %v321_v19, %v150_v21 }
 0x212   :  { %v152_v23 = vmul.f32 0.5, %v151_v22 }
 0x214   :  { %v153_v24 = vsub.f32 1.5, %v152_v23 }
 0x215   :  { %v323_v25 = vpop.eup %322 }
 0x216   :  { %v182_v26 = vmul.f32 %v323_v25, %v177_v20  ;;  %v154_v27 = vmul.f32 %v321_v19, %v153_v24  ;;  %vm188_vm2 = vweird.f32 %v323_v25 }
 0x217   :  { %vm189_vm4 = vmor %vm187_vm3, %vm188_vm2 }
 0x218   :  { %v183_v28 = vmul.f32 %v323_v25, %v182_v26  ;;  %v158_v29 = vsel %vm157_vm1, %v321_v19, %v154_v27 }
 0x219   :  { %v159_v30 = vmul.f32 %v158_v29, %v139_v0 }
 0x21a   :  { %v184_v31 = vmul.f32 0.5, %v183_v28 }
 0x21b   :  { %160 = vst.msk [vmem:[#allocation2] sm:$0x3] %vm144_vm11, %v159_v30 }
 0x21c   :  { %v185_v32 = vsub.f32 1.5, %v184_v31  ;;  %239 = dma.vmem_to_hbm [thread:$0]  %s235_s23, 32, %s237_s25, [#allocation3]  }
 0x21e   :  { %v186_v33 = vmul.f32 %v323_v25, %v185_v32 }
 0x220   :  { %v190_v34 = vsel %vm189_vm4, %v323_v25, %v186_v33 }
 0x221   :  { %v221_v35 = vmul.f32 %v190_v34, %v161_v10 }
 0x223   :  { %225 = vst [vmem:[#allocation4] sm:$0xff] %v221_v35 }
 0x224   :  { %252 = dma.vmem_to_hbm [thread:$0]  %s245_s27, 512, %s247_s30, [#allocation5], %s379_s5, %s379_s5, %s380_s7  }
 0x225   :  { %372 = dma.done.wait [#allocation3], 32  }
 0x226   :  { %373 = vsyncadd [#allocation3], 4294967264 }
 0x227   :  { %374 = dma.done.wait [#allocation5], 512  }
 0x228   :  { %375 = vsyncadd [#allocation5], 4294966784 }
 0x229   :  { %261 = vsyncpa [#allocation3], 1 }
 0x22a   :  { %262 = vsyncpa [#allocation5], 1 }

// kernel: forward.4
= control target key start
LH: loop header
LB: loop body
LE: loop exit
PB: predicated region body
PF: predicated region fallthrough
CT: control target
= control target key end

     0   :  { %s7621_s29 = smov [#allocation4]   ;;  %s9909_s0 = inlined_call_operand.vmem [shape: s32[24], index: 0, kind: input, shape index: {}]   ;;  %s9910_s2 = inlined_call_operand.vmem [shape: f32[2,24,128], index: 2, kind: input, shape index: {}]   ;;  %s9911_s3 = inlined_call_operand.vmem [shape: f32[1,128], index: 3, kind: input, shape index: {}]   ;;  %s9912_s4 = inlined_call_operand.vmem [shape: f32[1,128], index: 4, kind: input, shape index: {}]   ;;  %s9913_s5 = inlined_call_operand.vmem [shape: f32[24,1,128], index: 5, kind: input, shape index: {}]   ;;  %s9914_s6 = inlined_call_operand.vmem [shape: f32[24,1,128], index: 6, kind: input, shape index: {}]   ;;  %s9915_s7 = inlined_call_operand.vmem [shape: bf16[24,12,128,32], index: 7, kind: input, shape index: {}]   ;;  %s9916_s8 = inlined_call_operand.vmem [shape: f32[24,12,1,32], index: 8, kind: input, shape index: {}]   ;;  %s9917_s9 = inlined_call_operand.vmem [shape: bf16[24,4,32,128], index: 9, kind: input, shape index: {}]   ;;  %s9918_s10 = inlined_call_operand.vmem [shape: f32[24,1,128], index: 10, kind: input, shape index: {}]   ;;  %s9919_s11 = inlined_call_operand.vmem [shape: f32[24,1,128], index: 11, kind: input, shape index: {}]   ;;  %s9920_s12 = inlined_call_operand.vmem [shape: f32[24,1,128], index: 12, kind: input, shape index: {}]   ;;  %s9921_s13 = inlined_call_operand.vmem [shape: bf16[24,128,512], index: 13, kind: input, shape index: {}]   ;;  %s9922_s14 = inlined_call_operand.vmem [shape: f32[24,1,512], index: 14, kind: input, shape index: {}]   ;;  %s9923_s15 = inlined_call_operand.vmem [shape: bf16[24,512,128], index: 15, kind: input, shape index: {}]   ;;  %s9924_s16 = inlined_call_operand.vmem [shape: f32[24,1,128], index: 16, kind: input, shape index: {}]   ;;  %s9925_s17 = inlined_call_operand.vmem [shape: bf16[4,128,32], index: 17, kind: input, shape index: {}]   ;;  %s9926_s18 = inlined_call_operand.vmem [shape: bf16[4,32,128], index: 18, kind: input, shape index: {}]   ;;  %s9927_s19 = inlined_call_operand.vmem [shape: bf16[4,128,32], index: 19, kind: input, shape index: {}]   ;;  %s9928_s20 = inlined_call_operand.vmem [shape: bf16[4,32,128], index: 20, kind: input, shape index: {}]   ;;  %s9929_s21 = inlined_call_operand.vmem [shape: f32[2,24,128], index: 21, kind: output, shape index: {}]   ;;  %s9930_s1 = inlined_call_operand.vmem [shape: s32[24], index: 1, kind: input, shape index: {}]  }
   0x1   :  { %9946 = sst [smem:[#allocation19_spill]] %s9909_s0  ;;  %s32_s28 = sshll.u32 %s9930_s1, 4  ;;  %s33_s28 = int_to_ptr.vmem [resolvable:$true] %s32_s28 }
   0x2   :  { %9947 = sst [smem:[#allocation20_spill]] %s9910_s2  ;;  %s7622_s0 = smov [#allocation5]  }
   0x3   :  { %9948 = sst [smem:[#allocation21_spill]] %s9911_s3 }
   0x4   :  { %9949 = sst [smem:[#allocation22_spill]] %s9912_s4 }
   0x5   :  { %9950 = sst [smem:[#allocation23_spill]] %s9913_s5 }
   0x6   :  { %9951 = sst [smem:[#allocation24_spill]] %s9914_s6 }
   0x7   :  { %9952 = sst [smem:[#allocation25_spill]] %s9915_s7 }
   0x8   :  { %9953 = sst [smem:[#allocation26_spill]] %s9916_s8 }
   0x9   :  { %9954 = sst [smem:[#allocation27_spill]] %s9917_s9 }
   0xa   :  { %9955 = sst [smem:[#allocation28_spill]] %s9921_s13 }
   0xb   :  { %9956 = sst [smem:[#allocation29_spill]] %s9922_s14 }
   0xc   :  { %9957 = sst [smem:[#allocation30_spill]] %s9923_s15 }
   0xd   :  { %9958 = sst [smem:[#allocation31_spill]] %s9924_s16 }
   0xe   :  { %9959 = sst [smem:[#allocation32_spill]] %s9925_s17 }
   0xf   :  { %9960 = sst [smem:[#allocation33_spill]] %s9926_s18 }
  0x10   :  { %9961 = sst [smem:[#allocation34_spill]] %s9927_s19 }
  0x11   :  { %9962 = sst [smem:[#allocation35_spill]] %s9928_s20 }
  0x12   :  { %9963 = sst [smem:[#allocation36_spill]] %s9929_s21 }
  0x13   :  { %s9964_s26 = sld [smem:[#allocation19_spill]] }
  0x19   :  { %s27_s16 = sshll.u32 %s9964_s26, 4  ;;  %s28_s16 = int_to_ptr.vmem [resolvable:$true] %s27_s16 }
  0x1a   :  { %30 = dma.vmem_to_smem %s28_s16, 16, %s7621_s29, [#allocation3] }
  0x1b   :  { %35 = dma.vmem_to_smem %s33_s28, 16, %s7622_s0, [#allocation3] }
  0x1c   :  { %7615 = dma.done.wait [#allocation3], 32 }
  0x1d   :  { %7616 = vsyncadd [#allocation3], 4294967264 }
  0x1e   :  { %38 = sfence }
  0x1f   :  { %s7742_s5 = smov 0  }
  0x20 LB: > { %9965 = sst [smem:[#allocation7_spill]] %s7619_s5  ;;  %s7748_s1 = sadd.s32 4294967295, %s7619_s5   ;;  %s7619_s5 = sphi %s7742_s5, %s44_s5  }
  0x21   : > { %p6094_p0 = scmp.ge.s32.totalorder %s7619_s5, 1  ;;  %p699_p1 = scmp.lt.s32.totalorder %s7619_s5, 25 }
  0x23   : > { %p700_p2 = pnand %p6094_p0, %p699_p1 }
  0x25   : > { %703 = sbr.rel (%p700_p2) target bundleno = 4293 (0x10c5), region = 96 }
  0x2a   : > { %p815_p3 = scmp.lt.s32.totalorder %s7748_s1, 23  ;;  %s861_s16 = sld [smem:[#allocation5 + %s7748_s1]] }
  0x2b   : > { %s868_s30 = sld [smem:[#allocation5 + %s7748_s1]]  ;;  %p6111_p8 = scmp.ne.s32.totalorder %s7748_s1, 0 }
  0x2c   : > { %s7756_s6 = scalar_select %p815_p3, %s7748_s1, 23 }
  0x2d   : > { %s875_s22 = sld [smem:[#allocation5 + %s7748_s1]] }
  0x2e   : > { %s7314_s28 = smul.u32 768, %s7756_s6  ;;  %s7117_s29 = sshll.u32 %s7756_s6, 6 }
  0x2f   : > { %s7315_s0 = smul.u32 12, %s7756_s6  ;;  %s9968_s9 = sld [smem:[#allocation27_spill]] }
  0x30   : > { %s9969_s7 = sld [smem:[#allocation25_spill]]  ;;  %s7118_s19 = sshll.u32 %s7756_s6, 8 }
  0x31   : > { %s9970_s8 = sld [smem:[#allocation26_spill]]  ;;  %s6100_s2 = sshll.u32 %s7756_s6, 2 }
  0x32   : > { %s9971_s13 = sld [smem:[#allocation28_spill]]  ;;  %p862_p4 = scmp.lt.s32.totalorder %s861_s16, 3 }
  0x33   : > { %s9972_s14 = sld [smem:[#allocation29_spill]]  ;;  %p869_p5 = scmp.lt.s32.totalorder %s868_s30, 3 }
  0x34   : > { %s9973_s15 = sld [smem:[#allocation30_spill]]  ;;  %p876_p6 = scmp.lt.s32.totalorder %s875_s22, 3 }
  0x35   : > { %s7773_s20 = scalar_lea.vmem %s9968_s9, %s7117_s29  ;;  %s10045_s16 = smov (!%p862_p4, %s861_s16), 3 }
  0x36   : > { %s7778_s17 = scalar_lea.vmem %s9969_s7, %s7314_s28  ;;  %s10047_s30 = smov (!%p869_p5, %s868_s30), 3 }
  0x37   : > { %s7787_s27 = scalar_lea.vmem %s9970_s8, %s7315_s0  ;;  %s7120_s7 = sshll.u32 %s10045_s16, 6 }
  0x38   : > { %s7801_s23 = scalar_lea.vmem %s9971_s13, %s7118_s19  ;;  %s882_s28 = sld [smem:[#allocation5 + %s7748_s1]] }
  0x39   : > { %s7807_s0 = scalar_lea.vmem %s9972_s14, %s6100_s2  ;;  %s9975_s2 = sld [smem:[#allocation32_spill]] }
  0x3a   : > { %s7812_s3 = scalar_lea.vmem %s9973_s15, %s7118_s19  ;;  %s7121_s9 = sshll.u32 %s10047_s30, 4 }
  0x3b   : > { %s9976_s26 = sld [smem:[#allocation33_spill]]  ;;  %s10049_s22 = smov (!%p876_p6, %s875_s22), 3 }
  0x3c   : > { %s7122_s4 = sshll.u32 %s10049_s22, 6  ;;  %s9977_s18 = sld [smem:[#allocation34_spill]] }
  0x3d   : > { %s9981_s22 = sld [smem:[#allocation22_spill]] (!%p6111_p8) }
  0x3e   : > { %p883_p7 = scmp.lt.s32.totalorder %s882_s28, 3 }
  0x3f   : > { %s7822_s25 = scalar_lea.vmem %s9975_s2, %s7120_s7  ;;  %s9978_s7 = sld [smem:[#allocation35_spill]] }
  0x40   : > { %s10051_s28 = smov (!%p883_p7, %s882_s28), 3  ;;  %s9979_s2 = sld [smem:[#allocation20_spill]] (!%p6111_p8) }
  0x41   : > { %s7827_s13 = scalar_lea.vmem %s9976_s26, %s7121_s9  ;;  %s7123_s16 = sshll.u32 %s10051_s28, 4 }
  0x42   : > { %s7832_s14 = scalar_lea.vmem %s9977_s18, %s7122_s4  ;;  %893 = sbr.rel (%p6111_p8) target bundleno = 356 (0x164), region = 100 }
  0x45   : > { %s7837_s24 = scalar_lea.vmem %s9978_s7, %s7123_s16  ;;  %s9980_s7 = sld [smem:[#allocation21_spill]] (!%p6111_p8) }
  0x47   : > { %v898_v0 = vld [vmem:[%s9979_s2 + $0x20] sm:$0xff]  ;;  %v896_v1 = vld [vmem:[%s9979_s2 + $0x10] sm:$0xff]  ;;  %v899_v3 = vld [vmem:[%s9979_s2 + $0x28] sm:$0xff]  ;;  %v7623_v6 = vmov 128.0  }
  0x48   : > { %v894_v2 = vld [vmem:[%s9979_s2] sm:$0xff]  ;;  %910 = vadd.xlane.f32.xlu2 %v898_v0  ;;  %906 = vadd.xlane.f32.xlu1 %v896_v1  ;;  %v897_v4 = vld [vmem:[%s9979_s2 + $0x18] sm:$0xff]  ;;  %v895_v5 = vld [vmem:[%s9979_s2 + $0x8] sm:$0xff]  ;;  %7331 = vrcp.f32 %v7623_v6 }
  0x49   : > { %902 = vadd.xlane.f32.xlu0 %v894_v2 }
  0x4b   : > { %v7907_v6 = vld [vmem:[%s9980_s7] ss:$0 sm:$0xff] }
  0x4e   : > { %v7332_v7 = vpop.eup %7331 }
  0x4f   : > { %v915_v8 = vmul.f32 128.0, %v7332_v7  ;;  %vm919_vm0 = vweird.f32 %v7332_v7 }
  0x50   : > { %912 = vadd.xlane.f32.xlu2 %v899_v3  ;;  %908 = vadd.xlane.f32.xlu1 %v897_v4 }
  0x51   : > { %904 = vadd.xlane.f32.xlu0 %v895_v5  ;;  %v916_v9 = vsub.f32 1.0, %v915_v8 }
  0x53   : > { %v917_v10 = vmul.f32 %v7332_v7, %v916_v9 }
  0x55   : > { %v918_v11 = vadd.f32 %v7332_v7, %v917_v10 }
  0x57   : > { %v7858_v12 = vsel %vm919_vm0, %v7332_v7, %v918_v11 }
  0xbb   : > { %v911_v13 = vpop.xlane.xlu2 %910  ;;  %v907_v14 = vpop.xlane.xlu1 %906 }
  0xbc   : > { %v923_v15 = vmul.f32 %v7858_v12, %v907_v14  ;;  %v903_v16 = vpop.xlane.xlu0 %902  ;;  %v925_v33 = vmul.f32 %v7858_v12, %v911_v13 }
  0xbd   : > { %v921_v17 = vmul.f32 %v7858_v12, %v903_v16 }
  0xbe   : > { %v7862_v18 = vsub.f32 %v896_v1, %v923_v15  ;;  %v7886_v35 = vsub.f32 %v898_v0, %v925_v33 }
  0xbf   : > { %v7864_v19 = vsub.f32 %v894_v2, %v921_v17 }
  0xc0   : > { %v935_v20 = vmul.f32 %v7862_v18, %v7862_v18  ;;  %v937_v36 = vmul.f32 %v7886_v35, %v7886_v35 }
  0xc1   : > { %v933_v21 = vmul.f32 %v7864_v19, %v7864_v19 }
  0xc2   : > { %943 = vadd.xlane.f32.xlu2 %v935_v20 }
  0xc3   : > { %939 = vadd.xlane.f32.xlu0 %v933_v21  ;;  %v913_v22 = vpop.xlane.xlu2 %912  ;;  %v909_v23 = vpop.xlane.xlu1 %908 }
  0xc4   : > { %v926_v24 = vmul.f32 %v7858_v12, %v913_v22  ;;  %v924_v25 = vmul.f32 %v7858_v12, %v909_v23  ;;  %v905_v26 = vpop.xlane.xlu0 %904 }
  0xc5   : > { %v922_v27 = vmul.f32 %v7858_v12, %v905_v26 }
  0xc6   : > { %v7873_v28 = vsub.f32 %v899_v3, %v926_v24  ;;  %v7875_v29 = vsub.f32 %v897_v4, %v924_v25 }
  0xc7   : > { %v7877_v30 = vsub.f32 %v895_v5, %v922_v27 }
  0xc8   : > { %v938_v31 = vmul.f32 %v7873_v28, %v7873_v28  ;;  %v936_v32 = vmul.f32 %v7875_v29, %v7875_v29 }
  0xc9   : > { %v934_v34 = vmul.f32 %v7877_v30, %v7877_v30 }
  0xca   : > { %949 = vadd.xlane.f32.xlu2 %v938_v31 }
  0xcb   : > { %945 = vadd.xlane.f32.xlu0 %v936_v32  ;;  %941 = vadd.xlane.f32.xlu1 %v934_v34 }
  0xd3   : > { %947 = vadd.xlane.f32.xlu1 %v937_v36 }
 0x135   : > { %v944_v37 = vpop.xlane.xlu2 %943 }
 0x136   : > { %v953_v38 = vmul.f32 %v944_v37, %v7858_v12  ;;  %v940_v39 = vpop.xlane.xlu0 %939 }
 0x137   : > { %v951_v40 = vmul.f32 %v940_v39, %v7858_v12 }
 0x138   : > { %v959_v41 = vadd.f32 1e-05, %v953_v38 }
 0x139   : > { %v957_v42 = vadd.f32 1e-05, %v951_v40 }
 0x13a   : > { %7333 = vrsqrt.f32 %v959_v41  ;;  %vm989_vm1 = vweird.f32 %v959_v41 }
 0x13b   : > { %7335 = vrsqrt.f32 %v957_v42  ;;  %vm969_vm5 = vweird.f32 %v957_v42 }
 0x13d   : > { %v950_v43 = vpop.xlane.xlu2 %949 }
 0x13e   : > { %v956_v44 = vmul.f32 %v950_v43, %v7858_v12  ;;  %v942_v45 = vpop.xlane.xlu1 %941  ;;  %v946_v46 = vpop.xlane.xlu0 %945 }
 0x13f   : > { %v952_v47 = vmul.f32 %v942_v45, %v7858_v12  ;;  %v954_v48 = vmul.f32 %v946_v46, %v7858_v12 }
 0x140   : > { %v7334_v49 = vpop.eup %7333  ;;  %v962_v50 = vadd.f32 1e-05, %v956_v44 }
 0x141   : > { %v7336_v51 = vpop.eup %7335  ;;  %v984_v52 = vmul.f32 %v7334_v49, %v959_v41  ;;  %v7895_v53 = vadd.f32 1e-05, %v952_v47  ;;  %v7897_v54 = vadd.f32 1e-05, %v954_v48  ;;  %vm990_vm2 = vweird.f32 %v7334_v49 }
 0x142   : > { %v964_v55 = vmul.f32 %v7336_v51, %v957_v42  ;;  %7337 = vrsqrt.f32 %v962_v50  ;;  %vm970_vm3 = vweird.f32 %v7336_v51  ;;  %vm991_vm4 = vmor %vm989_vm1, %vm990_vm2  ;;  %vm1019_vm7 = vweird.f32 %v962_v50 }
 0x143   : > { %v985_v56 = vmul.f32 %v7334_v49, %v984_v52  ;;  %7339 = vrsqrt.f32 %v7895_v53  ;;  %vm971_vm6 = vmor %vm969_vm5, %vm970_vm3  ;;  %vm999_vm10 = vweird.f32 %v7897_v54  ;;  %vm979_vm13 = vweird.f32 %v7895_v53 }
 0x144   : > { %v965_v57 = vmul.f32 %v7336_v51, %v964_v55  ;;  %7341 = vrsqrt.f32 %v7897_v54 }
 0x145   : > { %v986_v58 = vmul.f32 0.5, %v985_v56 }
 0x146   : > { %v966_v59 = vmul.f32 0.5, %v965_v57  ;;  %v948_v60 = vpop.xlane.xlu1 %947 }
 0x147   : > { %v987_v61 = vsub.f32 1.5, %v986_v58  ;;  %v955_v62 = vmul.f32 %v948_v60, %v7858_v12  ;;  %v7330_v12 = vld [vmem:[%s9981_s22] ss:$0 sm:$0xff] }
 0x148   : > { %v7338_v63 = vpop.eup %7337  ;;  %v967_v0 = vsub.f32 1.5, %v966_v59 }
 0x149   : > { %v7340_v1 = vpop.eup %7339  ;;  %v988_v2 = vmul.f32 %v7334_v49, %v987_v61  ;;  %v1014_v3 = vmul.f32 %v7338_v63, %v962_v50  ;;  %v7902_v4 = vadd.f32 1e-05, %v955_v62  ;;  %vm1020_vm8 = vweird.f32 %v7338_v63 }
 0x14a   : > { %v7342_v5 = vpop.eup %7341  ;;  %v968_v7 = vmul.f32 %v7336_v51, %v967_v0  ;;  %v974_v8 = vmul.f32 %v7340_v1, %v7895_v53  ;;  %vm980_vm9 = vweird.f32 %v7340_v1  ;;  %vm1021_vm12 = vmor %vm1019_vm7, %vm1020_vm8 }
 0x14b   : > { %v992_v9 = vsel %vm991_vm4, %v7334_v49, %v988_v2  ;;  %v1015_v10 = vmul.f32 %v7338_v63, %v1014_v3  ;;  %v994_v11 = vmul.f32 %v7342_v5, %v7897_v54  ;;  %7343 = vrsqrt.f32 %v7902_v4  ;;  %vm981_vm14 = vmor %vm979_vm13, %vm980_vm9 }
 0x14c   : > { %v1025_v13 = vmul.f32 %v992_v9, %v7862_v18  ;;  %v972_v14 = vsel %vm971_vm6, %v7336_v51, %v968_v7  ;;  %v975_v15 = vmul.f32 %v7340_v1, %v974_v8  ;;  %vm1000_vm11 = vweird.f32 %v7342_v5 }
 0x14d   : > { %v1023_v16 = vmul.f32 %v972_v14, %v7864_v19  ;;  %v1016_v17 = vmul.f32 0.5, %v1015_v10  ;;  %v995_v20 = vmul.f32 %v7342_v5, %v994_v11  ;;  %vm1001_vm15 = vmor %vm999_vm10, %vm1000_vm11  ;;  %vm1009_vm1 = vweird.f32 %v7902_v4 }
 0x14e   : > { %v1034_v21 = vmul.f32 %v7907_v6, %v1025_v13  ;;  %v976_v22 = vmul.f32 0.5, %v975_v15 }
 0x14f   : > { %v1032_v23 = vmul.f32 %v7907_v6, %v1023_v16  ;;  %v1017_v24 = vsub.f32 1.5, %v1016_v17  ;;  %v996_v25 = vmul.f32 0.5, %v995_v20 }
 0x150   : > { %v1043_v26 = vadd.f32 %v7330_v12, %v1034_v21  ;;  %v977_v27 = vsub.f32 1.5, %v976_v22 }
 0x151   : > { %v1041_v18 = vadd.f32 %v7330_v12, %v1032_v23  ;;  %v1018_v31 = vmul.f32 %v7338_v63, %v1017_v24  ;;  %v997_v32 = vsub.f32 1.5, %v996_v25  ;;  %v7344_v19 = vpop.eup %7343 }
 0x152   : > { %1049 = vst [vmem:[#allocation2 + $0x8] sm:$0xff] %v1043_v26  ;;  %v978_v33 = vmul.f32 %v7340_v1, %v977_v27  ;;  %v1004_v37 = vmul.f32 %v7344_v19, %v7902_v4  ;;  %vm1010_vm0 = vweird.f32 %v7344_v19 }
 0x153   : > { %1047 = vst [vmem:[#allocation2 + $0x28] sm:$0xff] %v1041_v18  ;;  %v1022_v34 = vsel %vm1021_vm12, %v7338_v63, %v1018_v31  ;;  %v998_v36 = vmul.f32 %v7342_v5, %v997_v32  ;;  %vm1011_vm2 = vmor %vm1009_vm1, %vm1010_vm0 }
 0x154   : > { %v1028_v38 = vmul.f32 %v1022_v34, %v7873_v28  ;;  %v982_v39 = vsel %vm981_vm14, %v7340_v1, %v978_v33  ;;  %v1005_v42 = vmul.f32 %v7344_v19, %v1004_v37 }
 0x155   : > { %v1024_v40 = vmul.f32 %v982_v39, %v7877_v30  ;;  %v1002_v41 = vsel %vm1001_vm15, %v7342_v5, %v998_v36 }
 0x156   : > { %v1037_v43 = vmul.f32 %v7907_v6, %v1028_v38  ;;  %v1026_v44 = vmul.f32 %v1002_v41, %v7875_v29  ;;  %v1006_v46 = vmul.f32 0.5, %v1005_v42 }
 0x157   : > { %v1033_v45 = vmul.f32 %v7907_v6, %v1024_v40 }
 0x158   : > { %v1046_v47 = vadd.f32 %v7330_v12, %v1037_v43  ;;  %v1035_v48 = vmul.f32 %v7907_v6, %v1026_v44  ;;  %v1007_v28 = vsub.f32 1.5, %v1006_v46 }
 0x159   : > { %v1042_v49 = vadd.f32 %v7330_v12, %v1033_v45 }
 0x15a   : > { %1052 = vst [vmem:[#allocation2 + $0x20] sm:$0xff] %v1046_v47  ;;  %v1044_v50 = vadd.f32 %v7330_v12, %v1035_v48  ;;  %v1008_v51 = vmul.f32 %v7344_v19, %v1007_v28 }
 0x15b   : > { %1048 = vst [vmem:[#allocation2 + $0x10] sm:$0xff] %v1042_v49 }
 0x15c   : > { %1050 = vst [vmem:[#allocation2] sm:$0xff] %v1044_v50  ;;  %v1012_v30 = vsel %vm1011_vm2, %v7344_v19, %v1008_v51 }
 0x15d   : > { %v1027_v29 = vmul.f32 %v1012_v30, %v7886_v35 }
 0x15f   : > { %v1036_v52 = vmul.f32 %v7907_v6, %v1027_v29 }
 0x161   : > { %v1045_v53 = vadd.f32 %v7330_v12, %v1036_v52 }
 0x163   : > { %1051 = vst [vmem:[#allocation2 + $0x18] sm:$0xff] %v1045_v53 }
 0x164 PF: > { %v1055_v55 = vld [vmem:[#allocation2 + $0x8] sm:$0xff]  ;;  %v1058_v57 = vld [vmem:[#allocation2 + $0x20] sm:$0xff]  ;;  %v1054_v59 = vld [vmem:[#allocation2 + $0x10] sm:$0xff]  ;;  %v7624_v60 = vmov 128.0   ;;  %s9982_s19 = sld [smem:[#allocation23_spill]]  ;;  %s9993_s16 = scalar_lea.vmem %s9919_s11, %s7756_s6 }
 0x165   : > { %v1053_v56 = vld [vmem:[#allocation2 + $0x28] sm:$0xff]  ;;  %1065 = vadd.xlane.f32.xlu1 %v1055_v55  ;;  %v1056_v58 = vld [vmem:[#allocation2] sm:$0xff]  ;;  %7363 = vrcp.f32 %v7624_v60  ;;  %v7131_v18 = vld [vmem:[%s7778_s17 + $0x38] sm:$0xff]  ;;  %s9984_s4 = sld [smem:[#allocation24_spill]]  ;;  %s9994_s9 = scalar_lea.vmem %s9920_s12, %s7756_s6 }
 0x166   : > { %1061 = vadd.xlane.f32.xlu0 %v1053_v56  ;;  %v7139_v31 = vld [vmem:[%s7778_s17 + $0x138] sm:$0xff]  ;;  %1280 = vmatpush.bf16.msra.mxu0 %v7131_v18  ;;  %v7130_v19 = vld [vmem:[%s7778_s17 + $0x30] sm:$0xff]  ;;  %v7129_v36 = vld [vmem:[%s7778_s17 + $0x28] sm:$0xff]  ;;  %s10034_s22 = sld [smem:[#allocation31_spill]] }
 0x167   : > { %v7147_v32 = vld [vmem:[%s7778_s17 + $0x238] sm:$0xff]  ;;  %1374 = vmatpush.bf16.msra.mxu1 %v7139_v31  ;;  %v7138_v33 = vld [vmem:[%s7778_s17 + $0x130] sm:$0xff]  ;;  %v7137_v37 = vld [vmem:[%s7778_s17 + $0x128] sm:$0xff] }
 0x168   : > { %1468 = vmatpush.bf16.msra.mxu2 %v7147_v32  ;;  %v7146_v34 = vld [vmem:[%s7778_s17 + $0x230] sm:$0xff]  ;;  %v7145_v38 = vld [vmem:[%s7778_s17 + $0x228] sm:$0xff]  ;;  %v7128_v39 = vld [vmem:[%s7778_s17 + $0x20] sm:$0xff] }
 0x169   : > { %v7136_v40 = vld [vmem:[%s7778_s17 + $0x120] sm:$0xff]  ;;  %v7127_v42 = vld [vmem:[%s7778_s17 + $0x18] sm:$0xff]  ;;  %v7126_v45 = vld [vmem:[%s7778_s17 + $0x10] sm:$0xff] }
 0x16a   : > { %v1057_v54 = vld [vmem:[#allocation2 + $0x18] sm:$0xff]  ;;  %1281 = vmatpush.bf16.msra.mxu0 %v7130_v19  ;;  %v7144_v41 = vld [vmem:[%s7778_s17 + $0x220] sm:$0xff]  ;;  %v7134_v46 = vld [vmem:[%s7778_s17 + $0x110] sm:$0xff]  ;;  %s9983_s15 = scalar_lea.vmem %s9982_s19, %s7756_s6 }
 0x16b   : > { %1069 = vadd.xlane.f32.xlu2 %v1057_v54  ;;  %v7364_v35 = vpop.eup %7363  ;;  %1375 = vmatpush.bf16.msra.mxu1 %v7138_v33  ;;  %v7135_v43 = vld [vmem:[%s7778_s17 + $0x118] sm:$0xff]  ;;  %v7142_v47 = vld [vmem:[%s7778_s17 + $0x210] sm:$0xff]  ;;  %v7125_v48 = vld [vmem:[%s7778_s17 + $0x8] sm:$0xff]  ;;  %s9985_s5 = scalar_lea.vmem %s9984_s4, %s7756_s6 }
 0x16c   : > { %v1074_v61 = vmul.f32 128.0, %v7364_v35  ;;  %vm1078_vm3 = vweird.f32 %v7364_v35  ;;  %1469 = vmatpush.bf16.msra.mxu2 %v7146_v34  ;;  %v7143_v44 = vld [vmem:[%s7778_s17 + $0x218] sm:$0xff]  ;;  %v7133_v49 = vld [vmem:[%s7778_s17 + $0x108] sm:$0xff]  ;;  %v7124_v53 = vld [vmem:[%s7778_s17] sm:$0xff]  ;;  %s10035_s8 = scalar_lea.vmem %s10034_s22, %s7756_s6 }
 0x16d   : > { %1067 = vadd.xlane.f32.xlu1 %v1056_v58  ;;  %v7141_v28 = vld [vmem:[%s7778_s17 + $0x208] sm:$0xff]  ;;  %v7156_v19 = vld [vmem:[%s7778_s17 + $0x70] sm:$0xff] }
 0x16e   : > { %1063 = vadd.xlane.f32.xlu0 %v1054_v59  ;;  %v1075_v62 = vsub.f32 1.0, %v1074_v61  ;;  %1282 = vmatpush.bf16.msra.mxu0 %v7129_v36  ;;  %v8024_v36 = vld [vmem:[%s9983_s15] ss:$0 sm:$0xff] }
 0x16f   : > { %1376 = vmatpush.bf16.msra.mxu1 %v7137_v37 }
 0x170   : > { %v1076_v63 = vmul.f32 %v7364_v35, %v1075_v62  ;;  %1470 = vmatpush.bf16.msra.mxu2 %v7145_v38 }
 0x172   : > { %v1077_v0 = vadd.f32 %v7364_v35, %v1076_v63  ;;  %1283 = vmatpush.bf16.msra.mxu0 %v7128_v39 }
 0x173   : > { %1071 = vadd.xlane.f32.xlu2 %v1058_v57  ;;  %1377 = vmatpush.bf16.msra.mxu1 %v7136_v40  ;;  %v7155_v40 = vld [vmem:[%s7778_s17 + $0x68] sm:$0xff] }
 0x174   : > { %v7934_v1 = vsel %vm1078_vm3, %v7364_v35, %v1077_v0  ;;  %1471 = vmatpush.bf16.msra.mxu2 %v7144_v41 }
 0x176   : > { %1284 = vmatpush.bf16.msra.mxu0 %v7127_v42 }
 0x177   : > { %1378 = vmatpush.bf16.msra.mxu1 %v7135_v43 }
 0x178   : > { %1472 = vmatpush.bf16.msra.mxu2 %v7143_v44  ;;  %v8036_v44 = vld [vmem:[%s9985_s5] ss:$0 sm:$0xff] }
 0x17a   : > { %1285 = vmatpush.bf16.msra.mxu0 %v7126_v45 }
 0x17b   : > { %1379 = vmatpush.bf16.msra.mxu1 %v7134_v46 }
 0x17c   : > { %1473 = vmatpush.bf16.msra.mxu2 %v7142_v47 }
 0x17e   : > { %1286 = vmatpush.bf16.msra.mxu0 %v7125_v48 }
 0x17f   : > { %1380 = vmatpush.bf16.msra.mxu1 %v7133_v49  ;;  %v7154_v49 = vld [vmem:[%s7778_s17 + $0x60] sm:$0xff] }
 0x180   : > { %1474 = vmatpush.bf16.msra.mxu2 %v7141_v28 }
 0x182   : > { %1287 = vmatpush.bf16.msra.mxu0 %v7124_v53 }
 0x1d8   : > { %v1066_v3 = vpop.xlane.xlu1 %1065 }
 0x1d9   : > { %v1082_v4 = vmul.f32 %v7934_v1, %v1066_v3  ;;  %v1062_v5 = vpop.xlane.xlu0 %1061 }
 0x1da   : > { %v1080_v6 = vmul.f32 %v7934_v1, %v1062_v5 }
 0x1db   : > { %v7938_v7 = vsub.f32 %v1055_v55, %v1082_v4  ;;  %v7140_v55 = vld [vmem:[%s7778_s17 + $0x200] sm:$0xff] }
 0x1dc   : > { %v7940_v8 = vsub.f32 %v1053_v56, %v1080_v6  ;;  %1475 = vmatpush.bf16.msra.mxu2 %v7140_v55  ;;  %v7153_v55 = vld [vmem:[%s7778_s17 + $0x58] sm:$0xff] }
 0x1dd   : > { %v1094_v9 = vmul.f32 %v7938_v7, %v7938_v7 }
 0x1de   : > { %v1070_v2 = vpop.xlane.xlu2 %1069  ;;  %v1092_v10 = vmul.f32 %v7940_v8, %v7940_v8 }
 0x1df   : > { %1102 = vadd.xlane.f32.xlu2 %v1094_v9  ;;  %v1084_v21 = vmul.f32 %v7934_v1, %v1070_v2 }
 0x1e0   : > { %1098 = vadd.xlane.f32.xlu0 %v1092_v10  ;;  %v1068_v12 = vpop.xlane.xlu1 %1067 }
 0x1e1   : > { %v1083_v14 = vmul.f32 %v7934_v1, %v1068_v12  ;;  %v1064_v15 = vpop.xlane.xlu0 %1063  ;;  %v7962_v26 = vsub.f32 %v1057_v54, %v1084_v21  ;;  %v7132_v54 = vld [vmem:[%s7778_s17 + $0x100] sm:$0xff] }
 0x1e2   : > { %v1081_v16 = vmul.f32 %v7934_v1, %v1064_v15  ;;  %1381 = vmatpush.bf16.msra.mxu1 %v7132_v54 }
 0x1e3   : > { %v7951_v20 = vsub.f32 %v1056_v58, %v1083_v14  ;;  %v1096_v27 = vmul.f32 %v7962_v26, %v7962_v26 }
 0x1e4   : > { %v7954_v22 = vsub.f32 %v1054_v59, %v1081_v16 }
 0x1e5   : > { %v1095_v24 = vmul.f32 %v7951_v20, %v7951_v20 }
 0x1e6   : > { %v1072_v11 = vpop.xlane.xlu2 %1071  ;;  %v1093_v25 = vmul.f32 %v7954_v22, %v7954_v22 }
 0x1e7   : > { %v1085_v13 = vmul.f32 %v7934_v1, %v1072_v11 }
 0x1e8   : > { %1104 = vadd.xlane.f32.xlu0 %v1095_v24  ;;  %1100 = vadd.xlane.f32.xlu1 %v1093_v25 }
 0x1e9   : > { %v7949_v17 = vsub.f32 %v1058_v57, %v1085_v13 }
 0x1eb   : > { %v1097_v23 = vmul.f32 %v7949_v17, %v7949_v17 }
 0x1ed   : > { %1108 = vadd.xlane.f32.xlu2 %v1097_v23 }
 0x1f0   : > { %1106 = vadd.xlane.f32.xlu1 %v1096_v27  ;;  %v7157_v27 = vld [vmem:[%s7778_s17 + $0x78] sm:$0xff] }
 0x1f1   : > { %1854 = vmatpush.bf16.msrb.mxu2 %v7157_v27 }
 0x1f5   : > { %1855 = vmatpush.bf16.msrb.mxu2 %v7156_v19 }
 0x1f9   : > { %1856 = vmatpush.bf16.msrb.mxu2 %v7155_v40 }
 0x1fd   : > { %1857 = vmatpush.bf16.msrb.mxu2 %v7154_v49 }
 0x201   : > { %1858 = vmatpush.bf16.msrb.mxu2 %v7153_v55 }
 0x252   : > { %v1103_v50 = vpop.xlane.xlu2 %1102 }
 0x253   : > { %v1099_v51 = vpop.xlane.xlu0 %1098  ;;  %v1112_v29 = vmul.f32 %v1103_v50, %v7934_v1 }
 0x254   : > { %v1110_v30 = vmul.f32 %v1099_v51, %v7934_v1 }
 0x255   : > { %v7992_v56 = vadd.f32 1e-05, %v1112_v29 }
 0x256   : > { %v1116_v52 = vadd.f32 1e-05, %v1110_v30 }
 0x257   : > { %vm1148_vm12 = vweird.f32 %v7992_v56 }
 0x258   : > { %7365 = vrsqrt.f32 %v1116_v52  ;;  %vm1128_vm5 = vweird.f32 %v1116_v52 }
 0x259   : > { %7367 = vrsqrt.f32 %v7992_v56 }
 0x25b   : > { %v1101_v57 = vpop.xlane.xlu1 %1100  ;;  %v1105_v58 = vpop.xlane.xlu0 %1104 }
 0x25c   : > { %v1111_v59 = vmul.f32 %v1101_v57, %v7934_v1  ;;  %v1113_v60 = vmul.f32 %v1105_v58, %v7934_v1 }
 0x25e   : > { %v7366_v35 = vpop.eup %7365  ;;  %v1117_v61 = vadd.f32 1e-05, %v1111_v59  ;;  %v7997_v62 = vadd.f32 1e-05, %v1113_v60  ;;  %v7152_v59 = vld [vmem:[%s7778_s17 + $0x50] sm:$0xff] }
 0x25f   : > { %v1123_v63 = vmul.f32 %v7366_v35, %v1116_v52  ;;  %v8000_v5 = vpop.eup %7367  ;;  %vm1129_vm4 = vweird.f32 %v7366_v35  ;;  %1859 = vmatpush.bf16.msrb.mxu2 %v7152_v59 }
 0x260   : > { %7369 = vrsqrt.f32 %v1117_v61  ;;  %v1109_v3 = vpop.xlane.xlu2 %1108  ;;  %v1143_v13 = vmul.f32 %v8000_v5, %v7992_v56  ;;  %vm1130_vm6 = vmor %vm1128_vm5, %vm1129_vm4  ;;  %vm1138_vm8 = vweird.f32 %v1117_v61  ;;  %vm1158_vm10 = vweird.f32 %v7997_v62 }
 0x261   : > { %v1124_v0 = vmul.f32 %v7366_v35, %v1123_v63  ;;  %7371 = vrsqrt.f32 %v7997_v62  ;;  %v1115_v11 = vmul.f32 %v1109_v3, %v7934_v1  ;;  %vm1149_vm13 = vweird.f32 %v8000_v5  ;;  %v7151_v63 = vld [vmem:[%s7778_s17 + $0x48] sm:$0xff] }
 0x262   : > { %v1144_v18 = vmul.f32 %v8000_v5, %v1143_v13  ;;  %vm1150_vm15 = vmor %vm1148_vm12, %vm1149_vm13 }
 0x263   : > { %v1125_v2 = vmul.f32 0.5, %v1124_v0  ;;  %v1107_v4 = vpop.xlane.xlu1 %1106  ;;  %v8012_v24 = vadd.f32 1e-05, %v1115_v11  ;;  %1860 = vmatpush.bf16.msrb.mxu2 %v7151_v63 }
 0x264   : > { %v1114_v6 = vmul.f32 %v1107_v4, %v7934_v1  ;;  %v1145_v38 = vmul.f32 0.5, %v1144_v18  ;;  %v7150_v4 = vld [vmem:[%s7778_s17 + $0x40] sm:$0xff] }
 0x265   : > { %v1126_v9 = vsub.f32 1.5, %v1125_v2  ;;  %vm1178_vm2 = vweird.f32 %v8012_v24  ;;  %v7348_v18 = vld [vmem:[%s7787_s27 + $0x4] ss:$0 sm:$0xff] }
 0x266   : > { %v7370_v10 = vpop.eup %7369  ;;  %v8010_v21 = vadd.f32 1e-05, %v1114_v6  ;;  %v1146_v46 = vsub.f32 1.5, %v1145_v38 }
 0x267   : > { %v8004_v12 = vpop.eup %7371  ;;  %v1127_v14 = vmul.f32 %v7366_v35, %v1126_v9  ;;  %v1133_v15 = vmul.f32 %v7370_v10, %v1117_v61  ;;  %vm1139_vm7 = vweird.f32 %v7370_v10  ;;  %1861 = vmatpush.bf16.msrb.mxu2 %v7150_v4 }
 0x268   : > { %v1153_v16 = vmul.f32 %v8004_v12, %v7997_v62  ;;  %7373 = vrsqrt.f32 %v8010_v21  ;;  %vm1140_vm9 = vmor %vm1138_vm8, %vm1139_vm7  ;;  %vm1159_vm11 = vweird.f32 %v8004_v12  ;;  %v1147_v30 = vmul.f32 %v8000_v5, %v1146_v46 }
 0x269   : > { %v1134_v23 = vmul.f32 %v7370_v10, %v1133_v15  ;;  %v1131_v31 = vsel %vm1130_vm6, %v7366_v35, %v1127_v14  ;;  %7375 = vrsqrt.f32 %v8012_v24  ;;  %vm1160_vm14 = vmor %vm1158_vm10, %vm1159_vm11  ;;  %vm1168_vm0 = vweird.f32 %v8010_v21 }
 0x26a   : > { %v1154_v25 = vmul.f32 %v8004_v12, %v1153_v16  ;;  %v1182_v37 = vmul.f32 %v1131_v31, %v7940_v8  ;;  %v1151_v56 = vsel %vm1150_vm15, %v8000_v5, %v1147_v30  ;;  %vm1520_vm6 = vcmask 261120  }
 0x26b   : > { %v1135_v32 = vmul.f32 0.5, %v1134_v23  ;;  %v1184_v35 = vmul.f32 %v1151_v56, %v7938_v7  ;;  %vm1711_vm7 = vcmask 1043456  }
 0x26c   : > { %v1155_v34 = vmul.f32 0.5, %v1154_v25  ;;  %v1191_v8 = vmul.f32 %v8024_v36, %v1182_v37 }
 0x26d   : > { %v1136_v33 = vsub.f32 1.5, %v1135_v32  ;;  %v1193_v2 = vmul.f32 %v8024_v36, %v1184_v35 }
 0x26e   : > { %v1156_v42 = vsub.f32 1.5, %v1155_v34  ;;  %v8029_v43 = vpop.eup %7373  ;;  %v1200_v50 = vadd.f32 %v8036_v44, %v1191_v8 }
 0x26f   : > { %v1137_v39 = vmul.f32 %v7370_v10, %v1136_v33  ;;  %v7376_v47 = vpop.eup %7375  ;;  %vm1169_vm1 = vweird.f32 %v8029_v43  ;;  %v1202_v5 = vadd.f32 %v8036_v44, %v1193_v2 }
 0x270   : > { %v1157_v28 = vmul.f32 %v8004_v12, %v1156_v42  ;;  %v1173_v29 = vmul.f32 %v7376_v47, %v8012_v24  ;;  %vm1179_vm3 = vweird.f32 %v7376_v47  ;;  %vm1170_vm4 = vmor %vm1168_vm0, %vm1169_vm1 }
 0x271   : > { %v1141_v41 = vsel %vm1140_vm9, %v7370_v10, %v1137_v39  ;;  %vm1180_vm5 = vmor %vm1178_vm2, %vm1179_vm3  ;;  %v7349_v39 = vld [vmem:[%s7787_s27 + $0x8] ss:$0 sm:$0xff]  ;;  %vm1609_vm9 = vcmask 195584  }
 0x272   : > { %v1183_v45 = vmul.f32 %v1141_v41, %v7954_v22  ;;  %v1163_v22 = vmul.f32 %v8029_v43, %v8010_v21  ;;  %v1161_v53 = vsel %vm1160_vm14, %v8004_v12, %v1157_v28  ;;  %v1174_v57 = vmul.f32 %v7376_v47, %v1173_v29 }
 0x273   : > { %v1185_v58 = vmul.f32 %v1161_v53, %v7951_v20 }
 0x274   : > { %v1192_v48 = vmul.f32 %v8024_v36, %v1183_v45  ;;  %v1164_v54 = vmul.f32 %v8029_v43, %v1163_v22  ;;  %v1175_v61 = vmul.f32 0.5, %v1174_v57  ;;  %v8098_v45 = vld [vmem:[%s7787_s27] ss:$0 sm:$0xff] }
 0x275   : > { %v1194_v62 = vmul.f32 %v8024_v36, %v1185_v58 }
 0x276   : > { %v1201_v51 = vadd.f32 %v8036_v44, %v1192_v48  ;;  %v1165_v60 = vmul.f32 0.5, %v1164_v54  ;;  %v1176_v3 = vsub.f32 1.5, %v1175_v61 }
 0x277   : > { %v1203_v20 = vadd.f32 %v8036_v44, %v1194_v62 }
 0x278   : > { %v8053_v52 = vpack.c.bf16 %v1201_v51, %v1200_v50  ;;  %v1166_v0 = vsub.f32 1.5, %v1165_v60  ;;  %v1177_v6 = vmul.f32 %v7376_v47, %v1176_v3 }
 0x279   : > { %v8075_v9 = vpack.c.bf16 %v1203_v20, %v1202_v5 }
 0x27a   : > { %1288 = vmatmul.bf16.vlgmr.msra.gmra.mxu0 %v8053_v52  ;;  %1382 = vmatmul.bf16.vlgmr.msra.gmra.mxu1 %v8053_v52  ;;  %v1167_v7 = vmul.f32 %v8029_v43, %v1166_v0  ;;  %v1181_v11 = vsel %vm1180_vm5, %v7376_v47, %v1177_v6 }
 0x27b   : > { %1476 = vmatmul.bf16.vlgmr.msra.gmra.mxu2 %v8053_v52  ;;  %v1187_v13 = vmul.f32 %v1181_v11, %v7949_v17 }
 0x27c   : > { %v1171_v10 = vsel %vm1170_vm4, %v8029_v43, %v1167_v7 }
 0x27d   : > { %v1186_v12 = vmul.f32 %v1171_v10, %v7962_v26  ;;  %v1196_v15 = vmul.f32 %v8024_v36, %v1187_v13 }
 0x27f   : > { %v1195_v14 = vmul.f32 %v8024_v36, %v1186_v12  ;;  %v1205_v21 = vadd.f32 %v8036_v44, %v1196_v15 }
 0x281   : > { %v1204_v16 = vadd.f32 %v8036_v44, %v1195_v14 }
 0x283   : > { %v8087_v23 = vpack.c.bf16 %v1205_v21, %v1204_v16 }
 0x28a   : > { %1293 = vmatmul.bf16.gmra.mxu0 %v8075_v9  ;;  %1387 = vmatmul.bf16.gmra.mxu1 %v8075_v9 }
 0x28b   : > { %1481 = vmatmul.bf16.gmra.mxu2 %v8075_v9 }
 0x29a   : > { %1298 = vmatmul.bf16.gmra.mxu0 %v8087_v23  ;;  %1392 = vmatmul.bf16.gmra.mxu1 %v8087_v23 }
 0x29b   : > { %1486 = vmatmul.bf16.gmra.mxu2 %v8087_v23 }
 0x2ab   : > { %1862 = vmatmul.bf16.vlgmr.msrb.gmra.mxu2 %v8053_v52 }
 0x2bb   : > { %1867 = vmatmul.bf16.gmra.mxu2 %v8075_v9 }
 0x2cb   : > { %1872 = vmatmul.bf16.gmra.mxu2 %v8087_v23 }
 0x2f7   : > { %v1383_v17 = vpop.f32.mrf.mxu1  ;;  %v1289_v26 = vpop.f32.mrf.mxu0 }
 0x2f8   : > { %v1384_v34 = vadd.f32 %v7348_v18, %v1383_v17  ;;  %v1290_v29 = vadd.f32 %v8098_v45, %v1289_v26 }
 0x2fa   : > { %v1498_v40 = vpack.c.bf16 %v1384_v34, %v1384_v34  ;;  %v1492_v35 = vpack.c.bf16 %v1290_v29, %v1290_v29  ;;  %v7164_v29 = vld [vmem:[%s7778_s17 + $0x170] sm:$0xff] }
 0x2fc   : > { %v1515_v28 = vunpack.c.l.b16 %v1498_v40  ;;  %v1507_v20 = vunpack.c.l.b16 %v1492_v35  ;;  %v8111_v40 = vld [vmem:[%s7787_s27 + $0x1] ss:$0 sm:$0xff] }
 0x2fe   : > { %v1477_v24 = vpop.f32.mrf.mxu2 }
 0x2ff   : > { %v1385_v25 = vpop.f32.mrf.mxu1  ;;  %v1291_v27 = vpop.f32.mrf.mxu0  ;;  %v1478_v22 = vadd.f32 %v7349_v39, %v1477_v24 }
 0x300   : > { %v1386_v19 = vadd.f32 %v7348_v18, %v1385_v25  ;;  %v1292_v50 = vadd.f32 %v8098_v45, %v1291_v27 }
 0x301   : > { %v1682_v56 = vpack.c.bf16 %v1478_v22, %v1478_v22 }
 0x302   : > { %v1499_v37 = vpack.c.bf16 %v1386_v19, %v1386_v19  ;;  %v1493_v57 = vpack.c.bf16 %v1292_v50, %v1292_v50 }
 0x303   : > { %v1699_v0 = vunpack.c.l.b16 %v1682_v56  ;;  %v7163_v56 = vld [vmem:[%s7778_s17 + $0x168] sm:$0xff] }
 0x304   : > { %v1516_v46 = vunpack.c.l.b16 %v1499_v37  ;;  %v1508_v2 = vunpack.c.l.b16 %v1493_v57 }
 0x306   : > { %v1479_v31 = vpop.f32.mrf.mxu2  ;;  %v1518_v54 = vpack.c.b16 %v1516_v46, %v1515_v28  ;;  %v1510_v5 = vpack.c.b16 %v1508_v2, %v1507_v20  ;;  %v7161_v20 = vld [vmem:[%s7778_s17 + $0x158] sm:$0xff] }
 0x307   : > { %v1388_v32 = vpop.f32.mrf.mxu1  ;;  %v1294_v43 = vpop.f32.mrf.mxu0  ;;  %v1480_v47 = vadd.f32 %v7349_v39, %v1479_v31 }
 0x308   : > { %v1389_v33 = vadd.f32 %v7348_v18, %v1388_v32  ;;  %v1295_v51 = vadd.f32 %v8098_v45, %v1294_v43  ;;  %v1528_v62 = vsel %vm1520_vm6, %v1518_v54, 0 }
 0x309   : > { %v1683_v53 = vpack.c.bf16 %v1480_v47, %v1480_v47  ;;  %v7165_v47 = vld [vmem:[%s7778_s17 + $0x178] sm:$0xff] }
 0x30a   : > { %v1500_v36 = vpack.c.bf16 %v1389_v33, %v1389_v33  ;;  %v1494_v58 = vpack.c.bf16 %v1295_v51, %v1295_v51 }
 0x30b   : > { %v1700_v61 = vunpack.c.l.b16 %v1683_v53 }
 0x30c   : > { %v1517_v38 = vunpack.c.l.b16 %v1500_v36  ;;  %v1509_v3 = vunpack.c.l.b16 %v1494_v58 }
 0x30d   : > { %v1702_v4 = vpack.c.b16 %v1700_v61, %v1699_v0  ;;  %v7162_v61 = vld [vmem:[%s7778_s17 + $0x160] sm:$0xff] }
 0x30e   : > { %v1519_v41 = vpack.c.b16 %v1517_v38, %v1517_v38  ;;  %v1482_v42 = vpop.f32.mrf.mxu2  ;;  %v1511_v6 = vpack.c.b16 %v1509_v3, %v1509_v3 }
 0x30f   : > { %v1483_v44 = vadd.f32 %v7349_v39, %v1482_v42  ;;  %v1390_v8 = vpop.f32.mrf.mxu1  ;;  %v1296_v7 = vpop.f32.mrf.mxu0 }
 0x310   : > { %v1531_v48 = vsel %vm1520_vm6, %v1519_v41, 0  ;;  %v1391_v14 = vadd.f32 %v7348_v18, %v1390_v8  ;;  %v1297_v41 = vadd.f32 %v8098_v45, %v1296_v7 }
 0x311   : > { %v1684_v49 = vpack.c.bf16 %v1483_v44, %v1483_v44  ;;  %1539 = vmatpush.bf16.xpose.msrb.mxu0 %v1531_v48  ;;  %7312 = vmatpush.bf16.xpose.msra.mxu3 %v1531_v48 }
 0x312   : > { %v1501_v17 = vpack.c.bf16 %v1391_v14, %v1391_v14  ;;  %v1495_v28 = vpack.c.bf16 %v1297_v41, %v1297_v41 }
 0x313   : > { %v1701_v30 = vunpack.c.l.b16 %v1684_v49 }
 0x314   : > { %v1562_v36 = vunpack.c.l.b16 %v1501_v17  ;;  %v1554_v53 = vunpack.c.l.b16 %v1495_v28 }
 0x315   : > { %v1703_v55 = vpack.c.b16 %v1701_v30, %v1701_v30 }
 0x316   : > { %v1484_v59 = vpop.f32.mrf.mxu2 }
 0x317   : > { %v1393_v60 = vpop.f32.mrf.mxu1  ;;  %v1713_v63 = vsel %vm1711_vm7, %v1703_v55, 0  ;;  %v1299_v27 = vpop.f32.mrf.mxu0  ;;  %v1485_v32 = vadd.f32 %v7349_v39, %v1484_v59 }
 0x318   : > { %v1394_v12 = vadd.f32 %v7348_v18, %v1393_v60 }
 0x319   : > { %1540 = vmatpush.bf16.xpose.msrb.mxu0 %v1528_v62  ;;  %7313 = vmatpush.bf16.xpose.msra.mxu3 %v1528_v62  ;;  %v1685_v42 = vpack.c.bf16 %v1485_v32, %v1485_v32 }
 0x31a   : > { %v1502_v16 = vpack.c.bf16 %v1394_v12, %v1394_v12 }
 0x31b   : > { %v1744_v22 = vunpack.c.l.b16 %v1685_v42 }
 0x31c   : > { %v1563_v19 = vunpack.c.l.b16 %v1502_v16 }
 0x31e   : > { %v1487_v10 = vpop.f32.mrf.mxu2  ;;  %v1565_v43 = vpack.c.b16 %v1563_v19, %v1562_v36 }
 0x31f   : > { %v1395_v11 = vpop.f32.mrf.mxu1  ;;  %v1488_v26 = vadd.f32 %v7349_v39, %v1487_v10  ;;  %v1301_v57 = vpop.f32.mrf.mxu0  ;;  %v7158_v10 = vld [vmem:[%s7778_s17 + $0x140] sm:$0xff] }
 0x320   : > { %v1396_v13 = vadd.f32 %v7348_v18, %v1395_v11  ;;  %6242 = vmatmul.msk.bf16.vlgmr.msrb.gmra.mxu0 %vm1520_vm6, %v1510_v5  ;;  %6243 = vmatmul.msk.bf16.vlgmr.msra.gmra.mxu3 %vm1520_vm6, %v1511_v6  ;;  %v1300_v18 = vadd.f32 %v8098_v45, %v1299_v27  ;;  %v1574_v50 = vsel %vm1520_vm6, %v1565_v43, 0  ;;  %v1302_v35 = vadd.f32 %v8098_v45, %v1301_v57  ;;  %v7160_v45 = vld [vmem:[%s7778_s17 + $0x150] sm:$0xff]  ;;  %v7159_v6 = vld [vmem:[%s7778_s17 + $0x148] sm:$0xff] }
 0x321   : > { %1721 = vmatpush.bf16.msra.mxu0 %v1713_v63  ;;  %v1686_v37 = vpack.c.bf16 %v1488_v26, %v1488_v26 }
 0x322   : > { %v1503_v15 = vpack.c.bf16 %v1396_v13, %v1396_v13  ;;  %v1497_v2 = vpack.c.bf16 %v1302_v35, %v1302_v35  ;;  %v1209_v13 = vlaneseq }
 0x323   : > { %v1745_v8 = vunpack.c.l.b16 %v1686_v37 }
 0x324   : > { %v1564_v21 = vunpack.c.l.b16 %v1503_v15  ;;  %v1556_v7 = vunpack.c.l.b16 %v1497_v2  ;;  %v8141_v14 = vand.u32 127, %v1209_v13 }
 0x325   : > { %1722 = vmatpush.bf16.msra.mxu0 %v1702_v4  ;;  %v1747_v30 = vpack.c.b16 %v1745_v8, %v1744_v22 }
 0x326   : > { %v1489_v24 = vpop.f32.mrf.mxu2  ;;  %v1566_v25 = vpack.c.b16 %v1564_v21, %v1564_v21  ;;  %v1558_v5 = vpack.c.b16 %v1556_v7, %v1556_v7  ;;  %vm1211_vm8 = vcmp.lt.s32.totalorder %v8141_v14, 17 }
 0x327   : > { %v1490_v31 = vadd.f32 %v7349_v39, %v1489_v24  ;;  %v1496_v39 = vpack.c.bf16 %v1300_v18, %v1300_v18 }
 0x328   : > { %v1577_v33 = vsel %vm1520_vm6, %v1566_v25, 0 }
 0x329   : > { %v1687_v34 = vpack.c.bf16 %v1490_v31, %v1490_v31  ;;  %1585 = vmatpush.bf16.xpose.msrb.mxu3 %v1577_v33  ;;  %v1555_v51 = vunpack.c.l.b16 %v1496_v39 }
 0x32b   : > { %v1746_v38 = vunpack.c.l.b16 %v1687_v34  ;;  %v1557_v54 = vpack.c.b16 %v1555_v51, %v1554_v53 }
 0x32d   : > { %v1748_v44 = vpack.c.b16 %v1746_v38, %v1746_v38 }
 0x32e   : > { %v1863_v46 = vpop.f32.mrf.mxu2 }
 0x32f   : > { %v1864_v48 = vadd.f32 %v8111_v40, %v1863_v46  ;;  %v1757_v49 = vsel %vm1711_vm7, %v1748_v44, 0 }
 0x330   : > { %1765 = vmatpush.bf16.msrb.mxu1 %v1757_v49  ;;  %v7351_v49 = vld [vmem:[%s7787_s27 + $0x5] ss:$0 sm:$0xff] }
 0x331   : > { %1586 = vmatpush.bf16.xpose.msrb.mxu3 %v1574_v50  ;;  %v2066_v58 = vpack.c.bf16 %v1864_v48, %v1864_v48 }
 0x333   : > { %v8124_v62 = vunpack.c.l.b16 %v2066_v58 }
 0x334   : > { %1766 = vmatpush.bf16.msrb.mxu1 %v1747_v30 }
 0x336   : > { %v1865_v55 = vpop.f32.mrf.mxu2 }
 0x337   : > { %v1866_v59 = vadd.f32 %v8111_v40, %v1865_v55 }
 0x338   : > { %6244 = vmatmul.msk.bf16.vlgmr.msrb.gmra.mxu3 %vm1520_vm6, %v1557_v54 }
 0x339   : > { %1948 = vmatpush.bf16.msra.mxu3 %v7165_v47  ;;  %v2067_v60 = vpack.c.bf16 %v1866_v59, %v1866_v59 }
 0x33b   : > { %v8126_v63 = vunpack.c.l.b16 %v2067_v60 }
 0x33d   : > { %1949 = vmatpush.bf16.msra.mxu3 %v7164_v29  ;;  %v2084_v0 = vpack.c.b16 %v8126_v63, %v8124_v62 }
 0x33e   : > { %v1868_v3 = vpop.f32.mrf.mxu2 }
 0x33f   : > { %v8132_v4 = vadd.f32 %v8111_v40, %v1868_v3 }
 0x341   : > { %1950 = vmatpush.bf16.msra.mxu3 %v7163_v56 }
 0x345   : > { %1951 = vmatpush.bf16.msra.mxu3 %v7162_v61 }
 0x346   : > { %v1870_v2 = vpop.f32.mrf.mxu2 }
 0x348   : > { %6245 = vmatmul.msk.bf16.gmra.mxu3 %vm1520_vm6, %v1558_v5 }
 0x349   : > { %1952 = vmatpush.bf16.msra.mxu3 %v7161_v20 }
 0x34d   : > { %1953 = vmatpush.bf16.msra.mxu3 %v7160_v45 }
 0x34e   : > { %v1873_v13 = vpop.f32.mrf.mxu2 }
 0x351   : > { %1954 = vmatpush.bf16.msra.mxu3 %v7159_v6 }
 0x355   : > { %1955 = vmatpush.bf16.msra.mxu3 %v7158_v10 }
 0x358   : > { %1956 = vmatmul.bf16.vlgmr.msra.gmra.mxu3 %v8053_v52 }
 0x368   : > { %1961 = vmatmul.bf16.gmra.mxu3 %v8075_v9 }
 0x378   : > { %1966 = vmatmul.bf16.gmra.mxu3 %v8087_v23 }
 0x39d   : > { %v1542_v15 = vpop.f32.mrf.mxu0 }
 0x39e   : > { %v1597_v24 = vmul.f32 0.17677669, %v1542_v15 }
 0x3a0   : > { %v8152_v31 = vsel %vm1211_vm8, %v1597_v24, -1e+30  ;;  %v1871_v24 = vadd.f32 %v8111_v40, %v1870_v2 }
 0x3a1   : > { %v1610_v33 = vsel %vm1609_vm9, %v8152_v31, -inf }
 0x3a3   : > { %v1547_v11 = vpop.f32.mrf.mxu3 }
 0x3a4   : > { %v1599_v44 = vmul.f32 0.17677669, %v1547_v11 }
 0x3a5   : > { %v1544_v32 = vpop.f32.mrf.mxu0 }
 0x3a6   : > { %v1598_v36 = vmul.f32 0.17677669, %v1544_v32  ;;  %v8176_v8 = vsel %vm1211_vm8, %v1599_v44, -1e+30  ;;  %v2069_v32 = vpack.c.bf16 %v1871_v24, %v1871_v24 }
 0x3a7   : > { %v1616_v46 = vsel %vm1609_vm9, %v8176_v8, -inf }
 0x3a8   : > { %v8164_v38 = vsel %vm1211_vm8, %v1598_v36, -1e+30  ;;  %v2127_v36 = vunpack.c.l.b16 %v2069_v32 }
 0x3a9   : > { %v1613_v42 = vsel %vm1609_vm9, %v8164_v38, -inf }
 0x3ab   : > { %v1549_v12 = vpop.f32.mrf.mxu3 }
 0x3bb   : > { %v1588_v16 = vpop.f32.mrf.mxu3 }
 0x3bc   : > { %v1600_v21 = vmul.f32 0.17677669, %v1588_v16 }
 0x3be   : > { %v8146_v17 = vsel %vm1211_vm8, %v1600_v21, -1e+30  ;;  %v1874_v21 = vadd.f32 %v8111_v40, %v1873_v13 }
 0x3bf   : > { %v1619_v26 = vsel %vm1609_vm9, %v8146_v17, -inf }
 0x3c0   : > { %1620 = vmax.xlane.f32.xlu0 %v1619_v26 }
 0x3c3   : > { %v1590_v25 = vpop.f32.mrf.mxu3 }
 0x3c4   : > { %v1601_v27 = vmul.f32 0.17677669, %v1590_v25 }
 0x3c6   : > { %v8156_v19 = vsel %vm1211_vm8, %v1601_v27, -1e+30  ;;  %v2070_v27 = vpack.c.bf16 %v1874_v21, %v1874_v21 }
 0x3c7   : > { %v1622_v34 = vsel %vm1609_vm9, %v8156_v19, -inf }
 0x3c8   : > { %1611 = vmax.xlane.f32.xlu0 %v1610_v33  ;;  %1623 = vmax.xlane.f32.xlu1 %v1622_v34  ;;  %v2128_v34 = vunpack.c.l.b16 %v2070_v27  ;;  %v7172_v27 = vld [vmem:[%s7778_s17 + $0x270] sm:$0xff] }
 0x3cb   : > { %v1593_v18 = vpop.f32.mrf.mxu3 }
 0x3cc   : > { %v1602_v37 = vmul.f32 0.17677669, %v1593_v18  ;;  %v2130_v18 = vpack.c.b16 %v2128_v34, %v2127_v36  ;;  %v7171_v34 = vld [vmem:[%s7778_s17 + $0x268] sm:$0xff] }
 0x3ce   : > { %v8168_v41 = vsel %vm1211_vm8, %v1602_v37, -1e+30  ;;  %v1875_v37 = vpop.f32.mrf.mxu2 }
 0x3cf   : > { %v1625_v43 = vsel %vm1609_vm9, %v8168_v41, -inf }
 0x3d0   : > { %1614 = vmax.xlane.f32.xlu1 %v1613_v42  ;;  %1626 = vmax.xlane.f32.xlu2 %v1625_v43  ;;  %v1876_v42 = vadd.f32 %v8111_v40, %v1875_v37 }
 0x3d2   : > { %v2071_v43 = vpack.c.bf16 %v1876_v42, %v1876_v42 }
 0x3d3   : > { %v1595_v39 = vpop.f32.mrf.mxu3 }
 0x3d4   : > { %v2129_v44 = vunpack.c.l.b16 %v2071_v43 }
 0x3d6   : > { %v2131_v39 = vpack.c.b16 %v2129_v44, %v2129_v44 }
 0x3d8   : > { %1617 = vmax.xlane.f32.xlu1 %v1616_v46 }
 0x3db   : > { %v1957_v47 = vpop.f32.mrf.mxu3 }
 0x3dc   : > { %v1958_v51 = vadd.f32 %v7351_v49, %v1957_v47 }
 0x3de   : > { %v2072_v54 = vpack.c.bf16 %v1958_v51, %v1958_v51 }
 0x3e0   : > { %v2089_v59 = vunpack.c.l.b16 %v2072_v54 }
 0x3e3   : > { %v1959_v48 = vpop.f32.mrf.mxu3 }
 0x3e4   : > { %v1960_v22 = vadd.f32 %v7351_v49, %v1959_v48 }
 0x3e6   : > { %v2073_v29 = vpack.c.bf16 %v1960_v22, %v1960_v22 }
 0x3e8   : > { %v2090_v57 = vunpack.c.l.b16 %v2073_v29 }
 0x3ea   : > { %v2092_v60 = vpack.c.b16 %v2090_v57, %v2089_v59 }
 0x3eb   : > { %v1962_v28 = vpop.f32.mrf.mxu3 }
 0x3ec   : > { %v1963_v50 = vadd.f32 %v7351_v49, %v1962_v28  ;;  %v2101_v61 = vsel %vm1520_vm6, %v2092_v60, 0 }
 0x3ee   : > { %v2074_v30 = vpack.c.bf16 %v1963_v50, %v1963_v50 }
 0x3f0   : > { %v2091_v53 = vunpack.c.l.b16 %v2074_v30 }
 0x3f2   : > { %v2093_v55 = vpack.c.b16 %v2091_v53, %v2091_v53 }
 0x3f3   : > { %v1964_v56 = vpop.f32.mrf.mxu3 }
 0x3f4   : > { %v2104_v58 = vsel %vm1520_vm6, %v2093_v55, 0  ;;  %v1965_v45 = vadd.f32 %v7351_v49, %v1964_v56 }
 0x3f5   : > { %2112 = vmatpush.bf16.xpose.msra.mxu1 %v2104_v58 }
 0x3f6   : > { %v2075_v11 = vpack.c.bf16 %v1965_v45, %v1965_v45 }
 0x3f8   : > { %v2135_v26 = vunpack.c.l.b16 %v2075_v11 }
 0x3fb   : > { %v1967_v35 = vpop.f32.mrf.mxu3 }
 0x3fc   : > { %v1968_v20 = vadd.f32 %v7351_v49, %v1967_v35 }
 0x3fd   : > { %2113 = vmatpush.bf16.xpose.msra.mxu1 %v2101_v61 }
 0x3fe   : > { %v2076_v6 = vpack.c.bf16 %v1968_v20, %v1968_v20 }
 0x400   : > { %v2136_v15 = vunpack.c.l.b16 %v2076_v6 }
 0x402   : > { %v2138_v25 = vpack.c.b16 %v2136_v15, %v2135_v26 }
 0x403   : > { %v1969_v3 = vpop.f32.mrf.mxu3 }
 0x404   : > { %v1970_v7 = vadd.f32 %v7351_v49, %v1969_v3  ;;  %v2147_v33 = vsel %vm1520_vm6, %v2138_v25, 0  ;;  %v7173_v25 = vld [vmem:[%s7778_s17 + $0x278] sm:$0xff] }
 0x405   : > { %2042 = vmatpush.bf16.msrb.mxu0 %v7173_v25 }
 0x406   : > { %v2077_v5 = vpack.c.bf16 %v1970_v7, %v1970_v7 }
 0x408   : > { %v2137_v10 = vunpack.c.l.b16 %v2077_v5 }
 0x409   : > { %2043 = vmatpush.bf16.msrb.mxu0 %v7172_v27 }
 0x40a   : > { %v2139_v12 = vpack.c.b16 %v2137_v10, %v2137_v10 }
 0x40c   : > { %v2150_v16 = vsel %vm1520_vm6, %v2139_v12, 0 }
 0x40d   : > { %2158 = vmatpush.bf16.xpose.msra.mxu2 %v2150_v16  ;;  %2044 = vmatpush.bf16.msrb.mxu0 %v7171_v34 }
 0x415   : > { %2159 = vmatpush.bf16.xpose.msra.mxu2 %v2147_v33 }
 0x41c   : > { %6399 = vmatmul.msk.bf16.vlgmr.msra.gmra.mxu2 %vm1520_vm6, %v2130_v18  ;;  %v7170_v18 = vld [vmem:[%s7778_s17 + $0x260] sm:$0xff] }
 0x41d   : > { %2045 = vmatpush.bf16.msrb.mxu0 %v7170_v18 }
 0x42c   : > { %6400 = vmatmul.msk.bf16.gmra.mxu2 %vm1520_vm6, %v2131_v39 }
 0x433   : > { %v1621_v46 = vpop.xlane.xlu0 %1620 }
 0x434   : > { %v1631_v47 = vsub.f32 %v8146_v17, %v1621_v46 }
 0x436   : > { %v1640_v48 = vmul.f32 1.442695, %v1631_v47 }
 0x438   : > { %7377 = vpow2.f32 %v1640_v48  ;;  %v7169_v48 = vld [vmem:[%s7778_s17 + $0x258] sm:$0xff] }
 0x439   : > { %2046 = vmatpush.bf16.msrb.mxu0 %v7169_v48 }
 0x43b   : > { %v1624_v49 = vpop.xlane.xlu1 %1623  ;;  %v1612_v28 = vpop.xlane.xlu0 %1611 }
 0x43c   : > { %v1632_v22 = vsub.f32 %v8156_v19, %v1624_v49  ;;  %v1628_v30 = vsub.f32 %v8152_v31, %v1612_v28  ;;  %v7168_v28 = vld [vmem:[%s7778_s17 + $0x250] sm:$0xff] }
 0x43d   : > { %2047 = vmatpush.bf16.msrb.mxu0 %v7168_v28 }
 0x43e   : > { %v8192_v50 = vpop.eup %7377  ;;  %v1642_v51 = vmul.f32 1.442695, %v1632_v22  ;;  %v1634_v29 = vmul.f32 1.442695, %v1628_v30 }
 0x43f   : > { %v1655_v40 = vsel %vm1609_vm9, %v8192_v50, 0.0 }
 0x440   : > { %1656 = vadd.xlane.f32.xlu2 %v1655_v40  ;;  %7379 = vpow2.f32 %v1642_v51 }
 0x441   : > { %7381 = vpow2.f32 %v1634_v29 }
 0x443   : > { %v1615_v53 = vpop.xlane.xlu1 %1614  ;;  %v1627_v54 = vpop.xlane.xlu2 %1626 }
 0x444   : > { %v1629_v17 = vsub.f32 %v8164_v38, %v1615_v53  ;;  %v1633_v55 = vsub.f32 %v8168_v41, %v1627_v54 }
 0x446   : > { %v1636_v56 = vmul.f32 1.442695, %v1629_v17  ;;  %v1644_v57 = vmul.f32 1.442695, %v1633_v55  ;;  %v7380_v19 = vpop.eup %7379  ;;  %v7167_v55 = vld [vmem:[%s7778_s17 + $0x248] sm:$0xff] }
 0x447   : > { %v1658_v58 = vsel %vm1609_vm9, %v7380_v19, 0.0  ;;  %v8201_v60 = vpop.eup %7381  ;;  %2048 = vmatpush.bf16.msrb.mxu0 %v7167_v55  ;;  %v7352_v55 = vld [vmem:[%s7787_s27 + $0x9] ss:$0 sm:$0xff] }
 0x448   : > { %7383 = vpow2.f32 %v1636_v56  ;;  %1659 = vadd.xlane.f32.xlu0 %v1658_v58  ;;  %v1646_v41 = vsel %vm1609_vm9, %v8201_v60, 0.0  ;;  %v7166_v58 = vld [vmem:[%s7778_s17 + $0x240] sm:$0xff] }
 0x449   : > { %7385 = vpow2.f32 %v1644_v57 }
 0x44b   : > { %v1618_v31 = vpop.xlane.xlu1 %1617  ;;  %2049 = vmatpush.bf16.msrb.mxu0 %v7166_v58 }
 0x44c   : > { %v1630_v59 = vsub.f32 %v8176_v8, %v1618_v31 }
 0x44e   : > { %v7384_v35 = vpop.eup %7383  ;;  %v1638_v61 = vmul.f32 1.442695, %v1630_v59 }
 0x44f   : > { %v8203_v2 = vpop.eup %7385  ;;  %v1649_v38 = vsel %vm1609_vm9, %v7384_v35, 0.0 }
 0x450   : > { %7387 = vpow2.f32 %v1638_v61  ;;  %1650 = vadd.xlane.f32.xlu1 %v1649_v38  ;;  %v1661_v3 = vsel %vm1609_vm9, %v8203_v2, 0.0  ;;  %1647 = vadd.xlane.f32.xlu0 %v1646_v41 }
 0x451   : > { %1662 = vadd.xlane.f32.xlu2 %v1661_v3 }
 0x456   : > { %v8210_v20 = vpop.eup %7387 }
 0x457   : > { %v1652_v8 = vsel %vm1609_vm9, %v8210_v20, 0.0 }
 0x459   : > { %1653 = vadd.xlane.f32.xlu2 %v1652_v8 }
 0x49f   : > { %v2161_v7 = vpop.f32.mrf.mxu2 }
 0x4a0   : > { %v2173_v45 = vmul.f32 0.17677669, %v2161_v7 }
 0x4a2   : > { %v8216_v5 = vsel %vm1211_vm8, %v2173_v45, -1e+30  ;;  %v2068_v45 = vpack.c.bf16 %v8132_v4, %v8132_v4 }
 0x4a3   : > { %v2191_v6 = vsel %vm1609_vm9, %v8216_v5, -inf }
 0x4a4   : > { %2192 = vmax.xlane.f32.xlu0 %v2191_v6 }
 0x4a7   : > { %v2163_v10 = vpop.f32.mrf.mxu2 }
 0x4a8   : > { %v2174_v11 = vmul.f32 0.17677669, %v2163_v10  ;;  %v7149_v10 = vld [vmem:[%s7773_s20 + $0x8] sm:$0xff] }
 0x4a9   : > { %2428 = vmatpush.bf16.msrb.mxu2 %v7149_v10 }
 0x4aa   : > { %v8222_v12 = vsel %vm1211_vm8, %v2174_v11, -1e+30  ;;  %v7148_v11 = vld [vmem:[%s7773_s20] sm:$0xff] }
 0x4ab   : > { %v2194_v13 = vsel %vm1609_vm9, %v8222_v12, -inf }
 0x4ac   : > { %2195 = vmax.xlane.f32.xlu1 %v2194_v13 }
 0x4ad   : > { %2429 = vmatpush.bf16.msrb.mxu2 %v7148_v11 }
 0x4af   : > { %v2166_v15 = vpop.f32.mrf.mxu2 }
 0x4b0   : > { %v2175_v16 = vmul.f32 0.17677669, %v2166_v15 }
 0x4b2   : > { %v8228_v21 = vsel %vm1211_vm8, %v2175_v16, -1e+30 }
 0x4b3   : > { %v2197_v26 = vsel %vm1609_vm9, %v8228_v21, -inf  ;;  %v1657_v24 = vpop.xlane.xlu2 %1656 }
 0x4b4   : > { %2198 = vmax.xlane.f32.xlu2 %v2197_v26  ;;  %7389 = vrcp.f32 %v1657_v24 }
 0x4b7   : > { %v2168_v32 = vpop.f32.mrf.mxu2 }
 0x4ba   : > { %v7390_v36 = vpop.eup %7389 }
 0x4bb   : > { %v1660_v33 = vpop.xlane.xlu0 %1659  ;;  %v1673_v37 = vmul.f32 %v7390_v36, %v8192_v50 }
 0x4bc   : > { %7391 = vrcp.f32 %v1660_v33 }
 0x4bd   : > { %v1679_v44 = vpack.c.bf16 %v1673_v37, %v1673_v37 }
 0x4bf   : > { %v1736_v22 = vunpack.c.l.b16 %v1679_v44 }
 0x4c2   : > { %v7392_v42 = vpop.eup %7391 }
 0x4c3   : > { %v1651_v43 = vpop.xlane.xlu1 %1650  ;;  %v1674_v39 = vmul.f32 %v7392_v42, %v7380_v19  ;;  %v1648_v46 = vpop.xlane.xlu0 %1647 }
 0x4c4   : > { %7393 = vrcp.f32 %v1651_v43  ;;  %v1663_v47 = vpop.xlane.xlu2 %1662 }
 0x4c5   : > { %7395 = vrcp.f32 %v1648_v46  ;;  %v1680_v49 = vpack.c.bf16 %v1674_v39, %v1674_v39 }
 0x4c6   : > { %7397 = vrcp.f32 %v1663_v47 }
 0x4c7   : > { %v1737_v51 = vunpack.c.l.b16 %v1680_v49 }
 0x4c9   : > { %v1739_v50 = vpack.c.b16 %v1737_v51, %v1736_v22 }
 0x4ca   : > { %v7394_v30 = vpop.eup %7393 }
 0x4cb   : > { %v7396_v40 = vpop.eup %7395  ;;  %v1671_v29 = vmul.f32 %v7394_v30, %v7384_v35  ;;  %6248 = vmatmul.msk.bf16.vlgmr.msrb.gmra.mxu1 %vm1609_vm9, %v1739_v50 }
 0x4cc   : > { %v7398_v53 = vpop.eup %7397  ;;  %v1670_v54 = vmul.f32 %v7396_v40, %v8201_v60  ;;  %v1654_v17 = vpop.xlane.xlu2 %1653 }
 0x4cd   : > { %v1677_v56 = vpack.c.bf16 %v1671_v29, %v1671_v29  ;;  %7399 = vrcp.f32 %v1654_v17  ;;  %v1675_v19 = vmul.f32 %v7398_v53, %v8203_v2 }
 0x4ce   : > { %v1676_v57 = vpack.c.bf16 %v1670_v54, %v1670_v54 }
 0x4cf   : > { %v1692_v31 = vunpack.c.l.b16 %v1677_v56  ;;  %v1681_v38 = vpack.c.bf16 %v1675_v19, %v1675_v19 }
 0x4d0   : > { %v1691_v59 = vunpack.c.l.b16 %v1676_v57 }
 0x4d1   : > { %v1738_v60 = vunpack.c.l.b16 %v1681_v38 }
 0x4d2   : > { %v1694_v61 = vpack.c.b16 %v1692_v31, %v1691_v59 }
 0x4d3   : > { %v7400_v35 = vpop.eup %7399  ;;  %v1740_v3 = vpack.c.b16 %v1738_v60, %v1738_v60 }
 0x4d4   : > { %6246 = vmatmul.msk.bf16.vlgmr.msra.gmra.mxu0 %vm1609_vm9, %v1694_v61  ;;  %v1672_v41 = vmul.f32 %v7400_v35, %v8210_v20  ;;  %v2083_v20 = vunpack.c.l.b16 %v2068_v45 }
 0x4d6   : > { %v1678_v8 = vpack.c.bf16 %v1672_v41, %v1672_v41  ;;  %v2085_v6 = vpack.c.b16 %v2083_v20, %v2083_v20 }
 0x4d8   : > { %v1693_v2 = vunpack.c.l.b16 %v1678_v8 }
 0x4da   : > { %v1695_v7 = vpack.c.b16 %v1693_v2, %v1693_v2 }
 0x4db   : > { %6249 = vmatmul.msk.bf16.gmra.mxu1 %vm1609_vm9, %v1740_v3 }
 0x4e4   : > { %6247 = vmatmul.msk.bf16.gmra.mxu0 %vm1609_vm9, %v1695_v7 }
 0x4eb   : > { %6397 = vmatmul.msk.bf16.vlgmr.msra.gmra.mxu1 %vm1520_vm6, %v2084_v0 }
 0x4f4   : > { %2050 = vmatmul.bf16.vlgmr.msrb.gmra.mxu0 %v8053_v52 }
 0x4fb   : > { %6398 = vmatmul.msk.bf16.gmra.mxu1 %vm1520_vm6, %v2085_v6 }
 0x504   : > { %2055 = vmatmul.bf16.gmra.mxu0 %v8075_v9 }
 0x514   : > { %2060 = vmatmul.bf16.gmra.mxu0 %v8087_v23 }
 0x517   : > { %v2193_v16 = vpop.xlane.xlu0 %2192 }
 0x518   : > { %v2203_v25 = vsub.f32 %v8216_v5, %v2193_v16 }
 0x51a   : > { %v2212_v27 = vmul.f32 1.442695, %v2203_v25 }
 0x51c   : > { %7401 = vpow2.f32 %v2212_v27 }
 0x51f   : > { %v2196_v32 = vpop.xlane.xlu1 %2195 }
 0x520   : > { %v2204_v37 = vsub.f32 %v8222_v12, %v2196_v32 }
 0x522   : > { %v2214_v5 = vmul.f32 1.442695, %v2204_v37  ;;  %v8270_v47 = vpop.eup %7401  ;;  %v7189_v37 = vld [vmem:[%s7778_s17 + $0x1a8] sm:$0xff] }
 0x523   : > { %v2227_v28 = vsel %vm1609_vm9, %v8270_v47, 0.0 }
 0x524   : > { %7403 = vpow2.f32 %v2214_v5 }
 0x527   : > { %v2199_v44 = vpop.xlane.xlu2 %2198 }
 0x528   : > { %v2205_v12 = vsub.f32 %v8228_v21, %v2199_v44 }
 0x52a   : > { %v2216_v51 = vmul.f32 1.442695, %v2205_v12  ;;  %v8281_v40 = vpop.eup %7403 }
 0x52b   : > { %v2230_v54 = vsel %vm1609_vm9, %v8281_v40, 0.0 }
 0x52c   : > { %7405 = vpow2.f32 %v2216_v51 }
 0x532   : > { %v8293_v58 = vpop.eup %7405 }
 0x533   : > { %v2233_v35 = vsel %vm1609_vm9, %v8293_v58, 0.0 }
 0x548   : > { %v1768_v62 = vpop.f32.mrf.mxu1 }
 0x550   : > { %v1770_v0 = vpop.f32.mrf.mxu1 }
 0x551   : > { %v1724_v63 = vpop.f32.mrf.mxu0 }
 0x558   : > { %v1773_v15 = vpop.f32.mrf.mxu1 }
 0x559   : > { %v1726_v13 = vpop.f32.mrf.mxu0  ;;  %v1779_v29 = vpack.c.bf16 %v1773_v15, %v1770_v0 }
 0x55a   : > { %v1777_v4 = vpack.c.bf16 %v1726_v13, %v1724_v63 }
 0x55c   : > { %6428 = vmatmul.msk.bf16.vlgmr.msrb.gmra.mxu2 %vm1520_vm6, %v1777_v4 }
 0x560   : > { %v1775_v24 = vpop.f32.mrf.mxu1 }
 0x561   : > { %v1729_v26 = vpop.f32.mrf.mxu0 }
 0x562   : > { %v1778_v36 = vpack.c.bf16 %v1768_v62, %v1729_v26 }
 0x568   : > { %v2115_v34 = vpop.f32.mrf.mxu1 }
 0x569   : > { %v1731_v33 = vpop.f32.mrf.mxu0  ;;  %v2170_v18 = vmul.f32 0.17677669, %v2115_v34 }
 0x56a   : > { %v7191_v33 = vld [vmem:[%s7778_s17 + $0x1b8] sm:$0xff] }
 0x56b   : > { %v8266_v42 = vsel %vm1211_vm8, %v2170_v18, -1e+30 }
 0x56c   : > { %6429 = vmatmul.msk.bf16.gmra.mxu2 %vm1520_vm6, %v1778_v36  ;;  %v2182_v43 = vsel %vm1609_vm9, %v8266_v42, -inf  ;;  %v7190_v36 = vld [vmem:[%s7778_s17 + $0x1b0] sm:$0xff] }
 0x56d   : > { %2183 = vmax.xlane.f32.xlu0 %v2182_v43 }
 0x570   : > { %v2117_v46 = vpop.f32.mrf.mxu1 }
 0x571   : > { %v2051_v39 = vpop.f32.mrf.mxu0  ;;  %v2171_v48 = vmul.f32 0.17677669, %v2117_v46 }
 0x572   : > { %v2052_v59 = vadd.f32 %v7352_v55, %v2051_v39  ;;  %v7188_v39 = vld [vmem:[%s7778_s17 + $0x1a0] sm:$0xff] }
 0x573   : > { %v8275_v49 = vsel %vm1211_vm8, %v2171_v48, -1e+30 }
 0x574   : > { %v2185_v22 = vsel %vm1609_vm9, %v8275_v49, -inf  ;;  %v2254_v41 = vpack.c.bf16 %v2052_v59, %v2052_v59 }
 0x575   : > { %2228 = vadd.xlane.f32.xlu0 %v2227_v28  ;;  %2186 = vmax.xlane.f32.xlu1 %v2185_v22  ;;  %v7187_v22 = vld [vmem:[%s7778_s17 + $0x198] sm:$0xff] }
 0x576   : > { %v2271_v45 = vunpack.c.l.b16 %v2254_v41 }
 0x578   : > { %v2120_v50 = vpop.f32.mrf.mxu1 }
 0x579   : > { %v2053_v30 = vpop.f32.mrf.mxu0  ;;  %v2172_v21 = vmul.f32 0.17677669, %v2120_v50 }
 0x57a   : > { %v2054_v56 = vadd.f32 %v7352_v55, %v2053_v30  ;;  %v7186_v30 = vld [vmem:[%s7778_s17 + $0x190] sm:$0xff] }
 0x57b   : > { %v8286_v53 = vsel %vm1211_vm8, %v2172_v21, -1e+30 }
 0x57c   : > { %6430 = vmatmul.msk.bf16.gmra.mxu2 %vm1520_vm6, %v1779_v29  ;;  %v2188_v17 = vsel %vm1609_vm9, %v8286_v53, -inf  ;;  %v2255_v38 = vpack.c.bf16 %v2054_v56, %v2054_v56 }
 0x57d   : > { %2231 = vadd.xlane.f32.xlu1 %v2230_v54  ;;  %2189 = vmax.xlane.f32.xlu2 %v2188_v17  ;;  %v7185_v17 = vld [vmem:[%s7778_s17 + $0x188] sm:$0xff] }
 0x57e   : > { %v2272_v8 = vunpack.c.l.b16 %v2255_v38 }
 0x580   : > { %v2122_v19 = vpop.f32.mrf.mxu1  ;;  %v2274_v20 = vpack.c.b16 %v2272_v8, %v2271_v45 }
 0x581   : > { %v2056_v57 = vpop.f32.mrf.mxu0 }
 0x582   : > { %v2057_v31 = vadd.f32 %v7352_v55, %v2056_v57 }
 0x584   : > { %v2256_v61 = vpack.c.bf16 %v2057_v31, %v2057_v31  ;;  %v7184_v31 = vld [vmem:[%s7778_s17 + $0x180] sm:$0xff] }
 0x585   : > { %2234 = vadd.xlane.f32.xlu2 %v2233_v35 }
 0x586   : > { %v2273_v60 = vunpack.c.l.b16 %v2256_v61 }
 0x588   : > { %v2275_v3 = vpack.c.b16 %v2273_v60, %v2273_v60 }
 0x589   : > { %v2058_v2 = vpop.f32.mrf.mxu0 }
 0x58a   : > { %v2284_v7 = vsel %vm1711_vm7, %v2275_v3, 0  ;;  %v2059_v63 = vadd.f32 %v7352_v55, %v2058_v2  ;;  %v7183_v2 = vld [vmem:[%s7778_s17 + $0xb8] sm:$0xff] }
 0x58b   : > { %2292 = vmatpush.bf16.msrb.mxu3 %v2284_v7  ;;  %v7182_v7 = vld [vmem:[%s7778_s17 + $0xb0] sm:$0xff] }
 0x58c   : > { %v2257_v4 = vpack.c.bf16 %v2059_v63, %v2059_v63  ;;  %v7178_v63 = vld [vmem:[%s7778_s17 + $0x90] sm:$0xff] }
 0x58e   : > { %v2315_v25 = vunpack.c.l.b16 %v2257_v4 }
 0x58f   : > { %2293 = vmatpush.bf16.msrb.mxu3 %v2274_v20  ;;  %v7180_v20 = vld [vmem:[%s7778_s17 + $0xa0] sm:$0xff] }
 0x591   : > { %v2061_v6 = vpop.f32.mrf.mxu0 }
 0x592   : > { %v2062_v10 = vadd.f32 %v7352_v55, %v2061_v6 }
 0x593   : > { %2516 = vmatpush.bf16.msra.mxu3 %v7183_v2 }
 0x594   : > { %v2258_v13 = vpack.c.bf16 %v2062_v10, %v2062_v10  ;;  %v7179_v10 = vld [vmem:[%s7778_s17 + $0x98] sm:$0xff] }
 0x596   : > { %v2316_v26 = vunpack.c.l.b16 %v2258_v13 }
 0x597   : > { %2517 = vmatpush.bf16.msra.mxu3 %v7182_v7 }
 0x598   : > { %v2318_v27 = vpack.c.b16 %v2316_v26, %v2315_v25 }
 0x599   : > { %v2063_v11 = vpop.f32.mrf.mxu0 }
 0x59a   : > { %v2064_v62 = vadd.f32 %v7352_v55, %v2063_v11 }
 0x59c   : > { %v2259_v0 = vpack.c.bf16 %v2064_v62, %v2064_v62 }
 0x59e   : > { %v2317_v15 = vunpack.c.l.b16 %v2259_v0  ;;  %v7177_v0 = vld [vmem:[%s7778_s17 + $0x88] sm:$0xff] }
 0x5a0   : > { %v2319_v16 = vpack.c.b16 %v2317_v15, %v2317_v15 }
 0x5a2   : > { %v2328_v24 = vsel %vm1711_vm7, %v2319_v16, 0 }
 0x5a3   : > { %2336 = vmatpush.bf16.msrb.mxu1 %v2328_v24 }
 0x5a7   : > { %2337 = vmatpush.bf16.msrb.mxu1 %v2318_v27  ;;  %v7176_v27 = vld [vmem:[%s7778_s17 + $0x80] sm:$0xff] }
 0x5ab   : > { %2610 = vmatpush.bf16.msra.mxu1 %v7191_v33 }
 0x5af   : > { %2611 = vmatpush.bf16.msra.mxu1 %v7190_v36 }
 0x5b3   : > { %2612 = vmatpush.bf16.msra.mxu1 %v7189_v37 }
 0x5b7   : > { %2613 = vmatpush.bf16.msra.mxu1 %v7188_v39 }
 0x5bb   : > { %2614 = vmatpush.bf16.msra.mxu1 %v7187_v22 }
 0x5bf   : > { %2615 = vmatpush.bf16.msra.mxu1 %v7186_v30 }
 0x5c3   : > { %2616 = vmatpush.bf16.msra.mxu1 %v7185_v17 }
 0x5c7   : > { %2617 = vmatpush.bf16.msra.mxu1 %v7184_v31 }
 0x5e0   : > { %v2184_v32 = vpop.xlane.xlu0 %2183 }
 0x5e1   : > { %v2200_v34 = vsub.f32 %v8266_v42, %v2184_v32 }
 0x5e3   : > { %v2206_v18 = vmul.f32 1.442695, %v2200_v34 }
 0x5e5   : > { %7407 = vpow2.f32 %v2206_v18 }
 0x5e8   : > { %v2229_v43 = vpop.xlane.xlu0 %2228  ;;  %v2187_v5 = vpop.xlane.xlu1 %2186 }
 0x5e9   : > { %v2201_v44 = vsub.f32 %v8275_v49, %v2187_v5  ;;  %7409 = vrcp.f32 %v2229_v43 }
 0x5eb   : > { %v8305_v46 = vpop.eup %7407  ;;  %v2208_v48 = vmul.f32 1.442695, %v2201_v44 }
 0x5ec   : > { %v2218_v42 = vsel %vm1609_vm9, %v8305_v46, 0.0 }
 0x5ed   : > { %7411 = vpow2.f32 %v2208_v48  ;;  %2219 = vadd.xlane.f32.xlu0 %v2218_v42  ;;  %v7353_v42 = vld [vmem:[%s7787_s27 + $0x6] ss:$0 sm:$0xff] }
 0x5ef   : > { %v7410_v51 = vpop.eup %7409 }
 0x5f0   : > { %v2232_v12 = vpop.xlane.xlu1 %2231  ;;  %v2190_v28 = vpop.xlane.xlu2 %2189  ;;  %v2245_v21 = vmul.f32 %v7410_v51, %v8270_v47 }
 0x5f1   : > { %7413 = vrcp.f32 %v2232_v12  ;;  %v2202_v49 = vsub.f32 %v8286_v53, %v2190_v28 }
 0x5f2   : > { %v2251_v56 = vpack.c.bf16 %v2245_v21, %v2245_v21 }
 0x5f3   : > { %v7412_v50 = vpop.eup %7411  ;;  %v2210_v29 = vmul.f32 1.442695, %v2202_v49 }
 0x5f4   : > { %v2221_v54 = vsel %vm1609_vm9, %v7412_v50, 0.0  ;;  %v2307_v61 = vunpack.c.l.b16 %v2251_v56 }
 0x5f5   : > { %7415 = vpow2.f32 %v2210_v29  ;;  %2222 = vadd.xlane.f32.xlu1 %v2221_v54 }
 0x5f7   : > { %v7414_v55 = vpop.eup %7413 }
 0x5f8   : > { %v2246_v57 = vmul.f32 %v7414_v55, %v8281_v40  ;;  %v2235_v19 = vpop.xlane.xlu2 %2234 }
 0x5f9   : > { %7417 = vrcp.f32 %v2235_v19 }
 0x5fa   : > { %v2252_v53 = vpack.c.bf16 %v2246_v57, %v2246_v57 }
 0x5fb   : > { %v7416_v59 = vpop.eup %7415 }
 0x5fc   : > { %v2308_v38 = vunpack.c.l.b16 %v2252_v53  ;;  %v2224_v47 = vsel %vm1609_vm9, %v7416_v59, 0.0 }
 0x5fd   : > { %2225 = vadd.xlane.f32.xlu2 %v2224_v47 }
 0x5fe   : > { %v2310_v35 = vpack.c.b16 %v2308_v38, %v2307_v61 }
 0x5ff   : > { %v7418_v60 = vpop.eup %7417 }
 0x600   : > { %6403 = vmatmul.msk.bf16.vlgmr.msrb.gmra.mxu1 %vm1609_vm9, %v2310_v35  ;;  %v2247_v40 = vmul.f32 %v7418_v60, %v8293_v58  ;;  %v7181_v58 = vld [vmem:[%s7778_s17 + $0xa8] sm:$0xff] }
 0x601   : > { %2518 = vmatpush.bf16.msra.mxu3 %v7181_v58 }
 0x602   : > { %v2253_v41 = vpack.c.bf16 %v2247_v40, %v2247_v40 }
 0x604   : > { %v2309_v3 = vunpack.c.l.b16 %v2253_v41 }
 0x605   : > { %2519 = vmatpush.bf16.msra.mxu3 %v7180_v20  ;;  %v7174_v20 = vld [vmem:[%s7773_s20 + $0x10] sm:$0xff] }
 0x606   : > { %v2311_v8 = vpack.c.b16 %v2309_v3, %v2309_v3 }
 0x609   : > { %2520 = vmatpush.bf16.msra.mxu3 %v7179_v10  ;;  %v7198_v10 = vld [vmem:[%s7778_s17 + $0x2b0] sm:$0xff] }
 0x60d   : > { %2521 = vmatpush.bf16.msra.mxu3 %v7178_v63  ;;  %v7196_v63 = vld [vmem:[%s7778_s17 + $0x2a0] sm:$0xff] }
 0x610   : > { %6404 = vmatmul.msk.bf16.gmra.mxu1 %vm1609_vm9, %v2311_v8 }
 0x611   : > { %2522 = vmatpush.bf16.msra.mxu3 %v7177_v0 }
 0x615   : > { %2523 = vmatpush.bf16.msra.mxu3 %v7176_v27 }
 0x620   : > { %2618 = vmatmul.bf16.vlgmr.msra.gmra.mxu1 %v8053_v52 }
 0x630   : > { %2623 = vmatmul.bf16.gmra.mxu1 %v8075_v9 }
 0x640   : > { %2628 = vmatmul.bf16.gmra.mxu1 %v8087_v23 }
 0x660   : > { %v2220_v45 = vpop.xlane.xlu0 %2219 }
 0x661   : > { %7419 = vrcp.f32 %v2220_v45  ;;  %v7175_v45 = vld [vmem:[%s7773_s20 + $0x18] sm:$0xff] }
 0x662   : > { %2383 = vmatpush.bf16.msra.mxu0 %v7175_v45 }
 0x666   : > { %2384 = vmatpush.bf16.msra.mxu0 %v7174_v20 }
 0x667   : > { %v7420_v11 = vpop.eup %7419 }
 0x668   : > { %v2223_v6 = vpop.xlane.xlu1 %2222  ;;  %v2242_v62 = vmul.f32 %v7420_v11, %v8305_v46 }
 0x669   : > { %7421 = vrcp.f32 %v2223_v6  ;;  %v7199_v6 = vld [vmem:[%s7778_s17 + $0x2b8] sm:$0xff] }
 0x66a   : > { %v2248_v15 = vpack.c.bf16 %v2242_v62, %v2242_v62  ;;  %2704 = vmatpush.bf16.msrb.mxu0 %v7199_v6  ;;  %v7197_v62 = vld [vmem:[%s7778_s17 + $0x2a8] sm:$0xff] }
 0x66c   : > { %v2263_v24 = vunpack.c.l.b16 %v2248_v15  ;;  %v7195_v15 = vld [vmem:[%s7778_s17 + $0x298] sm:$0xff] }
 0x66e   : > { %2705 = vmatpush.bf16.msrb.mxu0 %v7198_v10 }
 0x66f   : > { %v7422_v13 = vpop.eup %7421 }
 0x670   : > { %v2243_v4 = vmul.f32 %v7422_v13, %v7412_v50  ;;  %v2226_v16 = vpop.xlane.xlu2 %2225 }
 0x671   : > { %7423 = vrcp.f32 %v2226_v16 }
 0x672   : > { %v2249_v26 = vpack.c.bf16 %v2243_v4, %v2243_v4  ;;  %2706 = vmatpush.bf16.msrb.mxu0 %v7197_v62  ;;  %v7194_v4 = vld [vmem:[%s7778_s17 + $0x290] sm:$0xff] }
 0x674   : > { %v2264_v25 = vunpack.c.l.b16 %v2249_v26  ;;  %v7193_v26 = vld [vmem:[%s7778_s17 + $0x288] sm:$0xff] }
 0x676   : > { %v2266_v32 = vpack.c.b16 %v2264_v25, %v2263_v24  ;;  %2707 = vmatpush.bf16.msrb.mxu0 %v7196_v63  ;;  %v7192_v24 = vld [vmem:[%s7778_s17 + $0x280] sm:$0xff] }
 0x677   : > { %v7424_v33 = vpop.eup %7423 }
 0x678   : > { %6401 = vmatmul.msk.bf16.vlgmr.msrb.gmra.mxu3 %vm1609_vm9, %v2266_v32  ;;  %v2244_v34 = vmul.f32 %v7424_v33, %v7416_v59  ;;  %v7354_v33 = vld [vmem:[%s7787_s27 + $0x2] ss:$0 sm:$0xff] }
 0x67a   : > { %v2250_v18 = vpack.c.bf16 %v2244_v34, %v2244_v34  ;;  %2708 = vmatpush.bf16.msrb.mxu0 %v7195_v15 }
 0x67c   : > { %v2265_v37 = vunpack.c.l.b16 %v2250_v18 }
 0x67d   : > { %v8334_v36 = vpop.f32.mrf.mxu1 }
 0x67e   : > { %v2267_v5 = vpack.c.b16 %v2265_v37, %v2265_v37  ;;  %2709 = vmatpush.bf16.msrb.mxu0 %v7194_v4 }
 0x682   : > { %2710 = vmatpush.bf16.msrb.mxu0 %v7193_v26 }
 0x685   : > { %v8336_v43 = vpop.f32.mrf.mxu1 }
 0x686   : > { %2711 = vmatpush.bf16.msrb.mxu0 %v7192_v24 }
 0x688   : > { %6402 = vmatmul.msk.bf16.gmra.mxu3 %vm1609_vm9, %v2267_v5 }
 0x68d   : > { %v8339_v44 = vpop.f32.mrf.mxu1 }
 0x68e   : > { %v2350_v37 = vpack.c.bf16 %v8339_v44, %v8336_v43  ;;  %v7206_v44 = vld [vmem:[%s7778_s17 + $0xe0] sm:$0xff] }
 0x695   : > { %v2346_v39 = vpop.f32.mrf.mxu1 }
 0x698   : > { %2524 = vmatmul.bf16.vlgmr.msra.gmra.mxu3 %v8053_v52 }
 0x69d   : > { %v2619_v46 = vpop.f32.mrf.mxu1 }
 0x69e   : > { %v2620_v51 = vadd.f32 %v7353_v42, %v2619_v46 }
 0x6a0   : > { %v2734_v29 = vpack.c.bf16 %v2620_v51, %v2620_v51  ;;  %v7207_v51 = vld [vmem:[%s7778_s17 + $0xe8] sm:$0xff] }
 0x6a2   : > { %v2751_v56 = vunpack.c.l.b16 %v2734_v29  ;;  %v7205_v29 = vld [vmem:[%s7778_s17 + $0xd8] sm:$0xff] }
 0x6a5   : > { %v2621_v48 = vpop.f32.mrf.mxu1 }
 0x6a6   : > { %v2622_v28 = vadd.f32 %v7353_v42, %v2621_v48  ;;  %v7209_v48 = vld [vmem:[%s7778_s17 + $0xf8] sm:$0xff] }
 0x6a8   : > { %2529 = vmatmul.bf16.gmra.mxu3 %v8075_v9  ;;  %v2735_v30 = vpack.c.bf16 %v2622_v28, %v2622_v28  ;;  %v7208_v28 = vld [vmem:[%s7778_s17 + $0xf0] sm:$0xff] }
 0x6aa   : > { %v2752_v17 = vunpack.c.l.b16 %v2735_v30 }
 0x6ac   : > { %v2754_v57 = vpack.c.b16 %v2752_v17, %v2751_v56 }
 0x6ad   : > { %v2624_v12 = vpop.f32.mrf.mxu1 }
 0x6ae   : > { %v2625_v22 = vadd.f32 %v7353_v42, %v2624_v12  ;;  %v2763_v53 = vsel %vm1520_vm6, %v2754_v57, 0 }
 0x6b0   : > { %v2736_v49 = vpack.c.bf16 %v2625_v22, %v2625_v22 }
 0x6b2   : > { %v2753_v50 = vunpack.c.l.b16 %v2736_v49 }
 0x6b4   : > { %v2755_v21 = vpack.c.b16 %v2753_v50, %v2753_v50 }
 0x6b5   : > { %v2626_v54 = vpop.f32.mrf.mxu1 }
 0x6b6   : > { %v2766_v55 = vsel %vm1520_vm6, %v2755_v21, 0  ;;  %v2627_v38 = vadd.f32 %v7353_v42, %v2626_v54  ;;  %v7204_v54 = vld [vmem:[%s7778_s17 + $0xd0] sm:$0xff] }
 0x6b7   : > { %2774 = vmatpush.bf16.xpose.msra.mxu2 %v2766_v55 }
 0x6b8   : > { %2534 = vmatmul.bf16.gmra.mxu3 %v8087_v23  ;;  %v2737_v40 = vpack.c.bf16 %v2627_v38, %v2627_v38 }
 0x6ba   : > { %v2797_v2 = vunpack.c.l.b16 %v2737_v40 }
 0x6bd   : > { %v2629_v19 = vpop.f32.mrf.mxu1 }
 0x6be   : > { %v2630_v59 = vadd.f32 %v7353_v42, %v2629_v19  ;;  %v7203_v19 = vld [vmem:[%s7778_s17 + $0xc8] sm:$0xff] }
 0x6bf   : > { %2775 = vmatpush.bf16.xpose.msra.mxu2 %v2763_v53 }
 0x6c0   : > { %v2738_v35 = vpack.c.bf16 %v2630_v59, %v2630_v59 }
 0x6c2   : > { %v2798_v3 = vunpack.c.l.b16 %v2738_v35 }
 0x6c4   : > { %v2800_v7 = vpack.c.b16 %v2798_v3, %v2797_v2  ;;  %v8382_v3 = vpop.f32.mrf.mxu2 }
 0x6c5   : > { %v2631_v31 = vpop.f32.mrf.mxu1 }
 0x6c6   : > { %v2632_v61 = vadd.f32 %v7353_v42, %v2631_v31  ;;  %v2809_v58 = vsel %vm1520_vm6, %v2800_v7, 0 }
 0x6c8   : > { %v2739_v47 = vpack.c.bf16 %v2632_v61, %v2632_v61  ;;  %v7202_v61 = vld [vmem:[%s7778_s17 + $0xc0] sm:$0xff] }
 0x6ca   : > { %v2799_v60 = vunpack.c.l.b16 %v2739_v47 }
 0x6cc   : > { %v2801_v41 = vpack.c.b16 %v2799_v60, %v2799_v60 }
 0x6ce   : > { %v2812_v8 = vsel %vm1520_vm6, %v2801_v41, 0 }
 0x6cf   : > { %2820 = vmatpush.bf16.xpose.msrb.mxu3 %v2812_v8  ;;  %v8385_v8 = vpop.f32.mrf.mxu2 }
 0x6d7   : > { %2821 = vmatpush.bf16.xpose.msrb.mxu3 %v2809_v58  ;;  %v8390_v7 = vpop.f32.mrf.mxu2 }
 0x6df   : > { %v8394_v45 = vpop.f32.mrf.mxu2 }
 0x6e7   : > { %v8400_v10 = vpop.f32.mrf.mxu2 }
 0x6ef   : > { %v8404_v62 = vpop.f32.mrf.mxu2 }
 0x6fb   : > { %v2295_v11 = vpop.f32.mrf.mxu3 }
 0x703   : > { %v2297_v0 = vpop.f32.mrf.mxu3 }
 0x704   : > { %v2348_v13 = vpack.c.bf16 %v2297_v0, %v2295_v11 }
 0x706   : > { %6417 = vmatmul.msk.bf16.vlgmr.msra.gmra.mxu0 %vm1520_vm6, %v2348_v13 }
 0x707   : > { %3139 = vmatpush.bf16.msra.mxu0 %v7209_v48 }
 0x70b   : > { %v2300_v16 = vpop.f32.mrf.mxu3  ;;  %3140 = vmatpush.bf16.msra.mxu0 %v7208_v28 }
 0x70c   : > { %v2349_v27 = vpack.c.bf16 %v8334_v36, %v2300_v16 }
 0x70f   : > { %3141 = vmatpush.bf16.msra.mxu0 %v7207_v51 }
 0x713   : > { %v2302_v25 = vpop.f32.mrf.mxu3  ;;  %3142 = vmatpush.bf16.msra.mxu0 %v7206_v44 }
 0x716   : > { %6418 = vmatmul.msk.bf16.gmra.mxu0 %vm1520_vm6, %v2349_v27 }
 0x717   : > { %3143 = vmatpush.bf16.msra.mxu0 %v7205_v29 }
 0x71b   : > { %v2525_v32 = vpop.f32.mrf.mxu3  ;;  %3144 = vmatpush.bf16.msra.mxu0 %v7204_v54 }
 0x71c   : > { %v2526_v34 = vadd.f32 %v7354_v33, %v2525_v32 }
 0x71e   : > { %v2728_v5 = vpack.c.bf16 %v2526_v34, %v2526_v34 }
 0x71f   : > { %3145 = vmatpush.bf16.msra.mxu0 %v7203_v19 }
 0x720   : > { %v2743_v36 = vunpack.c.l.b16 %v2728_v5 }
 0x723   : > { %v2527_v18 = vpop.f32.mrf.mxu3  ;;  %3146 = vmatpush.bf16.msra.mxu0 %v7202_v61 }
 0x724   : > { %v2528_v39 = vadd.f32 %v7354_v33, %v2527_v18  ;;  %v7355_v18 = vld [vmem:[%s7787_s27 + $0xa] ss:$0 sm:$0xff] }
 0x726   : > { %v2729_v46 = vpack.c.bf16 %v2528_v39, %v2528_v39  ;;  %6419 = vmatmul.msk.bf16.gmra.mxu0 %vm1520_vm6, %v2350_v37 }
 0x728   : > { %v2744_v42 = vunpack.c.l.b16 %v2729_v46 }
 0x72a   : > { %v2746_v12 = vpack.c.b16 %v2744_v42, %v2743_v36 }
 0x72b   : > { %v2530_v22 = vpop.f32.mrf.mxu3 }
 0x72c   : > { %6578 = vmatmul.msk.bf16.vlgmr.msra.gmra.mxu2 %vm1520_vm6, %v2746_v12  ;;  %v2531_v43 = vadd.f32 %v7354_v33, %v2530_v22 }
 0x72e   : > { %v2730_v49 = vpack.c.bf16 %v2531_v43, %v2531_v43 }
 0x730   : > { %v2745_v50 = vunpack.c.l.b16 %v2730_v49 }
 0x732   : > { %v2747_v17 = vpack.c.b16 %v2745_v50, %v2745_v50 }
 0x733   : > { %v2532_v30 = vpop.f32.mrf.mxu3 }
 0x734   : > { %v2533_v21 = vadd.f32 %v7354_v33, %v2532_v30 }
 0x736   : > { %2712 = vmatmul.bf16.vlgmr.msrb.gmra.mxu0 %v8053_v52  ;;  %v2731_v56 = vpack.c.bf16 %v2533_v21, %v2533_v21 }
 0x738   : > { %v2789_v31 = vunpack.c.l.b16 %v2731_v56 }
 0x73b   : > { %v2535_v55 = vpop.f32.mrf.mxu3 }
 0x73c   : > { %v2536_v57 = vadd.f32 %v7354_v33, %v2535_v55  ;;  %6579 = vmatmul.msk.bf16.gmra.mxu2 %vm1520_vm6, %v2747_v17 }
 0x73e   : > { %v2732_v53 = vpack.c.bf16 %v2536_v57, %v2536_v57 }
 0x740   : > { %v2790_v59 = vunpack.c.l.b16 %v2732_v53 }
 0x742   : > { %v2792_v38 = vpack.c.b16 %v2790_v59, %v2789_v31 }
 0x743   : > { %v2537_v47 = vpop.f32.mrf.mxu3 }
 0x744   : > { %6580 = vmatmul.msk.bf16.vlgmr.msrb.gmra.mxu3 %vm1520_vm6, %v2792_v38  ;;  %v2538_v35 = vadd.f32 %v7354_v33, %v2537_v47 }
 0x746   : > { %2717 = vmatmul.bf16.gmra.mxu0 %v8075_v9  ;;  %v2733_v60 = vpack.c.bf16 %v2538_v35, %v2538_v35 }
 0x748   : > { %v2791_v40 = vunpack.c.l.b16 %v2733_v60 }
 0x74a   : > { %v2793_v41 = vpack.c.b16 %v2791_v40, %v2791_v40 }
 0x754   : > { %6581 = vmatmul.msk.bf16.gmra.mxu3 %vm1520_vm6, %v2793_v41 }
 0x756   : > { %2722 = vmatmul.bf16.gmra.mxu0 %v8087_v23 }
 0x766   : > { %3147 = vmatmul.bf16.vlgmr.msra.gmra.mxu0 %v8053_v52 }
 0x776   : > { %3152 = vmatmul.bf16.gmra.mxu0 %v8075_v9 }
 0x783   : > { %v8387_v2 = vpop.f32.mrf.mxu0 }
 0x786   : > { %3157 = vmatmul.bf16.gmra.mxu0 %v8087_v23 }
 0x78b   : > { %v8392_v58 = vpop.f32.mrf.mxu0 }
 0x793   : > { %v8396_v20 = vpop.f32.mrf.mxu0 }
 0x79b   : > { %v8398_v6 = vpop.f32.mrf.mxu0 }
 0x7a3   : > { %v8402_v11 = vpop.f32.mrf.mxu0 }
 0x7ab   : > { %v8406_v63 = vpop.f32.mrf.mxu0 }
 0x7af   : > { %v2777_v0 = vpop.f32.mrf.mxu2 }
 0x7b0   : > { %v2832_v13 = vmul.f32 0.17677669, %v2777_v0 }
 0x7b2   : > { %v8410_v15 = vsel %vm1211_vm8, %v2832_v13, -1e+30 }
 0x7b3   : > { %v2713_v4 = vpop.f32.mrf.mxu0  ;;  %v2844_v16 = vsel %vm1609_vm9, %v8410_v15, -inf }
 0x7b4   : > { %2845 = vmax.xlane.f32.xlu0 %v2844_v16  ;;  %v2714_v36 = vadd.f32 %v7355_v18, %v2713_v4 }
 0x7b6   : > { %v2916_v44 = vpack.c.bf16 %v2714_v36, %v2714_v36 }
 0x7b7   : > { %v2779_v26 = vpop.f32.mrf.mxu2 }
 0x7b8   : > { %v2833_v24 = vmul.f32 0.17677669, %v2779_v26  ;;  %v2933_v17 = vunpack.c.l.b16 %v2916_v44 }
 0x7ba   : > { %v8416_v25 = vsel %vm1211_vm8, %v2833_v24, -1e+30 }
 0x7bb   : > { %v2715_v27 = vpop.f32.mrf.mxu0  ;;  %v2847_v32 = vsel %vm1609_vm9, %v8416_v25, -inf }
 0x7bc   : > { %2848 = vmax.xlane.f32.xlu1 %v2847_v32  ;;  %v2716_v5 = vadd.f32 %v7355_v18, %v2715_v27 }
 0x7be   : > { %v2917_v12 = vpack.c.bf16 %v2716_v5, %v2716_v5 }
 0x7bf   : > { %v2782_v33 = vpop.f32.mrf.mxu2 }
 0x7c0   : > { %v2834_v34 = vmul.f32 0.17677669, %v2782_v33  ;;  %v2934_v50 = vunpack.c.l.b16 %v2917_v12 }
 0x7c2   : > { %v8423_v37 = vsel %vm1211_vm8, %v2834_v34, -1e+30  ;;  %v2936_v56 = vpack.c.b16 %v2934_v50, %v2933_v17 }
 0x7c3   : > { %v2718_v39 = vpop.f32.mrf.mxu0  ;;  %v2850_v46 = vsel %vm1609_vm9, %v8423_v37, -inf }
 0x7c4   : > { %v2719_v48 = vadd.f32 %v7355_v18, %v2718_v39  ;;  %2851 = vmax.xlane.f32.xlu2 %v2850_v46 }
 0x7c6   : > { %v2918_v42 = vpack.c.bf16 %v2719_v48, %v2719_v48 }
 0x7c7   : > { %v2784_v28 = vpop.f32.mrf.mxu2  ;;  %v2823_v22 = vpop.f32.mrf.mxu3 }
 0x7c8   : > { %v2935_v51 = vunpack.c.l.b16 %v2918_v42  ;;  %v2835_v43 = vmul.f32 0.17677669, %v2823_v22 }
 0x7ca   : > { %v2937_v49 = vpack.c.b16 %v2935_v51, %v2935_v51  ;;  %v2841_v30 = vsel %vm1211_vm8, %v2835_v43, -1e+30 }
 0x7cb   : > { %v2720_v29 = vpop.f32.mrf.mxu0  ;;  %v2853_v21 = vsel %vm1609_vm9, %v2841_v30, -inf }
 0x7cc   : > { %2854 = vmax.xlane.f32.xlu0 %v2853_v21  ;;  %v2946_v54 = vsel %vm1711_vm7, %v2937_v49, 0  ;;  %v2721_v41 = vadd.f32 %v7355_v18, %v2720_v29 }
 0x7cd   : > { %2954 = vmatpush.bf16.msrb.mxu1 %v2946_v54 }
 0x7ce   : > { %v2919_v26 = vpack.c.bf16 %v2721_v41, %v2721_v41  ;;  %v7213_v41 = vld [vmem:[%s7778_s17 + $0x1d8] sm:$0xff] }
 0x7cf   : > { %v2825_v55 = vpop.f32.mrf.mxu3 }
 0x7d0   : > { %v2836_v57 = vmul.f32 0.17677669, %v2825_v55  ;;  %v2977_v33 = vunpack.c.l.b16 %v2919_v26 }
 0x7d1   : > { %2955 = vmatpush.bf16.msrb.mxu1 %v2936_v56 }
 0x7d2   : > { %v2842_v19 = vsel %vm1211_vm8, %v2836_v57, -1e+30 }
 0x7d3   : > { %v2723_v53 = vpop.f32.mrf.mxu0  ;;  %v2856_v31 = vsel %vm1609_vm9, %v2842_v19, -inf }
 0x7d4   : > { %2857 = vmax.xlane.f32.xlu1 %v2856_v31  ;;  %v2724_v47 = vadd.f32 %v7355_v18, %v2723_v53 }
 0x7d6   : > { %v2920_v13 = vpack.c.bf16 %v2724_v47, %v2724_v47 }
 0x7d7   : > { %v2828_v59 = vpop.f32.mrf.mxu3 }
 0x7d8   : > { %v2837_v61 = vmul.f32 0.17677669, %v2828_v59  ;;  %v2978_v27 = vunpack.c.l.b16 %v2920_v13 }
 0x7da   : > { %v2843_v38 = vsel %vm1211_vm8, %v2837_v61, -1e+30  ;;  %v2980_v34 = vpack.c.b16 %v2978_v27, %v2977_v33  ;;  %v7217_v61 = vld [vmem:[%s7778_s17 + $0x1f8] sm:$0xff] }
 0x7db   : > { %v2725_v35 = vpop.f32.mrf.mxu0  ;;  %v2859_v60 = vsel %vm1609_vm9, %v2843_v38, -inf  ;;  %3233 = vmatpush.bf16.msra.mxu1 %v7217_v61  ;;  %v7225_v33 = vld [vmem:[%s7778_s17 + $0x2f8] sm:$0xff] }
 0x7dc   : > { %v2726_v40 = vadd.f32 %v7355_v18, %v2725_v35  ;;  %2860 = vmax.xlane.f32.xlu2 %v2859_v60  ;;  %v7215_v35 = vld [vmem:[%s7778_s17 + $0x1e8] sm:$0xff]  ;;  %v7214_v60 = vld [vmem:[%s7778_s17 + $0x1e0] sm:$0xff] }
 0x7de   : > { %v2921_v0 = vpack.c.bf16 %v2726_v40, %v2726_v40 }
 0x7df   : > { %v2830_v4 = vpop.f32.mrf.mxu3 }
 0x7e0   : > { %v2979_v16 = vunpack.c.l.b16 %v2921_v0  ;;  %v7212_v4 = vld [vmem:[%s7778_s17 + $0x1d0] sm:$0xff] }
 0x7e2   : > { %v2981_v24 = vpack.c.b16 %v2979_v16, %v2979_v16 }
 0x7e4   : > { %v2990_v32 = vsel %vm1711_vm7, %v2981_v24, 0 }
 0x7e5   : > { %2998 = vmatpush.bf16.msrb.mxu2 %v2990_v32  ;;  %v7211_v32 = vld [vmem:[%s7778_s17 + $0x1c8] sm:$0xff] }
 0x7e9   : > { %2999 = vmatpush.bf16.msrb.mxu2 %v2980_v34 }
 0x7ed   : > { %3327 = vmatpush.bf16.msra.mxu2 %v7225_v33 }
 0x827   : > { %v2846_v5 = vpop.xlane.xlu0 %2845 }
 0x828   : > { %v2862_v39 = vsub.f32 %v8410_v15, %v2846_v5  ;;  %v7210_v5 = vld [vmem:[%s7778_s17 + $0x1c0] sm:$0xff] }
 0x82a   : > { %v2868_v46 = vmul.f32 1.442695, %v2862_v39  ;;  %v7224_v39 = vld [vmem:[%s7778_s17 + $0x2f0] sm:$0xff] }
 0x82b   : > { %3328 = vmatpush.bf16.msra.mxu2 %v7224_v39 }
 0x82c   : > { %7425 = vpow2.f32 %v2868_v46 }
 0x82f   : > { %v2849_v48 = vpop.xlane.xlu1 %2848 }
 0x830   : > { %v2863_v18 = vsub.f32 %v8416_v25, %v2849_v48 }
 0x832   : > { %v7426_v36 = vpop.eup %7425  ;;  %v2870_v42 = vmul.f32 1.442695, %v2863_v18 }
 0x833   : > { %v2880_v12 = vsel %vm1609_vm9, %v7426_v36, 0.0 }
 0x834   : > { %7427 = vpow2.f32 %v2870_v42  ;;  %2881 = vadd.xlane.f32.xlu0 %v2880_v12  ;;  %v7223_v12 = vld [vmem:[%s7778_s17 + $0x2e8] sm:$0xff] }
 0x835   : > { %3329 = vmatpush.bf16.msra.mxu2 %v7223_v12 }
 0x837   : > { %v2852_v28 = vpop.xlane.xlu2 %2851 }
 0x838   : > { %v2864_v22 = vsub.f32 %v8423_v37, %v2852_v28 }
 0x83a   : > { %v7428_v51 = vpop.eup %7427  ;;  %v2872_v43 = vmul.f32 1.442695, %v2864_v22  ;;  %v7222_v22 = vld [vmem:[%s7778_s17 + $0x2e0] sm:$0xff] }
 0x83b   : > { %v2883_v44 = vsel %vm1609_vm9, %v7428_v51, 0.0  ;;  %3330 = vmatpush.bf16.msra.mxu2 %v7222_v22 }
 0x83c   : > { %7429 = vpow2.f32 %v2872_v43  ;;  %2884 = vadd.xlane.f32.xlu1 %v2883_v44  ;;  %v7221_v44 = vld [vmem:[%s7778_s17 + $0x2d8] sm:$0xff] }
 0x83f   : > { %v2855_v15 = vpop.xlane.xlu0 %2854  ;;  %3331 = vmatpush.bf16.msra.mxu2 %v7221_v44 }
 0x840   : > { %v2865_v49 = vsub.f32 %v2841_v30, %v2855_v15 }
 0x842   : > { %v7430_v50 = vpop.eup %7429  ;;  %v2874_v29 = vmul.f32 1.442695, %v2865_v49 }
 0x843   : > { %v2886_v25 = vsel %vm1609_vm9, %v7430_v50, 0.0 }
 0x844   : > { %7431 = vpow2.f32 %v2874_v29  ;;  %2887 = vadd.xlane.f32.xlu2 %v2886_v25  ;;  %v7220_v29 = vld [vmem:[%s7778_s17 + $0x2d0] sm:$0xff] }
 0x845   : > { %3332 = vmatpush.bf16.msra.mxu2 %v7220_v29 }
 0x847   : > { %v2858_v21 = vpop.xlane.xlu1 %2857 }
 0x848   : > { %v2866_v54 = vsub.f32 %v2842_v19, %v2858_v21 }
 0x84a   : > { %v8444_v17 = vpop.eup %7431  ;;  %v2876_v37 = vmul.f32 1.442695, %v2866_v54 }
 0x84b   : > { %v2889_v55 = vsel %vm1609_vm9, %v8444_v17, 0.0 }
 0x84c   : > { %7433 = vpow2.f32 %v2876_v37  ;;  %2890 = vadd.xlane.f32.xlu0 %v2889_v55 }
 0x84f   : > { %v2861_v30 = vpop.xlane.xlu2 %2860 }
 0x850   : > { %v2867_v56 = vsub.f32 %v2843_v38, %v2861_v30  ;;  %v7216_v38 = vld [vmem:[%s7778_s17 + $0x1f0] sm:$0xff]  ;;  %v7219_v30 = vld [vmem:[%s7778_s17 + $0x2c8] sm:$0xff] }
 0x851   : > { %3234 = vmatpush.bf16.msra.mxu1 %v7216_v38  ;;  %3333 = vmatpush.bf16.msra.mxu2 %v7219_v30 }
 0x852   : > { %v8448_v57 = vpop.eup %7433  ;;  %v2878_v53 = vmul.f32 1.442695, %v2867_v56 }
 0x853   : > { %v2892_v19 = vsel %vm1609_vm9, %v8448_v57, 0.0 }
 0x854   : > { %7435 = vpow2.f32 %v2878_v53  ;;  %2893 = vadd.xlane.f32.xlu1 %v2892_v19  ;;  %v7218_v53 = vld [vmem:[%s7778_s17 + $0x2c0] sm:$0xff] }
 0x855   : > { %3235 = vmatpush.bf16.msra.mxu1 %v7215_v35  ;;  %3334 = vmatpush.bf16.msra.mxu2 %v7218_v53 }
 0x859   : > { %3236 = vmatpush.bf16.msra.mxu1 %v7214_v60  ;;  %v7201_v60 = vld [vmem:[%s7773_s20 + $0x28] sm:$0xff] }
 0x85a   : > { %v8452_v31 = vpop.eup %7435  ;;  %3045 = vmatpush.bf16.msra.mxu3 %v7201_v60 }
 0x85b   : > { %v2895_v59 = vsel %vm1609_vm9, %v8452_v31, 0.0 }
 0x85c   : > { %2896 = vadd.xlane.f32.xlu2 %v2895_v59 }
 0x85d   : > { %3237 = vmatpush.bf16.msra.mxu1 %v7213_v41 }
 0x861   : > { %3238 = vmatpush.bf16.msra.mxu1 %v7212_v4 }
 0x865   : > { %3239 = vmatpush.bf16.msra.mxu1 %v7211_v32  ;;  %v7357_v32 = vld [vmem:[%s7787_s27 + $0x7] ss:$0 sm:$0xff] }
 0x869   : > { %3240 = vmatpush.bf16.msra.mxu1 %v7210_v5 }
 0x8a7   : > { %v2882_v47 = vpop.xlane.xlu0 %2881 }
 0x8a8   : > { %7437 = vrcp.f32 %v2882_v47 }
 0x8ae   : > { %v7438_v0 = vpop.eup %7437 }
 0x8af   : > { %v2885_v40 = vpop.xlane.xlu1 %2884  ;;  %v2904_v13 = vmul.f32 %v7438_v0, %v7426_v36 }
 0x8b0   : > { %7439 = vrcp.f32 %v2885_v40 }
 0x8b1   : > { %v2910_v26 = vpack.c.bf16 %v2904_v13, %v2904_v13 }
 0x8b3   : > { %v2925_v46 = vunpack.c.l.b16 %v2910_v26 }
 0x8b6   : > { %v7440_v16 = vpop.eup %7439 }
 0x8b7   : > { %v2905_v24 = vmul.f32 %v7440_v16, %v7428_v51  ;;  %v2888_v27 = vpop.xlane.xlu2 %2887 }
 0x8b8   : > { %7441 = vrcp.f32 %v2888_v27 }
 0x8b9   : > { %v2911_v34 = vpack.c.bf16 %v2905_v24, %v2905_v24  ;;  %v3148_v24 = vpop.f32.mrf.mxu0 }
 0x8bb   : > { %v2926_v48 = vunpack.c.l.b16 %v2911_v34 }
 0x8bd   : > { %v2928_v18 = vpack.c.b16 %v2926_v48, %v2925_v46 }
 0x8be   : > { %v7442_v36 = vpop.eup %7441 }
 0x8bf   : > { %v2891_v42 = vpop.xlane.xlu0 %2890  ;;  %6582 = vmatmul.msk.bf16.vlgmr.msrb.gmra.mxu1 %vm1609_vm9, %v2928_v18  ;;  %v2906_v28 = vmul.f32 %v7442_v36, %v7430_v50 }
 0x8c0   : > { %7443 = vrcp.f32 %v2891_v42 }
 0x8c1   : > { %v2912_v51 = vpack.c.bf16 %v2906_v28, %v2906_v28  ;;  %v3150_v46 = vpop.f32.mrf.mxu0 }
 0x8c3   : > { %v2927_v49 = vunpack.c.l.b16 %v2912_v51 }
 0x8c5   : > { %v2929_v21 = vpack.c.b16 %v2927_v49, %v2927_v49 }
 0x8c6   : > { %v7444_v15 = vpop.eup %7443 }
 0x8c7   : > { %v2894_v43 = vpop.xlane.xlu1 %2893  ;;  %v2907_v25 = vmul.f32 %v7444_v15, %v8444_v17 }
 0x8c8   : > { %7445 = vrcp.f32 %v2894_v43  ;;  %v8492_v43 = vld [vmem:[%s7787_s27 + $0x3] ss:$0 sm:$0xff] }
 0x8c9   : > { %v2913_v50 = vpack.c.bf16 %v2907_v25, %v2907_v25  ;;  %v3151_v49 = vadd.f32 %v8492_v43, %v3150_v46  ;;  %v3153_v25 = vpop.f32.mrf.mxu0 }
 0x8cb   : > { %v2969_v19 = vunpack.c.l.b16 %v2913_v50 }
 0x8ce   : > { %v7446_v54 = vpop.eup %7445 }
 0x8cf   : > { %v2908_v37 = vmul.f32 %v7446_v54, %v8448_v57  ;;  %6583 = vmatmul.msk.bf16.gmra.mxu1 %vm1609_vm9, %v2929_v21  ;;  %v2897_v55 = vpop.xlane.xlu2 %2896  ;;  %v3149_v21 = vadd.f32 %v8492_v43, %v3148_v24 }
 0x8d0   : > { %7447 = vrcp.f32 %v2897_v55 }
 0x8d1   : > { %v2914_v56 = vpack.c.bf16 %v2908_v37, %v2908_v37  ;;  %v3352_v37 = vpack.c.bf16 %v3151_v49, %v3151_v49  ;;  %v3351_v30 = vpack.c.bf16 %v3149_v21, %v3149_v21 }
 0x8d3   : > { %v2970_v59 = vunpack.c.l.b16 %v2914_v56  ;;  %v3367_v53 = vunpack.c.l.b16 %v3352_v37 }
 0x8d5   : > { %v2972_v61 = vpack.c.b16 %v2970_v59, %v2969_v19  ;;  %v3366_v19 = vunpack.c.l.b16 %v3351_v30  ;;  %v3155_v59 = vpop.f32.mrf.mxu0 }
 0x8d6   : > { %v7448_v17 = vpop.eup %7447 }
 0x8d7   : > { %6584 = vmatmul.msk.bf16.vlgmr.msrb.gmra.mxu2 %vm1609_vm9, %v2972_v61  ;;  %v2909_v38 = vmul.f32 %v7448_v17, %v8452_v31  ;;  %v7200_v31 = vld [vmem:[%s7773_s20 + $0x20] sm:$0xff]  ;;  %v3369_v17 = vpack.c.b16 %v3367_v53, %v3366_v19 }
 0x8d8   : > { %3046 = vmatpush.bf16.msra.mxu3 %v7200_v31 }
 0x8d9   : > { %v2915_v57 = vpack.c.bf16 %v2909_v38, %v2909_v38 }
 0x8db   : > { %v2971_v47 = vunpack.c.l.b16 %v2915_v57 }
 0x8dd   : > { %v2973_v35 = vpack.c.b16 %v2971_v47, %v2971_v47  ;;  %v3158_v24 = vpop.f32.mrf.mxu0 }
 0x8df   : > { %3241 = vmatmul.bf16.vlgmr.msra.gmra.mxu1 %v8053_v52 }
 0x8e5   : > { %v3160_v30 = vpop.f32.mrf.mxu0 }
 0x8e7   : > { %6585 = vmatmul.msk.bf16.gmra.mxu2 %vm1609_vm9, %v2973_v35  ;;  %v3154_v35 = vadd.f32 %v8492_v43, %v3153_v25 }
 0x8ef   : > { %3246 = vmatmul.bf16.gmra.mxu1 %v8075_v9 }
 0x8f7   : > { %3335 = vmatmul.bf16.vlgmr.msra.gmra.mxu2 %v8053_v52 }
 0x8ff   : > { %3251 = vmatmul.bf16.gmra.mxu1 %v8087_v23 }
 0x907   : > { %3340 = vmatmul.bf16.gmra.mxu2 %v8075_v9 }
 0x917   : > { %3345 = vmatmul.bf16.gmra.mxu2 %v8087_v23 }
 0x93c   : > { %v2957_v40 = vpop.f32.mrf.mxu1 }
 0x944   : > { %v2959_v41 = vpop.f32.mrf.mxu1 }
 0x945   : > { %v3010_v0 = vpack.c.bf16 %v2959_v41, %v2957_v40  ;;  %v7358_v40 = vld [vmem:[%s7787_s27 + $0xb] ss:$0 sm:$0xff]  ;;  %s9986_s27 = scalar_lea.vmem %s9918_s10, %s7756_s6 }
 0x947   : > { %6598 = vmatmul.msk.bf16.vlgmr.msra.gmra.mxu3 %vm1520_vm6, %v3010_v0 }
 0x94c   : > { %v2962_v13 = vpop.f32.mrf.mxu1 }
 0x954   : > { %v2964_v4 = vpop.f32.mrf.mxu1 }
 0x95a   : > { %v3001_v16 = vpop.f32.mrf.mxu2 }
 0x95b   : > { %v3011_v52 = vpack.c.bf16 %v3001_v16, %v2962_v13  ;;  %v3353_v16 = vpack.c.bf16 %v3154_v35, %v3154_v35 }
 0x95c   : > { %v3242_v26 = vpop.f32.mrf.mxu1 }
 0x95d   : > { %6599 = vmatmul.msk.bf16.gmra.mxu3 %vm1520_vm6, %v3011_v52  ;;  %v3243_v48 = vadd.f32 %v7357_v32, %v3242_v26 }
 0x95f   : > { %v3357_v28 = vpack.c.bf16 %v3243_v48, %v3243_v48 }
 0x961   : > { %v3374_v29 = vunpack.c.l.b16 %v3357_v28 }
 0x962   : > { %v3003_v9 = vpop.f32.mrf.mxu2 }
 0x964   : > { %v3244_v23 = vpop.f32.mrf.mxu1 }
 0x965   : > { %v3245_v5 = vadd.f32 %v7357_v32, %v3244_v23 }
 0x967   : > { %v3358_v36 = vpack.c.bf16 %v3245_v5, %v3245_v5 }
 0x969   : > { %v3375_v44 = vunpack.c.l.b16 %v3358_v36  ;;  %v3156_v36 = vadd.f32 %v8492_v43, %v3155_v59 }
 0x96a   : > { %v3006_v27 = vpop.f32.mrf.mxu2 }
 0x96b   : > { %v3012_v33 = vpack.c.bf16 %v3006_v27, %v3003_v9  ;;  %v3377_v54 = vpack.c.b16 %v3375_v44, %v3374_v29  ;;  %v3354_v29 = vpack.c.bf16 %v3156_v36, %v3156_v36 }
 0x96c   : > { %v3247_v34 = vpop.f32.mrf.mxu1 }
 0x96d   : > { %v3248_v39 = vadd.f32 %v7357_v32, %v3247_v34  ;;  %6600 = vmatmul.msk.bf16.gmra.mxu3 %vm1520_vm6, %v3012_v33  ;;  %v3386_v56 = vsel %vm1520_vm6, %v3377_v54, 0 }
 0x96f   : > { %v3359_v18 = vpack.c.bf16 %v3248_v39, %v3248_v39  ;;  %v3368_v39 = vunpack.c.l.b16 %v3353_v16  ;;  %v2432_v16 = vadd.f32 %v8382_v3, %v8387_v2 }
 0x971   : > { %v3376_v42 = vunpack.c.l.b16 %v3359_v18 }
 0x972   : > { %v3008_v12 = vpop.f32.mrf.mxu2 }
 0x973   : > { %v3378_v22 = vpack.c.b16 %v3376_v42, %v3376_v42 }
 0x974   : > { %v3249_v51 = vpop.f32.mrf.mxu1 }
 0x975   : > { %v3389_v15 = vsel %vm1520_vm6, %v3378_v22, 0  ;;  %v3250_v60 = vadd.f32 %v7357_v32, %v3249_v51  ;;  %v3370_v51 = vpack.c.b16 %v3368_v39, %v3368_v39 }
 0x976   : > { %3397 = vmatpush.bf16.xpose.msrb.mxu3 %v3389_v15 }
 0x977   : > { %v3360_v52 = vpack.c.bf16 %v3250_v60, %v3250_v60 }
 0x979   : > { %v3420_v46 = vunpack.c.l.b16 %v3360_v52 }
 0x97a   : > { %v3336_v50 = vpop.f32.mrf.mxu2 }
 0x97b   : > { %v3337_v23 = vadd.f32 %v7358_v40, %v3336_v50  ;;  %v3412_v50 = vunpack.c.l.b16 %v3354_v29 }
 0x97c   : > { %v3252_v55 = vpop.f32.mrf.mxu1 }
 0x97d   : > { %v3253_v57 = vadd.f32 %v7357_v32, %v3252_v55  ;;  %v3539_v18 = vpack.c.bf16 %v3337_v23, %v3337_v23 }
 0x97e   : > { %3398 = vmatpush.bf16.xpose.msrb.mxu3 %v3386_v56  ;;  %v3161_v56 = vadd.f32 %v8492_v43, %v3160_v30 }
 0x97f   : > { %v3361_v41 = vpack.c.bf16 %v3253_v57, %v3253_v57  ;;  %v3556_v49 = vunpack.c.l.b16 %v3539_v18 }
 0x980   : > { %v3356_v59 = vpack.c.bf16 %v3161_v56, %v3161_v56 }
 0x981   : > { %v3421_v27 = vunpack.c.l.b16 %v3361_v41 }
 0x982   : > { %v3338_v61 = vpop.f32.mrf.mxu2 }
 0x983   : > { %v3339_v13 = vadd.f32 %v7358_v40, %v3338_v61  ;;  %v3423_v42 = vpack.c.b16 %v3421_v27, %v3420_v46 }
 0x984   : > { %v3254_v38 = vpop.f32.mrf.mxu1 }
 0x985   : > { %v3255_v47 = vadd.f32 %v7357_v32, %v3254_v38  ;;  %6748 = vmatmul.msk.bf16.vlgmr.msrb.gmra.mxu3 %vm1520_vm6, %v3369_v17  ;;  %v3540_v5 = vpack.c.bf16 %v3339_v13, %v3339_v13  ;;  %v3159_v32 = vadd.f32 %v8492_v43, %v3158_v24  ;;  %v3432_v25 = vsel %vm1520_vm6, %v3423_v42, 0 }
 0x987   : > { %v3362_v31 = vpack.c.bf16 %v3255_v47, %v3255_v47  ;;  %v3557_v28 = vunpack.c.l.b16 %v3540_v5  ;;  %v3355_v44 = vpack.c.bf16 %v3159_v32, %v3159_v32  ;;  %v3414_v47 = vunpack.c.l.b16 %v3356_v59 }
 0x989   : > { %v3422_v0 = vunpack.c.l.b16 %v3362_v31  ;;  %v3559_v21 = vpack.c.b16 %v3557_v28, %v3556_v49  ;;  %v3413_v54 = vunpack.c.l.b16 %v3355_v44 }
 0x98a   : > { %v3341_v4 = vpop.f32.mrf.mxu2 }
 0x98b   : > { %v3424_v26 = vpack.c.b16 %v3422_v0, %v3422_v0  ;;  %v3342_v9 = vadd.f32 %v7358_v40, %v3341_v4  ;;  %v3415_v55 = vpack.c.b16 %v3413_v54, %v3412_v50  ;;  %v3416_v0 = vpack.c.b16 %v3414_v47, %v3414_v47 }
 0x98d   : > { %v3541_v33 = vpack.c.bf16 %v3342_v9, %v3342_v9  ;;  %v3435_v34 = vsel %vm1520_vm6, %v3424_v26, 0  ;;  %v2437_v9 = vadd.f32 %v8390_v7, %v8396_v20 }
 0x98e   : > { %3443 = vmatpush.bf16.xpose.msrb.mxu0 %v3435_v34 }
 0x98f   : > { %v3558_v48 = vunpack.c.l.b16 %v3541_v33  ;;  %v2442_v33 = vadd.f32 %v8400_v10, %v8402_v11 }
 0x991   : > { %v3560_v12 = vpack.c.b16 %v3558_v48, %v3558_v48 }
 0x992   : > { %v3343_v22 = vpop.f32.mrf.mxu2 }
 0x993   : > { %v3569_v15 = vsel %vm1711_vm7, %v3560_v12, 0  ;;  %v3344_v17 = vadd.f32 %v7358_v40, %v3343_v22 }
 0x994   : > { %3577 = vmatpush.bf16.msrb.mxu1 %v3569_v15 }
 0x995   : > { %6749 = vmatmul.msk.bf16.gmra.mxu3 %vm1520_vm6, %v3370_v51  ;;  %v3542_v60 = vpack.c.bf16 %v3344_v17, %v3344_v17 }
 0x996   : > { %3444 = vmatpush.bf16.xpose.msrb.mxu0 %v3432_v25 }
 0x997   : > { %v3600_v4 = vunpack.c.l.b16 %v3542_v60 }
 0x998   : > { %3578 = vmatpush.bf16.msrb.mxu1 %v3559_v21 }
 0x99a   : > { %v3346_v37 = vpop.f32.mrf.mxu2 }
 0x99b   : > { %v3347_v53 = vadd.f32 %v7358_v40, %v3346_v37 }
 0x99d   : > { %6750 = vmatmul.msk.bf16.vlgmr.msrb.gmra.mxu0 %vm1520_vm6, %v3415_v55  ;;  %v3543_v57 = vpack.c.bf16 %v3347_v53, %v3347_v53 }
 0x99f   : > { %v3601_v41 = vunpack.c.l.b16 %v3543_v57 }
 0x9a1   : > { %v3603_v43 = vpack.c.b16 %v3601_v41, %v3600_v4 }
 0x9a2   : > { %v3348_v19 = vpop.f32.mrf.mxu2 }
 0x9a3   : > { %v3349_v61 = vadd.f32 %v7358_v40, %v3348_v19 }
 0x9a5   : > { %v3544_v38 = vpack.c.bf16 %v3349_v61, %v3349_v61 }
 0x9a7   : > { %v3602_v35 = vunpack.c.l.b16 %v3544_v38 }
 0x9a9   : > { %v3604_v31 = vpack.c.b16 %v3602_v35, %v3602_v35 }
 0x9ab   : > { %v3613_v13 = vsel %vm1711_vm7, %v3604_v31, 0 }
 0x9ac   : > { %3621 = vmatpush.bf16.msrb.mxu2 %v3613_v13 }
 0x9ad   : > { %6751 = vmatmul.msk.bf16.gmra.mxu0 %vm1520_vm6, %v3416_v0 }
 0x9b0   : > { %3622 = vmatpush.bf16.msrb.mxu2 %v3603_v43 }
 0x9ca   : > { %v3048_v40 = vpop.f32.mrf.mxu3 }
 0x9cb   : > { %v8513_v52 = vadd.f32 %v3048_v40, %v2432_v16 }
 0x9d2   : > { %v8515_v26 = vpop.f32.mrf.mxu3 }
 0x9e0   : > { %v3053_v24 = vpop.f32.mrf.mxu3 }
 0x9e1   : > { %v8519_v23 = vadd.f32 %v3053_v24, %v2437_v9 }
 0x9e8   : > { %v8521_v27 = vpop.f32.mrf.mxu3 }
 0x9f0   : > { %v3058_v34 = vpop.f32.mrf.mxu3 }
 0x9f1   : > { %v8525_v5 = vadd.f32 %v3058_v34, %v2442_v33 }
 0x9f8   : > { %v8527_v3 = vpop.f32.mrf.mxu3 }
 0xa08   : > { %v3400_v2 = vpop.f32.mrf.mxu3 }
 0xa09   : > { %v3455_v39 = vmul.f32 0.17677669, %v3400_v2 }
 0xa0b   : > { %v3461_v32 = vsel %vm1211_vm8, %v3455_v39, -1e+30 }
 0xa0c   : > { %v3467_v7 = vsel %vm1609_vm9, %v3461_v32, -inf }
 0xa0d   : > { %3468 = vmax.xlane.f32.xlu0 %v3467_v7 }
 0xa10   : > { %v3402_v20 = vpop.f32.mrf.mxu3 }
 0xa11   : > { %v3456_v46 = vmul.f32 0.17677669, %v3402_v20 }
 0xa13   : > { %v3462_v48 = vsel %vm1211_vm8, %v3456_v46, -1e+30 }
 0xa14   : > { %v3470_v10 = vsel %vm1609_vm9, %v3462_v48, -inf }
 0xa15   : > { %3471 = vmax.xlane.f32.xlu1 %v3470_v10 }
 0xa18   : > { %v3405_v11 = vpop.f32.mrf.mxu3 }
 0xa19   : > { %v3457_v18 = vmul.f32 0.17677669, %v3405_v11 }
 0xa1a   : > { %v3446_v36 = vpop.f32.mrf.mxu0 }
 0xa1b   : > { %v3458_v42 = vmul.f32 0.17677669, %v3446_v36  ;;  %v3463_v12 = vsel %vm1211_vm8, %v3457_v18, -1e+30 }
 0xa1c   : > { %v3473_v28 = vsel %vm1609_vm9, %v3463_v12, -inf }
 0xa1d   : > { %3474 = vmax.xlane.f32.xlu1 %v3473_v28  ;;  %v3464_v22 = vsel %vm1211_vm8, %v3458_v42, -1e+30 }
 0xa1e   : > { %v3476_v51 = vsel %vm1609_vm9, %v3464_v22, -inf }
 0xa1f   : > { %3477 = vmax.xlane.f32.xlu2 %v3476_v51 }
 0xa20   : > { %v3407_v44 = vpop.f32.mrf.mxu3 }
 0xa22   : > { %v3448_v15 = vpop.f32.mrf.mxu0 }
 0xa23   : > { %v3459_v49 = vmul.f32 0.17677669, %v3448_v15 }
 0xa25   : > { %v3465_v29 = vsel %vm1211_vm8, %v3459_v49, -1e+30 }
 0xa26   : > { %v3479_v25 = vsel %vm1609_vm9, %v3465_v29, -inf }
 0xa27   : > { %3480 = vmax.xlane.f32.xlu0 %v3479_v25 }
 0xa2a   : > { %v3451_v21 = vpop.f32.mrf.mxu0 }
 0xa2b   : > { %v3460_v54 = vmul.f32 0.17677669, %v3451_v21 }
 0xa2d   : > { %v3466_v50 = vsel %vm1211_vm8, %v3460_v54, -1e+30 }
 0xa2e   : > { %v3482_v37 = vsel %vm1609_vm9, %v3466_v50, -inf }
 0xa2f   : > { %3483 = vmax.xlane.f32.xlu2 %v3482_v37 }
 0xa32   : > { %v3453_v55 = vpop.f32.mrf.mxu0 }
 0xa80   : > { %v3469_v30 = vpop.xlane.xlu0 %3468 }
 0xa81   : > { %v3485_v56 = vsub.f32 %v3461_v32, %v3469_v30 }
 0xa83   : > { %v3491_v53 = vmul.f32 1.442695, %v3485_v56 }
 0xa85   : > { %7449 = vpow2.f32 %v3491_v53 }
 0xa88   : > { %v3472_v19 = vpop.xlane.xlu1 %3471 }
 0xa89   : > { %v3486_v59 = vsub.f32 %v3462_v48, %v3472_v19 }
 0xa8b   : > { %v7450_v61 = vpop.eup %7449  ;;  %v3493_v17 = vmul.f32 1.442695, %v3486_v59 }
 0xa8c   : > { %v3503_v38 = vsel %vm1609_vm9, %v7450_v61, 0.0 }
 0xa8d   : > { %7451 = vpow2.f32 %v3493_v17  ;;  %3504 = vadd.xlane.f32.xlu0 %v3503_v38 }
 0xa90   : > { %v3475_v57 = vpop.xlane.xlu1 %3474 }
 0xa91   : > { %v3487_v47 = vsub.f32 %v3463_v12, %v3475_v57 }
 0xa92   : > { %v3478_v14 = vpop.xlane.xlu2 %3477 }
 0xa93   : > { %v7452_v35 = vpop.eup %7451  ;;  %v3495_v60 = vmul.f32 1.442695, %v3487_v47  ;;  %v3488_v31 = vsub.f32 %v3464_v22, %v3478_v14 }
 0xa94   : > { %v3506_v41 = vsel %vm1609_vm9, %v7452_v35, 0.0 }
 0xa95   : > { %7453 = vpow2.f32 %v3495_v60  ;;  %v3497_v0 = vmul.f32 1.442695, %v3488_v31  ;;  %3507 = vadd.xlane.f32.xlu1 %v3506_v41  ;;  %v7227_v31 = vld [vmem:[%s7773_s20 + $0x38] sm:$0xff]  ;;  %v7226_v41 = vld [vmem:[%s7773_s20 + $0x30] sm:$0xff] }
 0xa96   : > { %3668 = vmatpush.bf16.msra.mxu3 %v7227_v31 }
 0xa97   : > { %7455 = vpow2.f32 %v3497_v0 }
 0xa9a   : > { %v3481_v13 = vpop.xlane.xlu0 %3480  ;;  %3669 = vmatpush.bf16.msra.mxu3 %v7226_v41 }
 0xa9b   : > { %v7454_v4 = vpop.eup %7453  ;;  %v3489_v43 = vsub.f32 %v3465_v29, %v3481_v13 }
 0xa9c   : > { %v3509_v16 = vsel %vm1609_vm9, %v7454_v4, 0.0 }
 0xa9d   : > { %v7456_v40 = vpop.eup %7455  ;;  %v3499_v9 = vmul.f32 1.442695, %v3489_v43  ;;  %3510 = vadd.xlane.f32.xlu1 %v3509_v16 }
 0xa9e   : > { %v3512_v24 = vsel %vm1609_vm9, %v7456_v40, 0.0 }
 0xa9f   : > { %7457 = vpow2.f32 %v3499_v9  ;;  %3513 = vadd.xlane.f32.xlu2 %v3512_v24 }
 0xaa2   : > { %v3484_v33 = vpop.xlane.xlu2 %3483 }
 0xaa3   : > { %v3490_v34 = vsub.f32 %v3466_v50, %v3484_v33 }
 0xaa5   : > { %v7458_v2 = vpop.eup %7457  ;;  %v3501_v39 = vmul.f32 1.442695, %v3490_v34 }
 0xaa6   : > { %v3515_v32 = vsel %vm1609_vm9, %v7458_v2, 0.0 }
 0xaa7   : > { %7459 = vpow2.f32 %v3501_v39  ;;  %3516 = vadd.xlane.f32.xlu0 %v3515_v32  ;;  %v7359_v39 = vld [vmem:[%s9986_s27] ss:$0 sm:$0xff] }
 0xaad   : > { %v7460_v7 = vpop.eup %7459 }
 0xaae   : > { %v3518_v20 = vsel %vm1609_vm9, %v7460_v7, 0.0 }
 0xaaf   : > { %3519 = vadd.xlane.f32.xlu2 %v3518_v20 }
 0xb00   : > { %v3505_v46 = vpop.xlane.xlu0 %3504 }
 0xb01   : > { %7461 = vrcp.f32 %v3505_v46  ;;  %v2434_v46 = vadd.f32 %v8385_v8, %v8392_v58  ;;  %v2439_v8 = vadd.f32 %v8394_v45, %v8398_v6  ;;  %v7583_v58 = vld [vmem:[#allocation2 + $0x8] sm:$0xff]  ;;  %v2444_v45 = vadd.f32 %v8404_v62, %v8406_v63  ;;  %v7585_v6 = vld [vmem:[#allocation2 + $0x18] sm:$0xff] }
 0xb07   : > { %v7462_v10 = vpop.eup %7461 }
 0xb08   : > { %v3508_v48 = vpop.xlane.xlu1 %3507  ;;  %v3527_v11 = vmul.f32 %v7462_v10, %v7450_v61 }
 0xb09   : > { %7463 = vrcp.f32 %v3508_v48  ;;  %v7581_v48 = vld [vmem:[#allocation2 + $0x28] sm:$0xff] }
 0xb0a   : > { %v3533_v36 = vpack.c.bf16 %v3527_v11, %v3527_v11  ;;  %v3064_v11 = vadd.f32 %v8515_v26, %v2434_v46  ;;  %v3066_v26 = vadd.f32 %v8521_v27, %v2439_v8  ;;  %v3068_v27 = vadd.f32 %v8527_v3, %v2444_v45  ;;  %v7259_v46 = vld [vmem:[%s7801_s23 + $0xf4] sm:$0xf0]  ;;  %v6871_v8 = vld [vmem:[%s7801_s23 + $0xd0] sm:$0xf0]  ;;  %v7248_v45 = vld [vmem:[%s7801_s23 + $0xa4] sm:$0xf] }
 0xb0c   : > { %v3548_v51 = vunpack.c.l.b16 %v3533_v36 }
 0xb0f   : > { %v7464_v18 = vpop.eup %7463 }
 0xb10   : > { %v3528_v42 = vmul.f32 %v7464_v18, %v7452_v35  ;;  %v3511_v12 = vpop.xlane.xlu1 %3510 }
 0xb11   : > { %7465 = vrcp.f32 %v3511_v12  ;;  %v7582_v12 = vld [vmem:[#allocation2 + $0x10] sm:$0xff] }
 0xb12   : > { %v3534_v28 = vpack.c.bf16 %v3528_v42, %v3528_v42  ;;  %v3514_v22 = vpop.xlane.xlu2 %3513 }
 0xb13   : > { %7467 = vrcp.f32 %v3514_v22 }
 0xb14   : > { %v3549_v44 = vunpack.c.l.b16 %v3534_v28 }
 0xb16   : > { %v3551_v15 = vpack.c.b16 %v3549_v44, %v3548_v51 }
 0xb17   : > { %v7466_v49 = vpop.eup %7465 }
 0xb18   : > { %6752 = vmatmul.msk.bf16.vlgmr.msrb.gmra.mxu1 %vm1609_vm9, %v3551_v15  ;;  %v3529_v29 = vmul.f32 %v7466_v49, %v7454_v4 }
 0xb19   : > { %v7468_v21 = vpop.eup %7467 }
 0xb1a   : > { %v3517_v25 = vpop.xlane.xlu0 %3516  ;;  %v3535_v54 = vpack.c.bf16 %v3529_v29, %v3529_v29  ;;  %v3530_v50 = vmul.f32 %v7468_v21, %v7456_v40 }
 0xb1b   : > { %7469 = vrcp.f32 %v3517_v25  ;;  %v7584_v25 = vld [vmem:[#allocation2] sm:$0xff] }
 0xb1c   : > { %v3536_v55 = vpack.c.bf16 %v3530_v50, %v3530_v50  ;;  %v3550_v53 = vunpack.c.l.b16 %v3535_v54 }
 0xb1e   : > { %v3592_v59 = vunpack.c.l.b16 %v3536_v55  ;;  %v3552_v17 = vpack.c.b16 %v3550_v53, %v3550_v53  ;;  %v7586_v53 = vld [vmem:[#allocation2 + $0x20] sm:$0xff] }
 0xb21   : > { %v7470_v37 = vpop.eup %7469 }
 0xb22   : > { %v3531_v30 = vmul.f32 %v7470_v37, %v7458_v2  ;;  %v3520_v56 = vpop.xlane.xlu2 %3519 }
 0xb23   : > { %7471 = vrcp.f32 %v3520_v56 }
 0xb24   : > { %v3537_v19 = vpack.c.bf16 %v3531_v30, %v3531_v30 }
 0xb26   : > { %v3593_v61 = vunpack.c.l.b16 %v3537_v19 }
 0xb28   : > { %v3595_v38 = vpack.c.b16 %v3593_v61, %v3592_v59  ;;  %6753 = vmatmul.msk.bf16.gmra.mxu1 %vm1609_vm9, %v3552_v17 }
 0xb29   : > { %v7472_v57 = vpop.eup %7471 }
 0xb2a   : > { %6754 = vmatmul.msk.bf16.vlgmr.msrb.gmra.mxu2 %vm1609_vm9, %v3595_v38  ;;  %v3532_v47 = vmul.f32 %v7472_v57, %v7460_v7 }
 0xb2c   : > { %v3538_v14 = vpack.c.bf16 %v3532_v47, %v3532_v47 }
 0xb2e   : > { %v3594_v35 = vunpack.c.l.b16 %v3538_v14 }
 0xb30   : > { %v3596_v60 = vpack.c.b16 %v3594_v35, %v3594_v35 }
 0xb3a   : > { %6755 = vmatmul.msk.bf16.gmra.mxu2 %vm1609_vm9, %v3596_v60 }
 0xb95   : > { %v3580_v0 = vpop.f32.mrf.mxu1 }
 0xb9d   : > { %v3582_v13 = vpop.f32.mrf.mxu1 }
 0xb9e   : > { %v3633_v4 = vpack.c.bf16 %v3582_v13, %v3580_v0 }
 0xba0   : > { %6768 = vmatmul.msk.bf16.vlgmr.msra.gmra.mxu3 %vm1520_vm6, %v3633_v4 }
 0xba5   : > { %v3585_v43 = vpop.f32.mrf.mxu1 }
 0xbad   : > { %v3587_v16 = vpop.f32.mrf.mxu1  ;;  %v3624_v40 = vpop.f32.mrf.mxu2 }
 0xbae   : > { %v3634_v9 = vpack.c.bf16 %v3624_v40, %v3585_v43 }
 0xbb0   : > { %6769 = vmatmul.msk.bf16.gmra.mxu3 %vm1520_vm6, %v3634_v9 }
 0xbb5   : > { %v3626_v24 = vpop.f32.mrf.mxu2 }
 0xbbd   : > { %v3629_v33 = vpop.f32.mrf.mxu2 }
 0xbbe   : > { %v3635_v34 = vpack.c.bf16 %v3629_v33, %v3626_v24 }
 0xbc0   : > { %6770 = vmatmul.msk.bf16.gmra.mxu3 %vm1520_vm6, %v3635_v34  ;;  %v6885_v34 = vld [vmem:[%s7801_s23 + $0xe0] sm:$0xf] }
 0xbc5   : > { %v3631_v2 = vpop.f32.mrf.mxu2 }
 0xbc6   : > { %v7258_v2 = vld [vmem:[%s7801_s23 + $0xec] sm:$0xf0] }
 0xc23   : > { %v3671_v32 = vpop.f32.mrf.mxu3 }
 0xc24   : > { %v3686_v7 = vadd.f32 %v3671_v32, %v8513_v52  ;;  %v6886_v32 = vor.u32 %v7258_v2, %v6885_v34  ;;  %v6823_v2 = vld [vmem:[%s7801_s23 + $0x70] sm:$0xf0] }
 0xc26   : > { %v3696_v20 = vadd.f32 %v7359_v39, %v3686_v7  ;;  %v6887_v7 = vld [vmem:[%s7801_s23 + $0xf0] sm:$0xf0]  ;;  %4053 = vmatpush.bf16.msra.mxu0 %v6886_v32  ;;  %v7243_v32 = vld [vmem:[%s7801_s23 + $0x74] sm:$0xf0] }
 0xc28   : > { %v8570_v10 = vadd.f32 %v7581_v48, %v3696_v20  ;;  %v6893_v20 = vld [vmem:[%s7801_s23 + $0xe8] sm:$0xf] }
 0xc2a   : > { %9987 = vst [vmem:[#allocation8_spill] sm:$0xff] %v8570_v10  ;;  %3710 = vadd.xlane.f32.xlu0 %v8570_v10 }
 0xc2b   : > { %v3673_v18 = vpop.f32.mrf.mxu3 }
 0xc2c   : > { %v3687_v36 = vadd.f32 %v3673_v18, %v3064_v11  ;;  %v6894_v11 = vor.u32 %v7259_v46, %v6893_v20  ;;  %v7257_v18 = vld [vmem:[%s7801_s23 + $0xec] sm:$0xf] }
 0xc2d   : > { %v7241_v46 = vld [vmem:[%s7801_s23 + $0x6c] sm:$0xf] }
 0xc2e   : > { %v3697_v42 = vadd.f32 %v7359_v39, %v3687_v36  ;;  %v6895_v36 = vld [vmem:[%s7801_s23 + $0xf8] sm:$0xf0]  ;;  %4101 = vmatpush.bf16.msra.mxu2 %v6894_v11 }
 0xc30   : > { %v8574_v28 = vadd.f32 %v7582_v12, %v3697_v42  ;;  %v6898_v42 = vor.u32 %v7257_v18, %v6895_v36  ;;  %v6869_v12 = vld [vmem:[%s7801_s23 + $0xc0] sm:$0xf]  ;;  %v7238_v36 = vld [vmem:[%s7801_s23 + $0x4c] sm:$0xf0] }
 0xc31   : > { %v6805_v18 = vld [vmem:[%s7801_s23 + $0x40] sm:$0xf] }
 0xc32   : > { %9988 = vst [vmem:[#allocation9_spill] sm:$0xff] %v8574_v28  ;;  %3712 = vadd.xlane.f32.xlu1 %v8574_v28  ;;  %4125 = vmatpush.bf16.msrb.mxu3 %v6898_v42  ;;  %v7236_v42 = vld [vmem:[%s7801_s23 + $0x44] sm:$0xf] }
 0xc33   : > { %v3676_v52 = vpop.f32.mrf.mxu3 }
 0xc34   : > { %v3688_v22 = vadd.f32 %v3676_v52, %v8519_v23  ;;  %v7254_v52 = vld [vmem:[%s7801_s23 + $0xcc] sm:$0xf0] }
 0xc36   : > { %v3698_v51 = vadd.f32 %v7359_v39, %v3688_v22  ;;  %v7252_v22 = vld [vmem:[%s7801_s23 + $0xc4] sm:$0xf] }
 0xc38   : > { %v8580_v44 = vadd.f32 %v7583_v58, %v3698_v51  ;;  %v6870_v51 = vor.u32 %v7254_v52, %v6869_v12  ;;  %v6877_v58 = vld [vmem:[%s7801_s23 + $0xc8] sm:$0xf]  ;;  %v6806_v12 = vor.u32 %v7238_v36, %v6805_v18  ;;  %v6807_v52 = vld [vmem:[%s7801_s23 + $0x50] sm:$0xf0] }
 0xc3a   : > { %9989 = vst [vmem:[#allocation10_spill] sm:$0xff] %v8580_v44  ;;  %3714 = vadd.xlane.f32.xlu2 %v8580_v44  ;;  %4054 = vmatpush.bf16.msra.mxu0 %v6870_v51  ;;  %v7239_v51 = vld [vmem:[%s7801_s23 + $0x54] sm:$0xf0] }
 0xc3b   : > { %v3678_v15 = vpop.f32.mrf.mxu3 }
 0xc3c   : > { %v3689_v49 = vadd.f32 %v3678_v15, %v3066_v26  ;;  %v7255_v26 = vld [vmem:[%s7801_s23 + $0xd4] sm:$0xf0]  ;;  %v6874_v15 = vor.u32 %v7252_v22, %v6871_v8  ;;  %v6813_v22 = vld [vmem:[%s7801_s23 + $0x48] sm:$0xf]  ;;  %v6810_v8 = vor.u32 %v7236_v42, %v6807_v52 }
 0xc3e   : > { %v3699_v29 = vadd.f32 %v7359_v39, %v3689_v49  ;;  %v6878_v49 = vor.u32 %v7255_v26, %v6877_v58  ;;  %v6814_v58 = vor.u32 %v7239_v51, %v6813_v22  ;;  %v7237_v26 = vld [vmem:[%s7801_s23 + $0x4c] sm:$0xf] }
 0xc40   : > { %v8584_v21 = vadd.f32 %v7584_v25, %v3699_v29  ;;  %v7253_v29 = vld [vmem:[%s7801_s23 + $0xcc] sm:$0xf]  ;;  %v6879_v25 = vld [vmem:[%s7801_s23 + $0xd8] sm:$0xf0]  ;;  %4102 = vmatpush.bf16.msra.mxu2 %v6878_v49 }
 0xc42   : > { %9990 = vst [vmem:[#allocation11_spill] sm:$0xff] %v8584_v21  ;;  %3716 = vadd.xlane.f32.xlu0 %v8584_v21 }
 0xc43   : > { %v3681_v23 = vpop.f32.mrf.mxu3 }
 0xc44   : > { %v3690_v54 = vadd.f32 %v3681_v23, %v8525_v5  ;;  %v6882_v23 = vor.u32 %v7253_v29, %v6879_v25  ;;  %v6789_v29 = vld [vmem:[%s7801_s23 + $0x20] sm:$0xf]  ;;  %v7234_v25 = vld [vmem:[%s7801_s23 + $0x2c] sm:$0xf0] }
 0xc46   : > { %v3700_v50 = vadd.f32 %v7359_v39, %v3690_v54  ;;  %v6853_v54 = vld [vmem:[%s7801_s23 + $0xa0] sm:$0xf]  ;;  %4126 = vmatpush.bf16.msrb.mxu3 %v6882_v23  ;;  %v7232_v23 = vld [vmem:[%s7801_s23 + $0x24] sm:$0xf] }
 0xc48   : > { %v8590_v37 = vadd.f32 %v7585_v6, %v3700_v50  ;;  %v7250_v50 = vld [vmem:[%s7801_s23 + $0xac] sm:$0xf0] }
 0xc49   : > { %v6854_v6 = vor.u32 %v7250_v50, %v6853_v54  ;;  %v6790_v54 = vor.u32 %v7234_v25, %v6789_v29  ;;  %v6791_v50 = vld [vmem:[%s7801_s23 + $0x30] sm:$0xf0] }
 0xc4a   : > { %9991 = vst [vmem:[#allocation12_spill] sm:$0xff] %v8590_v37  ;;  %3718 = vadd.xlane.f32.xlu1 %v8590_v37 }
 0xc4b   : > { %v3683_v55 = vpop.f32.mrf.mxu3  ;;  %4055 = vmatpush.bf16.msra.mxu0 %v6854_v6  ;;  %v7235_v6 = vld [vmem:[%s7801_s23 + $0x34] sm:$0xf0] }
 0xc4c   : > { %v3691_v30 = vadd.f32 %v3683_v55, %v3068_v27  ;;  %v6855_v27 = vld [vmem:[%s7801_s23 + $0xb0] sm:$0xf0]  ;;  %v6861_v55 = vld [vmem:[%s7801_s23 + $0xa8] sm:$0xf] }
 0xc4e   : > { %v3701_v56 = vadd.f32 %v7359_v39, %v3691_v30  ;;  %v7256_v39 = vld [vmem:[%s7801_s23 + $0xe4] sm:$0xf]  ;;  %v7251_v30 = vld [vmem:[%s7801_s23 + $0xb4] sm:$0xf0] }
 0xc4f   : > { %v6890_v48 = vor.u32 %v7256_v39, %v6887_v7  ;;  %v6829_v39 = vld [vmem:[%s7801_s23 + $0x68] sm:$0xf] }
 0xc50   : > { %v8594_v19 = vadd.f32 %v7586_v53, %v3701_v56  ;;  %v6858_v56 = vor.u32 %v7248_v45, %v6855_v27  ;;  %v6862_v53 = vor.u32 %v7251_v30, %v6861_v55  ;;  %v6830_v20 = vor.u32 %v7243_v32, %v6829_v39  ;;  %v6797_v45 = vld [vmem:[%s7801_s23 + $0x28] sm:$0xf] }
 0xc51   : > { %4077 = vmatpush.bf16.msra.mxu1 %v6890_v48  ;;  %v6831_v48 = vld [vmem:[%s7801_s23 + $0x78] sm:$0xf0]  ;;  %v6794_v55 = vor.u32 %v7232_v23, %v6791_v50  ;;  %v6798_v30 = vor.u32 %v7235_v6, %v6797_v45  ;;  %v8714_v50 = vld [vmem:[%s9994_s9] ss:$0 sm:$0xff] }
 0xc52   : > { %9992 = vst [vmem:[#allocation13_spill] sm:$0xff] %v8594_v19  ;;  %3720 = vadd.xlane.f32.xlu2 %v8594_v19  ;;  %4103 = vmatpush.bf16.msra.mxu2 %v6862_v53  ;;  %v6834_v11 = vor.u32 %v7241_v46, %v6831_v48  ;;  %v6799_v53 = vld [vmem:[%s7801_s23 + $0x38] sm:$0xf0] }
 0xc55   : > { %4078 = vmatpush.bf16.msra.mxu1 %v6874_v15  ;;  %v6815_v15 = vld [vmem:[%s7801_s23 + $0x58] sm:$0xf0] }
 0xc56   : > { %v6818_v49 = vor.u32 %v7237_v26, %v6815_v15  ;;  %v8706_v26 = vld [vmem:[%s9993_s16] ss:$0 sm:$0xff] }
 0xc59   : > { %4079 = vmatpush.bf16.msra.mxu1 %v6858_v56  ;;  %v7233_v56 = vld [vmem:[%s7801_s23 + $0x2c] sm:$0xf] }
 0xc9d   : > { %v3711_v5 = vpop.xlane.xlu0 %3710 }
 0xc9e   : > { %v3722_v59 = vmul.f32 %v3711_v5, %v7934_v1  ;;  %v7249_v5 = vld [vmem:[%s7801_s23 + $0xac] sm:$0xf] }
 0xca0   : > { %v8599_v62 = vsub.f32 %v8570_v10, %v3722_v59  ;;  %v6863_v59 = vld [vmem:[%s7801_s23 + $0xb8] sm:$0xf0] }
 0xca2   : > { %v3734_v63 = vmul.f32 %v8599_v62, %v8599_v62 }
 0xca4   : > { %3740 = vadd.xlane.f32.xlu0 %v3734_v63  ;;  %v6866_v63 = vor.u32 %v7249_v5, %v6863_v59  ;;  %v6802_v59 = vor.u32 %v7233_v56, %v6799_v53 }
 0xca5   : > { %v3713_v3 = vpop.xlane.xlu1 %3712 }
 0xca6   : > { %v3723_v61 = vmul.f32 %v3713_v3, %v7934_v1  ;;  %v6837_v3 = vld [vmem:[%s7801_s23 + $0x80] sm:$0xf]  ;;  %4127 = vmatpush.bf16.msrb.mxu3 %v6866_v63 }
 0xca7   : > { %v6773_v63 = vld [vmem:[%s7801_s23] sm:$0xf] }
 0xca8   : > { %v8605_v17 = vsub.f32 %v8574_v28, %v3723_v61  ;;  %v7246_v61 = vld [vmem:[%s7801_s23 + $0x8c] sm:$0xf0] }
 0xcaa   : > { %v3735_v38 = vmul.f32 %v8605_v17, %v8605_v17 }
 0xcac   : > { %3742 = vadd.xlane.f32.xlu1 %v3735_v38  ;;  %v7244_v38 = vld [vmem:[%s7801_s23 + $0x84] sm:$0xf] }
 0xcad   : > { %v3715_v57 = vpop.xlane.xlu2 %3714 }
 0xcae   : > { %v3724_v47 = vmul.f32 %v3715_v57, %v7934_v1  ;;  %v6838_v57 = vor.u32 %v7246_v61, %v6837_v3  ;;  %v7230_v3 = vld [vmem:[%s7801_s23 + $0xc] sm:$0xf0]  ;;  %v7228_v61 = vld [vmem:[%s7801_s23 + $0x4] sm:$0xf] }
 0xcb0   : > { %v8611_v14 = vsub.f32 %v8580_v44, %v3724_v47  ;;  %v6839_v47 = vld [vmem:[%s7801_s23 + $0x90] sm:$0xf0]  ;;  %4056 = vmatpush.bf16.msra.mxu0 %v6838_v57  ;;  %v6774_v57 = vor.u32 %v7230_v3, %v6773_v63 }
 0xcb2   : > { %v3736_v35 = vmul.f32 %v8611_v14, %v8611_v14 }
 0xcb4   : > { %3744 = vadd.xlane.f32.xlu2 %v3736_v35  ;;  %v6845_v35 = vld [vmem:[%s7801_s23 + $0x88] sm:$0xf] }
 0xcb5   : > { %v3717_v60 = vpop.xlane.xlu0 %3716 }
 0xcb6   : > { %v3725_v31 = vmul.f32 %v3717_v60, %v7934_v1  ;;  %v7247_v60 = vld [vmem:[%s7801_s23 + $0x94] sm:$0xf0] }
 0xcb8   : > { %v8617_v41 = vsub.f32 %v8584_v21, %v3725_v31  ;;  %v6842_v31 = vor.u32 %v7244_v38, %v6839_v47  ;;  %v6775_v47 = vld [vmem:[%s7801_s23 + $0x10] sm:$0xf0] }
 0xcba   : > { %v3737_v0 = vmul.f32 %v8617_v41, %v8617_v41  ;;  %4080 = vmatpush.bf16.msra.mxu1 %v6842_v31  ;;  %v7231_v31 = vld [vmem:[%s7801_s23 + $0x14] sm:$0xf0] }
 0xcbc   : > { %3746 = vadd.xlane.f32.xlu0 %v3737_v0  ;;  %v6846_v0 = vor.u32 %v7247_v60, %v6845_v35  ;;  %v6781_v35 = vld [vmem:[%s7801_s23 + $0x8] sm:$0xf]  ;;  %v6778_v60 = vor.u32 %v7228_v61, %v6775_v47 }
 0xcbd   : > { %v3719_v13 = vpop.xlane.xlu1 %3718 }
 0xcbe   : > { %v3726_v4 = vmul.f32 %v3719_v13, %v7934_v1  ;;  %v7245_v13 = vld [vmem:[%s7801_s23 + $0x8c] sm:$0xf]  ;;  %4104 = vmatpush.bf16.msra.mxu2 %v6846_v0 }
 0xcbf   : > { %v7229_v0 = vld [vmem:[%s7801_s23 + $0xc] sm:$0xf] }
 0xcc0   : > { %v8623_v43 = vsub.f32 %v8590_v37, %v3726_v4  ;;  %v6847_v4 = vld [vmem:[%s7801_s23 + $0x98] sm:$0xf0] }
 0xcc2   : > { %v3738_v16 = vmul.f32 %v8623_v43, %v8623_v43  ;;  %4105 = vmatpush.bf16.msra.mxu2 %v6830_v20 }
 0xcc4   : > { %3748 = vadd.xlane.f32.xlu1 %v3738_v16  ;;  %v6850_v16 = vor.u32 %v7245_v13, %v6847_v4  ;;  %v6783_v13 = vld [vmem:[%s7801_s23 + $0x18] sm:$0xf0]  ;;  %v6782_v4 = vor.u32 %v7231_v31, %v6781_v35 }
 0xcc5   : > { %v3721_v40 = vpop.xlane.xlu2 %3720 }
 0xcc6   : > { %v3727_v9 = vmul.f32 %v3721_v40, %v7934_v1  ;;  %v6821_v40 = vld [vmem:[%s7801_s23 + $0x60] sm:$0xf]  ;;  %4128 = vmatpush.bf16.msrb.mxu3 %v6850_v16  ;;  %4106 = vmatpush.bf16.msra.mxu2 %v6814_v58  ;;  %v6786_v16 = vor.u32 %v7229_v0, %v6783_v13 }
 0xcc8   : > { %v8629_v24 = vsub.f32 %v8594_v19, %v3727_v9  ;;  %v7242_v9 = vld [vmem:[%s7801_s23 + $0x6c] sm:$0xf0] }
 0xcc9   : > { %v6822_v34 = vor.u32 %v7242_v9, %v6821_v40 }
 0xcca   : > { %v3739_v33 = vmul.f32 %v8629_v24, %v8629_v24  ;;  %4129 = vmatpush.bf16.msrb.mxu3 %v6834_v11  ;;  %4107 = vmatpush.bf16.msra.mxu2 %v6798_v30 }
 0xccb   : > { %4057 = vmatpush.bf16.msra.mxu0 %v6822_v34 }
 0xccc   : > { %3750 = vadd.xlane.f32.xlu2 %v3739_v33  ;;  %v7240_v33 = vld [vmem:[%s7801_s23 + $0x64] sm:$0xf] }
 0xccd   : > { %v6826_v7 = vor.u32 %v7240_v33, %v6823_v2 }
 0xcce   : > { %4130 = vmatpush.bf16.msrb.mxu3 %v6818_v49  ;;  %4108 = vmatpush.bf16.msra.mxu2 %v6782_v4 }
 0xccf   : > { %4081 = vmatpush.bf16.msra.mxu1 %v6826_v7  ;;  %4058 = vmatpush.bf16.msra.mxu0 %v6806_v12 }
 0xcd2   : > { %4131 = vmatpush.bf16.msrb.mxu3 %v6802_v59 }
 0xcd3   : > { %4082 = vmatpush.bf16.msra.mxu1 %v6810_v8  ;;  %4059 = vmatpush.bf16.msra.mxu0 %v6790_v54 }
 0xcd6   : > { %4132 = vmatpush.bf16.msrb.mxu3 %v6786_v16 }
 0xcd7   : > { %4083 = vmatpush.bf16.msra.mxu1 %v6794_v55  ;;  %4060 = vmatpush.bf16.msra.mxu0 %v6774_v57 }
 0xcdb   : > { %4084 = vmatpush.bf16.msra.mxu1 %v6778_v60 }
 0xd17   : > { %v3741_v27 = vpop.xlane.xlu0 %3740 }
 0xd18   : > { %v3752_v5 = vmul.f32 %v3741_v27, %v7934_v1 }
 0xd1a   : > { %v3758_v38 = vadd.f32 1e-05, %v3752_v5 }
 0xd1c   : > { %7473 = vrsqrt.f32 %v3758_v38  ;;  %vm3770_vm11 = vweird.f32 %v3758_v38 }
 0xd1f   : > { %v3743_v40 = vpop.xlane.xlu1 %3742 }
 0xd20   : > { %v3753_v9 = vmul.f32 %v3743_v40, %v7934_v1 }
 0xd22   : > { %v7474_v33 = vpop.eup %7473  ;;  %v3759_v34 = vadd.f32 1e-05, %v3753_v9 }
 0xd23   : > { %v3765_v2 = vmul.f32 %v7474_v33, %v3758_v38  ;;  %vm3771_vm10 = vweird.f32 %v7474_v33 }
 0xd24   : > { %7475 = vrsqrt.f32 %v3759_v34  ;;  %vm3772_vm12 = vmor %vm3770_vm11, %vm3771_vm10  ;;  %vm3780_vm14 = vweird.f32 %v3759_v34 }
 0xd25   : > { %v3766_v39 = vmul.f32 %v7474_v33, %v3765_v2 }
 0xd27   : > { %v3767_v32 = vmul.f32 0.5, %v3766_v39  ;;  %v3745_v7 = vpop.xlane.xlu2 %3744 }
 0xd28   : > { %v3754_v20 = vmul.f32 %v3745_v7, %v7934_v1 }
 0xd29   : > { %v3768_v46 = vsub.f32 1.5, %v3767_v32 }
 0xd2a   : > { %v7476_v48 = vpop.eup %7475  ;;  %v3760_v11 = vadd.f32 1e-05, %v3754_v20 }
 0xd2b   : > { %v3769_v18 = vmul.f32 %v7474_v33, %v3768_v46  ;;  %v3775_v36 = vmul.f32 %v7476_v48, %v3759_v34  ;;  %vm3781_vm13 = vweird.f32 %v7476_v48 }
 0xd2c   : > { %7477 = vrsqrt.f32 %v3760_v11  ;;  %vm3782_vm15 = vmor %vm3780_vm14, %vm3781_vm13  ;;  %vm3790_vm1 = vweird.f32 %v3760_v11 }
 0xd2d   : > { %v3776_v42 = vmul.f32 %v7476_v48, %v3775_v36  ;;  %v3773_v12 = vsel %vm3772_vm12, %v7474_v33, %v3769_v18 }
 0xd2e   : > { %v3824_v15 = vmul.f32 %v3773_v12, %v8599_v62 }
 0xd2f   : > { %v3777_v52 = vmul.f32 0.5, %v3776_v42  ;;  %v3747_v22 = vpop.xlane.xlu0 %3746 }
 0xd30   : > { %v3755_v51 = vmul.f32 %v3747_v22, %v7934_v1  ;;  %v3833_v45 = vmul.f32 %v8706_v26, %v3824_v15 }
 0xd31   : > { %v3778_v8 = vsub.f32 1.5, %v3777_v52 }
 0xd32   : > { %v7478_v58 = vpop.eup %7477  ;;  %v3761_v49 = vadd.f32 1e-05, %v3755_v51  ;;  %v3842_v5 = vadd.f32 %v8714_v50, %v3833_v45 }
 0xd33   : > { %v3779_v29 = vmul.f32 %v7476_v48, %v3778_v8  ;;  %v3785_v25 = vmul.f32 %v7478_v58, %v3760_v11  ;;  %vm3791_vm0 = vweird.f32 %v7478_v58 }
 0xd34   : > { %7479 = vrsqrt.f32 %v3761_v49  ;;  %vm3792_vm2 = vmor %vm3790_vm1, %vm3791_vm0  ;;  %vm3800_vm4 = vweird.f32 %v3761_v49 }
 0xd35   : > { %v3783_v23 = vsel %vm3782_vm15, %v7476_v48, %v3779_v29  ;;  %v3786_v54 = vmul.f32 %v7478_v58, %v3785_v25 }
 0xd36   : > { %v3825_v6 = vmul.f32 %v3783_v23, %v8605_v17 }
 0xd37   : > { %v3787_v27 = vmul.f32 0.5, %v3786_v54  ;;  %v3749_v62 = vpop.xlane.xlu1 %3748 }
 0xd38   : > { %v3834_v55 = vmul.f32 %v8706_v26, %v3825_v6  ;;  %v3756_v30 = vmul.f32 %v3749_v62, %v7934_v1 }
 0xd39   : > { %v3788_v56 = vsub.f32 1.5, %v3787_v27 }
 0xd3a   : > { %v7480_v53 = vpop.eup %7479  ;;  %v3843_v59 = vadd.f32 %v8714_v50, %v3834_v55  ;;  %v3762_v63 = vadd.f32 1e-05, %v3756_v30 }
 0xd3b   : > { %v3789_v3 = vmul.f32 %v7478_v58, %v3788_v56  ;;  %v3795_v61 = vmul.f32 %v7480_v53, %v3761_v49  ;;  %vm3801_vm3 = vweird.f32 %v7480_v53 }
 0xd3c   : > { %7481 = vrsqrt.f32 %v3762_v63  ;;  %v3848_v38 = vpack.c.bf16 %v3843_v59, %v3842_v5  ;;  %vm3802_vm5 = vmor %vm3800_vm4, %vm3801_vm3  ;;  %vm3810_vm8 = vweird.f32 %v3762_v63 }
 0xd3d   : > { %v3796_v17 = vmul.f32 %v7480_v53, %v3795_v61  ;;  %v3793_v57 = vsel %vm3792_vm2, %v7478_v58, %v3789_v3 }
 0xd3e   : > { %4061 = vmatmul.bf16.vlgmr.msra.gmra.mxu0 %v3848_v38  ;;  %4085 = vmatmul.bf16.vlgmr.msra.gmra.mxu1 %v3848_v38  ;;  %v3826_v13 = vmul.f32 %v3793_v57, %v8611_v14 }
 0xd3f   : > { %v3797_v47 = vmul.f32 0.5, %v3796_v17  ;;  %4109 = vmatmul.bf16.vlgmr.msra.gmra.mxu2 %v3848_v38  ;;  %4133 = vmatmul.bf16.vlgmr.msrb.gmra.mxu3 %v3848_v38  ;;  %v3751_v35 = vpop.xlane.xlu2 %3750 }
 0xd40   : > { %v3757_v60 = vmul.f32 %v3751_v35, %v7934_v1  ;;  %v3835_v2 = vmul.f32 %v8706_v26, %v3826_v13 }
 0xd41   : > { %v3798_v31 = vsub.f32 1.5, %v3797_v47 }
 0xd42   : > { %v7482_v0 = vpop.eup %7481  ;;  %v3763_v4 = vadd.f32 1e-05, %v3757_v60  ;;  %v3844_v20 = vadd.f32 %v8714_v50, %v3835_v2 }
 0xd43   : > { %v3799_v16 = vmul.f32 %v7480_v53, %v3798_v31  ;;  %v3805_v40 = vmul.f32 %v7482_v0, %v3762_v63  ;;  %vm3811_vm7 = vweird.f32 %v7482_v0 }
 0xd44   : > { %7483 = vrsqrt.f32 %v3763_v4  ;;  %vm3812_vm9 = vmor %vm3810_vm8, %vm3811_vm7  ;;  %vm3820_vm11 = vweird.f32 %v3763_v4 }
 0xd45   : > { %v3803_v9 = vsel %vm3802_vm5, %v7480_v53, %v3799_v16  ;;  %v3806_v33 = vmul.f32 %v7482_v0, %v3805_v40 }
 0xd46   : > { %v3827_v34 = vmul.f32 %v3803_v9, %v8617_v41 }
 0xd47   : > { %v3807_v39 = vmul.f32 0.5, %v3806_v33 }
 0xd48   : > { %v3836_v1 = vmul.f32 %v8706_v26, %v3827_v34 }
 0xd49   : > { %v3808_v32 = vsub.f32 1.5, %v3807_v39 }
 0xd4a   : > { %v7484_v7 = vpop.eup %7483  ;;  %v3845_v14 = vadd.f32 %v8714_v50, %v3836_v1 }
 0xd4b   : > { %v3809_v46 = vmul.f32 %v7482_v0, %v3808_v32  ;;  %v3815_v48 = vmul.f32 %v7484_v7, %v3763_v4  ;;  %vm3821_vm10 = vweird.f32 %v7484_v7 }
 0xd4c   : > { %v3849_v11 = vpack.c.bf16 %v3845_v14, %v3844_v20  ;;  %vm3822_vm12 = vmor %vm3820_vm11, %vm3821_vm10 }
 0xd4d   : > { %v3816_v18 = vmul.f32 %v7484_v7, %v3815_v48  ;;  %v3813_v41 = vsel %vm3812_vm9, %v7482_v0, %v3809_v46 }
 0xd4e   : > { %4066 = vmatmul.bf16.gmra.mxu0 %v3849_v11  ;;  %4090 = vmatmul.bf16.gmra.mxu1 %v3849_v11  ;;  %v3828_v12 = vmul.f32 %v3813_v41, %v8623_v43  ;;  %v3883_v43 = vld [vmem:[%s7807_s0] sm:$0xf]  ;;  %s9817_s0 = sld [smem:[#allocation4 + %s7748_s1]] }
 0xd4f   : > { %v3817_v36 = vmul.f32 0.5, %v3816_v18  ;;  %4114 = vmatmul.bf16.gmra.mxu2 %v3849_v11  ;;  %4138 = vmatmul.bf16.gmra.mxu3 %v3849_v11  ;;  %v8736_v25 = vperm.slane %v3883_v43, 0  ;;  %v8738_v23 = vperm.slane %v3883_v43, 1  ;;  %v8752_v27 = vperm.slane %v3883_v43, 2 }
 0xd50   : > { %v3837_v8 = vmul.f32 %v8706_v26, %v3828_v12  ;;  %v8754_v62 = vperm.slane %v3883_v43, 3 }
 0xd51   : > { %v3818_v42 = vsub.f32 1.5, %v3817_v36 }
 0xd52   : > { %v3846_v15 = vadd.f32 %v8714_v50, %v3837_v8 }
 0xd53   : > { %v3819_v52 = vmul.f32 %v7484_v7, %v3818_v42 }
 0xd54   : > { %p7027_p9 = scmp.ne.s32.totalorder %s9817_s0, 1 }
 0xd55   : > { %v3823_v22 = vsel %vm3822_vm12, %v7484_v7, %v3819_v52 }
 0xd56   : > { %v3829_v51 = vmul.f32 %v3823_v22, %v8629_v24 }
 0xd58   : > { %v3838_v58 = vmul.f32 %v8706_v26, %v3829_v51 }
 0xd5a   : > { %v3847_v49 = vadd.f32 %v8714_v50, %v3838_v58 }
 0xd5c   : > { %v3850_v29 = vpack.c.bf16 %v3847_v49, %v3846_v15 }
 0xd5e   : > { %4071 = vmatmul.bf16.gmra.mxu0 %v3850_v29  ;;  %4095 = vmatmul.bf16.gmra.mxu1 %v3850_v29 }
 0xd5f   : > { %4119 = vmatmul.bf16.gmra.mxu2 %v3850_v29  ;;  %4143 = vmatmul.bf16.gmra.mxu3 %v3850_v29 }
 0xdbb   : > { %v4062_v54 = vpop.f32.mrf.mxu0  ;;  %v4086_v24 = vpop.f32.mrf.mxu1 }
 0xdbc   : > { %v8741_v45 = vadd.f32 %v4062_v54, %v8736_v25  ;;  %v8744_v26 = vadd.f32 %v4086_v24, %v8738_v23 }
 0xdbe   : > { %v8747_v50 = vmul.f32 0.70710677, %v8741_v45  ;;  %v8750_v6 = vmul.f32 0.70710677, %v8744_v26 }
 0xdc0   : > { %v8757_v55 = vand.u32 2147483647, %v8747_v50  ;;  %v8760_v30 = vand.u32 2147483647, %v8750_v6  ;;  %vm4197_vm12 = vcmp.ge.f32.partialorder %v8747_v50, 0.0 }
 0xdc2   : > { %v4269_v56 = vmul.f32 0.3275911, %v8757_v55  ;;  %v4270_v53 = vmul.f32 0.3275911, %v8760_v30  ;;  %v4110_v5 = vpop.f32.mrf.mxu2  ;;  %v4134_v59 = vpop.f32.mrf.mxu3 }
 0xdc3   : > { %v8765_v63 = vadd.f32 %v4110_v5, %v8752_v27  ;;  %v8768_v3 = vadd.f32 %v4134_v59, %v8754_v62  ;;  %v4064_v16 = vpop.f32.mrf.mxu0  ;;  %v4088_v33 = vpop.f32.mrf.mxu1 }
 0xdc4   : > { %v4293_v61 = vadd.f32 1.0, %v4269_v56  ;;  %v4294_v38 = vadd.f32 1.0, %v4270_v53  ;;  %v8787_v1 = vadd.f32 %v4064_v16, %v8736_v25  ;;  %v8790_v7 = vadd.f32 %v4088_v33, %v8738_v23 }
 0xdc5   : > { %v8771_v17 = vmul.f32 0.70710677, %v8765_v63  ;;  %v8774_v57 = vmul.f32 0.70710677, %v8768_v3 }
 0xdc6   : > { %7485 = vrcp.f32 %v4293_v61  ;;  %v4328_v20 = vand.u32 2147483648, %v4293_v61  ;;  %vm4322_vm14 = vweird.f32 %v4293_v61  ;;  %v4326_v48 = vand.u32 2147483647, %v4293_v61 }
 0xdc7   : > { %7487 = vrcp.f32 %v4294_v38  ;;  %v8777_v47 = vand.u32 2147483647, %v8771_v17  ;;  %v8781_v60 = vand.u32 2147483647, %v8774_v57  ;;  %v8794_v18 = vmul.f32 0.70710677, %v8787_v1 }
 0xdc8   : > { %v4341_v42 = vand.u32 2147483647, %v4294_v38  ;;  %v4343_v12 = vand.u32 2147483648, %v4294_v38  ;;  %v8797_v52 = vmul.f32 0.70710677, %v8790_v7  ;;  %v4329_v22 = vor.u32 1.1754944e-38, %v4328_v20 }
 0xdc9   : > { %v4271_v35 = vmul.f32 0.3275911, %v8777_v47  ;;  %v4272_v9 = vmul.f32 0.3275911, %v8781_v60  ;;  %vm4337_vm1 = vweird.f32 %v4294_v38  ;;  %vm4327_vm2 = vcmp.eq.f32.partialorder %v4326_v48, 8.507059e+37 }
 0xdca   : > { %v8802_v49 = vand.u32 2147483647, %v8794_v18  ;;  %vm4342_vm4 = vcmp.eq.f32.partialorder %v4341_v42, 8.507059e+37  ;;  %v4344_v43 = vor.u32 1.1754944e-38, %v4343_v12  ;;  %v8805_v54 = vand.u32 2147483647, %v8797_v52 }
 0xdcb   : > { %v4295_v4 = vadd.f32 1.0, %v4271_v35  ;;  %v8784_v39 = vadd.f32 1.0, %v4272_v9  ;;  %v8829_v12 = vmul.f32 0.5, %v8741_v45 }
 0xdcc   : > { %v7486_v31 = vpop.eup %7485 }
 0xdcd   : > { %v7488_v0 = vpop.eup %7487  ;;  %v4318_v13 = vmul.f32 %v7486_v31, %v4293_v61  ;;  %7489 = vrcp.f32 %v4295_v4  ;;  %vm4323_vm13 = vweird.f32 %v7486_v31  ;;  %vm4352_vm5 = vweird.f32 %v4295_v4 }
 0xdce   : > { %v4333_v40 = vmul.f32 %v7488_v0, %v4294_v38  ;;  %7491 = vrcp.f32 %v8784_v39  ;;  %vm4324_vm15 = vmor %vm4322_vm14, %vm4323_vm13  ;;  %vm4338_vm0 = vweird.f32 %v7488_v0  ;;  %v4358_v59 = vand.u32 2147483648, %v4295_v4 }
 0xdcf   : > { %v4319_v34 = vsub.f32 1.0, %v4318_v13  ;;  %vm4339_vm3 = vmor %vm4337_vm1, %vm4338_vm0  ;;  %v4273_v61 = vmul.f32 0.3275911, %v8802_v49  ;;  %v4356_v35 = vand.u32 2147483647, %v4295_v4  ;;  %v4373_v48 = vand.u32 2147483648, %v8784_v39 }
 0xdd0   : > { %v4334_v2 = vsub.f32 1.0, %v4333_v40  ;;  %vm4367_vm11 = vweird.f32 %v8784_v39  ;;  %vm4198_vm13 = vcmp.ge.f32.partialorder %v8750_v6, 0.0 }
 0xdd1   : > { %v4320_v32 = vmul.f32 %v7486_v31, %v4319_v34  ;;  %v8813_v13 = vadd.f32 1.0, %v4273_v61  ;;  %vm4357_vm9 = vcmp.eq.f32.partialorder %v4356_v35, 8.507059e+37 }
 0xdd2   : > { %v4335_v14 = vmul.f32 %v7488_v0, %v4334_v2  ;;  %v4359_v2 = vor.u32 1.1754944e-38, %v4358_v59  ;;  %v9934_v59 = vmov -1.0  }
 0xdd3   : > { %v4321_v46 = vadd.f32 %v7486_v31, %v4320_v32  ;;  %v7490_v41 = vpop.eup %7489  ;;  %7493 = vrcp.f32 %v8813_v13  ;;  %vm4382_vm1 = vweird.f32 %v8813_v13 }
 0xdd4   : > { %v4336_v11 = vadd.f32 %v7488_v0, %v4335_v14  ;;  %v4348_v51 = vmul.f32 %v7490_v41, %v4295_v4  ;;  %v7492_v29 = vpop.eup %7491  ;;  %vm4353_vm7 = vweird.f32 %v7490_v41  ;;  %v4893_v4 = vsub.f32 0.0, %v8757_v55 }
 0xdd5   : > { %v4325_v36 = vsel %vm4324_vm15, %v7486_v31, %v4321_v46  ;;  %v4363_v56 = vmul.f32 %v7492_v29, %v8784_v39  ;;  %vm4354_vm8 = vmor %vm4352_vm5, %vm4353_vm7  ;;  %vm4368_vm10 = vweird.f32 %v7492_v29  ;;  %vm4200_vm7 = vcmp.ge.f32.partialorder %v8774_v57, 0.0 }
 0xdd6   : > { %v8799_v8 = vsel %vm4327_vm2, %v4329_v22, %v4325_v36  ;;  %v4340_v58 = vsel %vm4339_vm3, %v7488_v0, %v4336_v11  ;;  %v4349_v15 = vsub.f32 1.0, %v4348_v51  ;;  %v4274_v0 = vmul.f32 0.3275911, %v8805_v54  ;;  %v4112_v36 = vpop.f32.mrf.mxu2  ;;  %vm8834_vm14 = vmor %vm4367_vm11, %vm4368_vm10 }
 0xdd7   : > { %v4677_v53 = vmul.f32 1.0614054, %v8799_v8  ;;  %v8809_v5 = vsel %vm4342_vm4, %v4344_v43, %v4340_v58  ;;  %v4364_v31 = vsub.f32 1.0, %v4363_v56  ;;  %v4894_v22 = vsub.f32 0.0, %v8760_v30 }
 0xdd8   : > { %v4350_v24 = vmul.f32 %v7490_v41, %v4349_v15  ;;  %v4678_v16 = vmul.f32 1.0614054, %v8809_v5  ;;  %v8816_v33 = vadd.f32 1.0, %v4274_v0  ;;  %v4917_v58 = vmul.f32 %v4893_v4, %v8757_v55 }
 0xdd9   : > { %v4365_v9 = vmul.f32 %v7492_v29, %v4364_v31  ;;  %v4701_v34 = vadd.f32 -1.4531521, %v4677_v53  ;;  %v7494_v42 = vpop.eup %7493  ;;  %v4374_v56 = vor.u32 1.1754944e-38, %v4373_v48  ;;  %v8849_v53 = vadd.f32 %v4112_v36, %v8752_v27 }
 0xdda   : > { %v4351_v38 = vadd.f32 %v7490_v41, %v4350_v24  ;;  %7495 = vrcp.f32 %v8816_v33  ;;  %v4702_v20 = vadd.f32 -1.4531521, %v4678_v16  ;;  %v4378_v45 = vmul.f32 %v7494_v42, %v8813_v13 }
 0xddb   : > { %v4366_v14 = vadd.f32 %v7492_v29, %v4365_v9  ;;  %v4725_v46 = vmul.f32 %v4701_v34, %v8799_v8  ;;  %v8846_v24 = vmul.f32 0.5, %v8744_v26  ;;  %v8852_v55 = vsel %vm4197_vm12, 1.0, %v9934_v59 }
 0xddc   : > { %v4355_v40 = vsel %vm4354_vm8, %v7490_v41, %v4351_v38  ;;  %v4371_v41 = vand.u32 2147483647, %v8784_v39  ;;  %v4726_v15 = vmul.f32 %v4702_v20, %v8809_v5  ;;  %v4379_v38 = vsub.f32 1.0, %v4378_v45 }
 0xddd   : > { %v8819_v32 = vsel %vm4357_vm9, %v4359_v2, %v4355_v40  ;;  %v4370_v39 = vsel %vm8834_vm14, %v7492_v29, %v4366_v14  ;;  %v4749_v50 = vadd.f32 1.4214138, %v4725_v46  ;;  %v8857_v29 = vsel %vm4198_vm13, 1.0, %v9934_v59 }
 0xdde   : > { %v4679_v11 = vmul.f32 1.0614054, %v8819_v32  ;;  %vm4372_vm15 = vcmp.eq.f32.partialorder %v4371_v41, 8.507059e+37  ;;  %v4918_v35 = vmul.f32 %v4894_v22, %v8760_v30  ;;  %v4941_v0 = vmul.f32 1.442695, %v4917_v58 }
 0xddf   : > { %v8860_v26 = vsel %vm4372_vm15, %v4374_v56, %v4370_v39  ;;  %v4750_v16 = vadd.f32 1.4214138, %v4726_v15  ;;  %v8865_v40 = vmul.f32 0.5, %v8765_v63  ;;  %v4380_v9 = vmul.f32 %v7494_v42, %v4379_v38 }
 0xde0   : > { %v8843_v43 = vpop.eup %7495  ;;  %v4703_v61 = vadd.f32 -1.4531521, %v4679_v11  ;;  %v4773_v34 = vmul.f32 %v4749_v50, %v8799_v8  ;;  %vm4383_vm0 = vweird.f32 %v7494_v42  ;;  %v8869_v6 = vmul.f32 0.70710677, %v8849_v53 }
 0xde1   : > { %v4393_v31 = vmul.f32 %v8843_v43, %v8816_v33  ;;  %v4680_v4 = vmul.f32 1.0614054, %v8860_v26  ;;  %v4381_v20 = vadd.f32 %v7494_v42, %v4380_v9  ;;  %v4388_v14 = vand.u32 2147483648, %v8813_v13  ;;  %vm8885_vm2 = vmor %vm4382_vm1, %vm4383_vm0 }
 0xde2   : > { %v4727_v30 = vmul.f32 %v4703_v61, %v8819_v32  ;;  %v4386_v63 = vand.u32 2147483647, %v8813_v13  ;;  %v8878_v48 = vand.u32 2147483647, %v8869_v6  ;;  %7497 = vpow2.f32 %v4941_v0 }
 0xde3   : > { %v4394_v2 = vsub.f32 1.0, %v4393_v31  ;;  %v4774_v11 = vmul.f32 %v4750_v16, %v8809_v5  ;;  %v4943_v41 = vmul.f32 1.442695, %v4918_v35  ;;  %v8882_v36 = vmul.f32 0.5, %v8768_v3 }
 0xde4   : > { %v4797_v51 = vadd.f32 -0.28449672, %v4773_v34  ;;  %vm4199_vm3 = vcmp.ge.f32.partialorder %v8771_v17, 0.0  ;;  %v4895_v13 = vsub.f32 0.0, %v8777_v47  ;;  %v4385_v58 = vsel %vm8885_vm2, %v7494_v42, %v4381_v20  ;;  %v4136_v42 = vpop.f32.mrf.mxu3 }
 0xde5   : > { %v4395_v46 = vmul.f32 %v8843_v43, %v4394_v2  ;;  %v4751_v15 = vadd.f32 1.4214138, %v4727_v30  ;;  %v4704_v39 = vadd.f32 -1.4531521, %v4680_v4  ;;  %v4896_v45 = vsub.f32 0.0, %v8781_v60 }
 0xde6   : > { %v4389_v50 = vor.u32 1.1754944e-38, %v4388_v14  ;;  %vm4387_vm4 = vcmp.eq.f32.partialorder %v4386_v63, 8.507059e+37  ;;  %vm4398_vm5 = vweird.f32 %v8843_v43  ;;  %v4275_v56 = vmul.f32 0.3275911, %v8878_v48 }
 0xde7   : > { %v4396_v3 = vadd.f32 %v8843_v43, %v4395_v46  ;;  %v4798_v61 = vadd.f32 -0.28449672, %v4774_v11  ;;  %v4403_v35 = vand.u32 2147483648, %v8816_v33  ;;  %v4919_v31 = vmul.f32 %v4895_v13, %v8777_v47  ;;  %v4067_v11 = vpop.f32.mrf.mxu0 }
 0xde8   : > { %v8898_v38 = vsel %vm4387_vm4, %v4389_v50, %v4385_v58  ;;  %vm4397_vm8 = vweird.f32 %v8816_v33  ;;  %v4401_v0 = vand.u32 2147483647, %v8816_v33  ;;  %v8904_v16 = vadd.f32 1.0, %v4275_v56  ;;  %v7498_v9 = vpop.eup %7497 }
 0xde9   : > { %v4821_v34 = vmul.f32 %v4797_v51, %v8799_v8  ;;  %v4775_v2 = vmul.f32 %v4751_v15, %v8819_v32  ;;  %v4728_v30 = vmul.f32 %v4704_v39, %v8860_v26  ;;  %v4920_v4 = vmul.f32 %v4896_v45, %v8781_v60  ;;  %vm8912_vm9 = vmor %vm4397_vm8, %vm4398_vm5 }
 0xdea   : > { %v4681_v47 = vmul.f32 1.0614054, %v8898_v38  ;;  %v4400_v33 = vsel %vm8912_vm9, %v8843_v43, %v4396_v3  ;;  %7499 = vrcp.f32 %v8904_v16  ;;  %v8922_v14 = vadd.f32 %v4136_v42, %v8754_v62 }
 0xdeb   : > { %v4822_v63 = vmul.f32 %v4798_v61, %v8809_v5  ;;  %7501 = vpow2.f32 %v4943_v41  ;;  %v8928_v60 = vsel %vm4199_vm3, 1.0, %v9934_v59  ;;  %v4404_v46 = vor.u32 1.1754944e-38, %v4403_v35 }
 0xdec   : > { %v4945_v22 = vmul.f32 1.442695, %v4919_v31  ;;  %v8933_v43 = vsel %vm4200_vm7, 1.0, %v9934_v59  ;;  %v8936_v51 = vmul.f32 0.5, %v8787_v1  ;;  %vm4402_vm10 = vcmp.eq.f32.partialorder %v4401_v0, 8.507059e+37 }
 0xded   : > { %v4845_v13 = vadd.f32 0.2548296, %v4821_v34  ;;  %v4799_v58 = vadd.f32 -0.28449672, %v4775_v2  ;;  %v4947_v41 = vmul.f32 1.442695, %v4920_v4  ;;  %v8938_v15 = vsel %vm4402_vm10, %v4404_v46, %v4400_v33 }
 0xdee   : > { %v4752_v17 = vadd.f32 1.4214138, %v4728_v30  ;;  %v4705_v39 = vadd.f32 -1.4531521, %v4681_v47  ;;  %v8941_v45 = vmul.f32 0.70710677, %v8922_v14  ;;  %v8944_v50 = vadd.f32 %v4067_v11, %v8736_v25 }
 0xdef   : > { %v4846_v57 = vadd.f32 0.2548296, %v4822_v63  ;;  %vm4201_vm11 = vcmp.ge.f32.partialorder %v8794_v18, 0.0  ;;  %v4897_v1 = vsub.f32 0.0, %v8802_v49  ;;  %v4898_v3 = vsub.f32 0.0, %v8805_v54 }
 0xdf0   : > { %v7500_v56 = vpop.eup %7499  ;;  %7503 = vpow2.f32 %v4945_v22  ;;  %v4682_v61 = vmul.f32 1.0614054, %v8938_v15  ;;  %v8951_v35 = vand.u32 2147483647, %v8941_v45  ;;  %v8954_v42 = vmul.f32 0.70710677, %v8944_v50 }
 0xdf1   : > { %v7502_v31 = vpop.eup %7501  ;;  %v4869_v0 = vmul.f32 %v4845_v13, %v8799_v8  ;;  %v4823_v34 = vmul.f32 %v4799_v58, %v8819_v32  ;;  %v8959_v2 = vmul.f32 0.5, %v8790_v7  ;;  %v4408_v30 = vmul.f32 %v7500_v56, %v8904_v16 }
 0xdf2   : > { %v4776_v4 = vmul.f32 %v4752_v17, %v8860_v26  ;;  %7505 = vpow2.f32 %v4947_v41  ;;  %v4729_v20 = vmul.f32 %v4705_v39, %v8898_v38  ;;  %v4276_v47 = vmul.f32 0.3275911, %v8951_v35 }
 0xdf3   : > { %v4870_v33 = vmul.f32 %v4846_v57, %v8809_v5  ;;  %v8969_v8 = vsel %vm4201_vm11, 1.0, %v9934_v59  ;;  %v4921_v63 = vmul.f32 %v4897_v1, %v8802_v49  ;;  %v4409_v7 = vsub.f32 1.0, %v4408_v30  ;;  %v4091_v5 = vpop.f32.mrf.mxu1 }
 0xdf4   : > { %v4706_v46 = vadd.f32 -1.4531521, %v4682_v61  ;;  %v4922_v11 = vmul.f32 %v4898_v3, %v8805_v54  ;;  %v8973_v22 = vadd.f32 1.0, %v4276_v47  ;;  %v8976_v13 = vand.u32 2147483647, %v8954_v42 }
 0xdf5   : > { %v4989_v58 = vmul.f32 %v7498_v9, %v4869_v0  ;;  %v4847_v41 = vadd.f32 0.2548296, %v4823_v34  ;;  %v4410_v17 = vmul.f32 %v7500_v56, %v4409_v7  ;;  %vm4413_vm12 = vweird.f32 %v7500_v56 }
 0xdf6   : > { %v7504_v39 = vpop.eup %7503  ;;  %v4800_v18 = vadd.f32 -0.28449672, %v4776_v4  ;;  %v4753_v57 = vadd.f32 1.4214138, %v4729_v20  ;;  %v4418_v59 = vand.u32 2147483648, %v8904_v16  ;;  %7507 = vrcp.f32 %v8973_v22 }
 0xdf7   : > { %v4990_v49 = vmul.f32 %v7502_v31, %v4870_v33  ;;  %v4411_v1 = vadd.f32 %v7500_v56, %v4410_v17  ;;  %vm4412_vm13 = vweird.f32 %v8904_v16  ;;  %v4416_v54 = vand.u32 2147483647, %v8904_v16 }
 0xdf8   : > { %v8982_v3 = vpop.eup %7505  ;;  %vm4202_vm14 = vcmp.ge.f32.partialorder %v8797_v52, 0.0  ;;  %v4730_v9 = vmul.f32 %v4706_v46, %v8938_v15  ;;  %vm8986_vm15 = vmor %vm4412_vm13, %vm4413_vm12  ;;  %v4277_v0 = vmul.f32 0.3275911, %v8976_v13  ;;  %v8992_v34 = vadd.f32 %v4091_v5, %v8738_v23 }
 0xdf9   : > { %v4871_v31 = vmul.f32 %v4847_v41, %v8819_v32  ;;  %v4949_v30 = vmul.f32 1.442695, %v4921_v63  ;;  %v4951_v4 = vmul.f32 1.442695, %v4922_v11  ;;  %v4415_v16 = vsel %vm8986_vm15, %v7500_v56, %v4411_v1  ;;  %v4115_v41 = vpop.f32.mrf.mxu2 }
 0xdfa   : > { %v4824_v20 = vmul.f32 %v4800_v18, %v8860_v26  ;;  %v4777_v47 = vmul.f32 %v4753_v57, %v8898_v38  ;;  %v4419_v33 = vor.u32 1.1754944e-38, %v4418_v59  ;;  %v8999_v7 = vadd.f32 1.0, %v4277_v0 }
 0xdfb   : > { %v5013_v46 = vsub.f32 1.0, %v4989_v58  ;;  %v5014_v17 = vsub.f32 1.0, %v4990_v49  ;;  %v9002_v19 = vmul.f32 0.5, %v8849_v53  ;;  %vm4417_vm0 = vcmp.eq.f32.partialorder %v4416_v54, 8.507059e+37 }
 0xdfc   : > { %v7508_v5 = vpop.eup %7507  ;;  %v4754_v32 = vadd.f32 1.4214138, %v4730_v9  ;;  %v9004_v63 = vsel %vm4417_vm0, %v4419_v33, %v4415_v16  ;;  %7509 = vrcp.f32 %v8999_v7  ;;  %v9008_v56 = vmul.f32 0.70710677, %v8992_v34 }
 0xdfd   : > { %v4991_v11 = vmul.f32 %v7504_v39, %v4871_v31  ;;  %7511 = vpow2.f32 %v4949_v30  ;;  %v10003_v59 = vmov -1.0   ;;  %v4423_v53 = vmul.f32 %v7508_v5, %v8973_v22 }
 0xdfe   : > { %v9013_v58 = vsel %vm4202_vm14, 1.0, %v10003_v59  ;;  %v4848_v18 = vadd.f32 0.2548296, %v4824_v20  ;;  %v4801_v57 = vadd.f32 -0.28449672, %v4777_v47  ;;  %7513 = vpow2.f32 %v4951_v4 }
 0xdff   : > { %v4899_v49 = vsub.f32 0.0, %v8878_v48  ;;  %v5037_v1 = vmul.f32 %v5013_v46, %v8852_v55  ;;  %v5038_v54 = vmul.f32 %v5014_v17, %v8857_v29  ;;  %v4683_v39 = vmul.f32 1.0614054, %v9004_v63 }
 0xe00   : > { %v4424_v9 = vsub.f32 1.0, %v4423_v53  ;;  %v4778_v61 = vmul.f32 %v4754_v32, %v8938_v15  ;;  %v4433_v52 = vand.u32 2147483648, %v8973_v22  ;;  %v9023_v0 = vand.u32 2147483647, %v9008_v56 }
 0xe01   : > { %v9026_v31 = vadd.f32 %v4115_v41, %v8752_v27  ;;  %v5015_v30 = vsub.f32 1.0, %v4991_v11  ;;  %vm4428_vm1 = vweird.f32 %v7508_v5  ;;  %v4431_v55 = vand.u32 2147483647, %v8973_v22 }
 0xe02   : > { %v4425_v4 = vmul.f32 %v7508_v5, %v4424_v9  ;;  %v7510_v16 = vpop.eup %7509  ;;  %v4872_v29 = vmul.f32 %v4848_v18, %v8860_v26  ;;  %v4825_v20 = vmul.f32 %v4801_v57, %v8898_v38  ;;  %vm4203_vm2 = vcmp.ge.f32.partialorder %v8869_v6, 0.0 }
 0xe03   : > { %v4923_v47 = vmul.f32 %v4899_v49, %v8878_v48  ;;  %v4278_v33 = vmul.f32 0.3275911, %v9023_v0  ;;  %v7512_v46 = vpop.eup %7511  ;;  %v4707_v17 = vadd.f32 -1.4531521, %v4683_v39  ;;  %vm4427_vm3 = vweird.f32 %v8973_v22 }
 0xe04   : > { %v4426_v32 = vadd.f32 %v7508_v5, %v4425_v4  ;;  %v4438_v11 = vmul.f32 %v7510_v16, %v8999_v7  ;;  %v9036_v53 = vpop.eup %7513  ;;  %v4802_v41 = vadd.f32 -0.28449672, %v4778_v61  ;;  %vm4429_vm4 = vmor %vm4427_vm3, %vm4428_vm1  ;;  %v4434_v26 = vor.u32 1.1754944e-38, %v4433_v52 }
 0xe05   : > { %v9039_v18 = vadd.f32 1.0, %v4278_v33  ;;  %v9042_v57 = vmul.f32 0.70710677, %v9026_v31  ;;  %v5039_v48 = vmul.f32 %v5015_v30, %v8928_v60  ;;  %vm4432_vm5 = vcmp.eq.f32.partialorder %v4431_v55, 8.507059e+37 }
 0xe06   : > { %v4430_v49 = vsel %vm4429_vm4, %v7508_v5, %v4426_v32  ;;  %v4439_v39 = vsub.f32 1.0, %v4438_v11  ;;  %v4849_v9 = vadd.f32 0.2548296, %v4825_v20  ;;  %v4448_v4 = vand.u32 2147483648, %v8999_v7 }
 0xe07   : > { %v9045_v22 = vsel %vm4432_vm5, %v4434_v26, %v4430_v49  ;;  %7515 = vrcp.f32 %v9039_v18  ;;  %v4731_v61 = vmul.f32 %v4707_v17, %v9004_v63  ;;  %vm4443_vm7 = vweird.f32 %v7510_v16 }
 0xe08   : > { %v4440_v52 = vmul.f32 %v7510_v16, %v4439_v39  ;;  %v4446_v33 = vand.u32 2147483647, %v8999_v7  ;;  %v5061_v37 = vadd.f32 1.0, %v5037_v1  ;;  %v4992_v21 = vmul.f32 %v8982_v3, %v4872_v29 }
 0xe09   : > { %v4826_v60 = vmul.f32 %v4802_v41, %v8938_v15  ;;  %v9054_v5 = vand.u32 2147483647, %v9042_v57  ;;  %v5062_v30 = vadd.f32 1.0, %v5038_v54  ;;  %v4684_v55 = vmul.f32 1.0614054, %v9045_v22  ;;  %v4139_v41 = vpop.f32.mrf.mxu3 }
 0xe0a   : > { %v4441_v20 = vadd.f32 %v7510_v16, %v4440_v52  ;;  %vm4442_vm8 = vweird.f32 %v8999_v7  ;;  %v5063_v32 = vadd.f32 1.0, %v5039_v48  ;;  %v4953_v17 = vmul.f32 1.442695, %v4923_v47 }
 0xe0b   : > { %vm4444_vm9 = vmor %vm4442_vm8, %vm4443_vm7  ;;  %v4449_v11 = vor.u32 1.1754944e-38, %v4448_v4  ;;  %v4279_v26 = vmul.f32 0.3275911, %v9054_v5  ;;  %v4873_v1 = vmul.f32 %v4849_v9, %v8898_v38  ;;  %v4755_v3 = vadd.f32 1.4214138, %v4731_v61  ;;  %v4069_v61 = vpop.f32.mrf.mxu0 }
 0xe0c   : > { %v4445_v29 = vsel %vm4444_vm9, %v7510_v16, %v4441_v20  ;;  %vm4447_vm10 = vcmp.eq.f32.partialorder %v4446_v33, 8.507059e+37  ;;  %v5016_v39 = vsub.f32 1.0, %v4992_v21  ;;  %v4850_v54 = vadd.f32 0.2548296, %v4826_v60 }
 0xe0d   : > { %v7516_v49 = vpop.eup %7515  ;;  %v9060_v44 = vsel %vm4447_vm10, %v4449_v11, %v4445_v29  ;;  %v9062_v52 = vadd.f32 1.0, %v4279_v26  ;;  %v9065_v7 = vmul.f32 %v5061_v37, %v8829_v12  ;;  %v9070_v47 = vsel %vm4203_vm2, 1.0, %v10003_v59 }
 0xe0e   : > { %v4708_v38 = vadd.f32 -1.4531521, %v4684_v55  ;;  %v4453_v16 = vmul.f32 %v7516_v49, %v9039_v18  ;;  %v9074_v48 = vmul.f32 %v5062_v30, %v8846_v24  ;;  %v4685_v21 = vmul.f32 1.0614054, %v9060_v44 }
 0xe0f   : > { %7517 = vrcp.f32 %v9062_v52  ;;  %v9079_v9 = vadd.f32 %v4139_v41, %v8754_v62  ;;  %v4993_v37 = vmul.f32 %v7512_v46, %v4873_v1  ;;  %v4779_v12 = vmul.f32 %v4755_v3, %v9004_v63 }
 0xe10   : > { %v9083_v6 = vmul.f32 0.5, %v8922_v14  ;;  %v4454_v4 = vsub.f32 1.0, %v4453_v16  ;;  %v9086_v33 = vmul.f32 %v5063_v32, %v8865_v40  ;;  %v5040_v24 = vmul.f32 %v5016_v39, %v8933_v43 }
 0xe11   : > { %v4874_v60 = vmul.f32 %v4850_v54, %v8938_v15  ;;  %7519 = vpow2.f32 %v4953_v17  ;;  %v4732_v30 = vmul.f32 %v4708_v38, %v9045_v22  ;;  %v4900_v55 = vsub.f32 0.0, %v8951_v35 }
 0xe12   : > { %v4901_v46 = vsub.f32 0.0, %v8976_v13  ;;  %v4455_v20 = vmul.f32 %v7516_v49, %v4454_v4  ;;  %v4709_v11 = vadd.f32 -1.4531521, %v4685_v21  ;;  %vm4458_vm11 = vweird.f32 %v7516_v49 }
 0xe13   : > { %v9094_v14 = vmul.f32 0.70710677, %v9079_v9  ;;  %v9097_v40 = vadd.f32 %v4069_v61, %v8736_v25  ;;  %v5017_v32 = vsub.f32 1.0, %v4993_v37  ;;  %v4803_v43 = vadd.f32 -0.28449672, %v4779_v12 }
 0xe14   : > { %v4456_v26 = vadd.f32 %v7516_v49, %v4455_v20  ;;  %v4463_v15 = vand.u32 2147483648, %v9039_v18  ;;  %v4994_v1 = vmul.f32 %v9036_v53, %v4874_v60  ;;  %vm4457_vm12 = vweird.f32 %v9039_v18 }
 0xe15   : > { %v9100_v17 = vpop.eup %7517  ;;  %v4461_v3 = vand.u32 2147483647, %v9039_v18  ;;  %v9106_v29 = vand.u32 2147483647, %v9094_v14  ;;  %vm4204_vm13 = vcmp.ge.f32.partialorder %v8941_v45, 0.0  ;;  %v4924_v39 = vmul.f32 %v4900_v55, %v8951_v35  ;;  %vm9114_vm14 = vmor %vm4457_vm12, %vm4458_vm11 }
 0xe16   : > { %v4756_v41 = vadd.f32 1.4214138, %v4732_v30  ;;  %v9111_v54 = vmul.f32 0.5, %v8944_v50  ;;  %v4733_v16 = vmul.f32 %v4709_v11, %v9060_v44  ;;  %v4460_v18 = vsel %vm9114_vm14, %v7516_v49, %v4456_v26 }
 0xe17   : > { %v7520_v53 = vpop.eup %7519  ;;  %v4468_v21 = vmul.f32 %v9100_v17, %v9062_v52  ;;  %v9124_v37 = vmul.f32 0.70710677, %v9097_v40  ;;  %v5041_v50 = vmul.f32 %v5017_v32, %v8969_v8  ;;  %v4827_v35 = vmul.f32 %v4803_v43, %v9004_v63 }
 0xe18   : > { %v4925_v12 = vmul.f32 %v4901_v46, %v8976_v13  ;;  %v4464_v4 = vor.u32 1.1754944e-38, %v4463_v15  ;;  %v5064_v61 = vadd.f32 1.0, %v5040_v24  ;;  %v5018_v60 = vsub.f32 1.0, %v4994_v1 }
 0xe19   : > { %vm4462_vm15 = vcmp.eq.f32.partialorder %v4461_v3, 8.507059e+37  ;;  %v4280_v30 = vmul.f32 0.3275911, %v9106_v29  ;;  %v4780_v49 = vmul.f32 %v4756_v41, %v9045_v22  ;;  %v4955_v55 = vmul.f32 1.442695, %v4924_v39 }
 0xe1a   : > { %v9131_v20 = vsel %vm4462_vm15, %v4464_v4, %v4460_v18  ;;  %v4469_v11 = vsub.f32 1.0, %v4468_v21  ;;  %vm4205_vm0 = vcmp.ge.f32.partialorder %v8954_v42, 0.0  ;;  %v4757_v26 = vadd.f32 1.4214138, %v4733_v16  ;;  %v4093_v21 = vpop.f32.mrf.mxu1 }
 0xe1b   : > { %v9134_v8 = vadd.f32 1.0, %v4280_v30  ;;  %v9137_v32 = vand.u32 2147483647, %v9124_v37  ;;  %v5065_v13 = vadd.f32 1.0, %v5041_v50  ;;  %v4851_v24 = vadd.f32 0.2548296, %v4827_v35 }
 0xe1c   : > { %v9142_v46 = vsel %vm4204_vm13, 1.0, %v10003_v59  ;;  %v4957_v43 = vmul.f32 1.442695, %v4925_v12  ;;  %v5042_v15 = vmul.f32 %v5018_v60, %v9013_v58  ;;  %v4686_v1 = vmul.f32 1.0614054, %v9131_v20 }
 0xe1d   : > { %v4902_v42 = vsub.f32 0.0, %v9023_v0  ;;  %7521 = vrcp.f32 %v9134_v8  ;;  %v9149_v3 = vmul.f32 %v5064_v61, %v8882_v36  ;;  %v4804_v41 = vadd.f32 -0.28449672, %v4780_v49 }
 0xe1e   : > { %v9152_v39 = vsel %vm4205_vm0, 1.0, %v10003_v59  ;;  %v4470_v45 = vmul.f32 %v9100_v17, %v4469_v11  ;;  %7523 = vpow2.f32 %v4955_v55  ;;  %v4781_v38 = vmul.f32 %v4757_v26, %v9060_v44 }
 0xe1f   : > { %10006 = vst [vmem:[#allocation14_spill] sm:$0xff] %v9149_v3  ;;  %v9157_v58 = vmul.f32 0.5, %v8992_v34  ;;  %v4281_v16 = vmul.f32 0.3275911, %v9137_v32  ;;  %v9161_v18 = vmul.f32 %v5065_v13, %v8936_v51  ;;  %v4875_v36 = vmul.f32 %v4851_v24, %v9004_v63 }
 0xe20   : > { %7525 = vpow2.f32 %v4957_v43  ;;  %vm4206_vm1 = vcmp.ge.f32.partialorder %v9008_v56, 0.0  ;;  %v5066_v50 = vadd.f32 1.0, %v5042_v15  ;;  %v4710_v35 = vadd.f32 -1.4531521, %v4686_v1 }
 0xe21   : > { %v4926_v12 = vmul.f32 %v4902_v42, %v9023_v0  ;;  %v9166_v4 = vadd.f32 1.0, %v4281_v16  ;;  %v4828_v34 = vmul.f32 %v4804_v41, %v9045_v22  ;;  %v4471_v61 = vadd.f32 %v9100_v17, %v4470_v45 }
 0xe22   : > { %vm4473_vm2 = vweird.f32 %v9100_v17  ;;  %v4903_v51 = vsub.f32 0.0, %v9054_v5  ;;  %v4805_v63 = vadd.f32 -0.28449672, %v4781_v38  ;;  %v4478_v30 = vand.u32 2147483648, %v9062_v52 }
 0xe23   : > { %v9172_v60 = vpop.eup %7521  ;;  %7527 = vrcp.f32 %v9166_v4  ;;  %v9177_v49 = vadd.f32 %v4093_v21, %v8738_v23  ;;  %v4995_v0 = vmul.f32 %v7520_v53, %v4875_v36  ;;  %vm4472_vm3 = vweird.f32 %v9062_v52 }
 0xe24   : > { %v4476_v55 = vand.u32 2147483647, %v9062_v52  ;;  %v4483_v11 = vmul.f32 %v9172_v60, %v9134_v8  ;;  %v7524_v26 = vpop.eup %7523  ;;  %v9186_v24 = vmul.f32 %v5066_v50, %v8959_v2  ;;  %v4734_v43 = vmul.f32 %v4710_v35, %v9131_v20  ;;  %vm9191_vm4 = vmor %vm4472_vm3, %vm4473_vm2 }
 0xe25   : > { %v4959_v15 = vmul.f32 1.442695, %v4926_v12  ;;  %v4852_v1 = vadd.f32 0.2548296, %v4828_v34  ;;  %vm4207_vm5 = vcmp.ge.f32.partialorder %v9042_v57, 0.0  ;;  %v4475_v42 = vsel %vm9191_vm4, %v9100_v17, %v4471_v61  ;;  %v4117_v61 = vpop.f32.mrf.mxu2 }
 0xe26   : > { %v7526_v52 = vpop.eup %7525  ;;  %v4484_v41 = vsub.f32 1.0, %v4483_v11  ;;  %v4829_v2 = vmul.f32 %v4805_v63, %v9060_v44  ;;  %v4479_v45 = vor.u32 1.1754944e-38, %v4478_v30  ;;  %v4927_v38 = vmul.f32 %v4903_v51, %v9054_v5 }
 0xe27   : > { %v9202_v16 = vmul.f32 0.70710677, %v9177_v49  ;;  %v5019_v36 = vsub.f32 1.0, %v4995_v0  ;;  %v9207_v21 = vsel %vm4206_vm1, 1.0, %v10003_v59  ;;  %v9210_v50 = vmul.f32 0.5, %v9026_v31 }
 0xe28   : > { %vm4477_vm7 = vcmp.eq.f32.partialorder %v4476_v55, 8.507059e+37  ;;  %v4758_v35 = vadd.f32 1.4214138, %v4734_v43  ;;  %v4485_v5 = vmul.f32 %v9172_v60, %v4484_v41  ;;  %v4876_v51 = vmul.f32 %v4852_v1, %v9045_v22  ;;  %v7275_v41 = vld [vmem:[%s7812_s3 + $0x78] sm:$0xff] }
 0xe29   : > { %v9212_v17 = vpop.eup %7527  ;;  %v9214_v12 = vsel %vm4477_vm7, %v4479_v45, %v4475_v42  ;;  %v9218_v34 = vand.u32 2147483647, %v9202_v16  ;;  %v9226_v31 = vsel %vm4207_vm5, 1.0, %v10003_v59  ;;  %v4853_v30 = vadd.f32 0.2548296, %v4829_v2  ;;  %5405 = vmatpush.bf16.msrb.mxu1 %v7275_v41 }
 0xe2a   : > { %v4498_v63 = vmul.f32 %v9212_v17, %v9166_v4  ;;  %7529 = vpow2.f32 %v4959_v15  ;;  %v4961_v0 = vmul.f32 1.442695, %v4927_v38  ;;  %v5043_v11 = vmul.f32 %v5019_v36, %v9070_v47  ;;  %v7267_v15 = vld [vmem:[%s7812_s3 + $0x38] sm:$0xff] }
 0xe2b   : > { %v4282_v55 = vmul.f32 0.3275911, %v9218_v34  ;;  %v4687_v43 = vmul.f32 1.0614054, %v9214_v12  ;;  %v9234_v22 = vadd.f32 %v4117_v61, %v8752_v27  ;;  %v4782_v57 = vmul.f32 %v4758_v35, %v9131_v20  ;;  %5381 = vmatpush.bf16.msrb.mxu0 %v7267_v15 }
 0xe2c   : > { %v4499_v53 = vsub.f32 1.0, %v4498_v63  ;;  %v4486_v1 = vadd.f32 %v9172_v60, %v4485_v5  ;;  %vm4488_vm8 = vweird.f32 %v9172_v60  ;;  %v4996_v2 = vmul.f32 %v7524_v26, %v4876_v51 }
 0xe2d   : > { %v9239_v42 = vadd.f32 1.0, %v4282_v55  ;;  %v9244_v45 = vmul.f32 0.5, %v9079_v9  ;;  %v4491_v47 = vand.u32 2147483647, %v9134_v8  ;;  %v4493_v38 = vand.u32 2147483648, %v9134_v8 }
 0xe2e   : > { %v4877_v36 = vmul.f32 %v4853_v30, %v9060_v44  ;;  %vm4487_vm9 = vweird.f32 %v9134_v8  ;;  %v4500_v35 = vmul.f32 %v9212_v17, %v4499_v53  ;;  %v4711_v5 = vadd.f32 -1.4531521, %v4687_v43 }
 0xe2f   : > { %7531 = vrcp.f32 %v9239_v42  ;;  %vm9254_vm10 = vmor %vm4487_vm9, %vm4488_vm8  ;;  %v9259_v26 = vmul.f32 0.5, %v9097_v40  ;;  %v9262_v44 = vmul.f32 0.70710677, %v9234_v22  ;;  %v5067_v61 = vadd.f32 1.0, %v5043_v11  ;;  %v4141_v40 = vpop.f32.mrf.mxu3 }
 0xe30   : > { %7533 = vpow2.f32 %v4961_v0  ;;  %v9264_v8 = vpop.eup %7529  ;;  %v4806_v51 = vadd.f32 -0.28449672, %v4782_v57  ;;  %vm4208_vm11 = vcmp.ge.f32.partialorder %v9094_v14, 0.0  ;;  %v4490_v63 = vsel %vm9254_vm10, %v9172_v60, %v4486_v1 }
 0xe31   : > { %v5020_v30 = vsub.f32 1.0, %v4996_v2  ;;  %vm4492_vm12 = vcmp.eq.f32.partialorder %v4491_v47, 8.507059e+37  ;;  %v4494_v0 = vor.u32 1.1754944e-38, %v4493_v38  ;;  %v4904_v55 = vsub.f32 0.0, %v9106_v29 }
 0xe32   : > { %v4997_v43 = vmul.f32 %v7526_v52, %v4877_v36  ;;  %v4501_v53 = vadd.f32 %v9212_v17, %v4500_v35  ;;  %vm4503_vm13 = vweird.f32 %v9212_v17  ;;  %v4506_v11 = vand.u32 2147483647, %v9166_v4 }
 0xe33   : > { %v4735_v57 = vmul.f32 %v4711_v5, %v9214_v12  ;;  %v9275_v15 = vsel %vm4492_vm12, %v4494_v0, %v4490_v63  ;;  %v4508_v41 = vand.u32 2147483648, %v9166_v4  ;;  %v9279_v60 = vand.u32 2147483647, %v9262_v44 }
 0xe34   : > { %v9282_v2 = vmul.f32 %v5067_v61, %v9002_v19  ;;  %v4830_v52 = vmul.f32 %v4806_v51, %v9131_v20  ;;  %vm4502_vm14 = vweird.f32 %v9166_v4  ;;  %v9287_v47 = vadd.f32 %v4141_v40, %v8754_v62 }
 0xe35   : > { %v7532_v1 = vpop.eup %7531  ;;  %v5044_v36 = vmul.f32 %v5020_v30, %v9142_v46  ;;  %v9295_v35 = vsel %vm4208_vm11, 1.0, %v10003_v59  ;;  %v4928_v5 = vmul.f32 %v4904_v55, %v9106_v29  ;;  %vm4504_vm15 = vmor %vm4502_vm14, %vm4503_vm13  ;;  %v5021_v4 = vsub.f32 1.0, %v4997_v43 }
 0xe36   : > { %v9289_v38 = vpop.eup %7533  ;;  %v4513_v19 = vmul.f32 %v7532_v1, %v9239_v42  ;;  %v4688_v9 = vmul.f32 1.0614054, %v9275_v15  ;;  %v4505_v61 = vsel %vm4504_vm15, %v9212_v17, %v4501_v53  ;;  %v4283_v51 = vmul.f32 0.3275911, %v9279_v60 }
 0xe37   : > { %v4759_v46 = vadd.f32 1.4214138, %v4735_v57  ;;  %vm4507_vm0 = vcmp.eq.f32.partialorder %v4506_v11, 8.507059e+37  ;;  %v4509_v63 = vor.u32 1.1754944e-38, %v4508_v41  ;;  %v4854_v30 = vadd.f32 0.2548296, %v4830_v52  ;;  %v4072_v52 = vpop.f32.mrf.mxu0 }
 0xe38   : > { %v4514_v14 = vsub.f32 1.0, %v4513_v19  ;;  %v4523_v0 = vand.u32 2147483648, %v9239_v42  ;;  %v9305_v29 = vadd.f32 1.0, %v4283_v51  ;;  %v9308_v55 = vmul.f32 0.70710677, %v9287_v47 }
 0xe39   : > { %v9310_v40 = vsel %vm4507_vm0, %v4509_v63, %v4505_v61  ;;  %vm4518_vm1 = vweird.f32 %v7532_v1  ;;  %v4521_v17 = vand.u32 2147483647, %v9239_v42  ;;  %v5068_v53 = vadd.f32 1.0, %v5044_v36 }
 0xe3a   : > { %v4515_v43 = vmul.f32 %v7532_v1, %v4514_v14  ;;  %v4712_v56 = vadd.f32 -1.4531521, %v4688_v9  ;;  %vm4209_vm2 = vcmp.ge.f32.partialorder %v9124_v37, 0.0  ;;  %7535 = vrcp.f32 %v9305_v29 }
 0xe3b   : > { %v4783_v11 = vmul.f32 %v4759_v46, %v9214_v12  ;;  %v4905_v57 = vsub.f32 0.0, %v9137_v32  ;;  %vm4517_vm3 = vweird.f32 %v9239_v42  ;;  %v5045_v19 = vmul.f32 %v5021_v4, %v9152_v39 }
 0xe3c   : > { %v4516_v41 = vadd.f32 %v7532_v1, %v4515_v43  ;;  %v4689_v61 = vmul.f32 1.0614054, %v9310_v40  ;;  %vm4519_vm4 = vmor %vm4517_vm3, %vm4518_vm1  ;;  %v4524_v51 = vor.u32 1.1754944e-38, %v4523_v0  ;;  %v9321_v36 = vand.u32 2147483647, %v9308_v55 }
 0xe3d   : > { %v4878_v9 = vmul.f32 %v4854_v30, %v9131_v20  ;;  %v4963_v63 = vmul.f32 1.442695, %v4928_v5  ;;  %vm4522_vm5 = vcmp.eq.f32.partialorder %v4521_v17, 8.507059e+37  ;;  %v4736_v46 = vmul.f32 %v4712_v56, %v9275_v15 }
 0xe3e   : > { %v4520_v14 = vsel %vm4519_vm4, %v7532_v1, %v4516_v41  ;;  %v4284_v39 = vmul.f32 0.3275911, %v9321_v36  ;;  %v9329_v4 = vadd.f32 %v4072_v52, %v8736_v25  ;;  %v9334_v43 = vmul.f32 %v5068_v53, %v9083_v6  ;;  %v4096_v52 = vpop.f32.mrf.mxu1 }
 0xe3f   : > { %v9325_v42 = vsel %vm4522_vm5, %v4524_v51, %v4520_v14  ;;  %v4807_v20 = vadd.f32 -0.28449672, %v4783_v11  ;;  %v9339_v1 = vsel %vm4209_vm2, 1.0, %v10003_v59  ;;  %v5069_v5 = vadd.f32 1.0, %v5045_v19  ;;  %v7266_v51 = vld [vmem:[%s7812_s3 + $0x30] sm:$0xff] }
 0xe40   : > { %10011 = vst [vmem:[#allocation15_spill] sm:$0xff] %v9334_v43  ;;  %v7536_v56 = vpop.eup %7535  ;;  %v4713_v30 = vadd.f32 -1.4531521, %v4689_v61  ;;  %v4929_v17 = vmul.f32 %v4905_v57, %v9137_v32  ;;  %v9342_v41 = vadd.f32 1.0, %v4284_v39  ;;  %v7274_v14 = vld [vmem:[%s7812_s3 + $0x70] sm:$0xff]  ;;  %7537 = vpow2.f32 %v4963_v63  ;;  %5382 = vmatpush.bf16.msrb.mxu0 %v7266_v51 }
 0xe41   : > { %v9347_v6 = vmul.f32 0.5, %v9177_v49  ;;  %v4690_v53 = vmul.f32 1.0614054, %v9325_v42  ;;  %v4528_v37 = vmul.f32 %v7536_v56, %v9305_v29  ;;  %v4998_v11 = vmul.f32 %v9264_v8, %v4878_v9  ;;  %5406 = vmatpush.bf16.msrb.mxu1 %v7274_v14 }
 0xe42   : > { %v4760_v0 = vadd.f32 1.4214138, %v4736_v46  ;;  %7539 = vrcp.f32 %v9342_v41  ;;  %v9354_v32 = vmul.f32 0.70710677, %v9329_v4  ;;  %v4831_v49 = vmul.f32 %v4807_v20, %v9214_v12 }
 0xe43   : > { %v4529_v19 = vsub.f32 1.0, %v4528_v37  ;;  %v9360_v61 = vadd.f32 %v4096_v52, %v8738_v23  ;;  %v9363_v63 = vmul.f32 %v5069_v5, %v9111_v54  ;;  %v4737_v8 = vmul.f32 %v4713_v30, %v9310_v40 }
 0xe44   : > { %v4965_v9 = vmul.f32 1.442695, %v4929_v17  ;;  %v4538_v46 = vand.u32 2147483648, %v9305_v29  ;;  %v4714_v39 = vadd.f32 -1.4531521, %v4690_v53  ;;  %vm4533_vm7 = vweird.f32 %v7536_v56 }
 0xe45   : > { %10012 = vst [vmem:[#allocation16_spill] sm:$0xff] %v9360_v61  ;;  %v4530_v51 = vmul.f32 %v7536_v56, %v4529_v19  ;;  %v4536_v14 = vand.u32 2147483647, %v9305_v29  ;;  %v5022_v57 = vsub.f32 1.0, %v4998_v11  ;;  %v4784_v20 = vmul.f32 %v4760_v0, %v9275_v15 }
 0xe46   : > { %10013 = vst [vmem:[#allocation17_spill] sm:$0xff] %v9363_v63  ;;  %v4906_v37 = vsub.f32 0.0, %v9218_v34  ;;  %v9371_v52 = vand.u32 2147483647, %v9354_v32  ;;  %v9373_v54 = vpop.eup %7537  ;;  %v4855_v5 = vadd.f32 0.2548296, %v4831_v49  ;;  %vm4532_vm8 = vweird.f32 %v9305_v29 }
 0xe47   : > { %v4531_v30 = vadd.f32 %v7536_v56, %v4530_v51  ;;  %v9377_v17 = vmul.f32 0.70710677, %v9360_v61  ;;  %v4761_v19 = vadd.f32 1.4214138, %v4737_v8  ;;  %vm4210_vm9 = vcmp.ge.f32.partialorder %v9202_v16, 0.0  ;;  %vm4534_vm10 = vmor %vm4532_vm8, %vm4533_vm7  ;;  %v4120_v51 = vpop.f32.mrf.mxu2 }
 0xe48   : > { %v7540_v53 = vpop.eup %7539  ;;  %v4539_v0 = vor.u32 1.1754944e-38, %v4538_v46  ;;  %v4285_v11 = vmul.f32 0.3275911, %v9371_v52  ;;  %v4738_v13 = vmul.f32 %v4714_v39, %v9325_v42  ;;  %vm4537_vm11 = vcmp.eq.f32.partialorder %v4536_v14, 8.507059e+37 }
 0xe49   : > { %v4535_v28 = vsel %vm4534_vm10, %v7536_v56, %v4531_v30  ;;  %v4543_v49 = vmul.f32 %v7540_v53, %v9342_v41  ;;  %v5046_v29 = vmul.f32 %v5022_v57, %v9207_v21  ;;  %v4808_v10 = vadd.f32 -0.28449672, %v4784_v20 }
 0xe4a   : > { %v9384_v61 = vsel %vm4537_vm11, %v4539_v0, %v4535_v28  ;;  %v9386_v63 = vadd.f32 1.0, %v4285_v11  ;;  %v4930_v8 = vmul.f32 %v4906_v37, %v9218_v34  ;;  %v9391_v43 = vand.u32 2147483647, %v9377_v17 }
 0xe4b   : > { %v4691_v46 = vmul.f32 1.0614054, %v9384_v61  ;;  %v4544_v3 = vsub.f32 1.0, %v4543_v49  ;;  %v4879_v56 = vmul.f32 %v4855_v5, %v9214_v12  ;;  %v4785_v39 = vmul.f32 %v4761_v19, %v9310_v40 }
 0xe4c   : > { %7541 = vrcp.f32 %v9386_v63  ;;  %v9397_v21 = vadd.f32 %v4120_v51, %v8752_v27  ;;  %v4762_v28 = vadd.f32 1.4214138, %v4738_v13  ;;  %vm4548_vm12 = vweird.f32 %v7540_v53 }
 0xe4d   : > { %v4545_v57 = vmul.f32 %v7540_v53, %v4544_v3  ;;  %v4553_v34 = vand.u32 2147483648, %v9342_v41  ;;  %v5070_v14 = vadd.f32 1.0, %v5046_v29  ;;  %v4832_v20 = vmul.f32 %v4808_v10, %v9275_v15 }
 0xe4e   : > { %10014 = vst [vmem:[#allocation18_spill] sm:$0xff] %v9397_v21  ;;  %v9402_v37 = vmul.f32 0.5, %v9234_v22  ;;  %v4551_v12 = vand.u32 2147483647, %v9342_v41  ;;  %v4715_v5 = vadd.f32 -1.4531521, %v4691_v46  ;;  %vm4547_vm13 = vweird.f32 %v9342_v41 }
 0xe4f   : > { %v4546_v30 = vadd.f32 %v7540_v53, %v4545_v57  ;;  %v4286_v19 = vmul.f32 0.3275911, %v9391_v43  ;;  %v4999_v3 = vmul.f32 %v9289_v38, %v4879_v56  ;;  %v4809_v13 = vadd.f32 -0.28449672, %v4785_v39  ;;  %vm9408_vm14 = vmor %vm4547_vm13, %vm4548_vm12  ;;  %v7291_v56 = vld [vmem:[%s7812_s3 + $0xf8] sm:$0xff] }
 0xe50   : > { %v4967_v0 = vmul.f32 1.442695, %v4930_v8  ;;  %v9413_v10 = vmul.f32 0.70710677, %v9397_v21  ;;  %v4786_v22 = vmul.f32 %v4762_v28, %v9325_v42  ;;  %v4554_v49 = vor.u32 1.1754944e-38, %v4553_v34  ;;  %v7283_v8 = vld [vmem:[%s7812_s3 + $0xb8] sm:$0xff]  ;;  %5453 = vmatpush.bf16.msra.mxu3 %v7291_v56 }
 0xe51   : > { %v4550_v41 = vsel %vm9408_vm14, %v7540_v53, %v4546_v30  ;;  %v9418_v51 = vadd.f32 1.0, %v4286_v19  ;;  %v4856_v46 = vadd.f32 0.2548296, %v4832_v20  ;;  %7543 = vpow2.f32 %v4965_v9  ;;  %5429 = vmatpush.bf16.msrb.mxu2 %v7283_v8  ;;  %v7265_v34 = vld [vmem:[%s7812_s3 + $0x28] sm:$0xff] }
 0xe52   : > { %v7542_v29 = vpop.eup %7541  ;;  %v9423_v38 = vsel %vm4210_vm9, 1.0, %v10003_v59  ;;  %vm4552_vm15 = vcmp.eq.f32.partialorder %v4551_v12, 8.507059e+37  ;;  %vm4211_vm0 = vcmp.ge.f32.partialorder %v9262_v44, 0.0  ;;  %v4739_v53 = vmul.f32 %v4715_v5, %v9384_v61  ;;  %v7273_v20 = vld [vmem:[%s7812_s3 + $0x68] sm:$0xff]  ;;  %5383 = vmatpush.bf16.msrb.mxu0 %v7265_v34  ;;  %v4144_v34 = vpop.f32.mrf.mxu3 }
 0xe53   : > { %v9429_v39 = vsel %vm4552_vm15, %v4554_v49, %v4550_v41  ;;  %v4558_v28 = vmul.f32 %v7542_v29, %v9386_v63  ;;  %v5023_v57 = vsub.f32 1.0, %v4999_v3  ;;  %v4907_v9 = vsub.f32 0.0, %v9279_v60  ;;  %5407 = vmatpush.bf16.msrb.mxu1 %v7273_v20  ;;  %v7282_v49 = vld [vmem:[%s7812_s3 + $0xb0] sm:$0xff] }
 0xe54   : > { %7545 = vrcp.f32 %v9418_v51  ;;  %v9435_v16 = vand.u32 2147483647, %v9413_v10  ;;  %v9440_v12 = vmul.f32 %v5070_v14, %v9157_v58  ;;  %v4833_v5 = vmul.f32 %v4809_v13, %v9310_v40  ;;  %v7290_v14 = vld [vmem:[%s7812_s3 + $0xf0] sm:$0xff] }
 0xe55   : > { %v4810_v30 = vadd.f32 -0.28449672, %v4786_v22  ;;  %v4559_v19 = vsub.f32 1.0, %v4558_v28  ;;  %v4880_v3 = vmul.f32 %v4856_v46, %v9275_v15  ;;  %7547 = vpow2.f32 %v4967_v0  ;;  %5430 = vmatpush.bf16.msrb.mxu2 %v7282_v49  ;;  %5454 = vmatpush.bf16.msra.mxu3 %v7290_v14 }
 0xe56   : > { %v4692_v11 = vmul.f32 1.0614054, %v9429_v39  ;;  %v4568_v41 = vand.u32 2147483648, %v9386_v63  ;;  %v4763_v8 = vadd.f32 1.4214138, %v4739_v53  ;;  %vm4563_vm1 = vweird.f32 %v7542_v29 }
 0xe57   : > { %v4560_v56 = vmul.f32 %v7542_v29, %v4559_v19  ;;  %v4566_v58 = vand.u32 2147483647, %v9386_v63  ;;  %v7544_v21 = vpop.eup %7543  ;;  %v5047_v13 = vmul.f32 %v5023_v57, %v9226_v31  ;;  %v9453_v15 = vsel %vm4211_vm0, 1.0, %v10003_v59 }
 0xe58   : > { %v4931_v0 = vmul.f32 %v4907_v9, %v9279_v60  ;;  %v4287_v22 = vmul.f32 0.3275911, %v9435_v16  ;;  %v4857_v46 = vadd.f32 0.2548296, %v4833_v5  ;;  %v4834_v53 = vmul.f32 %v4810_v30, %v9325_v42 }
 0xe59   : > { %v4561_v28 = vadd.f32 %v7542_v29, %v4560_v56  ;;  %vm4562_vm2 = vweird.f32 %v9386_v63  ;;  %v5000_v31 = vmul.f32 %v9373_v54, %v4880_v3  ;;  %v4716_v44 = vadd.f32 -1.4531521, %v4692_v11 }
 0xe5a   : > { %v9459_v20 = vpop.eup %7545  ;;  %vm4564_vm3 = vmor %vm4562_vm2, %vm4563_vm1  ;;  %v4569_v57 = vor.u32 1.1754944e-38, %v4568_v41  ;;  %v9463_v60 = vadd.f32 1.0, %v4287_v22  ;;  %v4787_v9 = vmul.f32 %v4763_v8, %v9384_v61  ;;  %vm4567_vm4 = vcmp.eq.f32.partialorder %v4566_v58, 8.507059e+37  ;;  %v4074_v8 = vpop.f32.mrf.mxu0 }
 0xe5b   : > { %v4565_v5 = vsel %vm4564_vm3, %v7542_v29, %v4561_v28  ;;  %v4573_v30 = vmul.f32 %v9459_v20, %v9418_v51  ;;  %v7548_v63 = vpop.eup %7547  ;;  %v4908_v19 = vsub.f32 0.0, %v9321_v36  ;;  %v9473_v54 = vadd.f32 %v4144_v34, %v8754_v62 }
 0xe5c   : > { %v9469_v49 = vsel %vm4567_vm4, %v4569_v57, %v4565_v5  ;;  %7549 = vrcp.f32 %v9463_v60  ;;  %v4881_v3 = vmul.f32 %v4857_v46, %v9310_v40  ;;  %v4858_v11 = vadd.f32 0.2548296, %v4834_v53 }
 0xe5d   : > { %v4693_v41 = vmul.f32 1.0614054, %v9469_v49  ;;  %v4574_v29 = vsub.f32 1.0, %v4573_v30  ;;  %v5071_v56 = vadd.f32 1.0, %v5047_v13  ;;  %v9478_v58 = vmul.f32 0.5, %v9287_v47 }
 0xe5e   : > { %v4740_v14 = vmul.f32 %v4716_v44, %v9429_v39  ;;  %v9482_v22 = vmul.f32 0.5, %v9329_v4  ;;  %v5024_v28 = vsub.f32 1.0, %v5000_v31  ;;  %v4811_v57 = vadd.f32 -0.28449672, %v4787_v9 }
 0xe5f   : > { %v4717_v34 = vadd.f32 -1.4531521, %v4693_v41  ;;  %v4575_v5 = vmul.f32 %v9459_v20, %v4574_v29  ;;  %vm4212_vm5 = vcmp.ge.f32.partialorder %v9308_v55, 0.0  ;;  %v4932_v40 = vmul.f32 %v4908_v19, %v9321_v36  ;;  %v7280_v55 = vld [vmem:[%s7812_s3 + $0xa0] sm:$0xff] }
 0xe60   : > { %v9488_v46 = vmul.f32 0.70710677, %v9473_v54  ;;  %v9491_v47 = vadd.f32 %v4074_v8, %v8736_v25  ;;  %v5001_v13 = vmul.f32 %v7544_v21, %v4881_v3  ;;  %v4882_v53 = vmul.f32 %v4858_v11, %v9325_v42  ;;  %v7289_v8 = vld [vmem:[%s7812_s3 + $0xe8] sm:$0xff] }
 0xe61   : > { %v4969_v4 = vmul.f32 1.442695, %v4931_v0  ;;  %v4581_v31 = vand.u32 2147483647, %v9418_v51  ;;  %v4764_v9 = vadd.f32 1.4214138, %v4740_v14  ;;  %v4576_v30 = vadd.f32 %v9459_v20, %v4575_v5  ;;  %5455 = vmatpush.bf16.msra.mxu3 %v7289_v8 }
 0xe62   : > { %v9495_v44 = vpop.eup %7549  ;;  %vm4578_vm7 = vweird.f32 %v9459_v20  ;;  %v9500_v36 = vand.u32 2147483647, %v9488_v46  ;;  %v5048_v19 = vmul.f32 %v5024_v28, %v9295_v35  ;;  %v4835_v25 = vmul.f32 %v4811_v57, %v9384_v61  ;;  %v7264_v57 = vld [vmem:[%s7812_s3 + $0x20] sm:$0xff] }
 0xe63   : > { %v4741_v42 = vmul.f32 %v4717_v34, %v9469_v49  ;;  %v4583_v21 = vand.u32 2147483648, %v9418_v51  ;;  %v4971_v0 = vmul.f32 1.442695, %v4932_v40  ;;  %vm4577_vm8 = vweird.f32 %v9418_v51  ;;  %5384 = vmatpush.bf16.msrb.mxu0 %v7264_v57  ;;  %v7271_v57 = vld [vmem:[%s7812_s3 + $0x58] sm:$0xff] }
 0xe64   : > { %v4588_v3 = vmul.f32 %v9495_v44, %v9463_v60  ;;  %v9510_v11 = vmul.f32 0.70710677, %v9491_v47  ;;  %v5025_v41 = vsub.f32 1.0, %v5001_v13  ;;  %v5002_v29 = vmul.f32 %v7548_v63, %v4882_v53  ;;  %vm9514_vm10 = vmor %vm4577_vm8, %vm4578_vm7 }
 0xe65   : > { %vm4213_vm9 = vcmp.ge.f32.partialorder %v9354_v32, 0.0  ;;  %v4909_v35 = vsub.f32 0.0, %v9371_v52  ;;  %v4788_v51 = vmul.f32 %v4764_v9, %v9429_v39  ;;  %v4580_v14 = vsel %vm9514_vm10, %v9459_v20, %v4576_v30  ;;  %v7281_v30 = vld [vmem:[%s7812_s3 + $0xa8] sm:$0xff]  ;;  %v7262_v32 = vld [vmem:[%s7812_s3 + $0x10] sm:$0xff] }
 0xe66   : > { %vm9522_vm11 = vcmp.eq.f32.partialorder %v4581_v31, 8.507059e+37  ;;  %v4288_v63 = vmul.f32 0.3275911, %v9500_v36  ;;  %v4859_v34 = vadd.f32 0.2548296, %v4835_v25  ;;  %v4584_v40 = vor.u32 1.1754944e-38, %v4583_v21  ;;  %5431 = vmatpush.bf16.msrb.mxu2 %v7281_v30 }
 0xe67   : > { %v4765_v5 = vadd.f32 1.4214138, %v4741_v42  ;;  %v4589_v13 = vsub.f32 1.0, %v4588_v3  ;;  %v9529_v53 = vmul.f32 %v5071_v56, %v9210_v50  ;;  %7551 = vpow2.f32 %v4969_v4  ;;  %v7272_v31 = vld [vmem:[%s7812_s3 + $0x60] sm:$0xff] }
 0xe68   : > { %v9531_v9 = vadd.f32 1.0, %v4288_v63  ;;  %v9534_v20 = vand.u32 2147483647, %v9510_v11  ;;  %v5049_v25 = vmul.f32 %v5025_v41, %v9339_v1  ;;  %v4933_v42 = vmul.f32 %v4909_v35, %v9371_v52  ;;  %5408 = vmatpush.bf16.msrb.mxu1 %v7272_v31  ;;  %v7263_v63 = vld [vmem:[%s7812_s3 + $0x18] sm:$0xff] }
 0xe69   : > { %v9543_v50 = vsel %vm9522_vm11, %v4584_v40, %v4580_v14  ;;  %v4910_v56 = vsub.f32 0.0, %v9391_v43  ;;  %v5026_v4 = vsub.f32 1.0, %v5002_v29  ;;  %v4812_v21 = vadd.f32 -0.28449672, %v4788_v51  ;;  %5385 = vmatpush.bf16.msrb.mxu0 %v7263_v63 }
 0xe6a   : > { %v4911_v3 = vsub.f32 0.0, %v9435_v16  ;;  %7553 = vrcp.f32 %v9531_v9  ;;  %v5072_v1 = vadd.f32 1.0, %v5048_v19  ;;  %v9553_v52 = vsel %vm4212_vm5, 1.0, %v10003_v59  ;;  %v4098_v19 = vpop.f32.mrf.mxu1  ;;  %5432 = vmatpush.bf16.msrb.mxu2 %v7280_v55  ;;  %v7269_v55 = vld [vmem:[%s7812_s3 + $0x48] sm:$0xff] }
 0xe6b   : > { %v4789_v41 = vmul.f32 %v4765_v5, %v9469_v49  ;;  %v4590_v29 = vmul.f32 %v9495_v44, %v4589_v13  ;;  %v4883_v35 = vmul.f32 %v4859_v34, %v9384_v61  ;;  %7555 = vpow2.f32 %v4971_v0  ;;  %v7288_v61 = vld [vmem:[%s7812_s3 + $0xe0] sm:$0xff] }
 0xe6c   : > { %v4694_v51 = vmul.f32 1.0614054, %v9543_v50  ;;  %v4289_v14 = vmul.f32 0.3275911, %v9534_v20  ;;  %v5073_v28 = vadd.f32 1.0, %v5049_v25  ;;  %v9564_v5 = vsel %vm4213_vm9, 1.0, %v10003_v59  ;;  %5409 = vmatpush.bf16.msrb.mxu1 %v7271_v57  ;;  %5456 = vmatpush.bf16.msra.mxu3 %v7288_v61 }
 0xe6d   : > { %v4973_v40 = vmul.f32 1.442695, %v4933_v42  ;;  %v4934_v13 = vmul.f32 %v4910_v56, %v9391_v43  ;;  %v7552_v0 = vpop.eup %7551  ;;  %v5050_v34 = vmul.f32 %v5026_v4, %v9423_v38  ;;  %v4836_v31 = vmul.f32 %v4812_v21, %v9429_v39  ;;  %v7270_v25 = vld [vmem:[%s7812_s3 + $0x50] sm:$0xff]  ;;  %5386 = vmatpush.bf16.msrb.mxu0 %v7262_v32  ;;  %v7279_v21 = vld [vmem:[%s7812_s3 + $0x98] sm:$0xff] }
 0xe6e   : > { %v4935_v30 = vmul.f32 %v4911_v3, %v9435_v16  ;;  %v9571_v8 = vadd.f32 1.0, %v4289_v14  ;;  %v4813_v63 = vadd.f32 -0.28449672, %v4789_v41  ;;  %v4591_v42 = vadd.f32 %v9495_v44, %v4590_v29  ;;  %v7287_v3 = vld [vmem:[%s7812_s3 + $0xd8] sm:$0xff]  ;;  %5433 = vmatpush.bf16.msrb.mxu2 %v7279_v21 }
 0xe6f   : > { %vm4593_vm12 = vweird.f32 %v9495_v44  ;;  %v9578_v43 = vadd.f32 %v4098_v19, %v8738_v23  ;;  %v5003_v16 = vmul.f32 %v7552_v0, %v4883_v35  ;;  %v4718_v56 = vadd.f32 -1.4531521, %v4694_v51 }
 0xe70   : > { %v9580_v38 = vpop.eup %7553  ;;  %v4598_v4 = vand.u32 2147483648, %v9463_v60  ;;  %7557 = vrcp.f32 %v9571_v8  ;;  %v4975_v57 = vmul.f32 1.442695, %v4934_v13  ;;  %vm4592_vm13 = vweird.f32 %v9463_v60  ;;  %5410 = vmatpush.bf16.msrb.mxu1 %v7270_v25  ;;  %5457 = vmatpush.bf16.msra.mxu3 %v7287_v3  ;;  %v7278_v25 = vld [vmem:[%s7812_s3 + $0x90] sm:$0xff] }
 0xe71   : > { %v4596_v23 = vand.u32 2147483647, %v9463_v60  ;;  %v4603_v41 = vmul.f32 %v9580_v38, %v9531_v9  ;;  %v7556_v29 = vpop.eup %7555  ;;  %v9591_v35 = vmul.f32 %v5072_v1, %v9244_v45  ;;  %v5074_v51 = vadd.f32 1.0, %v5050_v34  ;;  %vm9596_vm15 = vmor %vm4592_vm13, %vm4593_vm12  ;;  %v7261_v60 = vld [vmem:[%s7812_s3 + $0x8] sm:$0xff] }
 0xe72   : > { %v4860_v14 = vadd.f32 0.2548296, %v4836_v31  ;;  %vm4214_vm14 = vcmp.ge.f32.partialorder %v9377_v17, 0.0  ;;  %v4837_v13 = vmul.f32 %v4813_v63, %v9469_v49  ;;  %v4595_v45 = vsel %vm9596_vm15, %v9495_v44, %v4591_v42  ;;  %5387 = vmatpush.bf16.msrb.mxu0 %v7261_v60  ;;  %5434 = vmatpush.bf16.msrb.mxu2 %v7278_v25  ;;  %v7268_v17 = vld [vmem:[%s7812_s3 + $0x40] sm:$0xff] }
 0xe73   : > { %v4977_v1 = vmul.f32 1.442695, %v4935_v30  ;;  %v9607_v61 = vmul.f32 0.70710677, %v9578_v43  ;;  %v5027_v0 = vsub.f32 1.0, %v5003_v16  ;;  %v4742_v34 = vmul.f32 %v4718_v56, %v9543_v50  ;;  %v7286_v30 = vld [vmem:[%s7812_s3 + $0xd0] sm:$0xff] }
 0xe74   : > { %v4599_v31 = vor.u32 1.1754944e-38, %v4598_v4  ;;  %v4604_v32 = vsub.f32 1.0, %v4603_v41  ;;  %v9612_v63 = vmul.f32 %v5073_v28, %v9259_v26  ;;  %7559 = vpow2.f32 %v4973_v40  ;;  %v4122_v26 = vpop.f32.mrf.mxu2  ;;  %5411 = vmatpush.bf16.msrb.mxu1 %v7269_v55  ;;  %v7260_v28 = vld [vmem:[%s7812_s3] sm:$0xff]  ;;  %5458 = vmatpush.bf16.msra.mxu3 %v7286_v30  ;;  %v7285_v55 = vld [vmem:[%s7812_s3 + $0xc8] sm:$0xff] }
 0xe75   : > { %v9617_v44 = vsel %vm4214_vm14, 1.0, %v10003_v59  ;;  %vm4597_vm0 = vcmp.eq.f32.partialorder %v4596_v23, 8.507059e+37  ;;  %v4884_v16 = vmul.f32 %v4860_v14, %v9429_v39  ;;  %7561 = vpow2.f32 %v4975_v57  ;;  %v7277_v14 = vld [vmem:[%s7812_s3 + $0x88] sm:$0xff]  ;;  %v7284_v30 = vld [vmem:[%s7812_s3 + $0xc0] sm:$0xff] }
 0xe76   : > { %v9620_v42 = vpop.eup %7557  ;;  %v9623_v56 = vsel %vm4597_vm0, %v4599_v31, %v4595_v45  ;;  %v9626_v4 = vand.u32 2147483647, %v9607_v61  ;;  %v9631_v40 = vmul.f32 %v5074_v51, %v9347_v6  ;;  %v4861_v21 = vadd.f32 0.2548296, %v4837_v13  ;;  %5388 = vmatpush.bf16.msrb.mxu0 %v7260_v28  ;;  %5435 = vmatpush.bf16.msrb.mxu2 %v7277_v14 }
 0xe77   : > { %7563 = vpow2.f32 %v4977_v1  ;;  %v4618_v39 = vmul.f32 %v9620_v42, %v9571_v8  ;;  %v5051_v3 = vmul.f32 %v5027_v0, %v9453_v15  ;;  %v4766_v57 = vadd.f32 1.4214138, %v4742_v34 }
 0xe78   : > { %v4605_v23 = vmul.f32 %v9580_v38, %v4604_v32  ;;  %v4290_v41 = vmul.f32 0.3275911, %v9626_v4  ;;  %v4695_v19 = vmul.f32 1.0614054, %v9623_v56  ;;  %v9641_v6 = vmul.f32 0.5, %v9491_v47  ;;  %5412 = vmatpush.bf16.msrb.mxu1 %v7268_v17  ;;  %5459 = vmatpush.bf16.msra.mxu3 %v7285_v55 }
 0xe79   : > { %v4619_v51 = vsub.f32 1.0, %v4618_v39  ;;  %v9644_v60 = vadd.f32 %v4122_v26, %v8752_v27  ;;  %v5004_v13 = vmul.f32 %v7556_v29, %v4884_v16  ;;  %v4613_v15 = vand.u32 2147483648, %v9531_v9 }
 0xe7a   : > { %v4628_v45 = vand.u32 2147483648, %v9571_v8  ;;  %v9649_v1 = vadd.f32 1.0, %v4290_v41  ;;  %v7560_v0 = vpop.eup %7559  ;;  %v4885_v47 = vmul.f32 %v4861_v21, %v9469_v49  ;;  %vm4623_vm1 = vweird.f32 %v9620_v42  ;;  %v7276_v49 = vld [vmem:[%s7812_s3 + $0x80] sm:$0xff] }
 0xe7b   : > { %v4620_v34 = vmul.f32 %v9620_v42, %v4619_v51  ;;  %v4626_v27 = vand.u32 2147483647, %v9571_v8  ;;  %v10023_v29 = vpack.c.bf16 %v9161_v18, %v9065_v7  ;;  %v9658_v31 = vpop.eup %7561  ;;  %v4790_v32 = vmul.f32 %v4766_v57, %v9543_v50  ;;  %5436 = vmatpush.bf16.msrb.mxu2 %v7276_v49 }
 0xe7c   : > { %v4606_v25 = vadd.f32 %v9580_v38, %v4605_v23  ;;  %vm4608_vm2 = vweird.f32 %v9580_v38  ;;  %7565 = vrcp.f32 %v9649_v1  ;;  %v4719_v26 = vadd.f32 -1.4531521, %v4695_v19  ;;  %5460 = vmatpush.bf16.msra.mxu3 %v7284_v30 }
 0xe7d   : > { %5389 = vmatmul.bf16.vlgmr.msrb.gmra.mxu0 %v10023_v29  ;;  %v9666_v16 = vpop.eup %7563  ;;  %v4621_v28 = vadd.f32 %v9620_v42, %v4620_v34  ;;  %vm4622_vm3 = vweird.f32 %v9571_v8  ;;  %v9671_v7 = vmul.f32 0.70710677, %v9644_v60  ;;  %v10024_v18 = vpack.c.bf16 %v9186_v24, %v9074_v48  ;;  %v4146_v24 = vpop.f32.mrf.mxu3  ;;  %v10029_v34 = vld [vmem:[#allocation14_spill] sm:$0xff] }
 0xe7e   : > { %v5075_v17 = vadd.f32 1.0, %v5051_v3  ;;  %vm4607_vm4 = vweird.f32 %v9531_v9  ;;  %v4611_v21 = vand.u32 2147483647, %v9531_v9  ;;  %vm4624_vm5 = vmor %vm4622_vm3, %vm4623_vm1  ;;  %v4629_v39 = vor.u32 1.1754944e-38, %v4628_v45 }
 0xe7f   : > { %5413 = vmatmul.bf16.vlgmr.msrb.gmra.mxu1 %v10024_v18  ;;  %v5028_v57 = vsub.f32 1.0, %v5004_v13  ;;  %vm9682_vm7 = vmor %vm4607_vm4, %vm4608_vm2  ;;  %v4614_v23 = vor.u32 1.1754944e-38, %v4613_v15  ;;  %v4625_v48 = vsel %vm4624_vm5, %v9620_v42, %v4621_v28  ;;  %vm4627_vm8 = vcmp.eq.f32.partialorder %v4626_v27, 8.507059e+37 }
 0xe80   : > { %v5005_v3 = vmul.f32 %v7560_v0, %v4885_v47  ;;  %v4610_v9 = vsel %vm9682_vm7, %v9580_v38, %v4606_v25  ;;  %v9690_v41 = vsel %vm4627_vm8, %v4629_v39, %v4625_v48  ;;  %v4913_v14 = vsub.f32 0.0, %v9534_v20  ;;  %v10028_v47 = vld [vmem:[#allocation15_spill] sm:$0xff] }
 0xe81   : > { %v4814_v19 = vadd.f32 -0.28449672, %v4790_v32  ;;  %v4743_v51 = vmul.f32 %v4719_v26, %v9623_v56  ;;  %v4697_v55 = vmul.f32 1.0614054, %v9690_v41  ;;  %v9696_v13 = vand.u32 2147483647, %v9671_v7 }
 0xe82   : > { %v10027_v42 = vpack.c.bf16 %v9282_v2, %v9086_v33  ;;  %v7566_v15 = vpop.eup %7565  ;;  %v9702_v45 = vmul.f32 %v5075_v17, %v9402_v37  ;;  %vm4612_vm9 = vcmp.eq.f32.partialorder %v4611_v21, 8.507059e+37  ;;  %v4912_v38 = vsub.f32 0.0, %v9500_v36 }
 0xe83   : > { %v9706_v0 = vadd.f32 %v4146_v24, %v8754_v62  ;;  %v10030_v27 = vpack.c.bf16 %v10028_v47, %v10029_v34  ;;  %v9711_v29 = vsel %vm4612_vm9, %v4614_v23, %v4610_v9  ;;  %vm4217_vm10 = vcmp.ge.f32.partialorder %v9510_v11, 0.0 }
 0xe84   : > { %5437 = vmatmul.bf16.vlgmr.msrb.gmra.mxu2 %v10027_v42  ;;  %v4721_v33 = vadd.f32 -1.4531521, %v4697_v55  ;;  %v4633_v2 = vmul.f32 %v7566_v15, %v9649_v1  ;;  %v5052_v37 = vmul.f32 %v5028_v57, %v9553_v52  ;;  %v5029_v32 = vsub.f32 1.0, %v5005_v3 }
 0xe85   : > { %5461 = vmatmul.bf16.vlgmr.msra.gmra.mxu3 %v10030_v27  ;;  %v4937_v25 = vmul.f32 %v4913_v14, %v9534_v20  ;;  %v4291_v49 = vmul.f32 0.3275911, %v9696_v13  ;;  %v4838_v62 = vmul.f32 %v4814_v19, %v9543_v50  ;;  %v4767_v30 = vadd.f32 1.4214138, %v4743_v51 }
 0xe86   : > { %v4745_v26 = vmul.f32 %v4721_v33, %v9690_v41  ;;  %v4634_v28 = vsub.f32 1.0, %v4633_v2  ;;  %v4696_v18 = vmul.f32 1.0614054, %v9711_v29  ;;  %v4643_v17 = vand.u32 2147483648, %v9649_v1 }
 0xe87   : > { %v9722_v21 = vadd.f32 1.0, %v4291_v49  ;;  %v9725_v39 = vmul.f32 0.70710677, %v9706_v0  ;;  %vm4638_vm11 = vweird.f32 %v7566_v15  ;;  %v4641_v20 = vand.u32 2147483647, %v9649_v1 }
 0xe88   : > { %v4769_v52 = vadd.f32 1.4214138, %v4745_v26  ;;  %v4635_v57 = vmul.f32 %v7566_v15, %v4634_v28  ;;  %v5076_v8 = vadd.f32 1.0, %v5052_v37  ;;  %v9731_v23 = vsel %vm4217_vm10, 1.0, %v10003_v59  ;;  %v10031_v37 = vld [vmem:[#allocation17_spill] sm:$0xff] }
 0xe89   : > { %v4981_v48 = vmul.f32 1.442695, %v4937_v25  ;;  %7567 = vrcp.f32 %v9722_v21  ;;  %v4862_v24 = vadd.f32 0.2548296, %v4838_v62  ;;  %vm4637_vm12 = vweird.f32 %v9649_v1 }
 0xe8a   : > { %v4793_v3 = vmul.f32 %v4769_v52, %v9690_v41  ;;  %v4636_v9 = vadd.f32 %v7566_v15, %v4635_v57  ;;  %v5053_v14 = vmul.f32 %v5029_v32, %v9564_v5  ;;  %v4720_v19 = vadd.f32 -1.4531521, %v4696_v18  ;;  %vm4639_vm13 = vmor %vm4637_vm12, %vm4638_vm11 }
 0xe8b   : > { %v4644_v51 = vor.u32 1.1754944e-38, %v4643_v17  ;;  %v9738_v55 = vand.u32 2147483647, %v9725_v39  ;;  %v4791_v11 = vmul.f32 %v4767_v30, %v9623_v56  ;;  %vm4642_vm14 = vcmp.eq.f32.partialorder %v4641_v20, 8.507059e+37 }
 0xe8c   : > { %v4817_v42 = vadd.f32 -0.28449672, %v4793_v3  ;;  %v4640_v47 = vsel %vm4639_vm13, %v7566_v15, %v4636_v9  ;;  %7569 = vpow2.f32 %v4981_v48  ;;  %v4914_v27 = vsub.f32 0.0, %v9626_v4 }
 0xe8d   : > { %v9741_v34 = vsel %vm4642_vm14, %v4644_v51, %v4640_v47  ;;  %v4292_v1 = vmul.f32 0.3275911, %v9738_v55  ;;  %v4886_v5 = vmul.f32 %v4862_v24, %v9543_v50  ;;  %v5113_v32 = vpack.c.bf16 %v9612_v63, %v10031_v37 }
 0xe8e   : > { %v4841_v33 = vmul.f32 %v4817_v42, %v9690_v41  ;;  %v4698_v2 = vmul.f32 1.0614054, %v9741_v34  ;;  %v4744_v15 = vmul.f32 %v4720_v19, %v9711_v29  ;;  %v4936_v49 = vmul.f32 %v4912_v38, %v9500_v36 }
 0xe8f   : > { %v7568_v25 = vpop.eup %7567  ;;  %v9752_v62 = vadd.f32 1.0, %v4292_v1  ;;  %v5114_v30 = vpack.c.bf16 %v9631_v40, %v9440_v12  ;;  %v5100_v26 = vmul.f32 %v5076_v8, %v9478_v58  ;;  %5394 = vmatmul.bf16.gmra.mxu0 %v5113_v32  ;;  %v5077_v17 = vadd.f32 1.0, %v5053_v14 }
 0xe90   : > { %v4865_v50 = vadd.f32 0.2548296, %v4841_v33  ;;  %v4722_v28 = vadd.f32 -1.4531521, %v4698_v2  ;;  %v4648_v18 = vmul.f32 %v7568_v25, %v9722_v21  ;;  %v4815_v52 = vadd.f32 -0.28449672, %v4791_v11 }
 0xe91   : > { %v4938_v63 = vmul.f32 %v4914_v27, %v9626_v4  ;;  %7571 = vrcp.f32 %v9752_v62  ;;  %5418 = vmatmul.bf16.gmra.mxu1 %v5114_v30  ;;  %v5006_v36 = vmul.f32 %v9658_v31, %v4886_v5  ;;  %v4768_v57 = vadd.f32 1.4214138, %v4744_v15 }
 0xe92   : > { %v4889_v38 = vmul.f32 %v4865_v50, %v9690_v41  ;;  %v4746_v12 = vmul.f32 %v4722_v28, %v9741_v34  ;;  %v4649_v40 = vsub.f32 1.0, %v4648_v18  ;;  %v7570_v58 = vpop.eup %7569  ;;  %v4656_v20 = vand.u32 2147483647, %v9722_v21 }
 0xe93   : > { %v4658_v8 = vand.u32 2147483648, %v9722_v21  ;;  %v5115_v48 = vpack.c.bf16 %v9702_v45, %v9529_v53  ;;  %vm4653_vm15 = vweird.f32 %v7568_v25  ;;  %v5101_v31 = vmul.f32 %v5077_v17, %v9482_v22 }
 0xe94   : > { %v5009_v4 = vmul.f32 %v7570_v58, %v4889_v38  ;;  %v4770_v24 = vadd.f32 1.4214138, %v4746_v12  ;;  %v4650_v3 = vmul.f32 %v7568_v25, %v4649_v40  ;;  %v4839_v41 = vmul.f32 %v4815_v52, %v9623_v56 }
 0xe95   : > { %v4983_v9 = vmul.f32 1.442695, %v4938_v63  ;;  %5442 = vmatmul.bf16.gmra.mxu2 %v5115_v48  ;;  %v5116_v14 = vpack.c.bf16 %v5100_v26, %v9591_v35  ;;  %vm4652_vm0 = vweird.f32 %v9722_v21  ;;  %v5030_v53 = vsub.f32 1.0, %v5006_v36 }
 0xe96   : > { %v5033_v19 = vsub.f32 1.0, %v5009_v4  ;;  %v4794_v51 = vmul.f32 %v4770_v24, %v9741_v34  ;;  %v4651_v11 = vadd.f32 %v7568_v25, %v4650_v3  ;;  %v4792_v45 = vmul.f32 %v4768_v57, %v9711_v29  ;;  %vm4654_vm1 = vmor %vm4652_vm0, %vm4653_vm15 }
 0xe97   : > { %v7572_v42 = vpop.eup %7571  ;;  %vm4657_vm2 = vcmp.eq.f32.partialorder %v4656_v20, 8.507059e+37  ;;  %v4659_v47 = vor.u32 1.1754944e-38, %v4658_v8  ;;  %5466 = vmatmul.bf16.gmra.mxu3 %v5116_v14  ;;  %v4863_v5 = vadd.f32 0.2548296, %v4839_v41  ;;  %7573 = vpow2.f32 %v4983_v9 }
 0xe98   : > { %v5057_v22 = vmul.f32 %v5033_v19, %v9731_v23  ;;  %v4818_v27 = vadd.f32 -0.28449672, %v4794_v51  ;;  %v4655_v1 = vsel %vm4654_vm1, %v7568_v25, %v4651_v11  ;;  %v4663_v35 = vmul.f32 %v7572_v42, %v9752_v62  ;;  %v10032_v51 = vld [vmem:[#allocation16_spill] sm:$0xff] }
 0xe99   : > { %v9775_v33 = vsel %vm4657_vm2, %v4659_v47, %v4655_v1  ;;  %v4915_v21 = vsub.f32 0.0, %v9696_v13  ;;  %v4816_v30 = vadd.f32 -0.28449672, %v4792_v45  ;;  %vm4668_vm3 = vweird.f32 %v7572_v42 }
 0xe9a   : > { %v5081_v2 = vadd.f32 1.0, %v5057_v22  ;;  %v4842_v37 = vmul.f32 %v4818_v27, %v9741_v34  ;;  %v4699_v32 = vmul.f32 1.0614054, %v9775_v33  ;;  %v4664_v15 = vsub.f32 1.0, %v4663_v35 }
 0xe9b   : > { %v4671_v23 = vand.u32 2147483647, %v9752_v62  ;;  %v4673_v25 = vand.u32 2147483648, %v9752_v62  ;;  %v4979_v17 = vmul.f32 1.442695, %v4936_v49  ;;  %vm4218_vm4 = vcmp.ge.f32.partialorder %v9607_v61, 0.0 }
 0xe9c   : > { %v5105_v26 = vmul.f32 %v5081_v2, %v9641_v6  ;;  %v4866_v50 = vadd.f32 0.2548296, %v4842_v37  ;;  %v4723_v28 = vadd.f32 -1.4531521, %v4699_v32  ;;  %v4665_v18 = vmul.f32 %v7572_v42, %v4664_v15 }
 0xe9d   : > { %v4939_v52 = vmul.f32 %v4915_v21, %v9696_v13  ;;  %vm4667_vm5 = vweird.f32 %v9752_v62  ;;  %v7574_v40 = vpop.eup %7573  ;;  %v5054_v58 = vmul.f32 %v5030_v53, %v9617_v44  ;;  %v4887_v6 = vmul.f32 %v4863_v5, %v9623_v56 }
 0xe9e   : > { %v4890_v63 = vmul.f32 %v4866_v50, %v9741_v34  ;;  %v4747_v36 = vmul.f32 %v4723_v28, %v9775_v33  ;;  %v4666_v38 = vadd.f32 %v7572_v42, %v4665_v18  ;;  %v5117_v12 = vpack.c.bf16 %v5105_v26, %v5101_v31  ;;  %vm4669_vm7 = vmor %vm4667_vm5, %vm4668_vm3 }
 0xe9f   : > { %v4840_v57 = vmul.f32 %v4816_v30, %v9711_v29  ;;  %v4674_v49 = vor.u32 1.1754944e-38, %v4673_v25  ;;  %vm4672_vm8 = vcmp.eq.f32.partialorder %v4671_v23, 8.507059e+37  ;;  %v4985_v34 = vmul.f32 1.442695, %v4939_v52  ;;  %v10033_v52 = vld [vmem:[#allocation18_spill] sm:$0xff] }
 0xea0   : > { %v5010_v20 = vmul.f32 %v7574_v40, %v4890_v63  ;;  %v4771_v13 = vadd.f32 1.4214138, %v4747_v36  ;;  %v4670_v8 = vsel %vm4669_vm7, %v7572_v42, %v4666_v38  ;;  %5399 = vmatmul.bf16.gmra.mxu0 %v5117_v12  ;;  %v4916_v48 = vsub.f32 0.0, %v9738_v55 }
 0xea1   : > { %v4675_v62 = vsel %vm4672_vm8, %v4674_v49, %v4670_v8  ;;  %v5078_v3 = vadd.f32 1.0, %v5054_v58  ;;  %v5007_v56 = vmul.f32 %v9666_v16, %v4887_v6  ;;  %7575 = vpow2.f32 %v4979_v17 }
 0xea2   : > { %v5034_v4 = vsub.f32 1.0, %v5010_v20  ;;  %v4795_v24 = vmul.f32 %v4771_v13, %v9775_v33  ;;  %v4700_v44 = vmul.f32 1.0614054, %v4675_v62  ;;  %v4242_v31 = vsel %vm4218_vm4, 1.0, %v10003_v59 }
 0xea3   : > { %v4864_v41 = vadd.f32 0.2548296, %v4840_v57  ;;  %v4166_v11 = vmul.f32 0.5, %v10032_v51  ;;  %7577 = vpow2.f32 %v4985_v34  ;;  %v4940_v42 = vmul.f32 %v4916_v48, %v9738_v55 }
 0xea4   : > { %v5058_v9 = vmul.f32 %v5034_v4, %v4242_v31  ;;  %v4819_v14 = vadd.f32 -0.28449672, %v4795_v24  ;;  %v4724_v19 = vadd.f32 -1.4531521, %v4700_v44  ;;  %v4170_v53 = vmul.f32 0.5, %v9578_v43 }
 0xea5   : > { %v5102_v22 = vmul.f32 %v5078_v3, %v4166_v11  ;;  %vm4215_vm9 = vcmp.ge.f32.partialorder %v9413_v10, 0.0  ;;  %v5031_v61 = vsub.f32 1.0, %v5007_v56  ;;  %v4888_v27 = vmul.f32 %v4864_v41, %v9711_v29  ;;  %v10036_v11 = vld [vmem:[#allocation8_spill] sm:$0xff] }
 0xea6   : > { %v5082_v45 = vadd.f32 1.0, %v5058_v9  ;;  %v4843_v47 = vmul.f32 %v4819_v14, %v9775_v33  ;;  %v4748_v16 = vmul.f32 %v4724_v19, %v4675_v62  ;;  %v4987_v2 = vmul.f32 1.442695, %v4940_v42 }
 0xea7   : > { %v7576_v21 = vpop.eup %7575  ;;  %v4239_v15 = vsel %vm4215_vm9, 1.0, %v10003_v59  ;;  %vm4219_vm10 = vcmp.ge.f32.partialorder %v9671_v7, 0.0  ;;  %vm4216_vm11 = vcmp.ge.f32.partialorder %v9488_v46, 0.0  ;;  %v4167_v63 = vmul.f32 0.5, %v10033_v52 }
 0xea8   : > { %v5106_v1 = vmul.f32 %v5082_v45, %v4170_v53  ;;  %v4867_v35 = vadd.f32 0.2548296, %v4843_v47  ;;  %v4772_v5 = vadd.f32 1.4214138, %v4748_v16  ;;  %v5055_v30 = vmul.f32 %v5031_v61, %v4239_v15 }
 0xea9   : > { %v7578_v43 = vpop.eup %7577  ;;  %v5008_v23 = vmul.f32 %v7576_v21, %v4888_v27  ;;  %7579 = vpow2.f32 %v4987_v2  ;;  %v4243_v50 = vsel %vm4219_vm10, 1.0, %v10003_v59  ;;  %v4171_v7 = vmul.f32 0.5, %v9644_v60  ;;  %v10037_v27 = vld [vmem:[#allocation9_spill] sm:$0xff] }
 0xeaa   : > { %v4891_v37 = vmul.f32 %v4867_v35, %v9775_v33  ;;  %v4796_v55 = vmul.f32 %v4772_v5, %v4675_v62  ;;  %v5118_v32 = vpack.c.bf16 %v5106_v1, %v5102_v22  ;;  %v5079_v33 = vadd.f32 1.0, %v5055_v30  ;;  %v10038_v30 = vld [vmem:[#allocation10_spill] sm:$0xff] }
 0xeab   : > { %v5032_v28 = vsub.f32 1.0, %v5008_v23  ;;  %v4240_v40 = vsel %vm4216_vm11, 1.0, %v10003_v59  ;;  %vm4220_vm12 = vcmp.ge.f32.partialorder %v9725_v39, 0.0  ;;  %v4168_v60 = vmul.f32 0.5, %v9473_v54 }
 0xeac   : > { %v5011_v10 = vmul.f32 %v7578_v43, %v4891_v37  ;;  %v4820_v25 = vadd.f32 -0.28449672, %v4796_v55  ;;  %5423 = vmatmul.bf16.gmra.mxu1 %v5118_v32  ;;  %v5103_v58 = vmul.f32 %v5079_v33, %v4167_v63  ;;  %v4244_v13 = vsel %vm4220_vm12, 1.0, %v10003_v59  ;;  %v7362_v59 = vld [vmem:[%s10035_s8] ss:$0 sm:$0xff] }
 0xead   : > { %v5056_v6 = vmul.f32 %v5032_v28, %v4240_v40  ;;  %v10039_v28 = vld [vmem:[#allocation11_spill] sm:$0xff] }
 0xeae   : > { %v5035_v29 = vsub.f32 1.0, %v5011_v10  ;;  %v4844_v26 = vmul.f32 %v4820_v25, %v4675_v62 }
 0xeaf   : > { %v7580_v12 = vpop.eup %7579  ;;  %v5080_v8 = vadd.f32 1.0, %v5056_v6 }
 0xeb0   : > { %v5059_v18 = vmul.f32 %v5035_v29, %v4243_v50  ;;  %v4868_v17 = vadd.f32 0.2548296, %v4844_v26 }
 0xeb1   : > { %v5104_v4 = vmul.f32 %v5080_v8, %v4168_v60 }
 0xeb2   : > { %v5083_v36 = vadd.f32 1.0, %v5059_v18  ;;  %v4892_v38 = vmul.f32 %v4868_v17, %v4675_v62  ;;  %v4172_v62 = vmul.f32 0.5, %v9706_v0 }
 0xeb4   : > { %v5107_v46 = vmul.f32 %v5083_v36, %v4171_v7  ;;  %v5012_v57 = vmul.f32 %v7580_v12, %v4892_v38 }
 0xeb6   : > { %v5036_v49 = vsub.f32 1.0, %v5012_v57  ;;  %v5119_v20 = vpack.c.bf16 %v5107_v46, %v5103_v58 }
 0xeb8   : > { %v5060_v34 = vmul.f32 %v5036_v49, %v4244_v13  ;;  %5447 = vmatmul.bf16.gmra.mxu2 %v5119_v20  ;;  %v10040_v20 = vld [vmem:[#allocation12_spill] sm:$0xff] }
 0xeba   : > { %v5084_v48 = vadd.f32 1.0, %v5060_v34 }
 0xebc   : > { %v5108_v39 = vmul.f32 %v5084_v48, %v4172_v62  ;;  %v10041_v62 = vld [vmem:[#allocation13_spill] sm:$0xff] }
 0xebe   : > { %v5120_v24 = vpack.c.bf16 %v5108_v39, %v5104_v4 }
 0xec0   : > { %5471 = vmatmul.bf16.gmra.mxu3 %v5120_v24 }
 0xefa   : > { %v5390_v44 = vpop.f32.mrf.mxu0 }
 0xefb   : > { %v5391_v3 = vadd.f32 %v7362_v59, %v5390_v44 }
 0xefc   : > { %v5414_v56 = vpop.f32.mrf.mxu1 }
 0xefd   : > { %v5415_v31 = vadd.f32 %v5414_v56, %v5391_v3 }
 0xf02   : > { %v5392_v41 = vpop.f32.mrf.mxu0 }
 0xf03   : > { %v5393_v14 = vadd.f32 %v7362_v59, %v5392_v41 }
 0xf04   : > { %v5416_v51 = vpop.f32.mrf.mxu1 }
 0xf05   : > { %v5417_v53 = vadd.f32 %v5416_v51, %v5393_v14 }
 0xf07   : > { %v5438_v54 = vpop.f32.mrf.mxu2 }
 0xf08   : > { %v5439_v9 = vadd.f32 %v5438_v54, %v5415_v31  ;;  %v5462_v0 = vpop.f32.mrf.mxu3 }
 0xf0a   : > { %v5463_v19 = vadd.f32 %v5462_v0, %v5439_v9 }
 0xf0c   : > { %v9825_v42 = vadd.f32 %v5463_v19, %v10036_v11  ;;  %v5395_v47 = vpop.f32.mrf.mxu0 }
 0xf0d   : > { %v5396_v35 = vadd.f32 %v7362_v59, %v5395_v47 }
 0xf0e   : > { %5483 = vst [vmem:[#allocation2 + $0x28] sm:$0xff] %v9825_v42  ;;  %v5419_v5 = vpop.f32.mrf.mxu1 }
 0xf0f   : > { %v5440_v45 = vpop.f32.mrf.mxu2  ;;  %v5420_v21 = vadd.f32 %v5419_v5, %v5396_v35 }
 0xf10   : > { %v5441_v16 = vadd.f32 %v5440_v45, %v5417_v53  ;;  %v5464_v22 = vpop.f32.mrf.mxu3 }
 0xf12   : > { %v5465_v61 = vadd.f32 %v5464_v22, %v5441_v16 }
 0xf14   : > { %v9829_v1 = vadd.f32 %v5465_v61, %v10037_v27  ;;  %v5397_v2 = vpop.f32.mrf.mxu0 }
 0xf15   : > { %v5398_v43 = vadd.f32 %v7362_v59, %v5397_v2 }
 0xf16   : > { %5484 = vst [vmem:[#allocation2 + $0x10] sm:$0xff] %v9829_v1  ;;  %v5421_v10 = vpop.f32.mrf.mxu1 }
 0xf17   : > { %v5422_v25 = vadd.f32 %v5421_v10, %v5398_v43 }
 0xf18   : > { %v5443_v37 = vpop.f32.mrf.mxu2 }
 0xf19   : > { %v5444_v55 = vadd.f32 %v5443_v37, %v5420_v21 }
 0xf1a   : > { %v5467_v32 = vpop.f32.mrf.mxu3 }
 0xf1b   : > { %v5468_v15 = vadd.f32 %v5467_v32, %v5444_v55 }
 0xf1d   : > { %v9833_v23 = vadd.f32 %v5468_v15, %v10038_v30  ;;  %v5400_v17 = vpop.f32.mrf.mxu0 }
 0xf1e   : > { %v5401_v52 = vadd.f32 %v7362_v59, %v5400_v17 }
 0xf1f   : > { %5485 = vst [vmem:[#allocation2 + $0x8] sm:$0xff] %v9833_v23 }
 0xf20   : > { %v5445_v29 = vpop.f32.mrf.mxu2 }
 0xf21   : > { %v5446_v26 = vadd.f32 %v5445_v29, %v5422_v25 }
 0xf22   : > { %v5469_v50 = vpop.f32.mrf.mxu3 }
 0xf23   : > { %v5470_v33 = vadd.f32 %v5469_v50, %v5446_v26 }
 0xf25   : > { %v9837_v18 = vadd.f32 %v5470_v33, %v10039_v28  ;;  %v5402_v38 = vpop.f32.mrf.mxu0 }
 0xf26   : > { %v5403_v40 = vadd.f32 %v7362_v59, %v5402_v38 }
 0xf27   : > { %5486 = vst [vmem:[#allocation2] sm:$0xff] %v9837_v18 }
 0xf29   : > { %v5424_v63 = vpop.f32.mrf.mxu1 }
 0xf2a   : > { %v5425_v36 = vadd.f32 %v5424_v63, %v5401_v52 }
 0xf31   : > { %v5426_v46 = vpop.f32.mrf.mxu1 }
 0xf32   : > { %v5427_v49 = vadd.f32 %v5426_v46, %v5403_v40 }
 0xf3b   : > { %v5448_v7 = vpop.f32.mrf.mxu2 }
 0xf3c   : > { %v5449_v12 = vadd.f32 %v5448_v7, %v5425_v36 }
 0xf43   : > { %v5472_v58 = vpop.f32.mrf.mxu3  ;;  %v5450_v57 = vpop.f32.mrf.mxu2 }
 0xf44   : > { %v5473_v6 = vadd.f32 %v5472_v58, %v5449_v12  ;;  %v5451_v8 = vadd.f32 %v5450_v57, %v5427_v49 }
 0xf46   : > { %v9841_v13 = vadd.f32 %v5473_v6, %v10040_v20 }
 0xf48   : > { %5487 = vst [vmem:[#allocation2 + $0x18] sm:$0xff] %v9841_v13 }
 0xf4b   : > { %v5474_v34 = vpop.f32.mrf.mxu3 }
 0xf4c   : > { %v5475_v60 = vadd.f32 %v5474_v34, %v5451_v8  ;;  %5493 = sbr.rel (%p7027_p9) target bundleno = 4279 (0x10b7), region = 104 }
 0xf4e   : > { %v9845_v48 = vadd.f32 %v5475_v60, %v10041_v62 }
 0xf50   : > { %5488 = vst [vmem:[#allocation2 + $0x20] sm:$0xff] %v9845_v48 }
 0xf51   : > { %v7299_v4 = vld [vmem:[%s7822_s25 + $0x38] sm:$0xff]  ;;  %v7298_v24 = vld [vmem:[%s7822_s25 + $0x30] sm:$0xff]  ;;  %v7297_v59 = vld [vmem:[%s7822_s25 + $0x28] sm:$0xff]  ;;  %v5494_v53 = vpack.c.bf16 %v9829_v1, %v9825_v42  ;;  %v5495_v45 = vpack.c.bf16 %v9837_v18, %v9833_v23  ;;  %v5496_v47 = vpack.c.bf16 %v9845_v48, %v9841_v13 }
 0xf52   : > { %v7309_v39 = vld [vmem:[%s7832_s14 + $0x38] sm:$0xff]  ;;  %5561 = vmatpush.bf16.msra.mxu0 %v7299_v4  ;;  %v7308_v44 = vld [vmem:[%s7832_s14 + $0x30] sm:$0xff]  ;;  %v7307_v3 = vld [vmem:[%s7832_s14 + $0x28] sm:$0xff] }
 0xf53   : > { %5737 = vmatpush.bf16.msra.mxu2 %v7309_v39  ;;  %v7296_v56 = vld [vmem:[%s7822_s25 + $0x20] sm:$0xff]  ;;  %v7295_v41 = vld [vmem:[%s7822_s25 + $0x18] sm:$0xff]  ;;  %v7294_v9 = vld [vmem:[%s7822_s25 + $0x10] sm:$0xff] }
 0xf54   : > { %v7306_v31 = vld [vmem:[%s7832_s14 + $0x20] sm:$0xff]  ;;  %v7305_v54 = vld [vmem:[%s7832_s14 + $0x18] sm:$0xff]  ;;  %v7304_v0 = vld [vmem:[%s7832_s14 + $0x10] sm:$0xff] }
 0xf55   : > { %v7293_v14 = vld [vmem:[%s7822_s25 + $0x8] sm:$0xff]  ;;  %v7292_v51 = vld [vmem:[%s7822_s25] sm:$0xff] }
 0xf56   : > { %5562 = vmatpush.bf16.msra.mxu0 %v7298_v24  ;;  %v7303_v19 = vld [vmem:[%s7832_s14 + $0x8] sm:$0xff]  ;;  %v7302_v11 = vld [vmem:[%s7832_s14] sm:$0xff] }
 0xf57   : > { %5738 = vmatpush.bf16.msra.mxu2 %v7308_v44  ;;  %v7301_v16 = vld [vmem:[%s7827_s13 + $0x8] sm:$0xff]  ;;  %v7300_v22 = vld [vmem:[%s7827_s13] sm:$0xff] }
 0xf58   : > { %5637 = vmatpush.bf16.msra.mxu1 %v7301_v16  ;;  %v7311_v61 = vld [vmem:[%s7837_s24 + $0x8] sm:$0xff]  ;;  %v7310_v27 = vld [vmem:[%s7837_s24] sm:$0xff] }
 0xf59   : > { %5813 = vmatpush.bf16.msra.mxu3 %v7311_v61 }
 0xf5a   : > { %5563 = vmatpush.bf16.msra.mxu0 %v7297_v59 }
 0xf5b   : > { %5739 = vmatpush.bf16.msra.mxu2 %v7307_v3 }
 0xf5c   : > { %5638 = vmatpush.bf16.msra.mxu1 %v7300_v22 }
 0xf5d   : > { %5814 = vmatpush.bf16.msra.mxu3 %v7310_v27  ;;  %v5850_v27 = vmul.f32 0.8, %v9829_v1 }
 0xf5e   : > { %5564 = vmatpush.bf16.msra.mxu0 %v7296_v56 }
 0xf5f   : > { %5740 = vmatpush.bf16.msra.mxu2 %v7306_v31 }
 0xf62   : > { %5565 = vmatpush.bf16.msra.mxu0 %v7295_v41 }
 0xf63   : > { %5741 = vmatpush.bf16.msra.mxu2 %v7305_v54 }
 0xf66   : > { %5566 = vmatpush.bf16.msra.mxu0 %v7294_v9 }
 0xf67   : > { %5742 = vmatpush.bf16.msra.mxu2 %v7304_v0  ;;  %v5849_v0 = vmul.f32 0.8, %v9825_v42 }
 0xf6a   : > { %5567 = vmatpush.bf16.msra.mxu0 %v7293_v14 }
 0xf6b   : > { %5743 = vmatpush.bf16.msra.mxu2 %v7303_v19 }
 0xf6e   : > { %5568 = vmatpush.bf16.msra.mxu0 %v7292_v51 }
 0xf6f   : > { %5744 = vmatpush.bf16.msra.mxu2 %v7302_v11 }
 0xf71   : > { %5569 = vmatmul.bf16.vlgmr.msra.gmra.mxu0 %v5494_v53 }
 0xf72   : > { %5745 = vmatmul.bf16.vlgmr.msra.gmra.mxu2 %v5494_v53 }
 0xf81   : > { %5574 = vmatmul.bf16.gmra.mxu0 %v5495_v45 }
 0xf82   : > { %5750 = vmatmul.bf16.gmra.mxu2 %v5495_v45 }
 0xf91   : > { %5579 = vmatmul.bf16.gmra.mxu0 %v5496_v47 }
 0xf92   : > { %5755 = vmatmul.bf16.gmra.mxu2 %v5496_v47 }
 0xfee   : > { %v5570_v35 = vpop.f32.mrf.mxu0 }
 0xfef   : > { %v5591_v5 = vmul.f32 0.01, %v5570_v35  ;;  %vm5585_vm13 = vcmp.ge.f32.partialorder %v5570_v35, 0.0 }
 0xff1   : > { %v5597_v55 = vsel %vm5585_vm13, %v5570_v35, %v5591_v5 }
 0xff5   : > { %v5746_v21 = vpop.f32.mrf.mxu2 }
 0xff6   : > { %v5572_v2 = vpop.f32.mrf.mxu0  ;;  %v5767_v15 = vmul.f32 0.01, %v5746_v21  ;;  %vm5761_vm15 = vcmp.ge.f32.partialorder %v5746_v21, 0.0 }
 0xff7   : > { %vm5586_vm14 = vcmp.ge.f32.partialorder %v5572_v2, 0.0  ;;  %v5592_v37 = vmul.f32 0.01, %v5572_v2 }
 0xff8   : > { %v5773_v29 = vsel %vm5761_vm15, %v5746_v21, %v5767_v15 }
 0xff9   : > { %v5598_v32 = vsel %vm5586_vm14, %v5572_v2, %v5592_v37 }
 0xffa   : > { %v5603_v43 = vpack.c.bf16 %v5598_v32, %v5597_v55 }
 0xffc   : > { %7068 = vmatmul.msk.bf16.vlgmr.msra.gmra.mxu1 %vm1520_vm6, %v5603_v43 }
 0xffd   : > { %v5748_v30 = vpop.f32.mrf.mxu2 }
 0xffe   : > { %vm5762_vm0 = vcmp.ge.f32.partialorder %v5748_v30, 0.0  ;;  %v5768_v10 = vmul.f32 0.01, %v5748_v30  ;;  %v5575_v25 = vpop.f32.mrf.mxu0 }
 0xfff   : > { %v5593_v33 = vmul.f32 0.01, %v5575_v25  ;;  %vm5587_vm1 = vcmp.ge.f32.partialorder %v5575_v25, 0.0 }
0x1000   : > { %v5774_v26 = vsel %vm5762_vm0, %v5748_v30, %v5768_v10  ;;  %v5851_v30 = vmul.f32 0.8, %v9833_v23 }
0x1001   : > { %v5779_v50 = vpack.c.bf16 %v5774_v26, %v5773_v29  ;;  %v5599_v63 = vsel %vm5587_vm1, %v5575_v25, %v5593_v33 }
0x1003   : > { %7111 = vmatmul.msk.bf16.vlgmr.msra.gmra.mxu3 %vm1520_vm6, %v5779_v50 }
0x1005   : > { %v5751_v28 = vpop.f32.mrf.mxu2 }
0x1006   : > { %v5577_v17 = vpop.f32.mrf.mxu0  ;;  %v5769_v38 = vmul.f32 0.01, %v5751_v28  ;;  %vm5763_vm3 = vcmp.ge.f32.partialorder %v5751_v28, 0.0 }
0x1007   : > { %vm5588_vm2 = vcmp.ge.f32.partialorder %v5577_v17, 0.0  ;;  %v5594_v52 = vmul.f32 0.01, %v5577_v17 }
0x1008   : > { %v5775_v6 = vsel %vm5763_vm3, %v5751_v28, %v5769_v38 }
0x1009   : > { %v5600_v7 = vsel %vm5588_vm2, %v5577_v17, %v5594_v52 }
0x100a   : > { %v5604_v36 = vpack.c.bf16 %v5600_v7, %v5599_v63  ;;  %v5852_v63 = vmul.f32 0.8, %v9837_v18 }
0x100c   : > { %7069 = vmatmul.msk.bf16.gmra.mxu1 %vm1520_vm6, %v5604_v36 }
0x100d   : > { %v5753_v12 = vpop.f32.mrf.mxu2 }
0x100e   : > { %vm5764_vm4 = vcmp.ge.f32.partialorder %v5753_v12, 0.0  ;;  %v5770_v40 = vmul.f32 0.01, %v5753_v12  ;;  %v5580_v58 = vpop.f32.mrf.mxu0 }
0x100f   : > { %v5595_v49 = vmul.f32 0.01, %v5580_v58  ;;  %vm5589_vm5 = vcmp.ge.f32.partialorder %v5580_v58, 0.0 }
0x1010   : > { %v5776_v46 = vsel %vm5764_vm4, %v5753_v12, %v5770_v40 }
0x1011   : > { %v5780_v57 = vpack.c.bf16 %v5776_v46, %v5775_v6  ;;  %v5601_v60 = vsel %vm5589_vm5, %v5580_v58, %v5595_v49  ;;  %v5853_v49 = vmul.f32 0.8, %v9841_v13 }
0x1013   : > { %7112 = vmatmul.msk.bf16.gmra.mxu3 %vm1520_vm6, %v5780_v57 }
0x1015   : > { %v5756_v20 = vpop.f32.mrf.mxu2 }
0x1016   : > { %v5582_v8 = vpop.f32.mrf.mxu0  ;;  %v5771_v39 = vmul.f32 0.01, %v5756_v20  ;;  %vm5765_vm8 = vcmp.ge.f32.partialorder %v5756_v20, 0.0 }
0x1017   : > { %vm5590_vm7 = vcmp.ge.f32.partialorder %v5582_v8, 0.0  ;;  %v5596_v34 = vmul.f32 0.01, %v5582_v8 }
0x1018   : > { %v5777_v3 = vsel %vm5765_vm8, %v5756_v20, %v5771_v39 }
0x1019   : > { %v5602_v62 = vsel %vm5590_vm7, %v5582_v8, %v5596_v34 }
0x101a   : > { %v5605_v4 = vpack.c.bf16 %v5602_v62, %v5601_v60 }
0x101c   : > { %7070 = vmatmul.msk.bf16.gmra.mxu1 %vm1520_vm6, %v5605_v4 }
0x101d   : > { %v5758_v24 = vpop.f32.mrf.mxu2 }
0x101e   : > { %vm5766_vm9 = vcmp.ge.f32.partialorder %v5758_v24, 0.0  ;;  %v5772_v44 = vmul.f32 0.01, %v5758_v24 }
0x1020   : > { %v5778_v59 = vsel %vm5766_vm9, %v5758_v24, %v5772_v44  ;;  %v5854_v44 = vmul.f32 0.8, %v9845_v48 }
0x1021   : > { %v5781_v56 = vpack.c.bf16 %v5778_v59, %v5777_v3 }
0x1023   : > { %7113 = vmatmul.msk.bf16.gmra.mxu3 %vm1520_vm6, %v5781_v56 }
0x1079   : > { %v5640_v31 = vpop.f32.mrf.mxu1 }
0x107a   : > { %v5661_v41 = vmul.f32 0.01, %v5640_v31  ;;  %vm5655_vm10 = vcmp.ge.f32.partialorder %v5640_v31, 0.0 }
0x107c   : > { %v5667_v9 = vsel %vm5655_vm10, %v5640_v31, %v5661_v41 }
0x107d   : > { %v5855_v14 = vmul.f32 0.1, %v5667_v9 }
0x107f   : > { %v5861_v45 = vadd.f32 %v5855_v14, %v5849_v0 }
0x1081   : > { %v5642_v54 = vpop.f32.mrf.mxu1 }
0x1082   : > { %v5662_v51 = vmul.f32 0.01, %v5642_v54  ;;  %vm5656_vm12 = vcmp.ge.f32.partialorder %v5642_v54, 0.0 }
0x1084   : > { %v5668_v22 = vsel %vm5656_vm12, %v5642_v54, %v5662_v51 }
0x1085   : > { %v5856_v35 = vmul.f32 0.1, %v5668_v22 }
0x1086   : > { %v5816_v19 = vpop.f32.mrf.mxu3 }
0x1087   : > { %vm5831_vm11 = vcmp.ge.f32.partialorder %v5816_v19, 0.0  ;;  %v5837_v11 = vmul.f32 0.01, %v5816_v19  ;;  %v5862_v37 = vadd.f32 %v5856_v35, %v5850_v27 }
0x1089   : > { %v5843_v53 = vsel %vm5831_vm11, %v5816_v19, %v5837_v11  ;;  %v5645_v16 = vpop.f32.mrf.mxu1 }
0x108a   : > { %v5867_v47 = vmul.f32 0.1, %v5843_v53  ;;  %v5663_v21 = vmul.f32 0.01, %v5645_v16  ;;  %vm5657_vm13 = vcmp.ge.f32.partialorder %v5645_v16, 0.0 }
0x108c   : > { %v5873_v61 = vadd.f32 %v5867_v47, %v5861_v45  ;;  %v5669_v43 = vsel %vm5657_vm13, %v5645_v16, %v5663_v21 }
0x108d   : > { %v5857_v10 = vmul.f32 0.1, %v5669_v43 }
0x108e   : > { %5879 = vst [vmem:[#allocation2 + $0x28] sm:$0xff] %v5873_v61  ;;  %v5818_v5 = vpop.f32.mrf.mxu3 }
0x108f   : > { %vm5832_vm6 = vcmp.ge.f32.partialorder %v5818_v5, 0.0  ;;  %v5838_v42 = vmul.f32 0.01, %v5818_v5  ;;  %v5863_v50 = vadd.f32 %v5857_v10, %v5851_v30 }
0x1091   : > { %v5844_v2 = vsel %vm5832_vm6, %v5818_v5, %v5838_v42  ;;  %v5647_v32 = vpop.f32.mrf.mxu1 }
0x1092   : > { %v5868_v55 = vmul.f32 0.1, %v5844_v2  ;;  %v5664_v29 = vmul.f32 0.01, %v5647_v32  ;;  %vm5658_vm15 = vcmp.ge.f32.partialorder %v5647_v32, 0.0 }
0x1094   : > { %v5874_v15 = vadd.f32 %v5868_v55, %v5862_v37  ;;  %v5670_v17 = vsel %vm5658_vm15, %v5647_v32, %v5664_v29 }
0x1095   : > { %v5858_v7 = vmul.f32 0.1, %v5670_v17 }
0x1096   : > { %5880 = vst [vmem:[#allocation2 + $0x10] sm:$0xff] %v5874_v15  ;;  %v5821_v25 = vpop.f32.mrf.mxu3 }
0x1097   : > { %vm5833_vm14 = vcmp.ge.f32.partialorder %v5821_v25, 0.0  ;;  %v5839_v1 = vmul.f32 0.01, %v5821_v25  ;;  %v5864_v40 = vadd.f32 %v5858_v7, %v5852_v63 }
0x1099   : > { %v5845_v26 = vsel %vm5833_vm14, %v5821_v25, %v5839_v1  ;;  %v5650_v28 = vpop.f32.mrf.mxu1 }
0x109a   : > { %v5869_v33 = vmul.f32 0.1, %v5845_v26  ;;  %v5665_v38 = vmul.f32 0.01, %v5650_v28  ;;  %vm5659_vm1 = vcmp.ge.f32.partialorder %v5650_v28, 0.0 }
0x109c   : > { %v5875_v52 = vadd.f32 %v5869_v33, %v5863_v50  ;;  %v5671_v6 = vsel %vm5659_vm1, %v5650_v28, %v5665_v38 }
0x109d   : > { %v5859_v20 = vmul.f32 0.1, %v5671_v6 }
0x109e   : > { %5881 = vst [vmem:[#allocation2 + $0x8] sm:$0xff] %v5875_v52  ;;  %v5823_v36 = vpop.f32.mrf.mxu3 }
0x109f   : > { %vm5834_vm0 = vcmp.ge.f32.partialorder %v5823_v36, 0.0  ;;  %v5840_v23 = vmul.f32 0.01, %v5823_v36  ;;  %v5865_v62 = vadd.f32 %v5859_v20, %v5853_v49 }
0x10a1   : > { %v5846_v12 = vsel %vm5834_vm0, %v5823_v36, %v5840_v23  ;;  %v5652_v57 = vpop.f32.mrf.mxu1 }
0x10a2   : > { %v5870_v58 = vmul.f32 0.1, %v5846_v12  ;;  %v5666_v34 = vmul.f32 0.01, %v5652_v57  ;;  %vm5660_vm3 = vcmp.ge.f32.partialorder %v5652_v57, 0.0 }
0x10a4   : > { %v5876_v46 = vadd.f32 %v5870_v58, %v5864_v40  ;;  %v5672_v39 = vsel %vm5660_vm3, %v5652_v57, %v5666_v34 }
0x10a5   : > { %v5860_v59 = vmul.f32 0.1, %v5672_v39 }
0x10a6   : > { %5882 = vst [vmem:[#allocation2] sm:$0xff] %v5876_v46  ;;  %v5826_v8 = vpop.f32.mrf.mxu3 }
0x10a7   : > { %vm5835_vm2 = vcmp.ge.f32.partialorder %v5826_v8, 0.0  ;;  %v5841_v18 = vmul.f32 0.01, %v5826_v8  ;;  %v5866_v31 = vadd.f32 %v5860_v59, %v5854_v44 }
0x10a9   : > { %v5847_v60 = vsel %vm5835_vm2, %v5826_v8, %v5841_v18 }
0x10aa   : > { %v5871_v4 = vmul.f32 0.1, %v5847_v60 }
0x10ac   : > { %v5877_v24 = vadd.f32 %v5871_v4, %v5865_v62 }
0x10ae   : > { %5883 = vst [vmem:[#allocation2 + $0x18] sm:$0xff] %v5877_v24  ;;  %v5828_v3 = vpop.f32.mrf.mxu3 }
0x10af   : > { %vm5836_vm4 = vcmp.ge.f32.partialorder %v5828_v3, 0.0  ;;  %v5842_v56 = vmul.f32 0.01, %v5828_v3 }
0x10b1   : > { %v5848_v13 = vsel %vm5836_vm4, %v5828_v3, %v5842_v56 }
0x10b2   : > { %v5872_v41 = vmul.f32 0.1, %v5848_v13 }
0x10b4   : > { %v5878_v54 = vadd.f32 %v5872_v41, %v5866_v31 }
0x10b6   : > { %5884 = vst [vmem:[#allocation2 + $0x20] sm:$0xff] %v5878_v54 }
0x10b7 PF: > { %p7114_p10 = scmp.ne.s32.totalorder %s7748_s1, 23 }
0x10b8   : > { %s10042_s6 = sld [smem:[#allocation36_spill]] (!%p7114_p10) }
0x10b9   : > { %5888 = sbr.rel (%p7114_p10) target bundleno = 4293 (0x10c5), region = 108 }
0x10be   : > { %v5889_v9 = vld [vmem:[#allocation2 + $0x28] sm:$0xff]  ;;  %v5890_v0 = vld [vmem:[#allocation2 + $0x10] sm:$0xff]  ;;  %v5892_v48 = vld [vmem:[#allocation2] sm:$0xff] }
0x10bf   : > { %v5891_v14 = vld [vmem:[#allocation2 + $0x8] sm:$0xff]  ;;  %5895 = vst [vmem:[%s10042_s6] sm:$0xff] %v5889_v9  ;;  %v5893_v19 = vld [vmem:[#allocation2 + $0x18] sm:$0xff]  ;;  %v5894_v51 = vld [vmem:[#allocation2 + $0x20] sm:$0xff] }
0x10c0   : > { %5896 = vst [vmem:[%s10042_s6 + $0x8] sm:$0xff] %v5890_v0 }
0x10c1   : > { %5897 = vst [vmem:[%s10042_s6 + $0x10] sm:$0xff] %v5891_v14 }
0x10c2   : > { %5898 = vst [vmem:[%s10042_s6 + $0x18] sm:$0xff] %v5892_v48 }
0x10c3   : > { %5899 = vst [vmem:[%s10042_s6 + $0x20] sm:$0xff] %v5893_v19 }
0x10c4   : > { %5900 = vst [vmem:[%s10042_s6 + $0x28] sm:$0xff] %v5894_v51 }
0x10c5 PF: > { %s10043_s17 = sld [smem:[#allocation7_spill]] }
0x10cb   : > { %s44_s5 = sadd.s32 1, %s10043_s17  }
0x10cc   : > { %p41_p11 = scmp.ge.s32.totalorder %s44_s5, 26  }
0x10ce   :  { %43 = sbr.rel (!%p41_p11) target bundleno = 32 (0x20), region = 204 }

</bundles_post_ra>
